<compile_context>
chip_gen: v7x
topology: tpu7x:2x2x1
jax: 0.10.0
libtpu: 0.0.40
codegen_flags: <defaults>
</compile_context>

<pallas_src>
import math

import jax
import jax.numpy as jnp
from jax import lax
from jax.experimental import pallas as pl
from jax.experimental.pallas import tpu as pltpu

NUM_GROUPS = 32   # normalization(channels) == GroupNorm(32, channels) in the source
EPS = 1e-5


def _make_kernel(num_heads: int, num_groups: int, channels: int, seq: int, unroll):
    C, S = channels, seq
    d = C // num_heads
    cpg = C // num_groups

    def kernel(x_ref, gamma_ref, beta_ref, wqkv_ref, bqkv_ref,
               wproj_ref, bproj_ref, o_ref, qkv_ref, attn_ref):
        # ---- GroupNorm(num_groups, C) -------------------------------------------------
        # (C, S) -> (G, cpg, S) keeps the lane (S) axis intact; stats are a lane reduce
        # followed by a sublane reduce (no relayout of the whole tile). f32 throughout.
        x = x_ref[0]                                   # (C, S) f32
        xg = x.reshape(num_groups, cpg, S)
        inv_n = 1.0 / (cpg * S)
        mean = jnp.sum(jnp.sum(xg, axis=2, keepdims=True), axis=1, keepdims=True) * inv_n
        xc = xg - mean
        var = jnp.sum(jnp.sum(xc * xc, axis=2, keepdims=True), axis=1, keepdims=True) * inv_n
        xn = (xc * lax.rsqrt(var + EPS)).reshape(C, S)
        xn = (xn * gamma_ref[...] + beta_ref[...]).astype(jnp.bfloat16)

        # ---- qkv 1x1 conv: bf16 MXU matmul, f32 accumulation, bf16 scratch -------------
        # The d**-0.25 scale is pre-folded into the q/k rows of wqkv/bqkv (wrapper).
        qkv_ref[...] = (
            jnp.dot(wqkv_ref[...], xn, preferred_element_type=jnp.float32)
            + bqkv_ref[...]
        ).astype(jnp.bfloat16)                         # (3C, S) bf16 VMEM scratch

        # ---- QKVAttention: one head at a time, deferred softmax normalization ----------
        # Score layout: keys on sublanes, queries on lanes -> the max / sum reductions
        # produce (1, S_q) vectors that broadcast directly over the (d, S_q) PV output,
        # so normalization costs d*S multiplies instead of S^2.
        def head_body(h, carry):
            qs = pl.multiple_of(h * d, d)
            ks = pl.multiple_of(C + h * d, d)
            vs = pl.multiple_of(2 * C + h * d, d)
            q = qkv_ref[pl.ds(qs, d), :]               # (d, S) bf16, pre-scaled
            k = qkv_ref[pl.ds(ks, d), :]               # (d, S) bf16, pre-scaled
            v = qkv_ref[pl.ds(vs, d), :]               # (d, S) bf16
            # w[s, t] = sum_c k[c, s] * q[c, t]  -> (S_keys, S_queries) f32
            w = lax.dot_general(k, q, (((0,), (0,)), ((), ())),
                                preferred_element_type=jnp.float32)
            m = jnp.max(w, axis=0, keepdims=True)      # (1, S_q)
            p = jnp.exp(w - m)                         # un-normalized probabilities
            l = jnp.sum(p, axis=0, keepdims=True)      # (1, S_q)
            # a[c, t] = sum_s v[c, s] * p[s, t]  (bf16 MXU, f32 accumulation)
            a = jnp.dot(v, p.astype(jnp.bfloat16),
                        preferred_element_type=jnp.float32)   # (d, S_q) f32
            a = a * pl.reciprocal(l, approx=True)      # EUP reciprocal, lane broadcast
            attn_ref[pl.ds(qs, d), :] = a.astype(jnp.bfloat16)
            return carry

        # unroll gives the scheduler cross-head visibility (QK^T of head h+1 overlaps the
        # softmax of head h); capped by the wrapper for large S to bound live (S,S) bufs.
        lax.fori_loop(0, num_heads, head_body, 0, unroll=unroll)

        # ---- proj_out 1x1 conv (bf16 MXU) + residual (f32, fresh x load) ---------------
        h_out = (jnp.dot(wproj_ref[...], attn_ref[...],
                         preferred_element_type=jnp.float32)
                 + bproj_ref[...])
        o_ref[0] = x_ref[0] + h_out

    return kernel


def _vmem_limit_bytes(C, S, num_heads, unroll):
    """Generation-aware VMEM budget for one grid step (v5e/v6e: 128 MiB, v7x: 64 MiB)."""
    f32, bf16 = 4, 2
    live_heads = num_heads if unroll is True else max(int(unroll), 1)
    live_heads = min(live_heads, num_heads)
    est = (
        2 * 2 * C * S * f32                      # x input + output blocks, double-buffered
        + 2 * 4 * C * C * bf16                   # qkv (3C,C) + proj (C,C) bf16 weights (2 bufs)
        + 2 * 10 * C * f32                       # gamma/beta/biases (tiny)
        + (3 * C * S + C * S) * bf16             # qkv + attention-output bf16 scratch
        + (1 + live_heads) * 2 * S * S * f32     # live score/exp temporaries (unrolled heads)
    )
    est = est * 3 // 2                           # headroom for compiler temporaries
    try:
        phys = pltpu.get_tpu_info().vmem_capacity_bytes
    except Exception:
        phys = 64 * 1024 * 1024                  # conservative (v7x) if query unavailable
    cap = max(phys - 8 * 1024 * 1024, 32 * 1024 * 1024)
    return int(min(max(est, 32 * 1024 * 1024), cap))


def self_attention_block(x, params, num_heads, num_groups=NUM_GROUPS):
    """x: (B, C, H, W) float32, NCHW. Forward pass of NeMo SelfAttentionBlock."""
    B, C, H, W = x.shape
    S = H * W
    assert C % num_groups == 0 and C % num_heads == 0
    d = C // num_heads
    # d % 8 is the hard layout requirement; d % 16 keeps bf16 (16,128) tiles aligned.
    assert d % 8 == 0, "head_dim must be a multiple of 8 (prefer 16 for bf16 packing)"
    # Perf note: keep S = H*W a multiple of 128 so (1, C, S) blocks are lane-dense.

    x3 = x.reshape(B, C, S).astype(jnp.float32)
    gamma = params["gn_weight"].reshape(C, 1).astype(jnp.float32)
    beta = params["gn_bias"].reshape(C, 1).astype(jnp.float32)

    # Conv1d(kernel=1) weights as matrices. Fold the d**-0.25 attention scale into the
    # q and k rows (one-time parameter transform), then cast matmul weights to bf16.
    scale = 1.0 / math.sqrt(math.sqrt(d))
    wqkv = params["qkv_weight"].reshape(3 * C, C).astype(jnp.float32)
    bqkv = params["qkv_bias"].reshape(3 * C, 1).astype(jnp.float32)
    wqkv = wqkv.at[: 2 * C, :].multiply(scale).astype(jnp.bfloat16)
    bqkv = bqkv.at[: 2 * C, :].multiply(scale)
    wproj = params["proj_weight"].reshape(C, C).astype(jnp.bfloat16)
    bproj = params["proj_bias"].reshape(C, 1).astype(jnp.float32)

    # Fully unroll the head loop for small S; cap at 2 for large S to bound the number of
    # concurrently-live (S, S) score matrices (v7x 64 MiB VMEM).
    unroll = True if S <= 1024 else 2

    kernel = _make_kernel(num_heads, num_groups, C, S, unroll)
    out = pl.pallas_call(
        kernel,
        out_shape=jax.ShapeDtypeStruct((B, C, S), jnp.float32),
        grid_spec=pltpu.PrefetchScalarGridSpec(
            num_scalar_prefetch=0,
            grid=(B,),
            in_specs=[
                pl.BlockSpec((1, C, S), lambda b: (b, 0, 0)),    # x, per-batch tile
                # Grid-invariant parameters: constant index_map -> DMA'd only once.
                pl.BlockSpec((C, 1), lambda b: (0, 0)),          # gamma
                pl.BlockSpec((C, 1), lambda b: (0, 0)),          # beta
                pl.BlockSpec((3 * C, C), lambda b: (0, 0)),      # qkv weight (bf16, q/k scaled)
                pl.BlockSpec((3 * C, 1), lambda b: (0, 0)),      # qkv bias   (q/k scaled)
                pl.BlockSpec((C, C), lambda b: (0, 0)),          # proj weight (bf16)
                pl.BlockSpec((C, 1), lambda b: (0, 0)),          # proj bias
            ],
            out_specs=pl.BlockSpec((1, C, S), lambda b: (b, 0, 0)),
            scratch_shapes=[
                pltpu.VMEM((3 * C, S), jnp.bfloat16),  # qkv activations (persist over head loop)
                pltpu.VMEM((C, S), jnp.bfloat16),      # per-head attention outputs
            ],
        ),
        compiler_params=pltpu.CompilerParams(
            dimension_semantics=("parallel",),
            vmem_limit_bytes=_vmem_limit_bytes(C, S, num_heads, unroll),
        ),
    )(x3, gamma, beta, wqkv, bqkv, wproj, bproj)
    return out.reshape(B, C, H, W)


def reference(x, params, num_heads, num_groups=NUM_GROUPS):
    """Pure-JAX f32 reference mirroring the PyTorch module."""
    B, C, H, W = x.shape
    S = H * W
    x3 = x.reshape(B, C, S)
    xg = x3.reshape(B, num_groups, -1)
    mean = xg.mean(-1, keepdims=True)
    var = ((xg - mean) ** 2).mean(-1, keepdims=True)
    xn = ((xg - mean) / jnp.sqrt(var + EPS)).reshape(B, C, S)
    xn = xn * params["gn_weight"].reshape(1, C, 1) + params["gn_bias"].reshape(1, C, 1)
    qkv = (jnp.einsum("oc,bcs->bos", params["qkv_weight"].reshape(3 * C, C), xn)
           + params["qkv_bias"].reshape(1, 3 * C, 1))
    q, k, v = jnp.split(qkv, 3, axis=1)
    d = C // num_heads
    q = q.reshape(B * num_heads, d, S)
    k = k.reshape(B * num_heads, d, S)
    v = v.reshape(B * num_heads, d, S)
    scale = 1.0 / math.sqrt(math.sqrt(d))
    w = jnp.einsum("bct,bcs->bts", q * scale, k * scale)
    w = jax.nn.softmax(w, axis=-1)
    a = jnp.einsum("bts,bcs->bct", w, v).reshape(B, C, S)
    hout = (jnp.einsum("oc,bcs->bos", params["proj_weight"].reshape(C, C), a)
            + params["proj_bias"].reshape(1, C, 1))
    return (x3 + hout).reshape(B, C, H, W)


if __name__ == "__main__":
    B, C, Hs, Ws = 2, 64, 16, 16     # C divisible by 32 groups; S = 256 (lane-dense)
    num_heads = 4                    # head_dim = 16 (bf16 (16,128) tile-aligned)

    key = jax.random.PRNGKey(0)
    kx, k1, k2, k3, k4 = jax.random.split(key, 5)

    x = jax.random.normal(kx, (B, C, Hs, Ws), dtype=jnp.float32)

    # Deterministic synthetic parameters (shapes from the module's __init__).
    # NOTE: the original uses zero_module(proj_out) (zero weights/bias); we use small
    # random values so the attention/proj path is actually exercised numerically.
    params = {
        "gn_weight": jnp.ones((C,), jnp.float32),              # GroupNorm default init
        "gn_bias": jnp.zeros((C,), jnp.float32),
        "qkv_weight": 0.05 * jax.random.normal(k1, (3 * C, C, 1), jnp.float32),
        "qkv_bias": 0.05 * jax.random.normal(k2, (3 * C,), jnp.float32),
        "proj_weight": 0.05 * jax.random.normal(k3, (C, C, 1), jnp.float32),
        "proj_bias": 0.05 * jax.random.normal(k4, (C,), jnp.float32),
    }

    out = self_attention_block(x, params, num_heads)
    out = jax.block_until_ready(out)

    ref = reference(x, params, num_heads)
    assert out.shape == (B, C, Hs, Ws)
    # bf16 MXU operands + approx reciprocal loosen the tolerance vs. the f32 reference
    # (softmax rows sum to 1 only to ~1e-3 relative). Documented deviation from f32 parity.
    assert jnp.allclose(out, ref, atol=2e-2, rtol=2e-2), "Pallas output mismatch vs reference"

    print("KERNEL_OK")
</pallas_src>

<mosaic_0001>
module attributes {stable_mosaic.version = 11 : i64} {
  func.func @kernel(%arg0: i32, %arg1: memref<1x64x256xf32, #tpu.memory_space<vmem>>, %arg2: memref<64x1xf32, #tpu.memory_space<vmem>>, %arg3: memref<64x1xf32, #tpu.memory_space<vmem>>, %arg4: memref<192x64xbf16, #tpu.memory_space<vmem>>, %arg5: memref<192x1xf32, #tpu.memory_space<vmem>>, %arg6: memref<64x64xbf16, #tpu.memory_space<vmem>>, %arg7: memref<64x1xf32, #tpu.memory_space<vmem>>, %arg8: memref<1x64x256xf32, #tpu.memory_space<vmem>>, %arg9: memref<192x256xbf16, #tpu.memory_space<vmem>>, %arg10: memref<64x256xbf16, #tpu.memory_space<vmem>>) attributes {dimension_semantics = [#tpu.dimension_semantics<parallel>], iteration_bounds = array<i64: 2>, scalar_prefetch = 0 : i64, scratch_operands = 2 : i64, tpu.core_type = #tpu.core_type<tc>, window_params = [{transform_indices = @transform_0, window_bounds = array<i64: 1, 64, 256>}, {pipeline_mode = #tpu.pipeline_mode<synchronous>, transform_indices = @transform_1, window_bounds = array<i64: 64, 1>}, {pipeline_mode = #tpu.pipeline_mode<synchronous>, transform_indices = @transform_2, window_bounds = array<i64: 64, 1>}, {pipeline_mode = #tpu.pipeline_mode<synchronous>, transform_indices = @transform_3, window_bounds = array<i64: 192, 64>}, {pipeline_mode = #tpu.pipeline_mode<synchronous>, transform_indices = @transform_4, window_bounds = array<i64: 192, 1>}, {pipeline_mode = #tpu.pipeline_mode<synchronous>, transform_indices = @transform_5, window_bounds = array<i64: 64, 64>}, {pipeline_mode = #tpu.pipeline_mode<synchronous>, transform_indices = @transform_6, window_bounds = array<i64: 64, 1>}, {transform_indices = @transform_7, window_bounds = array<i64: 1, 64, 256>}]} {
    %c0 = arith.constant 0 : index
    %c0_0 = arith.constant 0 : index
    %c0_1 = arith.constant 0 : index
    %0 = vector.load %arg1[%c0, %c0_0, %c0_1] : memref<1x64x256xf32, #tpu.memory_space<vmem>>, vector<1x64x256xf32>
    %1 = vector.shape_cast %0 : vector<1x64x256xf32> to vector<64x256xf32>
    %2 = vector.shape_cast %1 : vector<64x256xf32> to vector<32x2x256xf32>
    %cst = arith.constant dense<0.000000e+00> : vector<32x2xf32>
    %3 = vector.multi_reduction <add>, %2, %cst [2] : vector<32x2x256xf32> to vector<32x2xf32>
    %4 = vector.shape_cast %3 : vector<32x2xf32> to vector<32x2x1xf32>
    %cst_2 = arith.constant dense<0.000000e+00> : vector<32x1xf32>
    %5 = vector.multi_reduction <add>, %4, %cst_2 [1] : vector<32x2x1xf32> to vector<32x1xf32>
    %6 = vector.shape_cast %5 : vector<32x1xf32> to vector<32x1x1xf32>
    %cst_3 = arith.constant 0.001953125 : f32
    %7 = vector.broadcast %cst_3 : f32 to vector<32x1x1xf32>
    %8 = arith.mulf %6, %7 : vector<32x1x1xf32>
    %9 = vector.broadcast %8 : vector<32x1x1xf32> to vector<32x2x256xf32>
    %10 = arith.subf %2, %9 : vector<32x2x256xf32>
    %11 = arith.mulf %10, %10 : vector<32x2x256xf32>
    %cst_4 = arith.constant dense<0.000000e+00> : vector<32x2xf32>
    %12 = vector.multi_reduction <add>, %11, %cst_4 [2] : vector<32x2x256xf32> to vector<32x2xf32>
    %13 = vector.shape_cast %12 : vector<32x2xf32> to vector<32x2x1xf32>
    %cst_5 = arith.constant dense<0.000000e+00> : vector<32x1xf32>
    %14 = vector.multi_reduction <add>, %13, %cst_5 [1] : vector<32x2x1xf32> to vector<32x1xf32>
    %15 = vector.shape_cast %14 : vector<32x1xf32> to vector<32x1x1xf32>
    %cst_6 = arith.constant 0.001953125 : f32
    %16 = vector.broadcast %cst_6 : f32 to vector<32x1x1xf32>
    %17 = arith.mulf %15, %16 : vector<32x1x1xf32>
    %cst_7 = arith.constant 9.99999974E-6 : f32
    %18 = vector.broadcast %cst_7 : f32 to vector<32x1x1xf32>
    %19 = arith.addf %17, %18 : vector<32x1x1xf32>
    %20 = math.rsqrt %19 : vector<32x1x1xf32>
    %21 = vector.broadcast %20 : vector<32x1x1xf32> to vector<32x2x256xf32>
    %22 = arith.mulf %10, %21 : vector<32x2x256xf32>
    %23 = vector.shape_cast %22 : vector<32x2x256xf32> to vector<64x256xf32>
    %c0_8 = arith.constant 0 : index
    %c0_9 = arith.constant 0 : index
    %24 = vector.load %arg2[%c0_8, %c0_9] : memref<64x1xf32, #tpu.memory_space<vmem>>, vector<64x1xf32>
    %25 = vector.broadcast %24 : vector<64x1xf32> to vector<64x256xf32>
    %26 = arith.mulf %23, %25 : vector<64x256xf32>
    %c0_10 = arith.constant 0 : index
    %c0_11 = arith.constant 0 : index
    %27 = vector.load %arg3[%c0_10, %c0_11] : memref<64x1xf32, #tpu.memory_space<vmem>>, vector<64x1xf32>
    %28 = vector.broadcast %27 : vector<64x1xf32> to vector<64x256xf32>
    %29 = arith.addf %26, %28 : vector<64x256xf32>
    %30 = arith.truncf %29 : vector<64x256xf32> to vector<64x256xbf16>
    %c0_12 = arith.constant 0 : index
    %c0_13 = arith.constant 0 : index
    %31 = vector.load %arg4[%c0_12, %c0_13] : memref<192x64xbf16, #tpu.memory_space<vmem>>, vector<192x64xbf16>
    %cst_14 = arith.constant dense<0.000000e+00> : vector<192x256xf32>
    %32 = tpu.matmul %31, %30, %cst_14 {dimension_numbers = #tpu.dot_dimension_numbers<[1], [0], [0], [1], [0, 0, 1, 1], [], []>} : vector<192x64xbf16>, vector<64x256xbf16>, vector<192x256xf32> -> vector<192x256xf32>
    %c0_15 = arith.constant 0 : index
    %c0_16 = arith.constant 0 : index
    %33 = vector.load %arg5[%c0_15, %c0_16] : memref<192x1xf32, #tpu.memory_space<vmem>>, vector<192x1xf32>
    %34 = vector.broadcast %33 : vector<192x1xf32> to vector<192x256xf32>
    %35 = arith.addf %32, %34 : vector<192x256xf32>
    %36 = arith.truncf %35 : vector<192x256xf32> to vector<192x256xbf16>
    %c0_17 = arith.constant 0 : index
    %c0_18 = arith.constant 0 : index
    %37 = vector.load %arg9[%c0_17, %c0_18] : memref<192x256xbf16, #tpu.memory_space<vmem>>, vector<192x256xbf16>
    tpu.vector_store %arg9[%c0_17, %c0_18], %36 {strides = array<i32>} : memref<192x256xbf16, #tpu.memory_space<vmem>>, vector<192x256xbf16>,
    %c0_i32 = arith.constant 0 : i32
    %c16_i32 = arith.constant 16 : i32
    %38 = arith.muli %c0_i32, %c16_i32 : i32
    %39 = tpu.assume_multiple %38, 16 : i32
    %c16_i32_19 = arith.constant 16 : i32
    %40 = arith.muli %c0_i32, %c16_i32_19 : i32
    %c64_i32 = arith.constant 64 : i32
    %41 = arith.addi %c64_i32, %40 : i32
    %42 = tpu.assume_multiple %41, 16 : i32
    %c16_i32_20 = arith.constant 16 : i32
    %43 = arith.muli %c0_i32, %c16_i32_20 : i32
    %c128_i32 = arith.constant 128 : i32
    %44 = arith.addi %c128_i32, %43 : i32
    %45 = tpu.assume_multiple %44, 16 : i32
    %46 = arith.index_cast %39 : i32 to index
    %c0_21 = arith.constant 0 : index
    %47 = vector.load %arg9[%46, %c0_21] : memref<192x256xbf16, #tpu.memory_space<vmem>>, vector<16x256xbf16>
    %48 = arith.index_cast %42 : i32 to index
    %c0_22 = arith.constant 0 : index
    %49 = vector.load %arg9[%48, %c0_22] : memref<192x256xbf16, #tpu.memory_space<vmem>>, vector<16x256xbf16>
    %50 = arith.index_cast %45 : i32 to index
    %c0_23 = arith.constant 0 : index
    %51 = vector.load %arg9[%50, %c0_23] : memref<192x256xbf16, #tpu.memory_space<vmem>>, vector<16x256xbf16>
    %cst_24 = arith.constant dense<0.000000e+00> : vector<256x256xf32>
    %52 = tpu.matmul %49, %47, %cst_24 {dimension_numbers = #tpu.dot_dimension_numbers<[0], [0], [1], [1], [0, 1, 1, 1], [], []>} : vector<16x256xbf16>, vector<16x256xbf16>, vector<256x256xf32> -> vector<256x256xf32>
    %cst_25 = arith.constant dense<0xFF800000> : vector<256xf32>
    %53 = vector.multi_reduction <maximumf>, %52, %cst_25 [0] : vector<256x256xf32> to vector<256xf32>
    %54 = vector.shape_cast %53 : vector<256xf32> to vector<1x256xf32>
    %55 = vector.broadcast %54 : vector<1x256xf32> to vector<256x256xf32>
    %56 = arith.subf %52, %55 : vector<256x256xf32>
    %57 = math.exp %56 : vector<256x256xf32>
    %cst_26 = arith.constant dense<0.000000e+00> : vector<256xf32>
    %58 = vector.multi_reduction <add>, %57, %cst_26 [0] : vector<256x256xf32> to vector<256xf32>
    %59 = vector.shape_cast %58 : vector<256xf32> to vector<1x256xf32>
    %60 = arith.truncf %57 : vector<256x256xf32> to vector<256x256xbf16>
    %cst_27 = arith.constant dense<0.000000e+00> : vector<16x256xf32>
    %61 = tpu.matmul %51, %60, %cst_27 {dimension_numbers = #tpu.dot_dimension_numbers<[1], [0], [0], [1], [0, 0, 1, 1], [], []>} : vector<16x256xbf16>, vector<256x256xbf16>, vector<16x256xf32> -> vector<16x256xf32>
    %62 = tpu.reciprocal %59 {approx = true} : vector<1x256xf32> -> vector<1x256xf32>
    %63 = vector.broadcast %62 : vector<1x256xf32> to vector<16x256xf32>
    %64 = arith.mulf %61, %63 : vector<16x256xf32>
    %65 = arith.truncf %64 : vector<16x256xf32> to vector<16x256xbf16>
    %66 = arith.index_cast %39 : i32 to index
    %c0_28 = arith.constant 0 : index
    %67 = vector.load %arg10[%66, %c0_28] : memref<64x256xbf16, #tpu.memory_space<vmem>>, vector<16x256xbf16>
    tpu.vector_store %arg10[%66, %c0_28], %65 {strides = array<i32>} : memref<64x256xbf16, #tpu.memory_space<vmem>>, vector<16x256xbf16>,
    %c1_i32 = arith.constant 1 : i32
    %c16_i32_29 = arith.constant 16 : i32
    %68 = arith.muli %c1_i32, %c16_i32_29 : i32
    %69 = tpu.assume_multiple %68, 16 : i32
    %c16_i32_30 = arith.constant 16 : i32
    %70 = arith.muli %c1_i32, %c16_i32_30 : i32
    %c64_i32_31 = arith.constant 64 : i32
    %71 = arith.addi %c64_i32_31, %70 : i32
    %72 = tpu.assume_multiple %71, 16 : i32
    %c16_i32_32 = arith.constant 16 : i32
    %73 = arith.muli %c1_i32, %c16_i32_32 : i32
    %c128_i32_33 = arith.constant 128 : i32
    %74 = arith.addi %c128_i32_33, %73 : i32
    %75 = tpu.assume_multiple %74, 16 : i32
    %76 = arith.index_cast %69 : i32 to index
    %c0_34 = arith.constant 0 : index
    %77 = vector.load %arg9[%76, %c0_34] : memref<192x256xbf16, #tpu.memory_space<vmem>>, vector<16x256xbf16>
    %78 = arith.index_cast %72 : i32 to index
    %c0_35 = arith.constant 0 : index
    %79 = vector.load %arg9[%78, %c0_35] : memref<192x256xbf16, #tpu.memory_space<vmem>>, vector<16x256xbf16>
    %80 = arith.index_cast %75 : i32 to index
    %c0_36 = arith.constant 0 : index
    %81 = vector.load %arg9[%80, %c0_36] : memref<192x256xbf16, #tpu.memory_space<vmem>>, vector<16x256xbf16>
    %cst_37 = arith.constant dense<0.000000e+00> : vector<256x256xf32>
    %82 = tpu.matmul %79, %77, %cst_37 {dimension_numbers = #tpu.dot_dimension_numbers<[0], [0], [1], [1], [0, 1, 1, 1], [], []>} : vector<16x256xbf16>, vector<16x256xbf16>, vector<256x256xf32> -> vector<256x256xf32>
    %cst_38 = arith.constant dense<0xFF800000> : vector<256xf32>
    %83 = vector.multi_reduction <maximumf>, %82, %cst_38 [0] : vector<256x256xf32> to vector<256xf32>
    %84 = vector.shape_cast %83 : vector<256xf32> to vector<1x256xf32>
    %85 = vector.broadcast %84 : vector<1x256xf32> to vector<256x256xf32>
    %86 = arith.subf %82, %85 : vector<256x256xf32>
    %87 = math.exp %86 : vector<256x256xf32>
    %cst_39 = arith.constant dense<0.000000e+00> : vector<256xf32>
    %88 = vector.multi_reduction <add>, %87, %cst_39 [0] : vector<256x256xf32> to vector<256xf32>
    %89 = vector.shape_cast %88 : vector<256xf32> to vector<1x256xf32>
    %90 = arith.truncf %87 : vector<256x256xf32> to vector<256x256xbf16>
    %cst_40 = arith.constant dense<0.000000e+00> : vector<16x256xf32>
    %91 = tpu.matmul %81, %90, %cst_40 {dimension_numbers = #tpu.dot_dimension_numbers<[1], [0], [0], [1], [0, 0, 1, 1], [], []>} : vector<16x256xbf16>, vector<256x256xbf16>, vector<16x256xf32> -> vector<16x256xf32>
    %92 = tpu.reciprocal %89 {approx = true} : vector<1x256xf32> -> vector<1x256xf32>
    %93 = vector.broadcast %92 : vector<1x256xf32> to vector<16x256xf32>
    %94 = arith.mulf %91, %93 : vector<16x256xf32>
    %95 = arith.truncf %94 : vector<16x256xf32> to vector<16x256xbf16>
    %96 = arith.index_cast %69 : i32 to index
    %c0_41 = arith.constant 0 : index
    %97 = vector.load %arg10[%96, %c0_41] : memref<64x256xbf16, #tpu.memory_space<vmem>>, vector<16x256xbf16>
    tpu.vector_store %arg10[%96, %c0_41], %95 {strides = array<i32>} : memref<64x256xbf16, #tpu.memory_space<vmem>>, vector<16x256xbf16>,
    %c2_i32 = arith.constant 2 : i32
    %c16_i32_42 = arith.constant 16 : i32
    %98 = arith.muli %c2_i32, %c16_i32_42 : i32
    %99 = tpu.assume_multiple %98, 16 : i32
    %c16_i32_43 = arith.constant 16 : i32
    %100 = arith.muli %c2_i32, %c16_i32_43 : i32
    %c64_i32_44 = arith.constant 64 : i32
    %101 = arith.addi %c64_i32_44, %100 : i32
    %102 = tpu.assume_multiple %101, 16 : i32
    %c16_i32_45 = arith.constant 16 : i32
    %103 = arith.muli %c2_i32, %c16_i32_45 : i32
    %c128_i32_46 = arith.constant 128 : i32
    %104 = arith.addi %c128_i32_46, %103 : i32
    %105 = tpu.assume_multiple %104, 16 : i32
    %106 = arith.index_cast %99 : i32 to index
    %c0_47 = arith.constant 0 : index
    %107 = vector.load %arg9[%106, %c0_47] : memref<192x256xbf16, #tpu.memory_space<vmem>>, vector<16x256xbf16>
    %108 = arith.index_cast %102 : i32 to index
    %c0_48 = arith.constant 0 : index
    %109 = vector.load %arg9[%108, %c0_48] : memref<192x256xbf16, #tpu.memory_space<vmem>>, vector<16x256xbf16>
    %110 = arith.index_cast %105 : i32 to index
    %c0_49 = arith.constant 0 : index
    %111 = vector.load %arg9[%110, %c0_49] : memref<192x256xbf16, #tpu.memory_space<vmem>>, vector<16x256xbf16>
    %cst_50 = arith.constant dense<0.000000e+00> : vector<256x256xf32>
    %112 = tpu.matmul %109, %107, %cst_50 {dimension_numbers = #tpu.dot_dimension_numbers<[0], [0], [1], [1], [0, 1, 1, 1], [], []>} : vector<16x256xbf16>, vector<16x256xbf16>, vector<256x256xf32> -> vector<256x256xf32>
    %cst_51 = arith.constant dense<0xFF800000> : vector<256xf32>
    %113 = vector.multi_reduction <maximumf>, %112, %cst_51 [0] : vector<256x256xf32> to vector<256xf32>
    %114 = vector.shape_cast %113 : vector<256xf32> to vector<1x256xf32>
    %115 = vector.broadcast %114 : vector<1x256xf32> to vector<256x256xf32>
    %116 = arith.subf %112, %115 : vector<256x256xf32>
    %117 = math.exp %116 : vector<256x256xf32>
    %cst_52 = arith.constant dense<0.000000e+00> : vector<256xf32>
    %118 = vector.multi_reduction <add>, %117, %cst_52 [0] : vector<256x256xf32> to vector<256xf32>
    %119 = vector.shape_cast %118 : vector<256xf32> to vector<1x256xf32>
    %120 = arith.truncf %117 : vector<256x256xf32> to vector<256x256xbf16>
    %cst_53 = arith.constant dense<0.000000e+00> : vector<16x256xf32>
    %121 = tpu.matmul %111, %120, %cst_53 {dimension_numbers = #tpu.dot_dimension_numbers<[1], [0], [0], [1], [0, 0, 1, 1], [], []>} : vector<16x256xbf16>, vector<256x256xbf16>, vector<16x256xf32> -> vector<16x256xf32>
    %122 = tpu.reciprocal %119 {approx = true} : vector<1x256xf32> -> vector<1x256xf32>
    %123 = vector.broadcast %122 : vector<1x256xf32> to vector<16x256xf32>
    %124 = arith.mulf %121, %123 : vector<16x256xf32>
    %125 = arith.truncf %124 : vector<16x256xf32> to vector<16x256xbf16>
    %126 = arith.index_cast %99 : i32 to index
    %c0_54 = arith.constant 0 : index
    %127 = vector.load %arg10[%126, %c0_54] : memref<64x256xbf16, #tpu.memory_space<vmem>>, vector<16x256xbf16>
    tpu.vector_store %arg10[%126, %c0_54], %125 {strides = array<i32>} : memref<64x256xbf16, #tpu.memory_space<vmem>>, vector<16x256xbf16>,
    %c3_i32 = arith.constant 3 : i32
    %c16_i32_55 = arith.constant 16 : i32
    %128 = arith.muli %c3_i32, %c16_i32_55 : i32
    %129 = tpu.assume_multiple %128, 16 : i32
    %c16_i32_56 = arith.constant 16 : i32
    %130 = arith.muli %c3_i32, %c16_i32_56 : i32
    %c64_i32_57 = arith.constant 64 : i32
    %131 = arith.addi %c64_i32_57, %130 : i32
    %132 = tpu.assume_multiple %131, 16 : i32
    %c16_i32_58 = arith.constant 16 : i32
    %133 = arith.muli %c3_i32, %c16_i32_58 : i32
    %c128_i32_59 = arith.constant 128 : i32
    %134 = arith.addi %c128_i32_59, %133 : i32
    %135 = tpu.assume_multiple %134, 16 : i32
    %136 = arith.index_cast %129 : i32 to index
    %c0_60 = arith.constant 0 : index
    %137 = vector.load %arg9[%136, %c0_60] : memref<192x256xbf16, #tpu.memory_space<vmem>>, vector<16x256xbf16>
    %138 = arith.index_cast %132 : i32 to index
    %c0_61 = arith.constant 0 : index
    %139 = vector.load %arg9[%138, %c0_61] : memref<192x256xbf16, #tpu.memory_space<vmem>>, vector<16x256xbf16>
    %140 = arith.index_cast %135 : i32 to index
    %c0_62 = arith.constant 0 : index
    %141 = vector.load %arg9[%140, %c0_62] : memref<192x256xbf16, #tpu.memory_space<vmem>>, vector<16x256xbf16>
    %cst_63 = arith.constant dense<0.000000e+00> : vector<256x256xf32>
    %142 = tpu.matmul %139, %137, %cst_63 {dimension_numbers = #tpu.dot_dimension_numbers<[0], [0], [1], [1], [0, 1, 1, 1], [], []>} : vector<16x256xbf16>, vector<16x256xbf16>, vector<256x256xf32> -> vector<256x256xf32>
    %cst_64 = arith.constant dense<0xFF800000> : vector<256xf32>
    %143 = vector.multi_reduction <maximumf>, %142, %cst_64 [0] : vector<256x256xf32> to vector<256xf32>
    %144 = vector.shape_cast %143 : vector<256xf32> to vector<1x256xf32>
    %145 = vector.broadcast %144 : vector<1x256xf32> to vector<256x256xf32>
    %146 = arith.subf %142, %145 : vector<256x256xf32>
    %147 = math.exp %146 : vector<256x256xf32>
    %cst_65 = arith.constant dense<0.000000e+00> : vector<256xf32>
    %148 = vector.multi_reduction <add>, %147, %cst_65 [0] : vector<256x256xf32> to vector<256xf32>
    %149 = vector.shape_cast %148 : vector<256xf32> to vector<1x256xf32>
    %150 = arith.truncf %147 : vector<256x256xf32> to vector<256x256xbf16>
    %cst_66 = arith.constant dense<0.000000e+00> : vector<16x256xf32>
    %151 = tpu.matmul %141, %150, %cst_66 {dimension_numbers = #tpu.dot_dimension_numbers<[1], [0], [0], [1], [0, 0, 1, 1], [], []>} : vector<16x256xbf16>, vector<256x256xbf16>, vector<16x256xf32> -> vector<16x256xf32>
    %152 = tpu.reciprocal %149 {approx = true} : vector<1x256xf32> -> vector<1x256xf32>
    %153 = vector.broadcast %152 : vector<1x256xf32> to vector<16x256xf32>
    %154 = arith.mulf %151, %153 : vector<16x256xf32>
    %155 = arith.truncf %154 : vector<16x256xf32> to vector<16x256xbf16>
    %156 = arith.index_cast %129 : i32 to index
    %c0_67 = arith.constant 0 : index
    %157 = vector.load %arg10[%156, %c0_67] : memref<64x256xbf16, #tpu.memory_space<vmem>>, vector<16x256xbf16>
    tpu.vector_store %arg10[%156, %c0_67], %155 {strides = array<i32>} : memref<64x256xbf16, #tpu.memory_space<vmem>>, vector<16x256xbf16>,
    %c4_i32 = arith.constant 4 : i32
    %c0_68 = arith.constant 0 : index
    %c0_69 = arith.constant 0 : index
    %158 = vector.load %arg6[%c0_68, %c0_69] : memref<64x64xbf16, #tpu.memory_space<vmem>>, vector<64x64xbf16>
    %c0_70 = arith.constant 0 : index
    %c0_71 = arith.constant 0 : index
    %159 = vector.load %arg10[%c0_70, %c0_71] : memref<64x256xbf16, #tpu.memory_space<vmem>>, vector<64x256xbf16>
    %cst_72 = arith.constant dense<0.000000e+00> : vector<64x256xf32>
    %160 = tpu.matmul %158, %159, %cst_72 {dimension_numbers = #tpu.dot_dimension_numbers<[1], [0], [0], [1], [0, 0, 1, 1], [], []>} : vector<64x64xbf16>, vector<64x256xbf16>, vector<64x256xf32> -> vector<64x256xf32>
    %c0_73 = arith.constant 0 : index
    %c0_74 = arith.constant 0 : index
    %161 = vector.load %arg7[%c0_73, %c0_74] : memref<64x1xf32, #tpu.memory_space<vmem>>, vector<64x1xf32>
    %162 = vector.broadcast %161 : vector<64x1xf32> to vector<64x256xf32>
    %163 = arith.addf %160, %162 : vector<64x256xf32>
    %c0_75 = arith.constant 0 : index
    %c0_76 = arith.constant 0 : index
    %c0_77 = arith.constant 0 : index
    %164 = vector.load %arg1[%c0_75, %c0_76, %c0_77] : memref<1x64x256xf32, #tpu.memory_space<vmem>>, vector<1x64x256xf32>
    %165 = vector.shape_cast %164 : vector<1x64x256xf32> to vector<64x256xf32>
    %166 = arith.addf %165, %163 : vector<64x256xf32>
    %c0_78 = arith.constant 0 : index
    %c0_79 = arith.constant 0 : index
    %c0_80 = arith.constant 0 : index
    %167 = vector.load %arg8[%c0_78, %c0_79, %c0_80] : memref<1x64x256xf32, #tpu.memory_space<vmem>>, vector<1x64x256xf32>
    %168 = vector.shape_cast %167 : vector<1x64x256xf32> to vector<64x256xf32>
    %169 = vector.shape_cast %166 : vector<64x256xf32> to vector<1x64x256xf32>
    tpu.vector_store %arg8[%c0_78, %c0_79, %c0_80], %169 {strides = array<i32>} : memref<1x64x256xf32, #tpu.memory_space<vmem>>, vector<1x64x256xf32>,
    return
  }
  func.func @transform_0(%arg0: i32) -> (i32, i32, i32) {
    %c0_i32 = arith.constant 0 : i32
    %c0_i32_0 = arith.constant 0 : i32
    %c0_i32_1 = arith.constant 0 : i32
    return %arg0, %c0_i32, %c0_i32_0 : i32, i32, i32
  }
  func.func @transform_1(%arg0: i32) -> (i32, i32) {
    %c0_i32 = arith.constant 0 : i32
    %c0_i32_0 = arith.constant 0 : i32
    %c0_i32_1 = arith.constant 0 : i32
    return %c0_i32, %c0_i32_0 : i32, i32
  }
  func.func @transform_2(%arg0: i32) -> (i32, i32) {
    %c0_i32 = arith.constant 0 : i32
    %c0_i32_0 = arith.constant 0 : i32
    %c0_i32_1 = arith.constant 0 : i32
    return %c0_i32, %c0_i32_0 : i32, i32
  }
  func.func @transform_3(%arg0: i32) -> (i32, i32) {
    %c0_i32 = arith.constant 0 : i32
    %c0_i32_0 = arith.constant 0 : i32
    %c0_i32_1 = arith.constant 0 : i32
    return %c0_i32, %c0_i32_0 : i32, i32
  }
  func.func @transform_4(%arg0: i32) -> (i32, i32) {
    %c0_i32 = arith.constant 0 : i32
    %c0_i32_0 = arith.constant 0 : i32
    %c0_i32_1 = arith.constant 0 : i32
    return %c0_i32, %c0_i32_0 : i32, i32
  }
  func.func @transform_5(%arg0: i32) -> (i32, i32) {
    %c0_i32 = arith.constant 0 : i32
    %c0_i32_0 = arith.constant 0 : i32
    %c0_i32_1 = arith.constant 0 : i32
    return %c0_i32, %c0_i32_0 : i32, i32
  }
  func.func @transform_6(%arg0: i32) -> (i32, i32) {
    %c0_i32 = arith.constant 0 : i32
    %c0_i32_0 = arith.constant 0 : i32
    %c0_i32_1 = arith.constant 0 : i32
    return %c0_i32, %c0_i32_0 : i32, i32
  }
  func.func @transform_7(%arg0: i32) -> (i32, i32, i32) {
    %c0_i32 = arith.constant 0 : i32
    %c0_i32_0 = arith.constant 0 : i32
    %c0_i32_1 = arith.constant 0 : i32
    return %arg0, %c0_i32, %c0_i32_0 : i32, i32, i32
  }
}

</mosaic_0001>

<bundles_post_ra>
// kernel: tpu_custom_call.1
= control target key start
LH: loop header
LB: loop body
LE: loop exit
PB: predicated region body
PF: predicated region fallthrough
CT: control target
= control target key end

     0   :  { %12 = vsyncpa [#allocation5], 0  ;;  %s12122_s0 = inlined_call_operand.vmem [shape: f32[2,64,256], index: 0, kind: input, shape index: {}]   ;;  %s12123_s1 = inlined_call_operand.vmem [shape: f32[64,1], index: 1, kind: input, shape index: {}]   ;;  %s12124_s2 = inlined_call_operand.vmem [shape: f32[64,1], index: 2, kind: input, shape index: {}]   ;;  %s12125_s3 = inlined_call_operand.vmem [shape: bf16[192,64], index: 3, kind: input, shape index: {}]   ;;  %s12126_s4 = inlined_call_operand.vmem [shape: f32[192,1], index: 4, kind: input, shape index: {}]   ;;  %s12127_s5 = inlined_call_operand.vmem [shape: bf16[64,64], index: 5, kind: input, shape index: {}]   ;;  %s12128_s6 = inlined_call_operand.vmem [shape: f32[64,1], index: 6, kind: input, shape index: {}]   ;;  %s12129_s7 = inlined_call_operand.hbm [shape: f32[2,64,256], index: 7, kind: output, shape index: {}]  }
   0x1   :  { %14 = vsyncpa [#allocation5 + $0x1], 0  ;;  %s7553_s24 = smov 0   ;;  %s7555_s25 = smov 0  }
   0x2   :  { %s7557_s26 = smov 0   ;;  %s7559_s27 = smov 0  }
   0x3 LB: > { %s7574_s28 = sadd.s32 4294967295, %s7502_s27   ;;  %s6641_s29 = sadd.s32 4294967294, %s7502_s27   ;;  %s7502_s27 = sphi %s7559_s27, %s13116_s27   ;;  %s7498_s26 = sphi %s7557_s26, %s13115_s26   ;;  %s7494_s25 = sphi %s7555_s25, %s13114_s25   ;;  %s7490_s24 = sphi %s7553_s24, %s13113_s24  }
   0x4   : > { %s7578_s30 = sadd.s32 1, %s7502_s27   ;;  %s179_s8 = sadd.s32 1, %s7498_s26 }
   0x5   : > { %s176_s9 = ssub.s32 %s7502_s27, %s7578_s30  ;;  %p189_p0 = scmp.ne.s32.totalorder %s7498_s26, %s7494_s25 }
   0x6   : > { %p177_p1 = scmp.eq.s32.totalorder %s176_s9, 0  ;;  %p190_p2 = scmp.eq.s32.totalorder %s7574_s28, 1 }
   0x7   : > { %p195_p3 = scmp.ne.s32.totalorder %s7494_s25, %s7490_s24  ;;  %p196_p4 = scmp.eq.s32.totalorder %s6641_s29, 1 }
   0x8   : > { %s7589_s10 = scalar_select %p177_p1, %s7498_s26, %s179_s8  }
   0x9   : > { %p7591_p5 = por %p190_p2, %p189_p0  ;;  %p7595_p6 = por %p196_p4, %p195_p3 }
   0xa   : > { %p6644_p7 = scmp.ge.s32.totalorder %s7502_s27, 1  ;;  %p240_p8 = scmp.lt.s32.totalorder %s7502_s27, 3 }
   0xc   : > { %p241_p9 = pnand %p6644_p7, %p240_p8 }
   0xe   : > { %244 = sbr.rel (%p241_p9) target bundleno = 3270 (0xcc6), region = 48 }
  0x15   : > { %p272_p10 = scmp.lt.s32.totalorder %s7574_s28, 1  ;;  %v315_v0 = vlaneseq  ;;  %v7504_v1 = vmov 1983009808   ;;  %v12130_v3 = vmov 0   ;;  %vm806_vm0 = vcmask 1041408   ;;  %s269_s15 = sand.u32 1, %s7494_s25  }
  0x16   : > { %v313_v2 = vunpack.c.l.s4 %v7504_v1  ;;  %6807 = vset.pattern.permute.xlu1 %v12130_v3  ;;  %6806 = vset.pattern.permute.xlu0 %v12130_v3  ;;  %vm3235_vm1 = vcmask 523264   ;;  %vm3520_vm2 = vcmask 130048   ;;  %s6645_s16 = sshll.u32 %s269_s15, 7  ;;  %s6750_s19 = sshll.u32 %s7574_s28, 11 }
  0x17   : > { %s273_s13 = scalar_select %p272_p10, %s7574_s28, 1  ;;  %v7605_v4 = vshrl.u32 %v315_v0, 7  ;;  %3304 = vmatprep.mubr.bf16.mxu0 %v12130_v3  ;;  %3384 = vmatprep.mubr.bf16.mxu1 %v12130_v3 }
  0x18   : > { %v314_v5 = vunpack.c.0.s8 %v313_v2  ;;  %s12040_s18 = scalar_lea.vmem [#allocation4], %s6645_s16  ;;  %s12072_s23 = scalar_lea.hbm %s12129_s7, %s6750_s19 }
  0x19   : > { %12376 = vst [vmem:[#allocation7_spill] sm:$0xff] %v7605_v4  ;;  %s6749_s14 = sshll.u32 %s273_s13, 7  ;;  %s6565_s20 = sshll.u32 %s12040_s18, 4  ;;  %s12074_s20 = int_to_ptr.vmem [resolvable:$true] %s6565_s20 }
  0x1a   : > { %s7612_s17 = scalar_lea.vmem %s12122_s0, %s6749_s14  ;;  %v7615_v6 = vsub.s32 %v314_v5, %v7605_v4  ;;  %s12081_s28 = scalar_lea.sflag [#allocation5], %s269_s15 }
  0x1b   : > { %v6808_v7 = vld [vmem:[%s7612_s17] ss:$8 sps:$4 sm:$0xff]   ;;  %v6810_v8 = vld [vmem:[%s7612_s17 + $0x4] ss:$8 sps:$4 sm:$0xff]   ;;  %v6811_v10 = vld [vmem:[%s7612_s17 + $0x10] ss:$8 sps:$4 sm:$0xff]  }
  0x1c   : > { %v7620_v9 = vrot.slane %v6808_v7, %v7615_v6  ;;  %v6813_v11 = vld [vmem:[%s7612_s17 + $0x14] ss:$8 sps:$4 sm:$0xff]   ;;  %v7625_v12 = vrot.slane %v6810_v8, %v7615_v6  ;;  %v6814_v13 = vld [vmem:[%s7612_s17 + $0x20] ss:$8 sps:$4 sm:$0xff]   ;;  %v6816_v14 = vld [vmem:[%s7612_s17 + $0x24] ss:$8 sps:$4 sm:$0xff]   ;;  %v7632_v16 = vrot.slane %v6811_v10, %v7615_v6 }
  0x1d   : > { %v7635_v17 = vrot.slane %v6813_v11, %v7615_v6  ;;  %v7640_v19 = vrot.slane %v6814_v13, %v7615_v6  ;;  %v7647_v21 = vrot.slane %v6816_v14, %v7615_v6  ;;  %v6817_v44 = vld [vmem:[%s7612_s17 + $0x30] ss:$8 sps:$4 sm:$0xff]   ;;  %v6819_v54 = vld [vmem:[%s7612_s17 + $0x34] ss:$8 sps:$4 sm:$0xff]   ;;  %v6820_v7 = vld [vmem:[%s7612_s17 + $0x40] ss:$8 sps:$4 sm:$0xff]  }
  0x1e   : > { %v492_v15 = vrot.slane %v7620_v9, %v7615_v6  ;;  %v508_v18 = vrot.slane %v7625_v12, %v7615_v6  ;;  %v7644_v20 = vcombine.high %v7625_v12, %v7625_v12  ;;  %v524_v24 = vrot.slane %v7632_v16, %v7615_v6  ;;  %s7510_s29 = smov [#allocation4]  }
  0x1f   : > { %v540_v25 = vrot.slane %v7635_v17, %v7615_v6  ;;  %v556_v28 = vrot.slane %v7640_v19, %v7615_v6  ;;  %v7666_v39 = vcombine.high %v7620_v9, %v7620_v9  ;;  %v572_v46 = vrot.slane %v7647_v21, %v7615_v6  ;;  %s7444_s8 = sshll.u32 %s7510_s29, 4  ;;  %s7445_s8 = int_to_ptr.vmem [resolvable:$false] %s7444_s8 }
  0x20   : > { %v493_v22 = vcombine.high %v492_v15, %v492_v15  ;;  %v807_v23 = vsel %vm806_vm0, %v492_v15, 0.0  ;;  %v509_v26 = vcombine.high %v508_v18, %v508_v18  ;;  %v817_v27 = vsel %vm806_vm0, %v508_v18, 0.0  ;;  %s7446_s9 = scalar_lea.vmem %s7445_s8, 4096  ;;  %p7447_p0 = scmp.lt.s32.totalorder %s12074_s20, %s7445_s8 }
  0x21   : > { %v516_v29 = vrot.slane %v7644_v20, %v7615_v6  ;;  %v525_v31 = vcombine.high %v524_v24, %v524_v24  ;;  %v827_v32 = vsel %vm806_vm0, %v524_v24, 0.0  ;;  %v541_v33 = vcombine.high %v540_v25, %v540_v25 }
  0x22   : > { %v808_v30 = vsel %vm806_vm0, %v493_v22, 0.0  ;;  %v818_v35 = vsel %vm806_vm0, %v509_v26, 0.0  ;;  %v837_v38 = vsel %vm806_vm0, %v540_v25, 0.0  ;;  %v557_v42 = vcombine.high %v556_v28, %v556_v28 }
  0x23   : > { %v809_v34 = vadd.f32 %v808_v30, %v807_v23  ;;  %v819_v36 = vadd.f32 %v818_v35, %v817_v27  ;;  %v828_v37 = vsel %vm806_vm0, %v525_v31, 0.0  ;;  %v838_v41 = vsel %vm806_vm0, %v541_v33, 0.0 }
  0x24   : > { %v829_v40 = vadd.f32 %v828_v37, %v827_v32  ;;  %v517_v43 = vcombine.high %v516_v29, %v516_v29  ;;  %v822_v45 = vsel %vm806_vm0, %v516_v29, 0.0  ;;  %v7675_v47 = vcombine.high %v7632_v16, %v7632_v16  ;;  %v6822_v37 = vld [vmem:[%s7612_s17 + $0x44] ss:$8 sps:$4 sm:$0xff]  }
  0x25   : > { %810 = vadd.xlane.f32.xlu0 %v809_v34  ;;  %820 = vadd.xlane.f32.xlu1 %v819_v36  ;;  %v7680_v49 = vcombine.high %v7635_v17, %v7635_v17  ;;  %v839_v50 = vadd.f32 %v838_v41, %v837_v38  ;;  %v847_v51 = vsel %vm806_vm0, %v556_v28, 0.0  ;;  %v848_v55 = vsel %vm806_vm0, %v557_v42, 0.0 }
  0x26   : > { %v823_v48 = vsel %vm806_vm0, %v517_v43, 0.0  ;;  %v532_v53 = vrot.slane %v7675_v47, %v7615_v6  ;;  %v500_v56 = vrot.slane %v7666_v39, %v7615_v6  ;;  %v7692_v58 = vrot.slane %v6817_v44, %v7615_v6 }
  0x27   : > { %v824_v52 = vadd.f32 %v823_v48, %v822_v45  ;;  %v548_v57 = vrot.slane %v7680_v49, %v7615_v6  ;;  %v573_v59 = vcombine.high %v572_v46, %v572_v46  ;;  %v7697_v62 = vcombine.high %v7640_v19, %v7640_v19 }
  0x28   : > { %v533_v60 = vcombine.high %v532_v53, %v532_v53  ;;  %v832_v61 = vsel %vm806_vm0, %v532_v53, 0.0  ;;  %v857_v63 = vsel %vm806_vm0, %v572_v46, 0.0  ;;  %v849_v1 = vadd.f32 %v848_v55, %v847_v51  ;;  %v6823_v53 = vld [vmem:[%s7612_s17 + $0x50] ss:$8 sps:$4 sm:$0xff]  }
  0x29   : > { %830 = vadd.xlane.f32.xlu0 %v829_v40  ;;  %825 = vadd.xlane.f32.xlu1 %v824_v52  ;;  %v549_v0 = vcombine.high %v548_v57, %v548_v57  ;;  %v842_v5 = vsel %vm806_vm0, %v548_v57, 0.0  ;;  %v501_v10 = vcombine.high %v500_v56, %v500_v56  ;;  %v564_v13 = vrot.slane %v7697_v62, %v7615_v6 }
  0x2a   : > { %v833_v2 = vsel %vm806_vm0, %v533_v60, 0.0  ;;  %v858_v14 = vsel %vm806_vm0, %v573_v59, 0.0  ;;  %v588_v15 = vrot.slane %v7692_v58, %v7615_v6  ;;  %v7710_v18 = vrot.slane %v6819_v54, %v7615_v6 }
  0x2b   : > { %v834_v8 = vadd.f32 %v833_v2, %v832_v61  ;;  %v843_v11 = vsel %vm806_vm0, %v549_v0, 0.0  ;;  %v7714_v22 = vcombine.high %v7647_v21, %v7647_v21  ;;  %v812_v23 = vsel %vm806_vm0, %v500_v56, 0.0 }
  0x2c   : > { %v844_v24 = vadd.f32 %v843_v11, %v842_v5  ;;  %v565_v25 = vcombine.high %v564_v13, %v564_v13  ;;  %v852_v26 = vsel %vm806_vm0, %v564_v13, 0.0  ;;  %v7722_v28 = vcombine.high %v7692_v58, %v7692_v58 }
  0x2d   : > { %840 = vadd.xlane.f32.xlu0 %v839_v50  ;;  %835 = vadd.xlane.f32.xlu1 %v834_v8  ;;  %v580_v27 = vrot.slane %v7714_v22, %v7615_v6  ;;  %v859_v29 = vadd.f32 %v858_v14, %v857_v63  ;;  %v813_v30 = vsel %vm806_vm0, %v501_v10, 0.0  ;;  %v7728_v32 = vcombine.high %v7710_v18, %v7710_v18  ;;  %v6825_v8 = vld [vmem:[%s7612_s17 + $0x54] ss:$8 sps:$4 sm:$0xff]  }
  0x2e   : > { %v853_v31 = vsel %vm806_vm0, %v565_v25, 0.0  ;;  %v589_v33 = vcombine.high %v588_v15, %v588_v15  ;;  %v604_v34 = vrot.slane %v7710_v18, %v7615_v6  ;;  %v7733_v36 = vrot.slane %v6820_v7, %v7615_v6 }
  0x2f   : > { %v581_v35 = vcombine.high %v580_v27, %v580_v27  ;;  %v854_v38 = vadd.f32 %v853_v31, %v852_v26  ;;  %v596_v40 = vrot.slane %v7722_v28, %v7615_v6  ;;  %v862_v41 = vsel %vm806_vm0, %v580_v27, 0.0  ;;  %v6826_v31 = vld [vmem:[%s7612_s17 + $0x60] ss:$8 sps:$4 sm:$0xff]  }
  0x30   : > { %v612_v43 = vrot.slane %v7728_v32, %v7615_v6  ;;  %v814_v44 = vadd.f32 %v813_v30, %v812_v23  ;;  %v867_v45 = vsel %vm806_vm0, %v588_v15, 0.0  ;;  %v868_v48 = vsel %vm806_vm0, %v589_v33, 0.0 }
  0x31   : > { %850 = vadd.xlane.f32.xlu0 %v849_v1  ;;  %845 = vadd.xlane.f32.xlu1 %v844_v24  ;;  %v863_v42 = vsel %vm806_vm0, %v581_v35, 0.0  ;;  %v597_v46 = vcombine.high %v596_v40, %v596_v40  ;;  %v605_v50 = vcombine.high %v604_v34, %v604_v34  ;;  %v620_v51 = vrot.slane %v7733_v36, %v7615_v6 }
  0x32   : > { %v7747_v52 = vrot.slane %v6822_v37, %v7615_v6  ;;  %v864_v54 = vadd.f32 %v863_v42, %v862_v41  ;;  %v7752_v55 = vcombine.high %v7733_v36, %v7733_v36  ;;  %v872_v56 = vsel %vm806_vm0, %v596_v40, 0.0 }
  0x33   : > { %v873_v57 = vsel %vm806_vm0, %v597_v46, 0.0  ;;  %v613_v59 = vcombine.high %v612_v43, %v612_v43  ;;  %v869_v61 = vadd.f32 %v868_v48, %v867_v45  ;;  %v877_v63 = vsel %vm806_vm0, %v604_v34, 0.0  ;;  %v6828_v48 = vld [vmem:[%s7612_s17 + $0x64] ss:$8 sps:$4 sm:$0xff]  }
  0x34   : > { %v7758_v60 = vcombine.high %v7747_v52, %v7747_v52  ;;  %v628_v0 = vrot.slane %v7752_v55, %v7615_v6  ;;  %v878_v1 = vsel %vm806_vm0, %v605_v50, 0.0  ;;  %v621_v2 = vcombine.high %v620_v51, %v620_v51 }
  0x35   : > { %860 = vadd.xlane.f32.xlu0 %v859_v29  ;;  %855 = vadd.xlane.f32.xlu1 %v854_v38  ;;  %v636_v5 = vrot.slane %v7747_v52, %v7615_v6  ;;  %v7767_v7 = vrot.slane %v6823_v53, %v7615_v6  ;;  %v874_v10 = vadd.f32 %v873_v57, %v872_v56  ;;  %v882_v11 = vsel %vm806_vm0, %v612_v43, 0.0 }
  0x36   : > { %v883_v13 = vsel %vm806_vm0, %v613_v59, 0.0  ;;  %v629_v14 = vcombine.high %v628_v0, %v628_v0  ;;  %v644_v15 = vrot.slane %v7758_v60, %v7615_v6  ;;  %v879_v24 = vadd.f32 %v878_v1, %v877_v63 }
  0x37   : > { %v7776_v23 = vcombine.high %v7767_v7, %v7767_v7  ;;  %v887_v25 = vsel %vm806_vm0, %v620_v51, 0.0  ;;  %v888_v26 = vsel %vm806_vm0, %v621_v2, 0.0  ;;  %v637_v27 = vcombine.high %v636_v5, %v636_v5 }
  0x38   : > { %v652_v29 = vrot.slane %v7767_v7, %v7615_v6  ;;  %v7783_v30 = vrot.slane %v6825_v8, %v7615_v6  ;;  %v884_v33 = vadd.f32 %v883_v13, %v882_v11  ;;  %v892_v34 = vsel %vm806_vm0, %v628_v0, 0.0 }
  0x39   : > { %815 = vadd.xlane.f32.xlu0 %v814_v44  ;;  %865 = vadd.xlane.f32.xlu1 %v864_v54  ;;  %v893_v35 = vsel %vm806_vm0, %v629_v14, 0.0  ;;  %v645_v37 = vcombine.high %v644_v15, %v644_v15  ;;  %v660_v38 = vrot.slane %v7776_v23, %v7615_v6  ;;  %v889_v41 = vadd.f32 %v888_v26, %v887_v25 }
  0x3a   : > { %v7792_v40 = vcombine.high %v7783_v30, %v7783_v30  ;;  %v897_v42 = vsel %vm806_vm0, %v636_v5, 0.0  ;;  %v898_v43 = vsel %vm806_vm0, %v637_v27, 0.0  ;;  %v653_v44 = vcombine.high %v652_v29, %v652_v29  ;;  %v6829_v5 = vld [vmem:[%s7612_s17 + $0x70] ss:$8 sps:$4 sm:$0xff]  }
  0x3b   : > { %v668_v45 = vrot.slane %v7783_v30, %v7615_v6  ;;  %v7799_v46 = vrot.slane %v6826_v31, %v7615_v6  ;;  %v894_v50 = vadd.f32 %v893_v35, %v892_v34  ;;  %v902_v51 = vsel %vm806_vm0, %v644_v15, 0.0 }
  0x3c   : > { %v903_v53 = vsel %vm806_vm0, %v645_v37, 0.0  ;;  %v661_v54 = vcombine.high %v660_v38, %v660_v38  ;;  %v676_v56 = vrot.slane %v7792_v40, %v7615_v6  ;;  %v899_v59 = vadd.f32 %v898_v43, %v897_v42 }
  0x3d   : > { %870 = vadd.xlane.f32.xlu0 %v869_v61  ;;  %875 = vadd.xlane.f32.xlu1 %v874_v10  ;;  %v7808_v57 = vcombine.high %v7799_v46, %v7799_v46  ;;  %v907_v61 = vsel %vm806_vm0, %v652_v29, 0.0  ;;  %v908_v63 = vsel %vm806_vm0, %v653_v44, 0.0  ;;  %v669_v0 = vcombine.high %v668_v45, %v668_v45 }
  0x3e   : > { %v684_v1 = vrot.slane %v7799_v46, %v7615_v6  ;;  %v7815_v2 = vrot.slane %v6828_v48, %v7615_v6  ;;  %v904_v8 = vadd.f32 %v903_v53, %v902_v51  ;;  %v912_v10 = vsel %vm806_vm0, %v660_v38, 0.0 }
  0x3f   : > { %12377 = vst [vmem:[#allocation8_spill] sm:$0xff] %v7808_v57  ;;  %v913_v11 = vsel %vm806_vm0, %v661_v54, 0.0  ;;  %v677_v13 = vcombine.high %v676_v56, %v676_v56  ;;  %v692_v14 = vrot.slane %v7808_v57, %v7615_v6  ;;  %v917_v25 = vsel %vm806_vm0, %v668_v45, 0.0 }
  0x40   : > { %v7824_v15 = vcombine.high %v7815_v2, %v7815_v2  ;;  %v918_v26 = vsel %vm806_vm0, %v669_v0, 0.0  ;;  %v685_v27 = vcombine.high %v684_v1, %v684_v1  ;;  %v700_v29 = vrot.slane %v7815_v2, %v7615_v6 }
  0x41   : > { %880 = vadd.xlane.f32.xlu0 %v879_v24  ;;  %885 = vadd.xlane.f32.xlu1 %v884_v33  ;;  %v909_v24 = vadd.f32 %v908_v63, %v907_v61  ;;  %v7831_v31 = vrot.slane %v6829_v5, %v7615_v6  ;;  %v6831_v33 = vld [vmem:[%s7612_s17 + $0x74] ss:$8 sps:$4 sm:$0xff]   ;;  %v914_v34 = vadd.f32 %v913_v11, %v912_v10  ;;  %v922_v35 = vsel %vm806_vm0, %v676_v56, 0.0 }
  0x42   : > { %12378 = vst [vmem:[#allocation9_spill] sm:$0xff] %v7824_v15  ;;  %v923_v37 = vsel %vm806_vm0, %v677_v13, 0.0  ;;  %v693_v38 = vcombine.high %v692_v14, %v692_v14  ;;  %v919_v43 = vadd.f32 %v918_v26, %v917_v25  ;;  %v927_v44 = vsel %vm806_vm0, %v684_v1, 0.0 }
  0x43   : > { %v7840_v42 = vcombine.high %v7831_v31, %v7831_v31  ;;  %v928_v45 = vsel %vm806_vm0, %v685_v27, 0.0  ;;  %v701_v48 = vcombine.high %v700_v29, %v700_v29  ;;  %v7847_v51 = vrot.slane %v6831_v33, %v7615_v6 }
  0x44   : > { %v924_v53 = vadd.f32 %v923_v37, %v922_v35  ;;  %v932_v54 = vsel %vm806_vm0, %v692_v14, 0.0  ;;  %v933_v56 = vsel %vm806_vm0, %v693_v38, 0.0  ;;  %v929_v0 = vadd.f32 %v928_v45, %v927_v44 }
  0x45   : > { %890 = vadd.xlane.f32.xlu0 %v889_v41  ;;  %895 = vadd.xlane.f32.xlu1 %v894_v50  ;;  %v708_v41 = vrot.slane %v7824_v15, %v7615_v6  ;;  %12379 = vst [vmem:[#allocation10_spill] sm:$0xff] %v7840_v42  ;;  %v716_v50 = vrot.slane %v7831_v31, %v7615_v6  ;;  %v937_v1 = vsel %vm806_vm0, %v700_v29, 0.0  ;;  %v938_v5 = vsel %vm806_vm0, %v701_v48, 0.0 }
  0x46   : > { %v724_v61 = vrot.slane %v7840_v42, %v7615_v6  ;;  %v7855_v63 = vcombine.high %v7847_v51, %v7847_v51  ;;  %v732_v10 = vrot.slane %v7847_v51, %v7615_v6  ;;  %v934_v11 = vadd.f32 %v933_v56, %v932_v54  ;;  %v2152_v56 = vld [vmem:[%s12123_s1 + $0x8] sm:$0xff] }
  0x47   : > { %v942_v13 = vsel %vm806_vm0, %v708_v41, 0.0  ;;  %v939_v26 = vadd.f32 %v938_v5, %v937_v1  ;;  %v947_v27 = vsel %vm806_vm0, %v716_v50, 0.0  ;;  %v2480_v1 = vld [vmem:[%s12124_s2 + $0x8] sm:$0xff]  ;;  %v2153_v5 = vld [vmem:[%s12123_s1 + $0x10] sm:$0xff] }
  0x48   : > { %12380 = vst [vmem:[#allocation11_spill] sm:$0xff] %v7855_v63  ;;  %v740_v25 = vrot.slane %v7855_v63, %v7615_v6  ;;  %v733_v33 = vcombine.high %v732_v10, %v732_v10  ;;  %v952_v35 = vsel %vm806_vm0, %v724_v61, 0.0 }
  0x49   : > { %900 = vadd.xlane.f32.xlu0 %v899_v59  ;;  %905 = vadd.xlane.f32.xlu1 %v904_v8  ;;  %v709_v59 = vcombine.high %v708_v41, %v708_v41  ;;  %v717_v8 = vcombine.high %v716_v50, %v716_v50 }
  0x4a   : > { %v741_v38 = vcombine.high %v740_v25, %v740_v25  ;;  %v958_v44 = vsel %vm806_vm0, %v733_v33, 0.0  ;;  %v962_v48 = vsel %vm806_vm0, %v740_v25, 0.0 }
  0x4b   : > { %v943_v14 = vsel %vm806_vm0, %v709_v59, 0.0  ;;  %v948_v29 = vsel %vm806_vm0, %v717_v8, 0.0  ;;  %v2151_v59 = vld [vmem:[%s12123_s1] sm:$0xff]  ;;  %v2154_v8 = vld [vmem:[%s12123_s1 + $0x18] sm:$0xff] }
  0x4c   : > { %v949_v41 = vadd.f32 %v948_v29, %v947_v27  ;;  %v963_v50 = vsel %vm806_vm0, %v741_v38, 0.0 }
  0x4d   : > { %910 = vadd.xlane.f32.xlu0 %v909_v24  ;;  %915 = vadd.xlane.f32.xlu1 %v914_v34  ;;  %v725_v24 = vcombine.high %v724_v61, %v724_v61  ;;  %v944_v34 = vadd.f32 %v943_v14, %v942_v13  ;;  %v964_v54 = vadd.f32 %v963_v50, %v962_v48  ;;  %v2479_v61 = vld [vmem:[%s12124_s2] sm:$0xff] }
  0x4e   : > { %v2155_v13 = vld [vmem:[%s12123_s1 + $0x20] sm:$0xff] }
  0x4f   : > { %v953_v37 = vsel %vm806_vm0, %v725_v24, 0.0  ;;  %v2483_v14 = vld [vmem:[%s12124_s2 + $0x20] sm:$0xff] }
  0x50   : > { %v954_v45 = vadd.f32 %v953_v37, %v952_v35 }
  0x51   : > { %920 = vadd.xlane.f32.xlu0 %v919_v43  ;;  %925 = vadd.xlane.f32.xlu1 %v924_v53  ;;  %v957_v43 = vsel %vm806_vm0, %v732_v10, 0.0  ;;  %v2481_v10 = vld [vmem:[%s12124_s2 + $0x10] sm:$0xff] }
  0x52   : > { %v959_v53 = vadd.f32 %v958_v44, %v957_v43 }
  0x55   : > { %930 = vadd.xlane.f32.xlu0 %v929_v0  ;;  %935 = vadd.xlane.f32.xlu1 %v934_v11  ;;  %v2156_v0 = vld [vmem:[%s12123_s1 + $0x28] sm:$0xff]  ;;  %v2482_v11 = vld [vmem:[%s12124_s2 + $0x18] sm:$0xff] }
  0x59   : > { %940 = vadd.xlane.f32.xlu0 %v939_v26  ;;  %945 = vadd.xlane.f32.xlu1 %v944_v34 }
  0x5d   : > { %950 = vadd.xlane.f32.xlu0 %v949_v41  ;;  %955 = vadd.xlane.f32.xlu1 %v954_v45 }
  0x61   : > { %960 = vadd.xlane.f32.xlu0 %v959_v53  ;;  %965 = vadd.xlane.f32.xlu1 %v964_v54 }
  0x72   : > { %2165 = vperm.xlu1 %6807, %v2152_v56  }
  0x76   : > { %2489 = vperm.xlu1 %6807, %v2479_v61  }
  0x77   : > { %2161 = vperm.xlu0 %6806, %v2151_v59  }
  0x7a   : > { %2493 = vperm.xlu1 %6807, %v2480_v1  }
  0x7b   : > { %2181 = vperm.xlu0 %6806, %v2156_v0  }
  0x7e   : > { %2169 = vperm.xlu1 %6807, %v2153_v5  }
  0x82   : > { %2173 = vperm.xlu1 %6807, %v2154_v8  }
  0x86   : > { %2497 = vperm.xlu1 %6807, %v2481_v10  }
  0x8a   : > { %2501 = vperm.xlu1 %6807, %v2482_v11  }
  0x8e   : > { %2177 = vperm.xlu1 %6807, %v2155_v13  }
  0x92   : > { %2505 = vperm.xlu1 %6807, %v2483_v14  }
  0xb2   : > { %v811_v24 = vpop.xlane.xlu0 %810  ;;  %v821_v26 = vpop.xlane.xlu1 %820 }
  0xb3   : > { %v967_v25 = vsel %vm806_vm0, %v811_v24, 0.0  ;;  %v981_v29 = vsel %vm806_vm0, %v821_v26, 0.0 }
  0xb4   : > { %v968_v27 = vrot.slane %v967_v25, 4  ;;  %v982_v33 = vrot.slane %v981_v29, 4 }
  0xb6   : > { %v969_v34 = vadd.f32 %v968_v27, %v967_v25  ;;  %v831_v35 = vpop.xlane.xlu0 %830  ;;  %v983_v37 = vadd.f32 %v982_v33, %v981_v29  ;;  %v826_v41 = vpop.xlane.xlu1 %825 }
  0xb7   : > { %v995_v38 = vsel %vm806_vm0, %v831_v35, 0.0  ;;  %v988_v45 = vsel %vm806_vm0, %v826_v41, 0.0 }
  0xb8   : > { %v970_v43 = vrot.slane %v969_v34, 2  ;;  %v996_v44 = vrot.slane %v995_v38, 4  ;;  %v989_v48 = vrot.slane %v988_v45, 4  ;;  %v984_v53 = vrot.slane %v983_v37, 2 }
  0xba   : > { %v971_v50 = vadd.f32 %v970_v43, %v969_v34  ;;  %v997_v54 = vadd.f32 %v996_v44, %v995_v38  ;;  %v841_v56 = vpop.xlane.xlu0 %840  ;;  %v990_v61 = vadd.f32 %v989_v48, %v988_v45  ;;  %v836_v5 = vpop.xlane.xlu1 %835  ;;  %v985_v11 = vadd.f32 %v984_v53, %v983_v37 }
  0xbb   : > { %v1009_v59 = vsel %vm806_vm0, %v841_v56, 0.0  ;;  %v1002_v10 = vsel %vm806_vm0, %v836_v5, 0.0 }
  0xbc   : > { %v998_v0 = vrot.slane %v997_v54, 2  ;;  %v1010_v1 = vrot.slane %v1009_v59, 4  ;;  %v972_v8 = vrot.slane %v971_v50, 1  ;;  %v1003_v24 = vrot.slane %v1002_v10, 4 }
  0xbd   : > { %v991_v27 = vrot.slane %v990_v61, 2  ;;  %v986_v35 = vrot.slane %v985_v11, 1 }
  0xbe   : > { %v1011_v13 = vadd.f32 %v1010_v1, %v1009_v59  ;;  %v851_v14 = vpop.xlane.xlu0 %850  ;;  %v999_v25 = vadd.f32 %v998_v0, %v997_v54  ;;  %v973_v33 = vadd.f32 %v972_v8, %v971_v50  ;;  %v1004_v43 = vadd.f32 %v1003_v24, %v1002_v10  ;;  %v846_v56 = vpop.xlane.xlu1 %845 }
  0xbf   : > { %v1023_v26 = vsel %vm806_vm0, %v851_v14, 0.0  ;;  %v992_v45 = vadd.f32 %v991_v27, %v990_v61  ;;  %v1016_v59 = vsel %vm806_vm0, %v846_v56, 0.0  ;;  %v987_v54 = vadd.f32 %v986_v35, %v985_v11 }
  0xc0   : > { %v1024_v29 = vrot.slane %v1023_v26, 4  ;;  %v1012_v34 = vrot.slane %v1011_v13, 2  ;;  %v1000_v44 = vrot.slane %v999_v25, 1  ;;  %v1191_v37 = vmul.f32 0.001953125, %v973_v33 }
  0xc1   : > { %v1005_v5 = vrot.slane %v1004_v43, 2  ;;  %v993_v8 = vrot.slane %v992_v45, 1  ;;  %v1017_v10 = vrot.slane %v1016_v59, 4  ;;  %v1193_v33 = vmul.f32 0.001953125, %v987_v54 }
  0xc2   : > { %v1025_v38 = vadd.f32 %v1024_v29, %v1023_v26  ;;  %v861_v41 = vpop.xlane.xlu0 %860  ;;  %v1013_v53 = vadd.f32 %v1012_v34, %v1011_v13  ;;  %v1001_v50 = vadd.f32 %v1000_v44, %v999_v25  ;;  %v856_v61 = vpop.xlane.xlu1 %855  ;;  %v7917_v27 = vsub.f32 %v7620_v9, %v1191_v37 }
  0xc3   : > { %v1037_v48 = vsel %vm806_vm0, %v861_v41, 0.0  ;;  %v1006_v41 = vadd.f32 %v1005_v5, %v1004_v43  ;;  %v994_v56 = vadd.f32 %v993_v8, %v992_v45  ;;  %v1018_v44 = vadd.f32 %v1017_v10, %v1016_v59 }
  0xc4   : > { %v1026_v0 = vrot.slane %v1025_v38, 2  ;;  %v1038_v1 = vrot.slane %v1037_v48, 4  ;;  %v1014_v24 = vrot.slane %v1013_v53, 1  ;;  %12381 = vst [vmem:[#allocation12_spill] sm:$0xff] %v7917_v27  ;;  %v1195_v35 = vmul.f32 0.001953125, %v1001_v50 }
  0xc5   : > { %v1030_v63 = vsel %vm806_vm0, %v856_v61, 0.0  ;;  %v1255_v42 = vmul.f32 %v7917_v27, %v7917_v27  ;;  %v7924_v9 = vsub.f32 %v7625_v12, %v1193_v33  ;;  %v1007_v43 = vrot.slane %v1006_v41, 1 }
  0xc6   : > { %v816_v14 = vpop.xlane.xlu0 %815  ;;  %v1027_v13 = vadd.f32 %v1026_v0, %v1025_v38  ;;  %v1039_v34 = vadd.f32 %v1038_v1, %v1037_v48  ;;  %v1015_v4 = vadd.f32 %v1014_v24, %v1013_v53  ;;  %v7927_v45 = vsub.f32 %v7632_v16, %v1195_v35  ;;  %v866_v0 = vpop.xlane.xlu1 %865 }
  0xc7   : > { %v974_v26 = vsel %vm806_vm0, %v816_v14, 0.0  ;;  %v1194_v54 = vmul.f32 0.001953125, %v994_v56  ;;  %v1325_v59 = vrot.slane %v1255_v42, %v7615_v6  ;;  %v1019_v5 = vrot.slane %v1018_v44, 2 }
  0xc8   : > { %v975_v29 = vrot.slane %v974_v26, 4  ;;  %v1028_v38 = vrot.slane %v1027_v13, 1  ;;  %v1040_v48 = vrot.slane %v1039_v34, 2  ;;  %12382 = vst [vmem:[#allocation13_spill] sm:$0xff] %v7927_v45  ;;  %v1031_v50 = vrot.slane %v1030_v63, 4 }
  0xc9   : > { %v1044_v10 = vsel %vm806_vm0, %v866_v0, 0.0  ;;  %v1008_v33 = vadd.f32 %v1007_v43, %v1006_v41  ;;  %v1639_v35 = vsel %vm806_vm0, %v1325_v59, 0.0  ;;  %v1020_v15 = vadd.f32 %v1019_v5, %v1018_v44 }
  0xca   : > { %v871_v11 = vpop.xlane.xlu0 %870  ;;  %v976_v25 = vadd.f32 %v975_v29, %v974_v26  ;;  %v1197_v26 = vmul.f32 0.001953125, %v1015_v4  ;;  %v1326_v29 = vcombine.high %v1325_v59, %v1325_v59  ;;  %v1029_v24 = vadd.f32 %v1028_v38, %v1027_v13  ;;  %v876_v41 = vpop.xlane.xlu1 %875 }
  0xcb   : > { %v1051_v3 = vsel %vm806_vm0, %v871_v11, 0.0  ;;  %v1041_v61 = vadd.f32 %v1040_v48, %v1039_v34  ;;  %v1045_v56 = vrot.slane %v1044_v10, 4  ;;  %v1032_v4 = vadd.f32 %v1031_v50, %v1030_v63 }
  0xcc   : > { %v1052_v14 = vrot.slane %v1051_v3, 4  ;;  %v977_v1 = vrot.slane %v976_v25, 2  ;;  %v1640_v42 = vsel %vm806_vm0, %v1326_v29, 0.0  ;;  %v7939_v38 = vsub.f32 %v7644_v20, %v1194_v54 }
  0xcd   : > { %v1196_v48 = vmul.f32 0.001953125, %v1008_v33  ;;  %v1046_v43 = vadd.f32 %v1045_v56, %v1044_v10  ;;  %v1042_v0 = vrot.slane %v1041_v61, 1  ;;  %v7943_v44 = vsub.f32 %v7635_v17, %v1197_v26 }
  0xce   : > { %v881_v37 = vpop.xlane.xlu0 %880  ;;  %v1053_v12 = vadd.f32 %v1052_v14, %v1051_v3  ;;  %v978_v27 = vadd.f32 %v977_v1, %v976_v25  ;;  %v1641_v3 = vadd.f32 %v1640_v42, %v1639_v35  ;;  %12383 = vst [vmem:[#allocation14_spill] sm:$0xff] %v7939_v38  ;;  %v1021_v5 = vrot.slane %v1020_v15, 1 }
  0xcf   : > { %v1065_v53 = vsel %vm806_vm0, %v881_v37, 0.0  ;;  %v1257_v37 = vmul.f32 %v7924_v9, %v7924_v9  ;;  %12384 = vst [vmem:[#allocation15_spill] sm:$0xff] %v7943_v44  ;;  %v1033_v50 = vrot.slane %v1032_v4, 2  ;;  %v1259_v54 = vmul.f32 %v7927_v45, %v7927_v45 }
  0xd0   : > { %v1066_v8 = vrot.slane %v1065_v53, 4  ;;  %v1054_v14 = vrot.slane %v1053_v12, 2  ;;  %1642 = vadd.xlane.f32.xlu0 %v1641_v3  ;;  %v979_v1 = vrot.slane %v978_v27, 1  ;;  %v1047_v33 = vrot.slane %v1046_v43, 2 }
  0xd1   : > { %v1341_v13 = vrot.slane %v1257_v37, %v7615_v6  ;;  %v1043_v26 = vadd.f32 %v1042_v0, %v1041_v61  ;;  %v1058_v42 = vsel %vm806_vm0, %v876_v41, 0.0 }
  0xd2   : > { %v1067_v16 = vadd.f32 %v1066_v8, %v1065_v53  ;;  %v891_v11 = vpop.xlane.xlu0 %890  ;;  %v1199_v53 = vmul.f32 0.001953125, %v1029_v24  ;;  %v1055_v8 = vadd.f32 %v1054_v14, %v1053_v12  ;;  %v7949_v24 = vsub.f32 %v7675_v47, %v1196_v48  ;;  %v886_v12 = vpop.xlane.xlu1 %885 }
  0xd3   : > { %v1079_v34 = vsel %vm806_vm0, %v891_v11, 0.0  ;;  %v1342_v25 = vcombine.high %v1341_v13, %v1341_v13  ;;  %v1649_v63 = vsel %vm806_vm0, %v1341_v13, 0.0  ;;  %v1072_v37 = vsel %vm806_vm0, %v886_v12, 0.0 }
  0xd4   : > { %v1068_v57 = vrot.slane %v1067_v16, 2  ;;  %v1080_v59 = vrot.slane %v1079_v34, 4  ;;  %v7952_v17 = vsub.f32 %v7640_v19, %v1199_v53  ;;  %v1261_v47 = vmul.f32 %v7943_v44, %v7943_v44 }
  0xd5   : > { %v1650_v20 = vsel %vm806_vm0, %v1342_v25, 0.0  ;;  %v980_v3 = vadd.f32 %v979_v1, %v978_v27  ;;  %v1056_v14 = vrot.slane %v1055_v8, 1  ;;  %v1059_v48 = vrot.slane %v1058_v42, 4 }
  0xd6   : > { %v1069_v29 = vadd.f32 %v1068_v57, %v1067_v16  ;;  %v901_v10 = vpop.xlane.xlu0 %900  ;;  %v1651_v11 = vadd.f32 %v1650_v20, %v1649_v63  ;;  %v1081_v35 = vadd.f32 %v1080_v59, %v1079_v34  ;;  %v1357_v57 = vrot.slane %v1259_v54, %v7615_v6 }
  0xd7   : > { %v1034_v16 = vadd.f32 %v1033_v50, %v1032_v4  ;;  %v1093_v56 = vsel %vm806_vm0, %v901_v10, 0.0  ;;  %v1048_v34 = vadd.f32 %v1047_v33, %v1046_v43  ;;  %v1073_v41 = vrot.slane %v1072_v37, 4  ;;  %v896_v43 = vpop.xlane.xlu1 %895 }
  0xd8   : > { %1652 = vadd.xlane.f32.xlu0 %v1651_v11  ;;  %v1070_v13 = vrot.slane %v1069_v29, 1  ;;  %v1358_v19 = vcombine.high %v1357_v57, %v1357_v57  ;;  %v1082_v61 = vrot.slane %v1081_v35, 2  ;;  %v1659_v59 = vsel %vm806_vm0, %v1357_v57, 0.0 }
  0xd9   : > { %v1094_v53 = vrot.slane %v1093_v56, 4  ;;  %v1373_v0 = vrot.slane %v1261_v47, %v7615_v6  ;;  %v1201_v63 = vmul.f32 0.001953125, %v1043_v26  ;;  %v1022_v50 = vadd.f32 %v1021_v5, %v1020_v15 }
  0xda   : > { %v1660_v4 = vsel %vm806_vm0, %v1358_v19, 0.0  ;;  %v911_v25 = vpop.xlane.xlu0 %910  ;;  %v1035_v20 = vrot.slane %v1034_v16, 1  ;;  %v1192_v27 = vmul.f32 0.001953125, %v980_v3  ;;  %v1057_v1 = vadd.f32 %v1056_v14, %v1055_v8 }
  0xdb   : > { %v1661_v54 = vadd.f32 %v1660_v4, %v1659_v59  ;;  %v1074_v10 = vadd.f32 %v1073_v41, %v1072_v37  ;;  %v1374_v11 = vcombine.high %v1373_v0, %v1373_v0  ;;  %v1071_v33 = vadd.f32 %v1070_v13, %v1069_v29  ;;  %v906_v4 = vpop.xlane.xlu1 %905 }
  0xdc   : > { %v1049_v12 = vrot.slane %v1048_v34, 1  ;;  %v1083_v44 = vadd.f32 %v1082_v61, %v1081_v35  ;;  %v1060_v45 = vadd.f32 %v1059_v48, %v1058_v42  ;;  %v1095_v57 = vadd.f32 %v1094_v53, %v1093_v56 }
  0xdd   : > { %1662 = vadd.xlane.f32.xlu0 %v1661_v54  ;;  %v1669_v19 = vsel %vm806_vm0, %v1373_v0, 0.0  ;;  %v1670_v47 = vsel %vm806_vm0, %v1374_v11, 0.0  ;;  %v1263_v15 = vmul.f32 %v7952_v17, %v7952_v17  ;;  %v7968_v5 = vsub.f32 %v7647_v21, %v1201_v63 }
  0xde   : > { %v7970_v8 = vmul.f32 0.001953125, %v1022_v50  ;;  %v1036_v26 = vadd.f32 %v1035_v20, %v1034_v16  ;;  %v1671_v37 = vadd.f32 %v1670_v47, %v1669_v19  ;;  %v1075_v29 = vrot.slane %v1074_v10, 2  ;;  %v921_v3 = vpop.xlane.xlu0 %920 }
  0xdf   : > { %v1107_v35 = vsel %vm806_vm0, %v911_v25, 0.0  ;;  %v1086_v42 = vsel %vm806_vm0, %v896_v43, 0.0  ;;  %v1389_v56 = vrot.slane %v1263_v15, %v7615_v6  ;;  %v7976_v14 = vsub.f32 %v7666_v39, %v1192_v27 }
  0xe0   : > { %v1203_v13 = vmul.f32 0.001953125, %v1057_v1  ;;  %v1084_v61 = vrot.slane %v1083_v44, 1  ;;  %v1061_v48 = vrot.slane %v1060_v45, 2  ;;  %v1205_v21 = vmul.f32 0.001953125, %v1071_v33 }
  0xe1   : > { %1672 = vadd.xlane.f32.xlu0 %v1671_v37  ;;  %v1050_v41 = vadd.f32 %v1049_v12, %v1048_v34  ;;  %v1096_v59 = vrot.slane %v1095_v57, 2  ;;  %v1390_v16 = vcombine.high %v1389_v56, %v1389_v56  ;;  %v1108_v53 = vrot.slane %v1107_v35, 4 }
  0xe2   : > { %v1087_v0 = vrot.slane %v1086_v42, 4  ;;  %v1121_v25 = vsel %vm806_vm0, %v921_v3, 0.0  ;;  %v1100_v63 = vsel %vm806_vm0, %v906_v4, 0.0  ;;  %v1076_v50 = vadd.f32 %v1075_v29, %v1074_v10  ;;  %v931_v10 = vpop.xlane.xlu0 %930 }
  0xe3   : > { %v1679_v20 = vsel %vm806_vm0, %v1389_v56, 0.0  ;;  %v1680_v39 = vsel %vm806_vm0, %v1390_v16, 0.0  ;;  %v1265_v54 = vmul.f32 %v7968_v5, %v7968_v5  ;;  %v7984_v27 = vmul.f32 0.001953125, %v1036_v26 }
  0xe4   : > { %v1085_v34 = vadd.f32 %v1084_v61, %v1083_v44  ;;  %v1062_v1 = vadd.f32 %v1061_v48, %v1060_v45  ;;  %v1681_v11 = vadd.f32 %v1680_v39, %v1679_v20  ;;  %v1122_v43 = vrot.slane %v1121_v25, 4 }
  0xe5   : > { %v1101_v33 = vrot.slane %v1100_v63, 4  ;;  %v1405_v12 = vrot.slane %v1265_v54, %v7615_v6  ;;  %v1256_v19 = vmul.f32 %v7976_v14, %v7976_v14  ;;  %v7990_v47 = vsub.f32 %v7692_v58, %v1203_v13 }
  0xe6   : > { %v7993_v15 = vsub.f32 %v7710_v18, %v1205_v21  ;;  %v7995_v37 = vmul.f32 0.001953125, %v1050_v41  ;;  %v1088_v26 = vadd.f32 %v1087_v0, %v1086_v42  ;;  %1682 = vadd.xlane.f32.xlu0 %v1681_v11  ;;  %v1097_v45 = vadd.f32 %v1096_v59, %v1095_v57  ;;  %v916_v41 = vpop.xlane.xlu1 %915 }
  0xe7   : > { %12385 = vst [vmem:[#allocation16_spill] sm:$0xff] %v7990_v47  ;;  %v1077_v44 = vrot.slane %v1076_v50, 1  ;;  %v1109_v29 = vadd.f32 %v1108_v53, %v1107_v35  ;;  %v1406_v56 = vcombine.high %v1405_v12, %v1405_v12  ;;  %v7997_v3 = vmul.f32 0.001953125, %v1085_v34  ;;  %v941_v34 = vpop.xlane.xlu0 %940 }
  0xe8   : > { %12386 = vst [vmem:[#allocation17_spill] sm:$0xff] %v7993_v15  ;;  %v1063_v61 = vrot.slane %v1062_v1, 1  ;;  %v1333_v48 = vrot.slane %v1256_v19, %v7615_v6  ;;  %v1135_v16 = vsel %vm806_vm0, %v931_v10, 0.0  ;;  %v1123_v58 = vadd.f32 %v1122_v43, %v1121_v25 }
  0xe9   : > { %v1102_v13 = vadd.f32 %v1101_v33, %v1100_v63  ;;  %v1689_v18 = vsel %vm806_vm0, %v1405_v12, 0.0  ;;  %v1690_v21 = vsel %vm806_vm0, %v1406_v56, 0.0  ;;  %v1089_v42 = vrot.slane %v1088_v26, 2 }
  0xea   : > { %v1691_v4 = vadd.f32 %v1690_v21, %v1689_v18  ;;  %v1334_v57 = vcombine.high %v1333_v48, %v1333_v48  ;;  %v1114_v35 = vsel %vm806_vm0, %v916_v41, 0.0  ;;  %v1098_v59 = vrot.slane %v1097_v45, 1 }
  0xeb   : > { %v1078_v53 = vadd.f32 %v1077_v44, %v1076_v50  ;;  %v1110_v0 = vrot.slane %v1109_v29, 2  ;;  %v1136_v20 = vrot.slane %v1135_v16, 4  ;;  %v1644_v39 = vsel %vm806_vm0, %v1333_v48, 0.0 }
  0xec   : > { %1692 = vadd.xlane.f32.xlu0 %v1691_v4  ;;  %v1645_v25 = vsel %vm806_vm0, %v1334_v57, 0.0  ;;  %v1258_v63 = vmul.f32 %v7939_v38, %v7939_v38  ;;  %v1267_v54 = vmul.f32 %v7990_v47, %v7990_v47  ;;  %v1124_v11 = vrot.slane %v1123_v58, 2 }
  0xed   : > { %v1103_v43 = vrot.slane %v1102_v13, 2  ;;  %v1646_v33 = vadd.f32 %v1645_v25, %v1644_v39  ;;  %v1115_v12 = vrot.slane %v1114_v35, 4  ;;  %v1064_v19 = vadd.f32 %v1063_v61, %v1062_v1 }
  0xee   : > { %v1090_v50 = vadd.f32 %v1089_v42, %v1088_v26  ;;  %v1349_v10 = vrot.slane %v1258_v63, %v7615_v6  ;;  %v1421_v44 = vrot.slane %v1267_v54, %v7615_v6  ;;  %v1099_v56 = vadd.f32 %v1098_v59, %v1097_v45  ;;  %v926_v42 = vpop.xlane.xlu1 %925 }
  0xef   : > { %v1111_v48 = vadd.f32 %v1110_v0, %v1109_v29  ;;  %1647 = vadd.xlane.f32.xlu1 %v1646_v33  ;;  %v1137_v18 = vadd.f32 %v1136_v20, %v1135_v16  ;;  %v1149_v21 = vsel %vm806_vm0, %v941_v34, 0.0  ;;  %v1206_v41 = vmul.f32 0.001953125, %v1078_v53  ;;  %v951_v16 = vpop.xlane.xlu0 %950 }
  0xf0   : > { %v1350_v4 = vcombine.high %v1349_v10, %v1349_v10  ;;  %v1654_v57 = vsel %vm806_vm0, %v1349_v10, 0.0  ;;  %v1422_v47 = vcombine.high %v1421_v44, %v1421_v44  ;;  %v1125_v38 = vadd.f32 %v1124_v11, %v1123_v58 }
  0xf1   : > { %v1104_v39 = vadd.f32 %v1103_v43, %v1102_v13  ;;  %v1116_v25 = vadd.f32 %v1115_v12, %v1114_v35  ;;  %v1699_v1 = vsel %vm806_vm0, %v1421_v44, 0.0  ;;  %v1091_v26 = vrot.slane %v1090_v50, 1 }
  0xf2   : > { %v1655_v61 = vsel %vm806_vm0, %v1350_v4, 0.0  ;;  %v1700_v45 = vsel %vm806_vm0, %v1422_v47, 0.0  ;;  %v1150_v29 = vrot.slane %v1149_v21, 4  ;;  %v1138_v59 = vrot.slane %v1137_v18, 2 }
  0xf3   : > { %v1656_v0 = vadd.f32 %v1655_v61, %v1654_v57  ;;  %v1701_v53 = vadd.f32 %v1700_v45, %v1699_v1  ;;  %v1128_v20 = vsel %vm806_vm0, %v926_v42, 0.0  ;;  %v8018_v63 = vmul.f32 0.001953125, %v1064_v19 }
  0xf4   : > { %v1112_v58 = vrot.slane %v1111_v48, 1  ;;  %v1260_v13 = vmul.f32 %v7949_v24, %v7949_v24  ;;  %v1269_v35 = vmul.f32 %v7993_v15, %v7993_v15  ;;  %v1126_v54 = vrot.slane %v1125_v38, 1 }
  0xf5   : > { %v1105_v34 = vrot.slane %v1104_v39, 1  ;;  %v1117_v47 = vrot.slane %v1116_v25, 2  ;;  %1657 = vadd.xlane.f32.xlu1 %v1656_v0  ;;  %1702 = vadd.xlane.f32.xlu0 %v1701_v53  ;;  %v1163_v11 = vsel %vm806_vm0, %v951_v16, 0.0  ;;  %v1151_v43 = vadd.f32 %v1150_v29, %v1149_v21 }
  0xf6   : > { %v1129_v33 = vrot.slane %v1128_v20, 4  ;;  %v1365_v12 = vrot.slane %v1260_v13, %v7615_v6  ;;  %v1437_v19 = vrot.slane %v1269_v35, %v7615_v6  ;;  %v8027_v10 = vmul.f32 0.001953125, %v1099_v56 }
  0xf7   : > { %v8030_v44 = vsub.f32 %v7728_v32, %v1206_v41  ;;  %v1092_v4 = vadd.f32 %v1091_v26, %v1090_v50  ;;  %v1139_v57 = vadd.f32 %v1138_v59, %v1137_v18  ;;  %v1113_v1 = vadd.f32 %v1112_v58, %v1111_v48  ;;  %v936_v48 = vpop.xlane.xlu1 %935 }
  0xf8   : > { %v1366_v61 = vcombine.high %v1365_v12, %v1365_v12  ;;  %v1664_v45 = vsel %vm806_vm0, %v1365_v12, 0.0  ;;  %v1164_v42 = vrot.slane %v1163_v11, 4  ;;  %v1106_v0 = vadd.f32 %v1105_v34, %v1104_v39 }
  0xf9   : > { %v1118_v16 = vadd.f32 %v1117_v47, %v1116_v25  ;;  %v1438_v21 = vcombine.high %v1437_v19, %v1437_v19  ;;  %v1709_v29 = vsel %vm806_vm0, %v1437_v19, 0.0  ;;  %v1127_v53 = vadd.f32 %v1126_v54, %v1125_v38  ;;  %v961_v25 = vpop.xlane.xlu0 %960 }
  0xfa   : > { %v1152_v13 = vrot.slane %v1151_v43, 2  ;;  %v1130_v35 = vadd.f32 %v1129_v33, %v1128_v20  ;;  %v1665_v56 = vsel %vm806_vm0, %v1366_v61, 0.0  ;;  %v1208_v15 = vmul.f32 0.001953125, %v1092_v4 }
  0xfb   : > { %v1140_v32 = vrot.slane %v1139_v57, 1  ;;  %v1666_v41 = vadd.f32 %v1665_v56, %v1664_v45  ;;  %v1710_v50 = vsel %vm806_vm0, %v1438_v21, 0.0  ;;  %v1165_v26 = vadd.f32 %v1164_v42, %v1163_v11 }
  0xfc   : > { %v1711_v18 = vadd.f32 %v1710_v50, %v1709_v29  ;;  %v1142_v59 = vsel %vm806_vm0, %v936_v48, 0.0  ;;  %v8039_v39 = vsub.f32 %v7680_v49, %v7970_v8  ;;  %v1211_v38 = vmul.f32 0.001953125, %v1113_v1 }
  0xfd   : > { %v1210_v58 = vmul.f32 0.001953125, %v1106_v0  ;;  %v1119_v20 = vrot.slane %v1118_v16, 1  ;;  %1667 = vadd.xlane.f32.xlu1 %v1666_v41  ;;  %v8043_v54 = vsub.f32 %v7733_v36, %v7997_v3  ;;  %v8045_v34 = vmul.f32 0.001953125, %v1127_v53  ;;  %v946_v53 = vpop.xlane.xlu1 %945 }
  0xfe   : > { %v1153_v47 = vadd.f32 %v1152_v13, %v1151_v43  ;;  %v1131_v33 = vrot.slane %v1130_v35, 2  ;;  %1712 = vadd.xlane.f32.xlu0 %v1711_v18  ;;  %v1262_v11 = vmul.f32 %v8039_v39, %v8039_v39  ;;  %v1143_v12 = vrot.slane %v1142_v59, 4 }
  0xff   : > { %v1271_v49 = vmul.f32 %v8043_v54, %v8043_v54  ;;  %v1177_v8 = vsel %vm806_vm0, %v961_v25, 0.0  ;;  %v8054_v19 = vsub.f32 %v7697_v62, %v7984_v27  ;;  %v8057_v36 = vsub.f32 %v7752_v55, %v1208_v15 }
 0x100   : > { %v1141_v3 = vadd.f32 %v1140_v32, %v1139_v57  ;;  %v1166_v43 = vrot.slane %v1165_v26, 2  ;;  %v1381_v4 = vrot.slane %v1262_v11, %v7615_v6  ;;  %v8061_v1 = vsub.f32 %v7758_v60, %v1210_v58 }
 0x101   : > { %12387 = vst [vmem:[#allocation18_spill] sm:$0xff] %v8057_v36  ;;  %v1120_v61 = vadd.f32 %v1119_v20, %v1118_v16  ;;  %v1453_v45 = vrot.slane %v1271_v49, %v7615_v6  ;;  %v1264_v42 = vmul.f32 %v8054_v19, %v8054_v19  ;;  %v1154_v0 = vrot.slane %v1153_v47, 1 }
 0x102   : > { %12388 = vst [vmem:[#allocation19_spill] sm:$0xff] %v8061_v1  ;;  %v1382_v21 = vcombine.high %v1381_v4, %v1381_v4  ;;  %v1674_v62 = vsel %vm806_vm0, %v1381_v4, 0.0  ;;  %v1178_v27 = vrot.slane %v1177_v8, 4  ;;  %v1132_v55 = vadd.f32 %v1131_v33, %v1130_v35  ;;  %v956_v4 = vpop.xlane.xlu1 %955 }
 0x103   : > { %v1144_v15 = vadd.f32 %v1143_v12, %v1142_v59  ;;  %v1454_v57 = vcombine.high %v1453_v45, %v1453_v45  ;;  %v1719_v29 = vsel %vm806_vm0, %v1453_v45, 0.0  ;;  %v1215_v13 = vmul.f32 0.001953125, %v1141_v3 }
 0x104   : > { %v1167_v60 = vadd.f32 %v1166_v43, %v1165_v26  ;;  %v1675_v16 = vsel %vm806_vm0, %v1382_v21, 0.0  ;;  %v1397_v56 = vrot.slane %v1264_v42, %v7615_v6  ;;  %v1212_v32 = vmul.f32 0.001953125, %v1120_v61 }
 0x105   : > { %v1676_v41 = vadd.f32 %v1675_v16, %v1674_v62  ;;  %v1720_v50 = vsel %vm806_vm0, %v1454_v57, 0.0  ;;  %v1156_v48 = vsel %vm806_vm0, %v946_v53, 0.0  ;;  %v1155_v18 = vadd.f32 %v1154_v0, %v1153_v47 }
 0x106   : > { %v1721_v25 = vadd.f32 %v1720_v50, %v1719_v29  ;;  %v1179_v35 = vadd.f32 %v1178_v27, %v1177_v8  ;;  %v1398_v59 = vcombine.high %v1397_v56, %v1397_v56  ;;  %v1133_v58 = vrot.slane %v1132_v55, 1 }
 0x107   : > { %v1145_v20 = vrot.slane %v1144_v15, 2  ;;  %1677 = vadd.xlane.f32.xlu1 %v1676_v41  ;;  %v1684_v33 = vsel %vm806_vm0, %v1397_v56, 0.0  ;;  %v8075_v26 = vsub.f32 %v7747_v52, %v8027_v10  ;;  %v1168_v11 = vrot.slane %v1167_v60, 1  ;;  %v966_v41 = vpop.xlane.xlu1 %965 }
 0x108   : > { %1722 = vadd.xlane.f32.xlu0 %v1721_v25  ;;  %v1157_v12 = vrot.slane %v1156_v48, 4  ;;  %v1685_v49 = vsel %vm806_vm0, %v1398_v59, 0.0  ;;  %v8080_v47 = vsub.f32 %v7714_v22, %v7995_v37  ;;  %v8083_v8 = vsub.f32 %v7799_v46, %v1215_v13 }
 0x109   : > { %12389 = vst [vmem:[#allocation20_spill] sm:$0xff] %v8075_v26  ;;  %v1686_v3 = vadd.f32 %v1685_v49, %v1684_v33  ;;  %v1273_v43 = vmul.f32 %v8075_v26, %v8075_v26  ;;  %v8088_v52 = vsub.f32 %v7767_v7, %v1211_v38  ;;  %v8091_v10 = vsub.f32 %v7776_v23, %v1212_v32 }
 0x10a   : > { %v1217_v61 = vmul.f32 0.001953125, %v1155_v18  ;;  %v1180_v45 = vrot.slane %v1179_v35, 2  ;;  %v1266_v22 = vmul.f32 %v8080_v47, %v8080_v47  ;;  %v1146_v37 = vadd.f32 %v1145_v20, %v1144_v15 }
 0x10b   : > { %1687 = vadd.xlane.f32.xlu1 %v1686_v3  ;;  %v1469_v46 = vrot.slane %v1273_v43, %v7615_v6  ;;  %v1170_v42 = vsel %vm806_vm0, %v956_v4, 0.0  ;;  %v1275_v0 = vmul.f32 %v8088_v52, %v8088_v52  ;;  %v1134_v21 = vadd.f32 %v1133_v58, %v1132_v55 }
 0x10c   : > { %v1169_v7 = vadd.f32 %v1168_v11, %v1167_v60  ;;  %v1158_v38 = vadd.f32 %v1157_v12, %v1156_v48  ;;  %v1413_v23 = vrot.slane %v1266_v22, %v7615_v6  ;;  %v8104_v15 = vsub.f32 %v7722_v28, %v8018_v63 }
 0x10d   : > { %v1470_v62 = vcombine.high %v1469_v46, %v1469_v46  ;;  %v1729_v27 = vsel %vm806_vm0, %v1469_v46, 0.0  ;;  %v1485_v57 = vrot.slane %v1275_v0, %v7615_v6  ;;  %v1181_v29 = vadd.f32 %v1180_v45, %v1179_v35 }
 0x10e   : > { %v1171_v53 = vrot.slane %v1170_v42, 4  ;;  %v1414_v13 = vcombine.high %v1413_v23, %v1413_v23  ;;  %v1694_v16 = vsel %vm806_vm0, %v1413_v23, 0.0  ;;  %v1147_v56 = vrot.slane %v1146_v37, 1 }
 0x10f   : > { %v1730_v55 = vsel %vm806_vm0, %v1470_v62, 0.0  ;;  %v1486_v60 = vcombine.high %v1485_v57, %v1485_v57  ;;  %v1739_v32 = vsel %vm806_vm0, %v1485_v57, 0.0  ;;  %v1159_v50 = vrot.slane %v1158_v38, 2 }
 0x110   : > { %v1731_v48 = vadd.f32 %v1730_v55, %v1729_v27  ;;  %v1695_v18 = vsel %vm806_vm0, %v1414_v13, 0.0  ;;  %v1184_v25 = vsel %vm806_vm0, %v966_v41, 0.0  ;;  %v1268_v35 = vmul.f32 %v8104_v15, %v8104_v15 }
 0x111   : > { %v1696_v28 = vadd.f32 %v1695_v18, %v1694_v16  ;;  %v1740_v63 = vsel %vm806_vm0, %v1486_v60, 0.0  ;;  %v8116_v59 = vsub.f32 %v7783_v30, %v8045_v34  ;;  %v1219_v58 = vmul.f32 0.001953125, %v1169_v7 }
 0x112   : > { %v1182_v20 = vrot.slane %v1181_v29, 1  ;;  %1732 = vadd.xlane.f32.xlu0 %v1731_v48  ;;  %v1172_v33 = vadd.f32 %v1171_v53, %v1170_v42  ;;  %v1741_v11 = vadd.f32 %v1740_v63, %v1739_v32  ;;  %v8119_v12 = vsub.f32 %v7815_v2, %v1217_v61 }
 0x113   : > { %v1214_v49 = vmul.f32 0.001953125, %v1134_v21  ;;  %1697 = vadd.xlane.f32.xlu1 %v1696_v28  ;;  %v1429_v3 = vrot.slane %v1268_v35, %v7615_v6  ;;  %v1277_v43 = vmul.f32 %v8116_v59, %v8116_v59  ;;  %v1148_v4 = vadd.f32 %v1147_v56, %v1146_v37 }
 0x114   : > { %v1160_v45 = vadd.f32 %v1159_v50, %v1158_v38  ;;  %v1185_v22 = vrot.slane %v1184_v25, 4  ;;  %v1270_v30 = vmul.f32 %v8030_v44, %v8030_v44  ;;  %v1279_v2 = vmul.f32 %v8083_v8, %v8083_v8 }
 0x115   : > { %v1430_v34 = vcombine.high %v1429_v3, %v1429_v3  ;;  %v1704_v46 = vsel %vm806_vm0, %v1429_v3, 0.0  ;;  %v1501_v42 = vrot.slane %v1277_v43, %v7615_v6  ;;  %v8131_v61 = vsub.f32 %v7831_v31, %v1219_v58 }
 0x116   : > { %v1183_v0 = vadd.f32 %v1182_v20, %v1181_v29  ;;  %v1173_v21 = vrot.slane %v1172_v33, 2  ;;  %1742 = vadd.xlane.f32.xlu0 %v1741_v11  ;;  %v1445_v37 = vrot.slane %v1270_v30, %v7615_v6  ;;  %v1517_v62 = vrot.slane %v1279_v2, %v7615_v6 }
 0x117   : > { %v1705_v7 = vsel %vm806_vm0, %v1430_v34, 0.0  ;;  %v1502_v38 = vcombine.high %v1501_v42, %v1501_v42  ;;  %v1749_v23 = vsel %vm806_vm0, %v1501_v42, 0.0  ;;  %v1161_v27 = vrot.slane %v1160_v45, 1 }
 0x118   : > { %v1186_v57 = vadd.f32 %v1185_v22, %v1184_v25  ;;  %v1706_v53 = vadd.f32 %v1705_v7, %v1704_v46  ;;  %v1446_v13 = vcombine.high %v1445_v37, %v1445_v37  ;;  %v1714_v31 = vsel %vm806_vm0, %v1445_v37, 0.0 }
 0x119   : > { %v1750_v16 = vsel %vm806_vm0, %v1502_v38, 0.0  ;;  %v1518_v29 = vcombine.high %v1517_v62, %v1517_v62  ;;  %v1759_v56 = vsel %vm806_vm0, %v1517_v62, 0.0  ;;  %v1221_v55 = vmul.f32 0.001953125, %v1183_v0 }
 0x11a   : > { %1707 = vadd.xlane.f32.xlu1 %v1706_v53  ;;  %v1751_v60 = vadd.f32 %v1750_v16, %v1749_v23  ;;  %v1715_v32 = vsel %vm806_vm0, %v1446_v13, 0.0  ;;  %v1272_v41 = vmul.f32 %v8057_v36, %v8057_v36  ;;  %v8144_v50 = vsub.f32 %v7792_v40, %v1214_v49  ;;  %v12390_v16 = vld [vmem:[#allocation8_spill] sm:$0xff] }
 0x11b   : > { %v1174_v48 = vadd.f32 %v1173_v21, %v1172_v33  ;;  %v1760_v18 = vsel %vm806_vm0, %v1518_v29, 0.0  ;;  %v1281_v25 = vmul.f32 %v8119_v12, %v8119_v12  ;;  %v1187_v28 = vrot.slane %v1186_v57, 2 }
 0x11c   : > { %1752 = vadd.xlane.f32.xlu0 %v1751_v60  ;;  %v1716_v63 = vadd.f32 %v1715_v32, %v1714_v31  ;;  %v1761_v35 = vadd.f32 %v1760_v18, %v1759_v56  ;;  %v1461_v58 = vrot.slane %v1272_v41, %v7615_v6  ;;  %v1216_v20 = vmul.f32 0.001953125, %v1148_v4 }
 0x11d   : > { %v1533_v11 = vrot.slane %v1281_v25, %v7615_v6  ;;  %v1274_v3 = vmul.f32 %v8061_v1, %v8061_v1  ;;  %v1283_v40 = vmul.f32 %v8131_v61, %v8131_v61  ;;  %v8156_v33 = vsub.f32 %v7847_v51, %v1221_v55 }
 0x11e   : > { %v1162_v49 = vadd.f32 %v1161_v27, %v1160_v45  ;;  %1717 = vadd.xlane.f32.xlu1 %v1716_v63  ;;  %v1462_v43 = vcombine.high %v1461_v58, %v1461_v58  ;;  %v1724_v22 = vsel %vm806_vm0, %v1461_v58, 0.0  ;;  %v1175_v42 = vrot.slane %v1174_v48, 1 }
 0x11f   : > { %v1534_v30 = vcombine.high %v1533_v11, %v1533_v11  ;;  %v1769_v34 = vsel %vm806_vm0, %v1533_v11, 0.0  ;;  %v1477_v4 = vrot.slane %v1274_v3, %v7615_v6  ;;  %v1549_v46 = vrot.slane %v1283_v40, %v7615_v6 }
 0x120   : > { %v1188_v2 = vadd.f32 %v1187_v28, %v1186_v57  ;;  %1762 = vadd.xlane.f32.xlu0 %v1761_v35  ;;  %v1725_v0 = vsel %vm806_vm0, %v1462_v43, 0.0  ;;  %v1276_v51 = vmul.f32 %v8091_v10, %v8091_v10  ;;  %v1218_v53 = vmul.f32 0.001953125, %v1162_v49  ;;  %v12391_v35 = vld [vmem:[#allocation9_spill] sm:$0xff] }
 0x121   : > { %v1726_v45 = vadd.f32 %v1725_v0, %v1724_v22  ;;  %v1770_v21 = vsel %vm806_vm0, %v1534_v30, 0.0  ;;  %v1478_v37 = vcombine.high %v1477_v4, %v1477_v4  ;;  %v1734_v7 = vsel %vm806_vm0, %v1477_v4, 0.0 }
 0x122   : > { %v1771_v38 = vadd.f32 %v1770_v21, %v1769_v34  ;;  %v1550_v23 = vcombine.high %v1549_v46, %v1549_v46  ;;  %v1779_v62 = vsel %vm806_vm0, %v1549_v46, 0.0  ;;  %v1493_v27 = vrot.slane %v1276_v51, %v7615_v6 }
 0x123   : > { %1727 = vadd.xlane.f32.xlu1 %v1726_v45  ;;  %v1735_v57 = vsel %vm806_vm0, %v1478_v37, 0.0  ;;  %v1285_v13 = vmul.f32 %v8156_v33, %v8156_v33  ;;  %v8173_v31 = vsub.f32 %v12390_v16, %v1216_v20  ;;  %v1189_v29 = vrot.slane %v1188_v2, 1  ;;  %v12393_v37 = vld [vmem:[#allocation10_spill] sm:$0xff] }
 0x124   : > { %1772 = vadd.xlane.f32.xlu0 %v1771_v38  ;;  %v1780_v56 = vsel %vm806_vm0, %v1550_v23, 0.0  ;;  %v1494_v55 = vcombine.high %v1493_v27, %v1493_v27  ;;  %v1176_v60 = vadd.f32 %v1175_v42, %v1174_v48  ;;  %v1736_v32 = vadd.f32 %v1735_v57, %v1734_v7 }
 0x125   : > { %v1781_v41 = vadd.f32 %v1780_v56, %v1779_v62  ;;  %v1565_v18 = vrot.slane %v1285_v13, %v7615_v6  ;;  %v1744_v25 = vsel %vm806_vm0, %v1493_v27, 0.0  ;;  %v1278_v63 = vmul.f32 %v8144_v50, %v8144_v50 }
 0x126   : > { %v1745_v28 = vsel %vm806_vm0, %v1494_v55, 0.0  ;;  %v8182_v58 = vsub.f32 %v12391_v35, %v1218_v53  ;;  %v1190_v3 = vadd.f32 %v1189_v29, %v1188_v2  ;;  %v1280_v40 = vmul.f32 %v8173_v31, %v8173_v31  ;;  %v12395_v53 = vld [vmem:[#allocation11_spill] sm:$0xff] }
 0x127   : > { %1737 = vadd.xlane.f32.xlu1 %v1736_v32  ;;  %v1566_v20 = vcombine.high %v1565_v18, %v1565_v18  ;;  %v1789_v11 = vsel %vm806_vm0, %v1565_v18, 0.0  ;;  %v1509_v48 = vrot.slane %v1278_v63, %v7615_v6  ;;  %v1220_v49 = vmul.f32 0.001953125, %v1176_v60 }
 0x128   : > { %12392 = vst [vmem:[#allocation8_spill] sm:$0xff] %v8182_v58  ;;  %1782 = vadd.xlane.f32.xlu0 %v1781_v41  ;;  %v1746_v43 = vadd.f32 %v1745_v28, %v1744_v25  ;;  %v1525_v46 = vrot.slane %v1280_v40, %v7615_v6  ;;  %v1282_v42 = vmul.f32 %v8182_v58, %v8182_v58  ;;  %v1222_v2 = vmul.f32 0.001953125, %v1190_v3  ;;  %v2484_v3 = vld [vmem:[%s12124_s2 + $0x28] sm:$0xff]  ;;  %v2486_v40 = vld [vmem:[%s12124_s2 + $0x38] sm:$0xff] }
 0x129   : > { %v1790_v22 = vsel %vm806_vm0, %v1566_v20, 0.0  ;;  %v1510_v34 = vcombine.high %v1509_v48, %v1509_v48  ;;  %v1754_v4 = vsel %vm806_vm0, %v1509_v48, 0.0  ;;  %v8196_v7 = vsub.f32 %v12393_v37, %v1220_v49  ;;  %v2158_v48 = vld [vmem:[%s12123_s1 + $0x38] sm:$0xff]  ;;  %v8224_v49 = vpop.permute.xlu1 %2165 }
 0x12a   : > { %v1791_v30 = vadd.f32 %v1790_v22, %v1789_v11  ;;  %v1526_v51 = vcombine.high %v1525_v46, %v1525_v46  ;;  %v1541_v21 = vrot.slane %v1282_v42, %v7615_v6  ;;  %v1764_v38 = vsel %vm806_vm0, %v1525_v46, 0.0  ;;  %v2157_v22 = vld [vmem:[%s12123_s1 + $0x30] sm:$0xff]  ;;  %v8240_v46 = vpop.permute.xlu0 %2161 }
 0x12b   : > { %1747 = vadd.xlane.f32.xlu1 %v1746_v43  ;;  %v1755_v0 = vsel %vm806_vm0, %v1510_v34, 0.0  ;;  %12394 = vst [vmem:[#allocation9_spill] sm:$0xff] %v8196_v7  ;;  %v1284_v27 = vmul.f32 %v8196_v7, %v8196_v7  ;;  %v8203_v57 = vsub.f32 %v12395_v53, %v1222_v2  ;;  %v3040_v43 = vld [vmem:[%s12126_s4 + $0x48] sm:$0xff]  ;;  %v3039_v2 = vld [vmem:[%s12126_s4 + $0x40] sm:$0xff] }
 0x12c   : > { %1792 = vadd.xlane.f32.xlu0 %v1791_v30  ;;  %v1756_v45 = vadd.f32 %v1755_v0, %v1754_v4  ;;  %v1765_v23 = vsel %vm806_vm0, %v1526_v51, 0.0  ;;  %v1542_v62 = vcombine.high %v1541_v21, %v1541_v21  ;;  %v1774_v29 = vsel %vm806_vm0, %v1541_v21, 0.0  ;;  %v3032_v34 = vld [vmem:[%s12126_s4 + $0x8] sm:$0xff]  ;;  %v2485_v4 = vld [vmem:[%s12124_s2 + $0x30] sm:$0xff]  ;;  %v3031_v0 = vld [vmem:[%s12126_s4] sm:$0xff] }
 0x12d   : > { %12396 = vst [vmem:[#allocation10_spill] sm:$0xff] %v8203_v57  ;;  %v1766_v13 = vadd.f32 %v1765_v23, %v1764_v38  ;;  %v1557_v16 = vrot.slane %v1284_v27, %v7615_v6  ;;  %v1286_v55 = vmul.f32 %v8203_v57, %v8203_v57  ;;  %v8232_v30 = vpop.permute.xlu1 %2489 }
 0x12e   : > { %v1775_v56 = vsel %vm806_vm0, %v1542_v62, 0.0  ;;  %v8250_v51 = vpop.permute.xlu0 %2181 }
 0x12f   : > { %1757 = vadd.xlane.f32.xlu1 %v1756_v45  ;;  %v1558_v60 = vcombine.high %v1557_v16, %v1557_v16  ;;  %v1573_v32 = vrot.slane %v1286_v55, %v7615_v6  ;;  %v1776_v41 = vadd.f32 %v1775_v56, %v1774_v29  ;;  %v1784_v18 = vsel %vm806_vm0, %v1557_v16, 0.0 }
 0x130   : > { %v7506_v55 = vmov 269488144  }
 0x131   : > { %v1785_v25 = vsel %vm806_vm0, %v1558_v60, 0.0  ;;  %v1574_v28 = vcombine.high %v1573_v32, %v1573_v32  ;;  %v1794_v35 = vsel %vm806_vm0, %v1573_v32, 0.0  ;;  %v8242_v42 = vpop.permute.xlu1 %2493  ;;  %v2192_v60 = vunpack.c.l.s4 %v7506_v55  ;;  %v12401_v55 = vld [vmem:[#allocation7_spill] sm:$0xff] }
 0x132   : > { %v1786_v63 = vadd.f32 %v1785_v25, %v1784_v18  ;;  %v7507_v32 = vmov 842150450   ;;  %v7508_v18 = vmov 1414812756  }
 0x133   : > { %1767 = vadd.xlane.f32.xlu1 %v1766_v13  ;;  %v1795_v20 = vsel %vm806_vm0, %v1574_v28, 0.0  ;;  %v2206_v25 = vunpack.c.l.s4 %v7508_v18 }
 0x134   : > { %v1796_v11 = vadd.f32 %v1795_v20, %v1794_v35 }
 0x135   : > { %v8252_v45 = vpop.permute.xlu1 %2169 }
 0x137   : > { %1777 = vadd.xlane.f32.xlu1 %v1776_v41  ;;  %v2199_v41 = vunpack.c.l.s4 %v7507_v32 }
 0x139   : > { %v8254_v37 = vpop.permute.xlu1 %2173 }
 0x13a   : > { %12397 = vst [vmem:[#allocation11_spill] sm:$0xff] %v8254_v37 }
 0x13b   : > { %1787 = vadd.xlane.f32.xlu1 %v1786_v63  ;;  %v7509_v63 = vmov 1987475062  }
 0x13c   : > { %v2213_v35 = vunpack.c.l.s4 %v7509_v63 }
 0x13d   : > { %v8258_v27 = vpop.permute.xlu1 %2497 }
 0x13e   : > { %12398 = vst [vmem:[#allocation21_spill] sm:$0xff] %v8258_v27 }
 0x13f   : > { %1797 = vadd.xlane.f32.xlu1 %v1796_v11 }
 0x141   : > { %v8261_v20 = vpop.permute.xlu1 %2501 }
 0x142   : > { %2509 = vperm.xlu0 %6806, %v2484_v3   ;;  %12399 = vst [vmem:[#allocation22_spill] sm:$0xff] %v8261_v20 }
 0x146   : > { %2189 = vperm.xlu0 %6806, %v2158_v48  }
 0x14a   : > { %2517 = vperm.xlu0 %6806, %v2486_v40  }
 0x14e   : > { %3102 = vperm.xlu0 %6806, %v3040_v43  }
 0x150   : > { %2185 = vperm.xlu1 %6807, %v2157_v22   ;;  %v2193_v22 = vunpack.c.0.s8 %v2192_v60 }
 0x152   : > { %3062 = vperm.xlu0 %6806, %v3032_v34   ;;  %v2200_v34 = vunpack.c.0.s8 %v2199_v41  ;;  %v8267_v32 = vsub.s32 %v2193_v22, %v12401_v55 }
 0x154   : > { %2513 = vperm.xlu1 %6807, %v2485_v4   ;;  %v2207_v4 = vunpack.c.0.s8 %v2206_v25 }
 0x158   : > { %3097 = vperm.xlu1 %6807, %v3039_v2  }
 0x15c   : > { %3057 = vperm.xlu1 %6807, %v3031_v0   ;;  %v2214_v0 = vunpack.c.0.s8 %v2213_v35 }
 0x15d   : > { %v1643_v21 = vpop.xlane.xlu0 %1642 }
 0x15e   : > { %v1799_v38 = vsel %vm806_vm0, %v1643_v21, 0.0  ;;  %v8276_v60 = vsub.s32 %v2214_v0, %v12401_v55 }
 0x15f   : > { %v1800_v53 = vrot.slane %v1799_v38, 4 }
 0x161   : > { %v1801_v29 = vadd.f32 %v1800_v53, %v1799_v38 }
 0x163   : > { %v1802_v40 = vrot.slane %v1801_v29, 2 }
 0x165   : > { %v1653_v23 = vpop.xlane.xlu0 %1652  ;;  %v1803_v53 = vadd.f32 %v1802_v40, %v1801_v29 }
 0x166   : > { %v1813_v62 = vsel %vm806_vm0, %v1653_v23, 0.0  ;;  %v8264_v23 = vpop.permute.xlu1 %2177 }
 0x167   : > { %v1814_v13 = vrot.slane %v1813_v62, 4  ;;  %12400 = vst [vmem:[#allocation23_spill] sm:$0xff] %v8264_v23  ;;  %v1804_v29 = vrot.slane %v1803_v53, 1 }
 0x169   : > { %v1815_v11 = vadd.f32 %v1814_v13, %v1813_v62  ;;  %v8270_v62 = vsub.s32 %v2200_v34, %v12401_v55  ;;  %v8273_v13 = vsub.s32 %v2207_v4, %v12401_v55 }
 0x16a   : > { %v1663_v16 = vpop.xlane.xlu0 %1662  ;;  %v8291_v34 = vpop.permute.xlu1 %2505 }
 0x16b   : > { %v1827_v56 = vsel %vm806_vm0, %v1663_v16, 0.0  ;;  %v1816_v21 = vrot.slane %v1815_v11, 2  ;;  %12402 = vst [vmem:[#allocation7_spill] sm:$0xff] %v8291_v34 }
 0x16c   : > { %v1828_v28 = vrot.slane %v1827_v56, 4 }
 0x16d   : > { %v1817_v41 = vadd.f32 %v1816_v21, %v1815_v11 }
 0x16e   : > { %v1829_v3 = vadd.f32 %v1828_v28, %v1827_v56  ;;  %v1673_v48 = vpop.xlane.xlu0 %1672 }
 0x16f   : > { %v1841_v43 = vsel %vm806_vm0, %v1673_v48, 0.0  ;;  %v1818_v4 = vrot.slane %v1817_v41, 1 }
 0x170   : > { %v1842_v2 = vrot.slane %v1841_v43, 4  ;;  %v1830_v38 = vrot.slane %v1829_v3, 2 }
 0x172   : > { %v1843_v16 = vadd.f32 %v1842_v2, %v1841_v43  ;;  %v1831_v25 = vadd.f32 %v1830_v38, %v1829_v3 }
 0x173   : > { %v1683_v56 = vpop.xlane.xlu0 %1682 }
 0x174   : > { %v1855_v18 = vsel %vm806_vm0, %v1683_v56, 0.0  ;;  %v1844_v63 = vrot.slane %v1843_v16, 2  ;;  %v1832_v21 = vrot.slane %v1831_v25, 1 }
 0x175   : > { %v1856_v28 = vrot.slane %v1855_v18, 4 }
 0x177   : > { %v1857_v43 = vadd.f32 %v1856_v28, %v1855_v18  ;;  %v1805_v18 = vadd.f32 %v1804_v29, %v1803_v53  ;;  %v1845_v28 = vadd.f32 %v1844_v63, %v1843_v16  ;;  %v1819_v16 = vadd.f32 %v1818_v4, %v1817_v41 }
 0x178   : > { %v1833_v63 = vadd.f32 %v1832_v21, %v1831_v25 }
 0x179   : > { %v1858_v38 = vrot.slane %v1857_v43, 2  ;;  %v1693_v55 = vpop.xlane.xlu0 %1692  ;;  %v1846_v3 = vrot.slane %v1845_v28, 1  ;;  %v2025_v4 = vmul.f32 0.001953125, %v1819_v16 }
 0x17a   : > { %v1869_v22 = vsel %vm806_vm0, %v1693_v55, 0.0 }
 0x17b   : > { %v1859_v40 = vadd.f32 %v1858_v38, %v1857_v43  ;;  %v1870_v2 = vrot.slane %v1869_v22, 4  ;;  %v2023_v38 = vmul.f32 0.001953125, %v1805_v18  ;;  %v2027_v18 = vmul.f32 0.001953125, %v1833_v63 }
 0x17c   : > { %v1648_v29 = vpop.xlane.xlu1 %1647 }
 0x17d   : > { %v1860_v55 = vrot.slane %v1859_v40, 1  ;;  %v1806_v48 = vsel %vm806_vm0, %v1648_v29, 0.0  ;;  %v1871_v56 = vadd.f32 %v1870_v2, %v1869_v22  ;;  %v2055_v35 = vadd.f32 1e-05, %v2023_v38 }
 0x17e   : > { %v1807_v11 = vrot.slane %v1806_v48, 4 }
 0x17f   : > { %v1861_v53 = vadd.f32 %v1860_v55, %v1859_v40  ;;  %v1872_v41 = vrot.slane %v1871_v56, 2  ;;  %v1847_v40 = vadd.f32 %v1846_v3, %v1845_v28 }
 0x180   : > { %v1808_v2 = vadd.f32 %v1807_v11, %v1806_v48  ;;  %v2057_v11 = vadd.f32 1e-05, %v2025_v4 }
 0x181   : > { %v2031_v29 = vmul.f32 0.001953125, %v1861_v53  ;;  %v1873_v43 = vadd.f32 %v1872_v41, %v1871_v56  ;;  %v2059_v53 = vadd.f32 1e-05, %v2027_v18  ;;  %v2029_v3 = vmul.f32 0.001953125, %v1847_v40 }
 0x182   : > { %v1809_v55 = vrot.slane %v1808_v2, 2  ;;  %v1658_v57 = vpop.xlane.xlu1 %1657  ;;  %v1703_v7 = vpop.xlane.xlu0 %1702 }
 0x183   : > { %v2063_v25 = vadd.f32 1e-05, %v2031_v29  ;;  %v1874_v58 = vrot.slane %v1873_v43, 1  ;;  %v1820_v22 = vsel %vm806_vm0, %v1658_v57, 0.0  ;;  %v1883_v48 = vsel %vm806_vm0, %v1703_v7, 0.0 }
 0x184   : > { %v1810_v16 = vadd.f32 %v1809_v55, %v1808_v2  ;;  %v1821_v21 = vrot.slane %v1820_v22, 4  ;;  %v1884_v63 = vrot.slane %v1883_v48, 4 }
 0x185   : > { %6848 = vrsqrt.f32 %v2063_v25  ;;  %v1875_v38 = vadd.f32 %v1874_v58, %v1873_v43 }
 0x186   : > { %v1811_v28 = vrot.slane %v1810_v16, 1  ;;  %v1822_v41 = vadd.f32 %v1821_v21, %v1820_v22  ;;  %v1885_v0 = vadd.f32 %v1884_v63, %v1883_v48  ;;  %6850 = vrsqrt.f32 %v2055_v35 }
 0x187   : > { %v2033_v57 = vmul.f32 0.001953125, %v1875_v38  ;;  %6852 = vrsqrt.f32 %v2057_v11  ;;  %v2061_v22 = vadd.f32 1e-05, %v2029_v3 }
 0x188   : > { %v1812_v4 = vadd.f32 %v1811_v28, %v1810_v16  ;;  %v1823_v2 = vrot.slane %v1822_v41, 2  ;;  %v1886_v55 = vrot.slane %v1885_v0, 2  ;;  %6854 = vrsqrt.f32 %v2059_v53 }
 0x189   : > { %v2065_v43 = vadd.f32 1e-05, %v2033_v57 }
 0x18a   : > { %v2024_v21 = vmul.f32 0.001953125, %v1812_v4  ;;  %v1824_v18 = vadd.f32 %v1823_v2, %v1822_v41  ;;  %v1887_v40 = vadd.f32 %v1886_v55, %v1885_v0  ;;  %v1668_v48 = vpop.xlane.xlu1 %1667 }
 0x18b   : > { %6856 = vrsqrt.f32 %v2065_v43  ;;  %v1834_v16 = vsel %vm806_vm0, %v1668_v48, 0.0  ;;  %v1713_v63 = vpop.xlane.xlu0 %1712 }
 0x18c   : > { %v2056_v38 = vadd.f32 1e-05, %v2024_v21  ;;  %v1825_v28 = vrot.slane %v1824_v18, 1  ;;  %v1888_v58 = vrot.slane %v1887_v40, 1  ;;  %v1835_v53 = vrot.slane %v1834_v16, 4 }
 0x18d   : > { %v1897_v57 = vsel %vm806_vm0, %v1713_v63, 0.0  ;;  %6858 = vrsqrt.f32 %v2061_v22 }
 0x18e   : > { %v1826_v4 = vadd.f32 %v1825_v28, %v1824_v18  ;;  %v1889_v2 = vadd.f32 %v1888_v58, %v1887_v40  ;;  %v1836_v55 = vadd.f32 %v1835_v53, %v1834_v16  ;;  %6860 = vrsqrt.f32 %v2056_v38 }
 0x18f   : > { %v6849_v43 = vpop.eup %6848  ;;  %v1898_v3 = vrot.slane %v1897_v57, 4  ;;  %v12403_v53 = vrot.slane %v8252_v45, %v8267_v32  ;;  %v2211_v58 = vrot.slane %v8240_v46, %v8273_v13 }
 0x190   : > { %v2026_v11 = vmul.f32 0.001953125, %v1826_v4  ;;  %v2035_v0 = vmul.f32 0.001953125, %v1889_v2  ;;  %v1837_v35 = vrot.slane %v1836_v55, 2  ;;  %v2127_v41 = vmul.f32 %v6849_v43, %v7952_v17  ;;  %v6851_v7 = vpop.eup %6850 }
 0x191   : > { %v1899_v40 = vadd.f32 %v1898_v3, %v1897_v57  ;;  %v6853_v16 = vpop.eup %6852  ;;  %v2197_v2 = vrot.slane %v8240_v46, %v8267_v32  ;;  %v12405_v57 = vrot.slane %v8258_v27, %v8267_v32 }
 0x192   : > { %v2058_v63 = vadd.f32 1e-05, %v2026_v11  ;;  %v2067_v38 = vadd.f32 1e-05, %v2035_v0  ;;  %v1838_v28 = vadd.f32 %v1837_v35, %v1836_v55  ;;  %v2455_v4 = vmul.f32 %v12403_v53, %v2127_v41  ;;  %v6855_v17 = vpop.eup %6854  ;;  %v12404_v0 = vld [vmem:[#allocation12_spill] sm:$0xff] }
 0x193   : > { %v1900_v18 = vrot.slane %v1899_v40, 2  ;;  %v2119_v35 = vmul.f32 %v6851_v7, %v12404_v0  ;;  %v2121_v21 = vmul.f32 %v6853_v16, %v7924_v9  ;;  %v2218_v7 = vrot.slane %v8240_v46, %v8276_v60 }
 0x194   : > { %6862 = vrsqrt.f32 %v2058_v63  ;;  %v1839_v3 = vrot.slane %v1838_v28, 1  ;;  %v1678_v11 = vpop.xlane.xlu1 %1677  ;;  %v8373_v41 = vadd.f32 %v12405_v57, %v2455_v4  ;;  %v12407_v9 = vrot.slane %v8252_v45, %v8273_v13 }
 0x195   : > { %v6857_v55 = vpop.eup %6856  ;;  %6864 = vrsqrt.f32 %v2067_v38  ;;  %v1901_v53 = vadd.f32 %v1900_v18, %v1899_v40  ;;  %v1848_v22 = vsel %vm806_vm0, %v1678_v11, 0.0  ;;  %v1723_v48 = vpop.xlane.xlu0 %1722  ;;  %v2447_v29 = vmul.f32 %v2197_v2, %v2119_v35  ;;  %v12411_v35 = vld [vmem:[#allocation15_spill] sm:$0xff] }
 0x196   : > { %12406 = vst [vmem:[#allocation12_spill] sm:$0xff] %v8373_v41  ;;  %v1840_v56 = vadd.f32 %v1839_v3, %v1838_v28  ;;  %v1849_v25 = vrot.slane %v1848_v22, 4  ;;  %v1911_v63 = vsel %vm806_vm0, %v1723_v48, 0.0  ;;  %v2129_v43 = vmul.f32 %v6857_v55, %v7968_v5  ;;  %v12408_v3 = vld [vmem:[#allocation13_spill] sm:$0xff] }
 0x197   : > { %v1902_v0 = vrot.slane %v1901_v53, 1  ;;  %v1912_v38 = vrot.slane %v1911_v63, 4  ;;  %v6859_v18 = vpop.eup %6858  ;;  %v2123_v55 = vmul.f32 %v6855_v17, %v12408_v3  ;;  %v2449_v34 = vmul.f32 %v2211_v58, %v2121_v21 }
 0x198   : > { %v2028_v40 = vmul.f32 0.001953125, %v1840_v56  ;;  %v1850_v11 = vadd.f32 %v1849_v25, %v1848_v22  ;;  %v1688_v57 = vpop.xlane.xlu1 %1687  ;;  %v2457_v16 = vmul.f32 %v12407_v9, %v2129_v43  ;;  %v6861_v48 = vpop.eup %6860  ;;  %v12409_v56 = vrot.slane %v8258_v27, %v8273_v13 }
 0x199   : > { %v1913_v28 = vadd.f32 %v1912_v38, %v1911_v63  ;;  %v1862_v5 = vsel %vm806_vm0, %v1688_v57, 0.0  ;;  %v1903_v2 = vadd.f32 %v1902_v0, %v1901_v53  ;;  %v2125_v63 = vmul.f32 %v6859_v18, %v12411_v35 }
 0x19a   : > { %v2060_v23 = vadd.f32 1e-05, %v2028_v40  ;;  %v1851_v4 = vrot.slane %v1850_v11, 2  ;;  %v1863_v1 = vrot.slane %v1862_v5, 4  ;;  %v8391_v25 = vadd.f32 %v12409_v56, %v2457_v16 }
 0x19b   : > { %v1914_v43 = vrot.slane %v1913_v28, 2  ;;  %v2120_v57 = vmul.f32 %v6861_v48, %v7976_v14  ;;  %v12412_v9 = vrot.slane %v8232_v30, %v8267_v32  ;;  %v12413_v3 = vrot.slane %v8224_v49, %v8267_v32 }
 0x19c   : > { %12410 = vst [vmem:[#allocation13_spill] sm:$0xff] %v8391_v25  ;;  %6866 = vrsqrt.f32 %v2060_v23  ;;  %v1852_v21 = vadd.f32 %v1851_v4, %v1850_v11  ;;  %v1864_v58 = vadd.f32 %v1863_v1, %v1862_v5  ;;  %v12414_v1 = vrot.slane %v8232_v30, %v8273_v13  ;;  %v12415_v5 = vld [vmem:[#allocation14_spill] sm:$0xff] }
 0x19d   : > { %v1915_v40 = vadd.f32 %v1914_v43, %v1913_v28  ;;  %v8404_v16 = vadd.f32 %v12412_v9, %v2447_v29  ;;  %v2451_v23 = vmul.f32 %v12413_v3, %v2123_v55  ;;  %v2037_v28 = vmul.f32 0.001953125, %v1903_v2  ;;  %v12417_v3 = vld [vmem:[#allocation16_spill] sm:$0xff] }
 0x19e   : > { %v6863_v53 = vpop.eup %6862  ;;  %v1853_v0 = vrot.slane %v1852_v21, 1  ;;  %v1865_v18 = vrot.slane %v1864_v58, 2  ;;  %v8412_v4 = vadd.f32 %v12414_v1, %v2449_v34  ;;  %v12416_v29 = vrot.slane %v8224_v49, %v8273_v13 }
 0x19f   : > { %v6865_v11 = vpop.eup %6864  ;;  %v1916_v14 = vrot.slane %v1915_v40, 1  ;;  %v1733_v48 = vpop.xlane.xlu0 %1732  ;;  %v2122_v56 = vmul.f32 %v6863_v53, %v12415_v5  ;;  %v12418_v2 = vrot.slane %v8240_v46, %v8270_v62 }
 0x1a0   : > { %v2453_v43 = vmul.f32 %v12416_v29, %v2125_v63  ;;  %v1854_v35 = vadd.f32 %v1853_v0, %v1852_v21  ;;  %v1866_v9 = vadd.f32 %v1865_v18, %v1864_v58  ;;  %v1925_v17 = vsel %vm806_vm0, %v1733_v48, 0.0  ;;  %v1698_v55 = vpop.xlane.xlu1 %1697 }
 0x1a1   : > { %v2131_v22 = vmul.f32 %v6865_v11, %v12417_v3  ;;  %v1926_v38 = vrot.slane %v1925_v17, 4  ;;  %v1876_v34 = vsel %vm806_vm0, %v1698_v55, 0.0  ;;  %v2448_v1 = vmul.f32 %v12418_v2, %v2120_v57 }
 0x1a2   : > { %v2450_v25 = vmul.f32 %v2218_v7, %v2122_v56  ;;  %v2030_v53 = vmul.f32 0.001953125, %v1854_v35  ;;  %v1917_v5 = vadd.f32 %v1916_v14, %v1915_v40  ;;  %v1867_v26 = vrot.slane %v1866_v9, 1 }
 0x1a3   : > { %v1877_v41 = vrot.slane %v1876_v34, 4  ;;  %v2069_v63 = vadd.f32 1e-05, %v2037_v28  ;;  %v1927_v21 = vadd.f32 %v1926_v38, %v1925_v17  ;;  %v1743_v58 = vpop.xlane.xlu0 %1742  ;;  %v12419_v0 = vrot.slane %v8242_v42, %v8267_v32 }
 0x1a4   : > { %v12420_v11 = vrot.slane %v8254_v37, %v8267_v32  ;;  %v1868_v29 = vadd.f32 %v1867_v26, %v1866_v9  ;;  %v1939_v7 = vsel %vm806_vm0, %v1743_v58, 0.0  ;;  %v12421_v40 = vrot.slane %v8232_v30, %v8276_v60 }
 0x1a5   : > { %v8427_v18 = vadd.f32 %v12419_v0, %v2451_v23  ;;  %v1878_v46 = vadd.f32 %v1877_v41, %v1876_v34  ;;  %v1928_v28 = vrot.slane %v1927_v21, 2  ;;  %v1940_v38 = vrot.slane %v1939_v7, 4 }
 0x1a6   : > { %v2459_v48 = vmul.f32 %v12420_v11, %v2131_v22  ;;  %v2778_v57 = vadd.f32 %v12421_v40, %v2450_v25  ;;  %v12422_v17 = vrot.slane %v8232_v30, %v8270_v62  ;;  %v12423_v23 = vrot.slane %v8242_v42, %v8273_v13  ;;  %v6867_v22 = vpop.eup %6866 }
 0x1a7   : > { %v2062_v26 = vadd.f32 1e-05, %v2030_v53  ;;  %v2039_v41 = vmul.f32 0.001953125, %v1917_v5  ;;  %v1879_v35 = vrot.slane %v1878_v46, 2  ;;  %v12424_v9 = vrot.slane %v8261_v20, %v8267_v32  ;;  %v1708_v34 = vpop.xlane.xlu1 %1707 }
 0x1a8   : > { %v2776_v14 = vadd.f32 %v12422_v17, %v2448_v1  ;;  %v8442_v56 = vadd.f32 %v12423_v23, %v2453_v43  ;;  %6868 = vrsqrt.f32 %v2069_v63  ;;  %v1929_v25 = vadd.f32 %v1928_v28, %v1927_v21 }
 0x1a9   : > { %v8447_v55 = vadd.f32 %v12424_v9, %v2459_v48  ;;  %v1941_v3 = vadd.f32 %v1940_v38, %v1939_v7  ;;  %v2124_v30 = vmul.f32 %v6867_v22, %v7949_v24  ;;  %v2032_v2 = vmul.f32 0.001953125, %v1868_v29  ;;  %v1753_v11 = vpop.xlane.xlu0 %1752 }
 0x1aa   : > { %v1880_v1 = vadd.f32 %v1879_v35, %v1878_v46  ;;  %v1890_v43 = vsel %vm806_vm0, %v1708_v34, 0.0  ;;  %v2840_v58 = vcombine.low %v8412_v4, %v2778_v57  ;;  %v1930_v53 = vrot.slane %v1929_v25, 1 }
 0x1ab   : > { %12425 = vst [vmem:[#allocation15_spill] sm:$0xff] %v8447_v55  ;;  %v1942_v5 = vrot.slane %v1941_v3, 2  ;;  %v1891_v0 = vrot.slane %v1890_v43, 4  ;;  %v2839_v40 = vcombine.low %v8404_v16, %v2776_v14  ;;  %6870 = vrsqrt.f32 %v2062_v26  ;;  %v1718_v29 = vpop.xlane.xlu1 %1717 }
 0x1ac   : > { %v2071_v48 = vadd.f32 1e-05, %v2039_v41  ;;  %v1881_v63 = vrot.slane %v1880_v1, 1  ;;  %v1953_v21 = vsel %vm806_vm0, %v1753_v11, 0.0  ;;  %v12426_v46 = vrot.slane %v8224_v49, %v8270_v62 }
 0x1ad   : > { %v1943_v7 = vadd.f32 %v1942_v5, %v1941_v3  ;;  %v1892_v28 = vadd.f32 %v1891_v0, %v1890_v43  ;;  %v1954_v24 = vrot.slane %v1953_v21, 4  ;;  %v2064_v4 = vadd.f32 1e-05, %v2032_v2  ;;  %v1763_v41 = vpop.xlane.xlu0 %1762 }
 0x1ae   : > { %v2452_v38 = vmul.f32 %v12426_v46, %v2124_v30  ;;  %v1931_v57 = vadd.f32 %v1930_v53, %v1929_v25  ;;  %v1904_v17 = vsel %vm806_vm0, %v1718_v29, 0.0  ;;  %v8459_v23 = vrot.slane %v2840_v58, %v7615_v6 }
 0x1af   : > { %v1882_v16 = vadd.f32 %v1881_v63, %v1880_v1  ;;  %v1944_v14 = vrot.slane %v1943_v7, 1  ;;  %v1893_v22 = vrot.slane %v1892_v28, 2  ;;  %v1955_v26 = vadd.f32 %v1954_v24, %v1953_v21 }
 0x1b0   : > { %6872 = vrsqrt.f32 %v2071_v48  ;;  %v1905_v35 = vrot.slane %v1904_v17, 4  ;;  %v1967_v9 = vsel %vm806_vm0, %v1763_v41, 0.0  ;;  %v8463_v3 = vrot.slane %v2839_v40, %v7615_v6  ;;  %v1728_v5 = vpop.xlane.xlu1 %1727 }
 0x1b1   : > { %v1945_v34 = vadd.f32 %v1944_v14, %v1943_v7  ;;  %v1894_v30 = vadd.f32 %v1893_v22, %v1892_v28  ;;  %v1956_v25 = vrot.slane %v1955_v26, 2  ;;  %v12427_v2 = vrot.slane %v8242_v42, %v8270_v62  ;;  %v1773_v21 = vpop.xlane.xlu0 %1772 }
 0x1b2   : > { %6874 = vrsqrt.f32 %v2064_v4  ;;  %v2041_v1 = vmul.f32 0.001953125, %v1931_v57  ;;  %v1906_v58 = vadd.f32 %v1905_v35, %v1904_v17  ;;  %v1968_v53 = vrot.slane %v1967_v9, 4  ;;  %v8468_v0 = vpop.eup %6868 }
 0x1b3   : > { %v2780_v43 = vadd.f32 %v12427_v2, %v2452_v38  ;;  %v2034_v11 = vmul.f32 0.001953125, %v1882_v16  ;;  %v2043_v48 = vmul.f32 0.001953125, %v1945_v34  ;;  %v1957_v63 = vadd.f32 %v1956_v25, %v1955_v26 }
 0x1b4   : > { %v1895_v7 = vrot.slane %v1894_v30, 1  ;;  %v1907_v28 = vrot.slane %v1906_v58, 2  ;;  %v1969_v24 = vadd.f32 %v1968_v53, %v1967_v9  ;;  %v1918_v29 = vsel %vm806_vm0, %v1728_v5, 0.0  ;;  %v1738_v41 = vpop.xlane.xlu1 %1737 }
 0x1b5   : > { %v1958_v46 = vrot.slane %v1957_v63, 1  ;;  %v1919_v38 = vrot.slane %v1918_v29, 4  ;;  %v2857_v4 = vcombine.low %v8427_v18, %v2780_v43  ;;  %v8476_v17 = vpop.eup %6870  ;;  %v2073_v16 = vadd.f32 1e-05, %v2041_v1  ;;  %v1783_v2 = vpop.xlane.xlu0 %1782 }
 0x1b6   : > { %v1908_v14 = vadd.f32 %v1907_v28, %v1906_v58  ;;  %v1970_v22 = vrot.slane %v1969_v24, 2  ;;  %v1981_v26 = vsel %vm806_vm0, %v1773_v21, 0.0  ;;  %v2066_v35 = vadd.f32 1e-05, %v2034_v11 }
 0x1b7   : > { %v2075_v34 = vadd.f32 1e-05, %v2043_v48  ;;  %v1959_v9 = vadd.f32 %v1958_v46, %v1957_v63  ;;  %v1920_v25 = vadd.f32 %v1919_v38, %v1918_v29  ;;  %v1896_v53 = vadd.f32 %v1895_v7, %v1894_v30 }
 0x1b8   : > { %v1971_v5 = vadd.f32 %v1970_v22, %v1969_v24  ;;  %v1982_v40 = vrot.slane %v1981_v26, 4  ;;  %v1932_v18 = vsel %vm806_vm0, %v1738_v41, 0.0  ;;  %v1909_v57 = vrot.slane %v1908_v14, 1  ;;  %v1748_v11 = vpop.xlane.xlu1 %1747 }
 0x1b9   : > { %v2045_v43 = vmul.f32 0.001953125, %v1959_v9  ;;  %v1921_v55 = vrot.slane %v1920_v25, 2  ;;  %v1933_v20 = vrot.slane %v1932_v18, 4  ;;  %v1995_v21 = vsel %vm806_vm0, %v1783_v2, 0.0  ;;  %v1793_v22 = vpop.xlane.xlu0 %1792 }
 0x1ba   : > { %v8480_v1 = vpop.eup %6872  ;;  %v1972_v58 = vrot.slane %v1971_v5, 1  ;;  %v1983_v28 = vadd.f32 %v1982_v40, %v1981_v26  ;;  %v8484_v48 = vrot.slane %v2857_v4, %v7615_v6  ;;  %6876 = vrsqrt.f32 %v2073_v16 }
 0x1bb   : > { %12428 = vst [vmem:[#allocation14_spill] sm:$0xff] %v8480_v1  ;;  %v2077_v30 = vadd.f32 1e-05, %v2045_v43  ;;  %v1922_v63 = vadd.f32 %v1921_v55, %v1920_v25  ;;  %v1934_v7 = vadd.f32 %v1933_v20, %v1932_v18  ;;  %6878 = vrsqrt.f32 %v2075_v34 }
 0x1bc   : > { %v8486_v24 = vpop.eup %6874  ;;  %v2036_v29 = vmul.f32 0.001953125, %v1896_v53  ;;  %v1984_v46 = vrot.slane %v1983_v28, 2  ;;  %v1996_v38 = vrot.slane %v1995_v21, 4  ;;  %v1910_v41 = vadd.f32 %v1909_v57, %v1908_v14  ;;  %v1758_v16 = vpop.xlane.xlu1 %1757 }
 0x1bd   : > { %v1923_v9 = vrot.slane %v1922_v63, 1  ;;  %v1935_v40 = vrot.slane %v1934_v7, 2  ;;  %v1946_v26 = vsel %vm806_vm0, %v1748_v11, 0.0  ;;  %6880 = vrsqrt.f32 %v2077_v30 }
 0x1be   : > { %v1973_v2 = vadd.f32 %v1972_v58, %v1971_v5  ;;  %v1985_v4 = vadd.f32 %v1984_v46, %v1983_v28  ;;  %v1997_v36 = vadd.f32 %v1996_v38, %v1995_v21  ;;  %v1947_v20 = vrot.slane %v1946_v26, 4 }
 0x1bf   : > { %v1924_v43 = vadd.f32 %v1923_v9, %v1922_v63  ;;  %v1936_v55 = vadd.f32 %v1935_v40, %v1934_v7  ;;  %v2009_v25 = vsel %vm806_vm0, %v1793_v22, 0.0  ;;  %6882 = vrsqrt.f32 %v2066_v35 }
 0x1c0   : > { %v2068_v34 = vadd.f32 1e-05, %v2036_v29  ;;  %v1986_v53 = vrot.slane %v1985_v4, 1  ;;  %v1998_v18 = vrot.slane %v1997_v36, 2  ;;  %v2038_v27 = vmul.f32 0.001953125, %v1910_v41  ;;  %v1768_v58 = vpop.xlane.xlu1 %1767 }
 0x1c1   : > { %v1937_v57 = vrot.slane %v1936_v55, 1  ;;  %v1948_v14 = vadd.f32 %v1947_v20, %v1946_v26  ;;  %v2010_v37 = vrot.slane %v2009_v25, 4  ;;  %v2047_v1 = vmul.f32 0.001953125, %v1973_v2 }
 0x1c2   : > { %v1987_v11 = vadd.f32 %v1986_v53, %v1985_v4  ;;  %v1999_v30 = vadd.f32 %v1998_v18, %v1997_v36  ;;  %v1960_v5 = vsel %vm806_vm0, %v1758_v16, 0.0  ;;  %v2040_v28 = vmul.f32 0.001953125, %v1924_v43 }
 0x1c3   : > { %v1938_v21 = vadd.f32 %v1937_v57, %v1936_v55  ;;  %v1949_v63 = vrot.slane %v1948_v14, 2  ;;  %v2011_v7 = vadd.f32 %v2010_v37, %v2009_v25  ;;  %v1961_v35 = vrot.slane %v1960_v5, 4 }
 0x1c4   : > { %v2049_v46 = vmul.f32 0.001953125, %v1987_v11  ;;  %v2000_v38 = vrot.slane %v1999_v30, 1  ;;  %v1974_v29 = vsel %vm806_vm0, %v1768_v58, 0.0  ;;  %v8492_v22 = vpop.eup %6876  ;;  %v2070_v41 = vadd.f32 1e-05, %v2038_v27  ;;  %v1778_v43 = vpop.xlane.xlu1 %1777 }
 0x1c5   : > { %v2042_v9 = vmul.f32 0.001953125, %v1938_v21  ;;  %v1950_v40 = vadd.f32 %v1949_v63, %v1948_v14  ;;  %v2012_v26 = vrot.slane %v2011_v7, 2  ;;  %v6879_v2 = vpop.eup %6878  ;;  %v2079_v36 = vadd.f32 1e-05, %v2047_v1  ;;  %v8494_v63 = vpop.permute.xlu0 %2509 }
 0x1c6   : > { %v2001_v4 = vadd.f32 %v2000_v38, %v1999_v30  ;;  %v1962_v16 = vadd.f32 %v1961_v35, %v1960_v5  ;;  %v1975_v20 = vrot.slane %v1974_v29, 4  ;;  %6884 = vrsqrt.f32 %v2068_v34 }
 0x1c7   : > { %v2072_v55 = vadd.f32 1e-05, %v2040_v28  ;;  %v1951_v37 = vrot.slane %v1950_v40, 1  ;;  %v2013_v25 = vadd.f32 %v2012_v26, %v2011_v7  ;;  %v6881_v53 = vpop.eup %6880  ;;  %v2081_v18 = vadd.f32 1e-05, %v2049_v46 }
 0x1c8   : > { %v2051_v57 = vmul.f32 0.001953125, %v2001_v4  ;;  %v1963_v11 = vrot.slane %v1962_v16, 2  ;;  %v1976_v58 = vadd.f32 %v1975_v20, %v1974_v29  ;;  %6886 = vrsqrt.f32 %v2070_v41  ;;  %v1788_v41 = vpop.xlane.xlu1 %1787 }
 0x1c9   : > { %v2074_v27 = vadd.f32 1e-05, %v2042_v9  ;;  %v1952_v21 = vadd.f32 %v1951_v37, %v1950_v40  ;;  %v2014_v14 = vrot.slane %v2013_v25, 1  ;;  %v8496_v1 = vpop.eup %6882  ;;  %6888 = vrsqrt.f32 %v2079_v36 }
 0x1ca   : > { %v2083_v30 = vadd.f32 1e-05, %v2051_v57  ;;  %v1964_v5 = vadd.f32 %v1963_v11, %v1962_v16  ;;  %v1977_v34 = vrot.slane %v1976_v58, 2  ;;  %6890 = vrsqrt.f32 %v2072_v55 }
 0x1cb   : > { %v2044_v28 = vmul.f32 0.001953125, %v1952_v21  ;;  %v2015_v7 = vadd.f32 %v2014_v14, %v2013_v25  ;;  %v2139_v46 = vmul.f32 %v6879_v2, %v8088_v52  ;;  %6892 = vrsqrt.f32 %v2081_v18 }
 0x1cc   : > { %v1965_v38 = vrot.slane %v1964_v5, 1  ;;  %v1978_v35 = vadd.f32 %v1977_v34, %v1976_v58  ;;  %v2141_v29 = vmul.f32 %v6881_v53, %v8116_v59  ;;  %6894 = vrsqrt.f32 %v2074_v27  ;;  %v8506_v59 = vpop.permute.xlu0 %2189 }
 0x1cd   : > { %v2076_v9 = vadd.f32 1e-05, %v2044_v28  ;;  %v2053_v40 = vmul.f32 0.001953125, %v2015_v7  ;;  %v2126_v26 = vmul.f32 %v8476_v17, %v8039_v39  ;;  %6896 = vrsqrt.f32 %v2083_v30 }
 0x1ce   : > { %v1966_v36 = vadd.f32 %v1965_v38, %v1964_v5  ;;  %v1979_v4 = vrot.slane %v1978_v35, 1  ;;  %v1988_v16 = vsel %vm806_vm0, %v1778_v43, 0.0  ;;  %v12429_v52 = vrot.slane %v8250_v51, %v8267_v32  ;;  %v1798_v5 = vpop.xlane.xlu1 %1797 }
 0x1cf   : > { %6898 = vrsqrt.f32 %v2076_v9  ;;  %v2085_v20 = vadd.f32 1e-05, %v2053_v40  ;;  %v1989_v55 = vrot.slane %v1988_v16, 4  ;;  %v12430_v53 = vrot.slane %v8250_v51, %v8273_v13 }
 0x1d0   : > { %v2467_v2 = vmul.f32 %v12429_v52, %v2139_v46  ;;  %v2046_v37 = vmul.f32 0.001953125, %v1966_v36  ;;  %v1980_v25 = vadd.f32 %v1979_v4, %v1978_v35  ;;  %v2665_v17 = vrot.slane %v8494_v63, %v8267_v32  ;;  %v8513_v18 = vpop.eup %6884 }
 0x1d1   : > { %v2469_v39 = vmul.f32 %v12430_v53, %v2141_v29  ;;  %6900 = vrsqrt.f32 %v2085_v20  ;;  %v2672_v43 = vrot.slane %v8494_v63, %v8270_v62  ;;  %v2679_v57 = vrot.slane %v8494_v63, %v8273_v13 }
 0x1d2   : > { %v1990_v11 = vadd.f32 %v1989_v55, %v1988_v16  ;;  %v2078_v58 = vadd.f32 1e-05, %v2046_v37  ;;  %v2048_v27 = vmul.f32 0.001953125, %v1980_v25  ;;  %v12431_v21 = vrot.slane %v8224_v49, %v8276_v60  ;;  %v8523_v34 = vpop.eup %6886  ;;  %v8538_v16 = vpop.permute.xlu0 %2517 }
 0x1d3   : > { %v2002_v30 = vsel %vm806_vm0, %v1788_v41, 0.0  ;;  %v2686_v28 = vrot.slane %v8494_v63, %v8276_v60  ;;  %v8527_v7 = vadd.f32 %v2665_v17, %v2467_v2  ;;  %v6889_v35 = vpop.eup %6888  ;;  %v8529_v9 = vadd.f32 %v2679_v57, %v2469_v39 }
 0x1d4   : > { %v2454_v14 = vmul.f32 %v12431_v21, %v2126_v26  ;;  %v1991_v46 = vrot.slane %v1990_v11, 2  ;;  %v2003_v38 = vrot.slane %v2002_v30, 4  ;;  %6902 = vrsqrt.f32 %v2078_v58  ;;  %v8534_v41 = vpop.eup %6890  ;;  %v8555_v21 = vpop.permute.xlu1 %2185 }
 0x1d5   : > { %v2080_v29 = vadd.f32 1e-05, %v2048_v27  ;;  %v12432_v49 = vrot.slane %v8242_v42, %v8276_v60  ;;  %v2393_v36 = vrot.slane %v8506_v59, %v8267_v32  ;;  %v2016_v20 = vsel %vm806_vm0, %v1798_v5, 0.0  ;;  %v6893_v52 = vpop.eup %6892 }
 0x1d6   : > { %v1992_v26 = vadd.f32 %v1991_v46, %v1990_v11  ;;  %v2004_v4 = vadd.f32 %v2003_v38, %v2002_v30  ;;  %v2400_v2 = vrot.slane %v8506_v59, %v8270_v62  ;;  %v2017_v42 = vrot.slane %v2016_v20, 4  ;;  %v8544_v37 = vpop.eup %6894 }
 0x1d7   : > { %v2782_v40 = vadd.f32 %v12432_v49, %v2454_v14  ;;  %6904 = vrsqrt.f32 %v2080_v29  ;;  %v2407_v53 = vrot.slane %v8506_v59, %v8273_v13  ;;  %v6897_v57 = vpop.eup %6896 }
 0x1d8   : > { %v1993_v25 = vrot.slane %v1992_v26, 1  ;;  %v2005_v17 = vrot.slane %v2004_v4, 2  ;;  %v2018_v27 = vadd.f32 %v2017_v42, %v2016_v20  ;;  %v2147_v58 = vmul.f32 %v6897_v57, %v8131_v61 }
 0x1d9   : > { %v2858_v55 = vcombine.low %v8442_v56, %v2782_v40  ;;  %v2728_v56 = vrot.slane %v8538_v16, %v8270_v62  ;;  %v6899_v14 = vpop.eup %6898 }
 0x1da   : > { %v1994_v30 = vadd.f32 %v1993_v25, %v1992_v26  ;;  %v2006_v5 = vadd.f32 %v2005_v17, %v2004_v4  ;;  %v2140_v29 = vmul.f32 %v6899_v14, %v8091_v10  ;;  %v2365_v26 = vrot.slane %v8555_v21, %v8267_v32 }
 0x1db   : > { %v2872_v11 = vrot.slane %v2858_v55, %v7615_v6  ;;  %v2019_v55 = vrot.slane %v2018_v27, 2  ;;  %v6901_v39 = vpop.eup %6900  ;;  %v12433_v4 = vrot.slane %v8250_v51, %v8270_v62  ;;  %v12434_v10 = vcombine.high %v8463_v3, %v8459_v23 }
 0x1dc   : > { %v2050_v20 = vmul.f32 0.001953125, %v1994_v30  ;;  %v2007_v42 = vrot.slane %v2006_v5, 1  ;;  %v2379_v14 = vrot.slane %v8555_v21, %v8273_v13  ;;  %v2149_v57 = vmul.f32 %v6901_v39, %v8156_v33 }
 0x1dd   : > { %v2874_v49 = vcombine.high %v8484_v48, %v2872_v11  ;;  %v2873_v40 = vcombine.low %v8484_v48, %v2872_v11  ;;  %v2468_v25 = vmul.f32 %v12433_v4, %v2140_v29  ;;  %v12435_v48 = vcombine.low %v8463_v3, %v8459_v23 }
 0x1de   : > { %v2082_v30 = vadd.f32 1e-05, %v2050_v20  ;;  %v2008_v61 = vadd.f32 %v2007_v42, %v2006_v5  ;;  %v2020_v38 = vadd.f32 %v2019_v55, %v2018_v27  ;;  %v6903_v46 = vpop.eup %6902  ;;  %v2372_v29 = vrot.slane %v8555_v21, %v8270_v62 }
 0x1df   : > { %v3000_v17 = vpack.c.bf16 %v2874_v49, %v12434_v10  ;;  %v2999_v11 = vpack.c.bf16 %v2873_v40, %v12435_v48  ;;  %v2143_v49 = vmul.f32 %v6889_v35, %v8083_v8  ;;  %v2145_v4 = vmul.f32 %v6893_v52, %v8119_v12  ;;  %v8584_v40 = vpop.permute.xlu1 %2513  ;;  %v12437_v10 = vld [vmem:[#allocation17_spill] sm:$0xff] }
 0x1e0   : > { %v2142_v23 = vmul.f32 %v6903_v46, %v8144_v50  ;;  %6906 = vrsqrt.f32 %v2082_v30  ;;  %v2052_v3 = vmul.f32 0.001953125, %v2008_v61  ;;  %v2021_v5 = vrot.slane %v2020_v38, 1 }
 0x1e1   : > { %3272 = vmatprep.subr.bf16.mxu0 %v3000_v17  ;;  %6751 = vmatprep.subr.bf16.mxu1 %v3000_v17  ;;  %v6905_v33 = vpop.eup %6904  ;;  %v8589_v39 = vadd.f32 %v2672_v43, %v2468_v25  ;;  %v8591_v27 = vmul.f32 %v2393_v36, %v2147_v58  ;;  %v2386_v8 = vrot.slane %v8555_v21, %v8276_v60 }
 0x1e2   : > { %3273 = vmatpush1.bf16.msra.mxu0 %v2999_v11  ;;  %6755 = vmatpush1.bf16.msra.mxu1 %v2999_v11  ;;  %v8595_v12 = vmul.f32 %v2365_v26, %v2143_v49  ;;  %v2084_v50 = vadd.f32 1e-05, %v2052_v3  ;;  %v8597_v35 = vmul.f32 %v2407_v53, %v2149_v57  ;;  %v2022_v52 = vadd.f32 %v2021_v5, %v2020_v38  ;;  %v12439_v11 = vld [vmem:[#allocation14_spill] sm:$0xff]  ;;  %v12445_v57 = vld [vmem:[#allocation21_spill] sm:$0xff] }
 0x1e3   : > { %v8599_v46 = vmul.f32 %v2379_v14, %v2145_v4  ;;  %v2693_v55 = vrot.slane %v8584_v40, %v8267_v32  ;;  %v2700_v43 = vrot.slane %v8584_v40, %v8270_v62  ;;  %v2707_v36 = vrot.slane %v8584_v40, %v8273_v13  ;;  %v12447_v4 = vld [vmem:[#allocation18_spill] sm:$0xff] }
 0x1e4   : > { %v2128_v58 = vmul.f32 %v8486_v24, %v8054_v19  ;;  %v12436_v20 = vrot.slane %v8250_v51, %v8276_v60  ;;  %6908 = vrsqrt.f32 %v2084_v50  ;;  %v2054_v38 = vmul.f32 0.001953125, %v2022_v52 }
 0x1e5   : > { %v2144_v42 = vmul.f32 %v6905_v33, %v8173_v31  ;;  %v2130_v26 = vmul.f32 %v8496_v1, %v8080_v47  ;;  %v2132_v25 = vmul.f32 %v8513_v18, %v8104_v15  ;;  %v2133_v17 = vmul.f32 %v8468_v0, %v12437_v10  ;;  %v12441_v18 = vld [vmem:[#allocation11_spill] sm:$0xff]  ;;  %v12449_v33 = vld [vmem:[#allocation22_spill] sm:$0xff] }
 0x1e6   : > { %v2470_v53 = vmul.f32 %v12436_v20, %v2142_v23  ;;  %v2134_v19 = vmul.f32 %v8523_v34, %v8030_v44  ;;  %v2086_v24 = vadd.f32 1e-05, %v2054_v38  ;;  %v2714_v51 = vrot.slane %v8584_v40, %v8276_v60  ;;  %v12453_v38 = vld [vmem:[#allocation12_spill] sm:$0xff]  ;;  %v12455_v10 = vld [vmem:[#allocation19_spill] sm:$0xff] }
 0x1e7   : > { %v12438_v48 = vrot.slane %v8252_v45, %v8270_v62  ;;  %v2135_v47 = vmul.f32 %v12439_v11, %v8043_v54  ;;  %v12440_v15 = vrot.slane %v8252_v45, %v8276_v60  ;;  %v12442_v0 = vrot.slane %v12441_v18, %v8270_v62 }
 0x1e8   : > { %v12443_v44 = vrot.slane %v12441_v18, %v8273_v13  ;;  %v12444_v30 = vrot.slane %v12441_v18, %v8276_v60  ;;  %v2798_v54 = vadd.f32 %v2686_v28, %v2470_v53  ;;  %6910 = vrsqrt.f32 %v2086_v24  ;;  %v12460_v18 = vld [vmem:[#allocation15_spill] sm:$0xff] }
 0x1e9   : > { %v2456_v31 = vmul.f32 %v12438_v48, %v2128_v58  ;;  %v2458_v1 = vmul.f32 %v12440_v15, %v2130_v26  ;;  %v2460_v14 = vmul.f32 %v12442_v0, %v2132_v25  ;;  %v12446_v45 = vrot.slane %v12445_v57, %v8270_v62  ;;  %v12459_v15 = vld [vmem:[#allocation13_spill] sm:$0xff] }
 0x1ea   : > { %v2461_v34 = vmul.f32 %v12443_v44, %v2133_v17  ;;  %v2462_v61 = vmul.f32 %v12444_v30, %v2134_v19  ;;  %v2136_v23 = vmul.f32 %v8534_v41, %v12447_v4  ;;  %v12448_v3 = vrot.slane %v12445_v57, %v8276_v60  ;;  %v6907_v53 = vpop.eup %6906  ;;  %v12454_v41 = vld [vmem:[#allocation20_spill] sm:$0xff]  ;;  %v12456_v19 = vld [vmem:[#allocation23_spill] sm:$0xff] }
 0x1eb   : > { %v2784_v49 = vadd.f32 %v12446_v45, %v2456_v31  ;;  %v12450_v50 = vrot.slane %v12449_v33, %v8270_v62  ;;  %v12451_v63 = vrot.slane %v12449_v33, %v8273_v13  ;;  %v12452_v58 = vrot.slane %v12449_v33, %v8276_v60  ;;  %v12458_v31 = vld [vmem:[#allocation8_spill] sm:$0xff] }
 0x1ec   : > { %v2786_v5 = vadd.f32 %v12448_v3, %v2458_v1  ;;  %v2137_v25 = vmul.f32 %v8492_v22, %v12454_v41  ;;  %v2138_v17 = vmul.f32 %v8544_v37, %v12455_v10  ;;  %v12457_v24 = vrot.slane %v12456_v19, %v8267_v32 }
 0x1ed   : > { %v2788_v52 = vadd.f32 %v12450_v50, %v2460_v14  ;;  %v2789_v28 = vadd.f32 %v12451_v63, %v2461_v34  ;;  %v2790_v20 = vadd.f32 %v12452_v58, %v2462_v61  ;;  %v2875_v26 = vcombine.low %v12453_v38, %v2784_v49 }
 0x1ee   : > { %v2463_v48 = vmul.f32 %v12457_v24, %v2135_v47  ;;  %v2146_v11 = vmul.f32 %v6907_v53, %v12458_v31  ;;  %v2876_v1 = vcombine.low %v12459_v15, %v2786_v5  ;;  %v12461_v34 = vrot.slane %v12456_v19, %v8270_v62  ;;  %v6909_v3 = vpop.eup %6908  ;;  %v12464_v5 = vld [vmem:[#allocation7_spill] sm:$0xff] }
 0x1ef   : > { %v2893_v0 = vcombine.low %v12460_v18, %v2788_v52  ;;  %v2894_v14 = vcombine.low %v2789_v28, %v2790_v20  ;;  %v2883_v44 = vrot.slane %v2875_v26, %v7615_v6  ;;  %v12462_v37 = vrot.slane %v12456_v19, %v8273_v13  ;;  %v12469_v20 = vld [vmem:[#allocation9_spill] sm:$0xff] }
 0x1f0   : > { %v2464_v22 = vmul.f32 %v12461_v34, %v2136_v23  ;;  %v12463_v47 = vrot.slane %v12456_v19, %v8276_v60  ;;  %v2474_v57 = vmul.f32 %v2386_v8, %v2146_v11  ;;  %v2890_v45 = vrot.slane %v2876_v1, %v7615_v6 }
 0x1f1   : > { %v2465_v30 = vmul.f32 %v12462_v37, %v2137_v25  ;;  %v2901_v49 = vrot.slane %v2893_v0, %v7615_v6  ;;  %v2908_v4 = vrot.slane %v2894_v14, %v7615_v6  ;;  %v12465_v33 = vrot.slane %v12464_v5, %v8267_v32 }
 0x1f2   : > { %v2466_v61 = vmul.f32 %v12463_v47, %v2138_v17  ;;  %v12466_v50 = vrot.slane %v12464_v5, %v8270_v62  ;;  %v12467_v63 = vrot.slane %v12464_v5, %v8273_v13  ;;  %v12468_v8 = vrot.slane %v12464_v5, %v8276_v60  ;;  %v6911_v15 = vpop.eup %6910  ;;  %v6832_v5 = vld [vmem:[%s12125_s3] sm:$0xff]  }
 0x1f3   : > { %v2791_v23 = vadd.f32 %v12465_v33, %v2463_v48  ;;  %v2148_v53 = vmul.f32 %v6909_v3, %v12469_v20  ;;  %v2472_v38 = vmul.f32 %v2372_v29, %v2144_v42  ;;  %v2892_v26 = vcombine.high %v2883_v44, %v2890_v45  ;;  %v6838_v33 = vld [vmem:[%s12125_s3 + $0x40] sm:$0xff]   ;;  %v6841_v20 = vld [vmem:[%s12125_s3 + $0x58] sm:$0xff]  }
 0x1f4   : > { %v2792_v52 = vadd.f32 %v12466_v50, %v2464_v22  ;;  %v2793_v28 = vadd.f32 %v12467_v63, %v2465_v30  ;;  %v2794_v58 = vadd.f32 %v12468_v8, %v2466_v61  ;;  %v2910_v41 = vcombine.high %v2901_v49, %v2908_v4  ;;  %v6834_v50 = vld [vmem:[%s12125_s3 + $0x10] sm:$0xff]   ;;  %v6836_v63 = vld [vmem:[%s12125_s3 + $0x20] sm:$0xff]   ;;  %v6839_v8 = vld [vmem:[%s12125_s3 + $0x48] sm:$0xff]  }
 0x1f5   : > { %v2891_v25 = vcombine.low %v2883_v44, %v2890_v45  ;;  %v2909_v10 = vcombine.low %v2901_v49, %v2908_v4  ;;  %v2476_v24 = vmul.f32 %v2400_v2, %v2148_v53  ;;  %v2802_v48 = vadd.f32 %v2714_v51, %v2474_v57  ;;  %v12470_v51 = vld [vmem:[#allocation10_spill] sm:$0xff]  ;;  %v3103_v53 = vpop.permute.xlu0 %3102 }
 0x1f6   : > { %v2911_v17 = vcombine.low %v2791_v23, %v2792_v52  ;;  %v2912_v19 = vcombine.low %v2793_v28, %v2794_v58  ;;  %v3002_v31 = vpack.c.bf16 %v2910_v41, %v2892_v26  ;;  %v2929_v11 = vcombine.low %v8527_v7, %v8589_v39  ;;  %v6833_v23 = vld [vmem:[%s12125_s3 + $0x8] sm:$0xff]   ;;  %v6835_v52 = vld [vmem:[%s12125_s3 + $0x18] sm:$0xff]   ;;  %v6840_v58 = vld [vmem:[%s12125_s3 + $0x50] sm:$0xff]  }
 0x1f7   : > { %v2801_v1 = vadd.f32 %v2707_v36, %v8599_v46  ;;  %v3001_v21 = vpack.c.bf16 %v2909_v10, %v2891_v25  ;;  %v2930_v42 = vcombine.low %v8529_v9, %v2798_v54  ;;  %v2804_v18 = vadd.f32 %v2728_v56, %v2476_v24  ;;  %v6837_v28 = vld [vmem:[%s12125_s3 + $0x28] sm:$0xff]  }
 0x1f8   : > { %v2926_v29 = vrot.slane %v2912_v19, %v7615_v6  ;;  %v2800_v2 = vadd.f32 %v2700_v43, %v2472_v38  ;;  %3274 = vmatprep.subr.bf16.mxu0 %v3002_v31  ;;  %6752 = vmatprep.subr.bf16.mxu1 %v3002_v31  ;;  %v2150_v7 = vmul.f32 %v6911_v15, %v12470_v51  ;;  %v3098_v38 = vpop.permute.xlu1 %3097 }
 0x1f9   : > { %3275 = vmatpush1.bf16.msra.mxu0 %v3001_v21  ;;  %6756 = vmatpush1.bf16.msra.mxu1 %v3001_v21  ;;  %v2919_v39 = vrot.slane %v2911_v17, %v7615_v6  ;;  %v2937_v46 = vrot.slane %v2929_v11, %v7615_v6  ;;  %v2944_v9 = vrot.slane %v2930_v42, %v7615_v6  ;;  %v3063_v41 = vpop.permute.xlu0 %3062 }
 0x1fa   : > { %v12471_v56 = vrot.slane %v8538_v16, %v8267_v32  ;;  %v2799_v62 = vadd.f32 %v2693_v55, %v8595_v12  ;;  %v2948_v43 = vcombine.low %v2801_v1, %v2802_v48  ;;  %v12472_v54 = vrot.slane %v8506_v59, %v8276_v60 }
 0x1fb   : > { %v2928_v14 = vcombine.high %v2919_v39, %v2926_v29  ;;  %v2946_v44 = vcombine.high %v2937_v46, %v2944_v9  ;;  %v2927_v34 = vcombine.low %v2919_v39, %v2926_v29  ;;  %v2945_v22 = vcombine.low %v2937_v46, %v2944_v9  ;;  %v6842_v46 = vld [vmem:[%s12125_s3 + $0x30] sm:$0xff]  }
 0x1fc   : > { %v2803_v36 = vadd.f32 %v12471_v56, %v8591_v27  ;;  %v2478_v0 = vmul.f32 %v12472_v54, %v2150_v7  ;;  %v12473_v37 = vrot.slane %v8538_v16, %v8273_v13  ;;  %v2947_v47 = vcombine.low %v2799_v62, %v2800_v2  ;;  %v3058_v10 = vpop.permute.xlu1 %3057 }
 0x1fd   : > { %v12474_v32 = vrot.slane %v8538_v16, %v8276_v60  ;;  %v3004_v12 = vpack.c.bf16 %v2946_v44, %v2928_v14  ;;  %v3003_v55 = vpack.c.bf16 %v2945_v22, %v2927_v34  ;;  %v2962_v59 = vrot.slane %v2948_v43, %v7615_v6 }
 0x1fe   : > { %v2805_v30 = vadd.f32 %v12473_v37, %v8597_v35  ;;  %v2965_v27 = vcombine.low %v2803_v36, %v2804_v18  ;;  %v2955_v57 = vrot.slane %v2947_v47, %v7615_v6 }
 0x1ff   : > { %v2806_v40 = vadd.f32 %v12474_v32, %v2478_v0  ;;  %3276 = vmatprep.subr.bf16.mxu0 %v3004_v12  ;;  %6753 = vmatprep.subr.bf16.mxu1 %v3004_v12 }
 0x200   : > { %3277 = vmatpush1.bf16.msra.mxu0 %v3003_v55  ;;  %6757 = vmatpush1.bf16.msra.mxu1 %v3003_v55  ;;  %v2973_v13 = vrot.slane %v2965_v27, %v7615_v6  ;;  %v2964_v45 = vcombine.high %v2955_v57, %v2962_v59  ;;  %v2963_v4 = vcombine.low %v2955_v57, %v2962_v59  ;;  %v3042_v55 = vld [vmem:[%s12126_s4 + $0x58] sm:$0xff] }
 0x201   : > { %v2966_v61 = vcombine.low %v2805_v30, %v2806_v40 }
 0x203   : > { %v2980_v35 = vrot.slane %v2966_v61, %v7615_v6  ;;  %v12475_v6 = vmov 0   ;;  %v3047_v61 = vld [vmem:[%s12126_s4 + $0x80] sm:$0xff] }
 0x205   : > { %v2982_v49 = vcombine.high %v2973_v13, %v2980_v35  ;;  %v2981_v60 = vcombine.low %v2973_v13, %v2980_v35  ;;  %v3041_v13 = vld [vmem:[%s12126_s4 + $0x50] sm:$0xff] }
 0x206   : > { %v3033_v35 = vld [vmem:[%s12126_s4 + $0x10] sm:$0xff] }
 0x207   : > { %v3006_v16 = vpack.c.bf16 %v2982_v49, %v2964_v45  ;;  %v3005_v3 = vpack.c.bf16 %v2981_v60, %v2963_v4  ;;  %v3048_v45 = vld [vmem:[%s12126_s4 + $0x88] sm:$0xff]  ;;  %v3034_v60 = vld [vmem:[%s12126_s4 + $0x18] sm:$0xff] }
 0x209   : > { %3278 = vmatprep.subr.bf16.mxu0 %v3006_v16  ;;  %6754 = vmatprep.subr.bf16.mxu1 %v3006_v16  ;;  %v6843_v16 = vld [vmem:[%s12125_s3 + $0x38] sm:$0xff]  }
 0x20a   : > { %3279 = vmatpush1.bf16.msra.mxu0 %v3005_v3  ;;  %6758 = vmatpush1.bf16.msra.mxu1 %v3005_v3 }
 0x20d   : > { %6660 = vmatmul.mubr.msk.bf16.vlgmr.msra.gmra.mrb[0].mxu0 %vm3235_vm1, %v6832_v5  ;;  %6668 = vmatmul.mubr.msk.bf16.vlgmr.msra.gmra.mrb[0].mxu1 %vm3235_vm1, %v6838_v33 }
 0x20e   : > { %3314 = vmatprep.mubr.bf16.mxu0 %v12475_v6  ;;  %3394 = vmatprep.mubr.bf16.mxu1 %v12475_v6 }
 0x215   : > { %6661 = vmatmul.mubr.msk.bf16.gmra.mrb[4].mxu0 %vm3235_vm1, %v6833_v23  ;;  %6669 = vmatmul.mubr.msk.bf16.gmra.mrb[4].mxu1 %vm3235_vm1, %v6839_v8 }
 0x216   : > { %3324 = vmatprep.mubr.bf16.mxu0 %v12475_v6  ;;  %3404 = vmatprep.mubr.bf16.mxu1 %v12475_v6 }
 0x21d   : > { %6662 = vmatmul.mubr.msk.bf16.gmra.mrb[8].mxu0 %vm3235_vm1, %v6834_v50  ;;  %6670 = vmatmul.mubr.msk.bf16.gmra.mrb[8].mxu1 %vm3235_vm1, %v6840_v58 }
 0x21e   : > { %3334 = vmatprep.mubr.bf16.mxu0 %v12475_v6  ;;  %3414 = vmatprep.mubr.bf16.mxu1 %v12475_v6 }
 0x225   : > { %6663 = vmatmul.mubr.msk.bf16.gmra.mrb[12].mxu0 %vm3235_vm1, %v6835_v52  ;;  %6671 = vmatmul.mubr.msk.bf16.gmra.mrb[12].mxu1 %vm3235_vm1, %v6841_v20 }
 0x226   : > { %3344 = vmatprep.mubr.bf16.mxu0 %v12475_v6  ;;  %3601 = vmatprep.mubr.bf16.mxu1 %v12475_v6 }
 0x22d   : > { %6664 = vmatmul.mubr.msk.bf16.gmra.mrb[16].mxu0 %vm3235_vm1, %v6836_v63 }
 0x22e   : > { %3354 = vmatprep.mubr.bf16.mxu0 %v12475_v6 }
 0x235   : > { %6665 = vmatmul.mubr.msk.bf16.gmra.mrb[20].mxu0 %vm3235_vm1, %v6837_v28 }
 0x236   : > { %3364 = vmatprep.mubr.bf16.mxu0 %v12475_v6 }
 0x23d   : > { %6666 = vmatmul.mubr.msk.bf16.gmra.mrb[24].mxu0 %vm3235_vm1, %v6842_v46 }
 0x23e   : > { %3374 = vmatprep.mubr.bf16.mxu0 %v12475_v6 }
 0x245   : > { %6667 = vmatmul.mubr.msk.bf16.gmra.mrb[28].mxu0 %vm3235_vm1, %v6843_v16 }
 0x2e0   : > { %v3306_v26 = vpop.f32.mrb[0].mxu0  ;;  %v8830_v59 = vpop.f32.mrb[0].mxu1 }
 0x2e1   : > { %v3308_v25 = vpop.f32.mrb[1].mxu0  ;;  %v3307_v19 = vadd.f32 %v3306_v26, %v3058_v10  ;;  %v8835_v57 = vpop.f32.mrb[1].mxu1 }
 0x2e2   : > { %v3310_v17 = vpop.f32.mrb[2].mxu0  ;;  %v3309_v31 = vadd.f32 %v3308_v25, %v3058_v10  ;;  %v8846_v49 = vpop.f32.mrb[2].mxu1 }
 0x2e3   : > { %v3311_v24 = vadd.f32 %v3310_v17, %v3063_v41  ;;  %v3312_v48 = vpop.f32.mrb[3].mxu0  ;;  %v8848_v4 = vpop.f32.mrb[3].mxu1 }
 0x2e4   : > { %v3313_v11 = vadd.f32 %v3312_v48, %v3063_v41 }
 0x2e5   : > { %v3425_v15 = vpack.c.bf16 %v3311_v24, %v3307_v19 }
 0x2e6   : > { %v3426_v1 = vpack.c.bf16 %v3313_v11, %v3309_v31 }
 0x2e8   : > { %v8790_v21 = vpop.f32.mrb[4].mxu0  ;;  %3569 = vmatprep.subr.bf16.mxu1 %v3426_v1  ;;  %v8865_v28 = vpop.f32.mrb[4].mxu1 }
 0x2e9   : > { %v8792_v29 = vpop.f32.mrb[5].mxu0  ;;  %3570 = vmatpush1.bf16.msra.mxu1 %v3425_v15  ;;  %v8867_v58 = vpop.f32.mrb[5].mxu1 }
 0x2ea   : > { %v8794_v42 = vpop.f32.mrb[6].mxu0  ;;  %v8869_v20 = vpop.f32.mrb[6].mxu1 }
 0x2eb   : > { %v8796_v18 = vpop.f32.mrb[7].mxu0 }
 0x2f0   : > { %v8798_v2 = vpop.f32.mrb[8].mxu0 }
 0x2f1   : > { %v8800_v51 = vpop.f32.mrb[9].mxu0 }
 0x2f2   : > { %v8802_v7 = vpop.f32.mrb[10].mxu0 }
 0x2f3   : > { %v8804_v39 = vpop.f32.mrb[11].mxu0 }
 0x2f8   : > { %v8809_v9 = vpop.f32.mrb[12].mxu0 }
 0x2f9   : > { %12476 = vst [vmem:[#allocation16_spill] sm:$0xff] %v8809_v9  ;;  %v8812_v56 = vpop.f32.mrb[13].mxu0 }
 0x2fa   : > { %12477 = vst [vmem:[#allocation17_spill] sm:$0xff] %v8812_v56  ;;  %v8815_v36 = vpop.f32.mrb[14].mxu0 }
 0x2fb   : > { %12478 = vst [vmem:[#allocation14_spill] sm:$0xff] %v8815_v36  ;;  %v8817_v62 = vpop.f32.mrb[15].mxu0 }
 0x2fc   : > { %12479 = vst [vmem:[#allocation11_spill] sm:$0xff] %v8817_v62 }
 0x300   : > { %v3346_v43 = vpop.f32.mrb[16].mxu0 }
 0x301   : > { %v3348_v54 = vpop.f32.mrb[17].mxu0  ;;  %v3347_v14 = vadd.f32 %v3346_v43, %v3098_v38 }
 0x302   : > { %v3350_v0 = vpop.f32.mrb[18].mxu0  ;;  %v3349_v22 = vadd.f32 %v3348_v54, %v3098_v38 }
 0x303   : > { %v3351_v44 = vadd.f32 %v3350_v0, %v3103_v53  ;;  %v3352_v34 = vpop.f32.mrb[19].mxu0 }
 0x304   : > { %v3353_v37 = vadd.f32 %v3352_v34, %v3103_v53  ;;  %v8871_v53 = vpop.f32.mrb[7].mxu1 }
 0x305   : > { %v3433_v30 = vpack.c.bf16 %v3351_v44, %v3347_v14  ;;  %v8875_v26 = vpop.f32.mrb[8].mxu1 }
 0x306   : > { %v3434_v27 = vpack.c.bf16 %v3353_v37, %v3349_v22  ;;  %12480 = vst [vmem:[#allocation21_spill] sm:$0xff] %v8875_v26  ;;  %v8877_v25 = vpop.f32.mrb[9].mxu1 }
 0x307   : > { %3488 = vxpose.xlu1.c.b16.start.end [1/1] (short) %v3433_v30, 128  ;;  %12481 = vst [vmem:[#allocation18_spill] sm:$0xff] %v8877_v25  ;;  %v8879_v17 = vpop.f32.mrb[10].mxu1 }
 0x308   : > { %3504 = vxpose.xlu0.c.b16.start.end [1/1] (short) %v3434_v27, 128  ;;  %v8819_v47 = vpop.f32.mrb[20].mxu0  ;;  %12482 = vst [vmem:[#allocation22_spill] sm:$0xff] %v8879_v17  ;;  %v8883_v19 = vpop.f32.mrb[11].mxu1 }
 0x309   : > { %v8821_v32 = vpop.f32.mrb[21].mxu0  ;;  %12483 = vst [vmem:[#allocation12_spill] sm:$0xff] %v8883_v19  ;;  %v8885_v31 = vpop.f32.mrb[12].mxu1 }
 0x30a   : > { %v8823_v40 = vpop.f32.mrb[22].mxu0  ;;  %12484 = vst [vmem:[#allocation20_spill] sm:$0xff] %v8885_v31  ;;  %v8887_v11 = vpop.f32.mrb[13].mxu1 }
 0x30b   : > { %v8825_v12 = vpop.f32.mrb[23].mxu0  ;;  %12485 = vst [vmem:[#allocation19_spill] sm:$0xff] %v8887_v11  ;;  %v8889_v15 = vpop.f32.mrb[14].mxu1 }
 0x30c   : > { %12486 = vst [vmem:[#allocation23_spill] sm:$0xff] %v8889_v15  ;;  %v8893_v1 = vpop.f32.mrb[15].mxu1 }
 0x30d   : > { %12487 = vst [vmem:[#allocation8_spill] sm:$0xff] %v8893_v1 }
 0x327   : > { %3112 = vperm.xlu1 %6807, %v3042_v55  }
 0x32b   : > { %3137 = vperm.xlu1 %6807, %v3047_v61  }
 0x32d   : > { %3107 = vperm.xlu0 %6806, %v3041_v13  }
 0x32f   : > { %3067 = vperm.xlu1 %6807, %v3033_v35  }
 0x331   : > { %3142 = vperm.xlu0 %6806, %v3048_v45  }
 0x335   : > { %3072 = vperm.xlu0 %6806, %v3034_v60  }
 0x36d   : > { %v3496_v3 = vpop.trf.xlu1 }
 0x36e   : > { %6672 = vmatmul.mubr.msk.bf16.vlgmr.msra.gmra.mrb[16].mxu1 %vm3520_vm2, %v3496_v3  ;;  %v3512_v23 = vpop.trf.xlu0 }
 0x36f   : > { %3611 = vmatprep.mubr.bf16.mxu1 %v12475_v6 }
 0x371   : > { %v3497_v5 = vpop.trf.xlu1 }
 0x372   : > { %v3513_v50 = vpop.trf.xlu0 }
 0x375   : > { %v3498_v33 = vpop.trf.xlu1 }
 0x376   : > { %6673 = vmatmul.mubr.msk.bf16.gmra.mrb[20].mxu1 %vm3520_vm2, %v3497_v5  ;;  %v3514_v63 = vpop.trf.xlu0 }
 0x377   : > { %3621 = vmatprep.mubr.bf16.mxu1 %v12475_v6 }
 0x379   : > { %v3499_v52 = vpop.trf.xlu1 }
 0x37a   : > { %v3515_v38 = vpop.trf.xlu0 }
 0x37d   : > { %v3500_v8 = vpop.trf.xlu1 }
 0x37e   : > { %6674 = vmatmul.mubr.msk.bf16.gmra.mrb[24].mxu1 %vm3520_vm2, %v3498_v33  ;;  %v3516_v10 = vpop.trf.xlu0  ;;  %v3049_v33 = vld [vmem:[%s12126_s4 + $0x90] sm:$0xff] }
 0x37f   : > { %3631 = vmatprep.mubr.bf16.mxu1 %v12475_v6 }
 0x381   : > { %v3501_v41 = vpop.trf.xlu1 }
 0x382   : > { %v3517_v48 = vpop.trf.xlu0 }
 0x385   : > { %v3502_v24 = vpop.trf.xlu1 }
 0x386   : > { %6675 = vmatmul.mubr.msk.bf16.gmra.mrb[28].mxu1 %vm3520_vm2, %v3499_v52  ;;  %v3518_v43 = vpop.trf.xlu0  ;;  %v3050_v52 = vld [vmem:[%s12126_s4 + $0x98] sm:$0xff] }
 0x387   : > { %3641 = vmatprep.mubr.bf16.mxu1 %v12475_v6 }
 0x389   : > { %v3503_v46 = vpop.trf.xlu1 }
 0x38a   : > { %v3519_v0 = vpop.trf.xlu0 }
 0x38e   : > { %6676 = vmatmul.mubr.msk.bf16.gmra.mrb[32].mxu1 %vm3520_vm2, %v3500_v8 }
 0x38f   : > { %3651 = vmatprep.mubr.bf16.mxu1 %v12475_v6 }
 0x396   : > { %6677 = vmatmul.mubr.msk.bf16.gmra.mrb[36].mxu1 %vm3520_vm2, %v3501_v41 }
 0x397   : > { %3661 = vmatprep.mubr.bf16.mxu1 %v12475_v6 }
 0x39e   : > { %6678 = vmatmul.mubr.msk.bf16.gmra.mrb[40].mxu1 %vm3520_vm2, %v3502_v24 }
 0x39f   : > { %3671 = vmatprep.mubr.bf16.mxu1 %v12475_v6 }
 0x3a6   : > { %v3113_v54 = vpop.permute.xlu1 %3112  ;;  %6679 = vmatmul.mubr.msk.bf16.gmra.mrb[44].mxu1 %vm3520_vm2, %v3503_v46 }
 0x3a7   : > { %3681 = vmatprep.mubr.bf16.mxu1 %v12475_v6  ;;  %v3361_v22 = vadd.f32 %v8823_v40, %v3113_v54  ;;  %v3363_v37 = vadd.f32 %v8825_v12, %v3113_v54 }
 0x3aa   : > { %v3138_v14 = vpop.permute.xlu1 %3137 }
 0x3ab   : > { %v8898_v44 = vadd.f32 %v8830_v59, %v3138_v14  ;;  %v3389_v35 = vadd.f32 %v8835_v57, %v3138_v14 }
 0x3ac   : > { %v3108_v34 = vpop.permute.xlu0 %3107 }
 0x3ad   : > { %12488 = vst [vmem:[#allocation13_spill] sm:$0xff] %v8898_v44  ;;  %v3357_v30 = vadd.f32 %v8819_v47, %v3108_v34  ;;  %v3359_v27 = vadd.f32 %v8821_v32, %v3108_v34 }
 0x3ae   : > { %6680 = vmatmul.mubr.msk.bf16.gmra.mrb[48].mxu1 %vm3520_vm2, %v3512_v23  ;;  %v3068_v12 = vpop.permute.xlu1 %3067  ;;  %v3043_v23 = vld [vmem:[%s12126_s4 + $0x60] sm:$0xff] }
 0x3af   : > { %v3435_v55 = vpack.c.bf16 %v3361_v22, %v3357_v30  ;;  %v3436_v61 = vpack.c.bf16 %v3363_v37, %v3359_v27  ;;  %3691 = vmatprep.mubr.bf16.mxu1 %v12475_v6  ;;  %v8914_v60 = vadd.f32 %v8790_v21, %v3068_v12  ;;  %v8917_v16 = vadd.f32 %v8792_v29, %v3068_v12  ;;  %v8935_v21 = vpop.f32.mrb[24].mxu0  ;;  %v3044_v29 = vld [vmem:[%s12126_s4 + $0x68] sm:$0xff] }
 0x3b0   : > { %v3143_v13 = vpop.permute.xlu0 %3142 }
 0x3b1   : > { %v8908_v59 = vadd.f32 %v8846_v49, %v3143_v13  ;;  %v3393_v40 = vadd.f32 %v8848_v4, %v3143_v13  ;;  %4220 = vxpose.xlu0.c.b16.start.end [1/1] (short) %v3436_v61, 128  ;;  %4204 = vxpose.xlu1.c.b16.start.end [1/1] (short) %v3435_v55, 128  ;;  %12490 = vst [vmem:[#allocation7_spill] sm:$0xff] %v8914_v60  ;;  %12491 = vst [vmem:[#allocation9_spill] sm:$0xff] %v8917_v16 }
 0x3b3   : > { %12489 = vst [vmem:[#allocation15_spill] sm:$0xff] %v8908_v59  ;;  %v3442_v32 = vpack.c.bf16 %v3393_v40, %v3389_v35 }
 0x3b4   : > { %v3073_v45 = vpop.permute.xlu0 %3072 }
 0x3b5   : > { %v8920_v57 = vadd.f32 %v8794_v42, %v3073_v45  ;;  %v8923_v49 = vadd.f32 %v8796_v18, %v3073_v45  ;;  %4166 = vmatprep.mubr.bf16.mxu0 %v3442_v32  ;;  %v8941_v42 = vpop.f32.mrb[25].mxu0 }
 0x3b6   : > { %6681 = vmatmul.mubr.msk.bf16.gmra.mrb[52].mxu1 %vm3520_vm2, %v3513_v50  ;;  %v3370_v18 = vpop.f32.mrb[26].mxu0  ;;  %v3035_v50 = vld [vmem:[%s12126_s4 + $0x20] sm:$0xff] }
 0x3b7   : > { %12492 = vst [vmem:[#allocation10_spill] sm:$0xff] %v8920_v57  ;;  %12493 = vst [vmem:[#allocation24_spill] sm:$0xff] %v8923_v49  ;;  %3701 = vmatprep.mubr.bf16.mxu1 %v12475_v6  ;;  %v3372_v5 = vpop.f32.mrb[27].mxu0 }
 0x3be   : > { %6682 = vmatmul.mubr.msk.bf16.gmra.mrb[56].mxu1 %vm3520_vm2, %v3514_v63  ;;  %v3036_v63 = vld [vmem:[%s12126_s4 + $0x28] sm:$0xff] }
 0x3bf   : > { %3711 = vmatprep.mubr.bf16.mxu1 %v12475_v6 }
 0x3c6   : > { %6683 = vmatmul.mubr.msk.bf16.gmra.mrb[60].mxu1 %vm3520_vm2, %v3515_v38 }
 0x3c7   : > { %3721 = vmatprep.mubr.bf16.mxu1 %v12475_v6 }
 0x3ce   : > { %6684 = vmatmul.mubr.msk.bf16.gmra.mrb[64].mxu1 %vm3520_vm2, %v3516_v10 }
 0x3cf   : > { %3731 = vmatprep.mubr.bf16.mxu1 %v12475_v6 }
 0x3d1   : > { %3122 = vperm.xlu1 %6807, %v3044_v29  }
 0x3d5   : > { %3147 = vperm.xlu1 %6807, %v3049_v33  }
 0x3d6   : > { %6685 = vmatmul.mubr.msk.bf16.gmra.mrb[68].mxu1 %vm3520_vm2, %v3517_v48  ;;  %3117 = vperm.xlu0 %6806, %v3043_v23  }
 0x3d7   : > { %3741 = vmatprep.mubr.bf16.mxu1 %v12475_v6 }
 0x3d9   : > { %3077 = vperm.xlu1 %6807, %v3035_v50  }
 0x3da   : > { %3152 = vperm.xlu0 %6806, %v3050_v52  }
 0x3de   : > { %6686 = vmatmul.mubr.msk.bf16.gmra.mrb[72].mxu1 %vm3520_vm2, %v3518_v43  ;;  %3082 = vperm.xlu0 %6806, %v3036_v63  }
 0x3df   : > { %3751 = vmatprep.mubr.bf16.mxu1 %v12475_v6 }
 0x3e6   : > { %6687 = vmatmul.mubr.msk.bf16.gmra.mrb[76].mxu1 %vm3520_vm2, %v3519_v0 }
 0x417   : > { %v8964_v8 = vpop.trf.xlu1  ;;  %v8966_v38 = vpop.trf.xlu0 }
 0x418   : > { %12494 = vst [vmem:[#allocation25_spill] sm:$0xff] %v8964_v8  ;;  %12495 = vst [vmem:[#allocation26_spill] sm:$0xff] %v8966_v38 }
 0x41b   : > { %v8968_v41 = vpop.trf.xlu1  ;;  %v8970_v10 = vpop.trf.xlu0 }
 0x41c   : > { %12496 = vst [vmem:[#allocation27_spill] sm:$0xff] %v8968_v41  ;;  %12497 = vst [vmem:[#allocation28_spill] sm:$0xff] %v8970_v10 }
 0x41f   : > { %v8972_v24 = vpop.trf.xlu1  ;;  %v8974_v48 = vpop.trf.xlu0 }
 0x420   : > { %12498 = vst [vmem:[#allocation29_spill] sm:$0xff] %v8972_v24  ;;  %12499 = vst [vmem:[#allocation30_spill] sm:$0xff] %v8974_v48 }
 0x423   : > { %v8976_v46 = vpop.trf.xlu1  ;;  %v8978_v43 = vpop.trf.xlu0 }
 0x424   : > { %12500 = vst [vmem:[#allocation31_spill] sm:$0xff] %v8976_v46  ;;  %12501 = vst [vmem:[#allocation32_spill] sm:$0xff] %v8978_v43  ;;  %v3038_v46 = vld [vmem:[%s12126_s4 + $0x38] sm:$0xff] }
 0x427   : > { %v8980_v54 = vpop.trf.xlu1  ;;  %v8982_v14 = vpop.trf.xlu0 }
 0x428   : > { %12502 = vst [vmem:[#allocation33_spill] sm:$0xff] %v8980_v54  ;;  %12503 = vst [vmem:[#allocation34_spill] sm:$0xff] %v8982_v14 }
 0x42b   : > { %v8984_v0 = vpop.trf.xlu1  ;;  %v8992_v30 = vpop.trf.xlu0 }
 0x42c   : > { %12504 = vst [vmem:[#allocation35_spill] sm:$0xff] %v8984_v0  ;;  %12505 = vst [vmem:[#allocation36_spill] sm:$0xff] %v8992_v30 }
 0x42f   : > { %v8996_v55 = vpop.trf.xlu1  ;;  %v9000_v13 = vpop.trf.xlu0 }
 0x430   : > { %12506 = vst [vmem:[#allocation37_spill] sm:$0xff] %v8996_v55  ;;  %12507 = vst [vmem:[#allocation38_spill] sm:$0xff] %v9000_v13 }
 0x433   : > { %v9006_v12 = vpop.trf.xlu1  ;;  %v9018_v50 = vpop.trf.xlu0 }
 0x434   : > { %12508 = vst [vmem:[#allocation39_spill] sm:$0xff] %v9006_v12  ;;  %12509 = vst [vmem:[#allocation40_spill] sm:$0xff] %v9018_v50 }
 0x441   : > { %v8986_v34 = vpop.f32.mrb[16].mxu1 }
 0x442   : > { %v8988_v22 = vpop.f32.mrb[17].mxu1 }
 0x443   : > { %v8990_v37 = vpop.f32.mrb[18].mxu1 }
 0x444   : > { %v8994_v27 = vpop.f32.mrb[19].mxu1 }
 0x449   : > { %v8998_v61 = vpop.f32.mrb[20].mxu1 }
 0x44a   : > { %v3762_v35 = vmax.f32 %v8986_v34, %v8998_v61  ;;  %v9004_v40 = vpop.f32.mrb[21].mxu1 }
 0x44b   : > { %v3799_v32 = vmax.f32 %v8988_v22, %v9004_v40  ;;  %v9010_v45 = vpop.f32.mrb[22].mxu1 }
 0x44c   : > { %v3763_v29 = vmax.f32 %v8990_v37, %v9010_v45  ;;  %v9014_v33 = vpop.f32.mrb[23].mxu1 }
 0x44d   : > { %v3800_v23 = vmax.f32 %v8994_v27, %v9014_v33 }
 0x450   : > { %v3123_v52 = vpop.permute.xlu1 %3122 }
 0x451   : > { %v9020_v63 = vpop.f32.mrb[24].mxu1  ;;  %v3371_v43 = vadd.f32 %v3370_v18, %v3123_v52  ;;  %v3373_v15 = vadd.f32 %v3372_v5, %v3123_v52 }
 0x452   : > { %v3764_v4 = vmax.f32 %v3762_v35, %v9020_v63  ;;  %v9023_v47 = vpop.f32.mrb[25].mxu1 }
 0x453   : > { %v3801_v3 = vmax.f32 %v3799_v32, %v9023_v47  ;;  %v9026_v13 = vpop.f32.mrb[26].mxu1 }
 0x454   : > { %v3765_v30 = vmax.f32 %v3763_v29, %v9026_v13  ;;  %v9029_v14 = vpop.f32.mrb[27].mxu1  ;;  %v3148_v11 = vpop.permute.xlu1 %3147 }
 0x455   : > { %v3802_v31 = vmax.f32 %v3800_v23, %v9029_v14  ;;  %v9033_v50 = vadd.f32 %v8865_v28, %v3148_v11  ;;  %v3118_v1 = vpop.permute.xlu0 %3117  ;;  %v3399_v38 = vadd.f32 %v8867_v58, %v3148_v11 }
 0x456   : > { %v3367_v35 = vadd.f32 %v8935_v21, %v3118_v1  ;;  %v3369_v48 = vadd.f32 %v8941_v42, %v3118_v1 }
 0x457   : > { %12510 = vst [vmem:[#allocation41_spill] sm:$0xff] %v9033_v50 }
 0x458   : > { %v3437_v32 = vpack.c.bf16 %v3371_v43, %v3367_v35  ;;  %v3438_v10 = vpack.c.bf16 %v3373_v15, %v3369_v48  ;;  %v3078_v21 = vpop.permute.xlu1 %3077 }
 0x459   : > { %v9038_v29 = vpop.f32.mrb[28].mxu1  ;;  %v3153_v12 = vpop.permute.xlu0 %3152  ;;  %v9057_v5 = vadd.f32 %v8798_v2, %v3078_v21 }
 0x45a   : > { %v3766_v55 = vmax.f32 %v3764_v4, %v9038_v29  ;;  %v9042_v23 = vadd.f32 %v8869_v20, %v3153_v12  ;;  %v3403_v28 = vadd.f32 %v8871_v53, %v3153_v12  ;;  %v9045_v18 = vpop.f32.mrb[29].mxu1  ;;  %4935 = vxpose.xlu0.c.b16.start.end [1/1] (short) %v3438_v10, 128  ;;  %4919 = vxpose.xlu1.c.b16.start.end [1/1] (short) %v3437_v32, 128 }
 0x45b   : > { %v3803_v1 = vmax.f32 %v3801_v3, %v9045_v18  ;;  %v9048_v15 = vpop.f32.mrb[30].mxu1  ;;  %12512 = vst [vmem:[#allocation43_spill] sm:$0xff] %v9057_v5  ;;  %v9060_v10 = vadd.f32 %v8800_v51, %v3078_v21 }
 0x45c   : > { %12511 = vst [vmem:[#allocation42_spill] sm:$0xff] %v9042_v23  ;;  %v3444_v11 = vpack.c.bf16 %v3403_v28, %v3399_v38  ;;  %v3767_v4 = vmax.f32 %v3765_v30, %v9048_v15  ;;  %v9053_v42 = vpop.f32.mrb[31].mxu1 }
 0x45d   : > { %v3804_v20 = vmax.f32 %v3802_v31, %v9053_v42  ;;  %v3083_v53 = vpop.permute.xlu0 %3082  ;;  %12513 = vst [vmem:[#allocation44_spill] sm:$0xff] %v9060_v10  ;;  %v3045_v10 = vld [vmem:[%s12126_s4 + $0x70] sm:$0xff] }
 0x45e   : > { %v9063_v3 = vadd.f32 %v8802_v7, %v3083_v53  ;;  %v9066_v48 = vadd.f32 %v8804_v39, %v3083_v53  ;;  %4881 = vmatprep.mubr.bf16.mxu1 %v3444_v11 }
 0x460   : > { %12514 = vst [vmem:[#allocation45_spill] sm:$0xff] %v9063_v3  ;;  %12515 = vst [vmem:[#allocation46_spill] sm:$0xff] %v9066_v48 }
 0x461   : > { %v9072_v43 = vpop.f32.mrb[32].mxu1 }
 0x462   : > { %v3768_v2 = vmax.f32 %v3766_v55, %v9072_v43  ;;  %v9075_v30 = vpop.f32.mrb[33].mxu1 }
 0x463   : > { %v3805_v51 = vmax.f32 %v3803_v1, %v9075_v30  ;;  %v9078_v7 = vpop.f32.mrb[34].mxu1 }
 0x464   : > { %v3769_v39 = vmax.f32 %v3767_v4, %v9078_v7  ;;  %v9081_v12 = vpop.f32.mrb[35].mxu1 }
 0x465   : > { %v3806_v52 = vmax.f32 %v3804_v20, %v9081_v12 }
 0x469   : > { %v9084_v35 = vpop.f32.mrb[36].mxu1 }
 0x46a   : > { %v3770_v32 = vmax.f32 %v3768_v2, %v9084_v35  ;;  %v9087_v28 = vpop.f32.mrb[37].mxu1 }
 0x46b   : > { %12516 = vst [vmem:[#allocation47_spill] sm:$0xff] %v9087_v28  ;;  %v3807_v55 = vmax.f32 %v3805_v51, %v9087_v28  ;;  %v9090_v21 = vpop.f32.mrb[38].mxu1 }
 0x46c   : > { %v3771_v1 = vmax.f32 %v3769_v39, %v9090_v21  ;;  %v9093_v11 = vpop.f32.mrb[39].mxu1 }
 0x46d   : > { %12517 = vst [vmem:[#allocation48_spill] sm:$0xff] %v9093_v11  ;;  %v3808_v4 = vmax.f32 %v3806_v52, %v9093_v11  ;;  %v3046_v52 = vld [vmem:[%s12126_s4 + $0x78] sm:$0xff] }
 0x471   : > { %v9096_v53 = vpop.f32.mrb[40].mxu1 }
 0x472   : > { %v3772_v20 = vmax.f32 %v3770_v32, %v9096_v53  ;;  %v9099_v38 = vpop.f32.mrb[41].mxu1 }
 0x473   : > { %12518 = vst [vmem:[#allocation49_spill] sm:$0xff] %v9099_v38  ;;  %v3809_v2 = vmax.f32 %v3807_v55, %v9099_v38  ;;  %v9102_v58 = vpop.f32.mrb[42].mxu1 }
 0x474   : > { %v3773_v51 = vmax.f32 %v3771_v1, %v9102_v58  ;;  %v9105_v31 = vpop.f32.mrb[43].mxu1  ;;  %v3051_v1 = vld [vmem:[%s12126_s4 + $0xa0] sm:$0xff] }
 0x475   : > { %12519 = vst [vmem:[#allocation50_spill] sm:$0xff] %v9105_v31  ;;  %v3810_v39 = vmax.f32 %v3808_v4, %v9105_v31 }
 0x479   : > { %v9111_v5 = vpop.f32.mrb[44].mxu1 }
 0x47a   : > { %v3774_v32 = vmax.f32 %v3772_v20, %v9111_v5  ;;  %v9114_v3 = vpop.f32.mrb[45].mxu1  ;;  %3132 = vperm.xlu1 %6807, %v3046_v52   ;;  %v3052_v52 = vld [vmem:[%s12126_s4 + $0xa8] sm:$0xff] }
 0x47b   : > { %12520 = vst [vmem:[#allocation51_spill] sm:$0xff] %v9114_v3  ;;  %v3811_v55 = vmax.f32 %v3809_v2, %v9114_v3  ;;  %v9117_v50 = vpop.f32.mrb[46].mxu1  ;;  %v3037_v2 = vld [vmem:[%s12126_s4 + $0x30] sm:$0xff] }
 0x47c   : > { %v3775_v4 = vmax.f32 %v3773_v51, %v9117_v50  ;;  %v9123_v23 = vpop.f32.mrb[47].mxu1 }
 0x47d   : > { %12521 = vst [vmem:[#allocation52_spill] sm:$0xff] %v9123_v23  ;;  %v3812_v20 = vmax.f32 %v3810_v39, %v9123_v23 }
 0x47e   : > { %3157 = vperm.xlu1 %6807, %v3051_v1  }
 0x47f   : > { %3127 = vperm.xlu0 %6806, %v3045_v10  }
 0x481   : > { %v9135_v48 = vpop.f32.mrb[48].mxu1 }
 0x482   : > { %v3776_v51 = vmax.f32 %v3774_v32, %v9135_v48  ;;  %v9138_v0 = vpop.f32.mrb[49].mxu1  ;;  %3087 = vperm.xlu1 %6807, %v3037_v2  }
 0x483   : > { %12522 = vst [vmem:[#allocation53_spill] sm:$0xff] %v9138_v0  ;;  %v3813_v54 = vmax.f32 %v3811_v55, %v9138_v0  ;;  %v9141_v39 = vpop.f32.mrb[50].mxu1  ;;  %3162 = vperm.xlu0 %6806, %v3052_v52  }
 0x484   : > { %v3777_v10 = vmax.f32 %v3775_v4, %v9141_v39  ;;  %v9144_v1 = vpop.f32.mrb[51].mxu1 }
 0x485   : > { %12523 = vst [vmem:[#allocation54_spill] sm:$0xff] %v9144_v1  ;;  %v3814_v24 = vmax.f32 %v3812_v20, %v9144_v1 }
 0x487   : > { %3092 = vperm.xlu0 %6806, %v3038_v46  }
 0x489   : > { %v9150_v32 = vpop.f32.mrb[52].mxu1 }
 0x48a   : > { %v3778_v2 = vmax.f32 %v3776_v51, %v9150_v32  ;;  %v9153_v41 = vpop.f32.mrb[53].mxu1 }
 0x48b   : > { %12524 = vst [vmem:[#allocation55_spill] sm:$0xff] %v9153_v41  ;;  %v3815_v55 = vmax.f32 %v3813_v54, %v9153_v41  ;;  %v9156_v52 = vpop.f32.mrb[54].mxu1 }
 0x48c   : > { %v3779_v4 = vmax.f32 %v3777_v10, %v9156_v52  ;;  %v9159_v8 = vpop.f32.mrb[55].mxu1 }
 0x48d   : > { %12525 = vst [vmem:[#allocation56_spill] sm:$0xff] %v9159_v8  ;;  %v3816_v6 = vmax.f32 %v3814_v24, %v9159_v8 }
 0x491   : > { %v9162_v60 = vpop.f32.mrb[56].mxu1 }
 0x492   : > { %v3780_v46 = vmax.f32 %v3778_v2, %v9162_v60  ;;  %v9165_v20 = vpop.f32.mrb[57].mxu1 }
 0x493   : > { %12526 = vst [vmem:[#allocation57_spill] sm:$0xff] %v9165_v20  ;;  %v3817_v51 = vmax.f32 %v3815_v55, %v9165_v20  ;;  %v9168_v57 = vpop.f32.mrb[58].mxu1  ;;  %v9227_v20 = vpop.f32.mrb[28].mxu0 }
 0x494   : > { %v3781_v54 = vmax.f32 %v3779_v4, %v9168_v57  ;;  %v9171_v44 = vpop.f32.mrb[59].mxu1  ;;  %12537 = vst [vmem:[#allocation68_spill] sm:$0xff] %v9227_v20 }
 0x495   : > { %12527 = vst [vmem:[#allocation58_spill] sm:$0xff] %v9171_v44  ;;  %v3818_v10 = vmax.f32 %v3816_v6, %v9171_v44 }
 0x499   : > { %v9174_v59 = vpop.f32.mrb[60].mxu1 }
 0x49a   : > { %v3782_v24 = vmax.f32 %v3780_v46, %v9174_v59  ;;  %v9177_v16 = vpop.f32.mrb[61].mxu1 }
 0x49b   : > { %12528 = vst [vmem:[#allocation59_spill] sm:$0xff] %v9177_v16  ;;  %v3819_v2 = vmax.f32 %v3817_v51, %v9177_v16  ;;  %v9180_v49 = vpop.f32.mrb[62].mxu1 }
 0x49c   : > { %v3783_v55 = vmax.f32 %v3781_v54, %v9180_v49  ;;  %v9183_v62 = vpop.f32.mrb[63].mxu1 }
 0x49d   : > { %12529 = vst [vmem:[#allocation60_spill] sm:$0xff] %v9183_v62  ;;  %v3820_v4 = vmax.f32 %v3818_v10, %v9183_v62 }
 0x4a1   : > { %v9186_v36 = vpop.f32.mrb[64].mxu1 }
 0x4a2   : > { %v3784_v6 = vmax.f32 %v3782_v24, %v9186_v36  ;;  %v9189_v19 = vpop.f32.mrb[65].mxu1 }
 0x4a3   : > { %12530 = vst [vmem:[#allocation61_spill] sm:$0xff] %v9189_v19  ;;  %v3821_v46 = vmax.f32 %v3819_v2, %v9189_v19  ;;  %v9192_v56 = vpop.f32.mrb[66].mxu1 }
 0x4a4   : > { %v3785_v51 = vmax.f32 %v3783_v55, %v9192_v56  ;;  %v9195_v17 = vpop.f32.mrb[67].mxu1 }
 0x4a5   : > { %12531 = vst [vmem:[#allocation62_spill] sm:$0xff] %v9195_v17  ;;  %v3822_v54 = vmax.f32 %v3820_v4, %v9195_v17 }
 0x4a9   : > { %v9198_v9 = vpop.f32.mrb[68].mxu1 }
 0x4aa   : > { %v3786_v10 = vmax.f32 %v3784_v6, %v9198_v9  ;;  %v9201_v25 = vpop.f32.mrb[69].mxu1 }
 0x4ab   : > { %12532 = vst [vmem:[#allocation63_spill] sm:$0xff] %v9201_v25  ;;  %v3823_v24 = vmax.f32 %v3821_v46, %v9201_v25  ;;  %v9204_v26 = vpop.f32.mrb[70].mxu1 }
 0x4ac   : > { %v3787_v2 = vmax.f32 %v3785_v51, %v9204_v26  ;;  %v9207_v19 = vpop.f32.mrb[71].mxu1 }
 0x4ad   : > { %12533 = vst [vmem:[#allocation64_spill] sm:$0xff] %v9207_v19  ;;  %v3824_v55 = vmax.f32 %v3822_v54, %v9207_v19 }
 0x4b1   : > { %v9210_v62 = vpop.f32.mrb[72].mxu1 }
 0x4b2   : > { %v3788_v4 = vmax.f32 %v3786_v10, %v9210_v62  ;;  %v9213_v17 = vpop.f32.mrb[73].mxu1 }
 0x4b3   : > { %12534 = vst [vmem:[#allocation65_spill] sm:$0xff] %v9213_v17  ;;  %v3825_v6 = vmax.f32 %v3823_v24, %v9213_v17  ;;  %v9216_v16 = vpop.f32.mrb[74].mxu1  ;;  %v9232_v24 = vpop.f32.mrb[29].mxu0 }
 0x4b4   : > { %v3789_v46 = vmax.f32 %v3787_v2, %v9216_v16  ;;  %v9219_v25 = vpop.f32.mrb[75].mxu1  ;;  %12538 = vst [vmem:[#allocation69_spill] sm:$0xff] %v9232_v24  ;;  %v9237_v41 = vpop.f32.mrb[30].mxu0 }
 0x4b5   : > { %12535 = vst [vmem:[#allocation66_spill] sm:$0xff] %v9219_v25  ;;  %v3826_v51 = vmax.f32 %v3824_v55, %v9219_v25  ;;  %12540 = vst [vmem:[#allocation71_spill] sm:$0xff] %v9237_v41  ;;  %v9240_v25 = vpop.f32.mrb[31].mxu0 }
 0x4b9   : > { %v9222_v44 = vpop.f32.mrb[76].mxu1 }
 0x4ba   : > { %v3790_v54 = vmax.f32 %v3788_v4, %v9222_v44  ;;  %v9225_v19 = vpop.f32.mrb[77].mxu1 }
 0x4bb   : > { %12536 = vst [vmem:[#allocation67_spill] sm:$0xff] %v9225_v19  ;;  %v3827_v10 = vmax.f32 %v3825_v6, %v9225_v19  ;;  %v9230_v8 = vpop.f32.mrb[78].mxu1 }
 0x4bc   : > { %v3791_v2 = vmax.f32 %v3789_v46, %v9230_v8  ;;  %v9235_v17 = vpop.f32.mrb[79].mxu1 }
 0x4bd   : > { %12539 = vst [vmem:[#allocation70_spill] sm:$0xff] %v9235_v17  ;;  %v3828_v55 = vmax.f32 %v3826_v51, %v9235_v17 }
 0x4be   : > { %v3792_v4 = vmax.f32 %v3790_v54, %v3791_v2 }
 0x4bf   : > { %v3829_v1 = vmax.f32 %v3827_v10, %v3828_v55 }
 0x4c0   : > { %v3793_v0 = vrot.slane %v3792_v4, 4  ;;  %v9242_v11 = vpop.trf.xlu1 }
 0x4c1   : > { %v3830_v20 = vrot.slane %v3829_v1, 4  ;;  %12541 = vst [vmem:[#allocation72_spill] sm:$0xff] %v9242_v11 }
 0x4c2   : > { %v3794_v23 = vmax.f32 %v3792_v4, %v3793_v0 }
 0x4c3   : > { %v3831_v6 = vmax.f32 %v3829_v1, %v3830_v20 }
 0x4c4   : > { %v3795_v19 = vrot.slane %v3794_v23, 2 }
 0x4c5   : > { %v3832_v3 = vrot.slane %v3831_v6, 2 }
 0x4c6   : > { %v3796_v31 = vmax.f32 %v3794_v23, %v3795_v19 }
 0x4c7   : > { %v3833_v24 = vmax.f32 %v3831_v6, %v3832_v3 }
 0x4c8   : > { %v3797_v38 = vrot.slane %v3796_v31, 1 }
 0x4c9   : > { %v3834_v46 = vrot.slane %v3833_v24, 1 }
 0x4ca   : > { %v9244_v28 = vmax.f32 %v3796_v31, %v3797_v38  ;;  %v9272_v31 = vpop.trf.xlu0 }
 0x4cb   : > { %v9246_v41 = vmax.f32 %v3833_v24, %v3834_v46  ;;  %12542 = vst [vmem:[#allocation73_spill] sm:$0xff] %v9272_v31 }
 0x4cc   : > { %v3836_v51 = vsub.f32 %v8986_v34, %v9244_v28  ;;  %v3838_v54 = vsub.f32 %v8990_v37, %v9244_v28  ;;  %v3840_v0 = vsub.f32 %v8998_v61, %v9244_v28  ;;  %v3842_v19 = vsub.f32 %v9010_v45, %v9244_v28 }
 0x4cd   : > { %v3844_v23 = vsub.f32 %v9020_v63, %v9244_v28  ;;  %v3846_v3 = vsub.f32 %v9026_v13, %v9244_v28  ;;  %v3848_v38 = vsub.f32 %v9038_v29, %v9244_v28  ;;  %v3850_v34 = vsub.f32 %v9048_v15, %v9244_v28 }
 0x4ce   : > { %v3852_v37 = vsub.f32 %v9072_v43, %v9244_v28  ;;  %v3854_v61 = vsub.f32 %v9078_v7, %v9244_v28  ;;  %v3856_v45 = vsub.f32 %v9084_v35, %v9244_v28  ;;  %v3858_v63 = vsub.f32 %v9090_v21, %v9244_v28  ;;  %v9282_v7 = vpop.trf.xlu1  ;;  %v9318_v4 = vpop.trf.xlu0 }
 0x4cf   : > { %v3860_v13 = vsub.f32 %v9096_v53, %v9244_v28  ;;  %v3862_v29 = vsub.f32 %v9102_v58, %v9244_v28  ;;  %v3864_v15 = vsub.f32 %v9111_v5, %v9244_v28  ;;  %v3866_v43 = vsub.f32 %v9117_v50, %v9244_v28  ;;  %12543 = vst [vmem:[#allocation74_spill] sm:$0xff] %v9282_v7 }
 0x4d0   : > { %v3868_v35 = vsub.f32 %v9135_v48, %v9244_v28  ;;  %v3870_v21 = vsub.f32 %v9141_v39, %v9244_v28  ;;  %v3872_v53 = vsub.f32 %v9150_v32, %v9244_v28  ;;  %v3874_v58 = vsub.f32 %v9156_v52, %v9244_v28  ;;  %12544 = vst [vmem:[#allocation75_spill] sm:$0xff] %v9318_v4  ;;  %v12563_v4 = vld [vmem:[#allocation60_spill] sm:$0xff] }
 0x4d1   : > { %v3876_v5 = vsub.f32 %v9162_v60, %v9244_v28  ;;  %v3878_v50 = vsub.f32 %v9168_v57, %v9244_v28  ;;  %v3880_v1 = vsub.f32 %v9174_v59, %v9244_v28  ;;  %v3882_v48 = vsub.f32 %v9180_v49, %v9244_v28 }
 0x4d2   : > { %v3900_v10 = vmul.f32 1.442695, %v3836_v51  ;;  %v3904_v24 = vmul.f32 1.442695, %v3838_v54  ;;  %v3908_v2 = vmul.f32 1.442695, %v3840_v0  ;;  %v9322_v57 = vpop.trf.xlu1 }
 0x4d3   : > { %v3912_v6 = vmul.f32 1.442695, %v3842_v19  ;;  %12545 = vst [vmem:[#allocation76_spill] sm:$0xff] %v9322_v57  ;;  %v3916_v59 = vmul.f32 1.442695, %v3844_v23  ;;  %v9324_v19 = vpop.trf.xlu0 }
 0x4d4   : > { %6912 = vpow2.f32 %v3900_v10  ;;  %v3920_v49 = vmul.f32 1.442695, %v3846_v3  ;;  %v3924_v20 = vmul.f32 1.442695, %v3848_v38  ;;  %v3928_v51 = vmul.f32 1.442695, %v3850_v34 }
 0x4d5   : > { %6914 = vpow2.f32 %v3904_v24  ;;  %v3932_v54 = vmul.f32 1.442695, %v3852_v37  ;;  %v3936_v0 = vmul.f32 1.442695, %v3854_v61  ;;  %v3940_v55 = vmul.f32 1.442695, %v3856_v45 }
 0x4d6   : > { %6916 = vpow2.f32 %v3908_v2  ;;  %v3944_v60 = vmul.f32 1.442695, %v3858_v63  ;;  %v3948_v52 = vmul.f32 1.442695, %v3860_v13  ;;  %12546 = vst [vmem:[#allocation77_spill] sm:$0xff] %v9324_v19  ;;  %v9326_v10 = vpop.trf.xlu1  ;;  %v12560_v13 = vld [vmem:[#allocation57_spill] sm:$0xff] }
 0x4d7   : > { %6918 = vpow2.f32 %v3912_v6  ;;  %v3952_v46 = vmul.f32 1.442695, %v3862_v29  ;;  %v3956_v32 = vmul.f32 1.442695, %v3864_v15  ;;  %v3960_v39 = vmul.f32 1.442695, %v3866_v43 }
 0x4d8   : > { %6920 = vpow2.f32 %v3916_v59  ;;  %12547 = vst [vmem:[#allocation78_spill] sm:$0xff] %v9326_v10  ;;  %v3964_v23 = vmul.f32 1.442695, %v3868_v35  ;;  %v3968_v3 = vmul.f32 1.442695, %v3870_v21  ;;  %v12552_v6 = vld [vmem:[#allocation49_spill] sm:$0xff] }
 0x4d9   : > { %6922 = vpow2.f32 %v3920_v49  ;;  %v3972_v38 = vmul.f32 1.442695, %v3872_v53  ;;  %v3976_v34 = vmul.f32 1.442695, %v3874_v58  ;;  %v9328_v37 = vmul.f32 1.442695, %v3876_v5  ;;  %v9352_v5 = vpop.trf.xlu0 }
 0x4da   : > { %6924 = vpow2.f32 %v3924_v20  ;;  %v9330_v61 = vmul.f32 1.442695, %v3878_v50  ;;  %v9332_v45 = vmul.f32 1.442695, %v3880_v1  ;;  %v9334_v63 = vmul.f32 1.442695, %v3882_v48  ;;  %v9362_v24 = vpop.trf.xlu1 }
 0x4db   : > { %6926 = vpow2.f32 %v3928_v51  ;;  %12548 = vst [vmem:[#allocation79_spill] sm:$0xff] %v9352_v5  ;;  %v12549_v48 = vld [vmem:[#allocation47_spill] sm:$0xff]  ;;  %v12550_v49 = vld [vmem:[#allocation48_spill] sm:$0xff]  ;;  %v12553_v51 = vld [vmem:[#allocation50_spill] sm:$0xff] }
 0x4dc   : > { %6928 = vpow2.f32 %v3932_v54  ;;  %12551 = vst [vmem:[#allocation47_spill] sm:$0xff] %v9362_v24  ;;  %v12554_v59 = vld [vmem:[#allocation51_spill] sm:$0xff]  ;;  %v12555_v1 = vld [vmem:[#allocation52_spill] sm:$0xff]  ;;  %v12557_v43 = vld [vmem:[#allocation54_spill] sm:$0xff] }
 0x4dd   : > { %6930 = vpow2.f32 %v3936_v0  ;;  %v12558_v15 = vld [vmem:[#allocation55_spill] sm:$0xff]  ;;  %v12559_v20 = vld [vmem:[#allocation56_spill] sm:$0xff]  ;;  %v12561_v5 = vld [vmem:[#allocation58_spill] sm:$0xff]  ;;  %v9402_v31 = vpop.trf.xlu0 }
 0x4de   : > { %v9344_v35 = vpop.eup %6912  ;;  %6932 = vpow2.f32 %v3940_v55  ;;  %v12562_v54 = vld [vmem:[#allocation59_spill] sm:$0xff]  ;;  %12564 = vst [vmem:[#allocation48_spill] sm:$0xff] %v9402_v31  ;;  %v12565_v53 = vld [vmem:[#allocation61_spill] sm:$0xff]  ;;  %v9412_v57 = vpop.trf.xlu1  ;;  %v12569_v31 = vld [vmem:[#allocation64_spill] sm:$0xff] }
 0x4df   : > { %v9354_v50 = vpop.eup %6914  ;;  %6934 = vpow2.f32 %v3944_v60  ;;  %12568 = vst [vmem:[#allocation49_spill] sm:$0xff] %v9412_v57  ;;  %v12574_v57 = vsub.f32 %v9192_v56, %v9244_v28  ;;  %v12579_v56 = vsub.f32 %v9204_v26, %v9244_v28 }
 0x4e0   : > { %v9364_v2 = vpop.eup %6916  ;;  %6936 = vpow2.f32 %v3948_v52  ;;  %v4028_v55 = vadd.f32 %v9354_v50, %v9344_v35  ;;  %v12556_v52 = vld [vmem:[#allocation53_spill] sm:$0xff] }
 0x4e1   : > { %v9372_v0 = vpop.eup %6918  ;;  %6938 = vpow2.f32 %v3952_v46 }
 0x4e2   : > { %v9380_v21 = vpop.eup %6920  ;;  %6940 = vpow2.f32 %v3956_v32  ;;  %v4029_v60 = vadd.f32 %v9364_v2, %v4028_v55  ;;  %v4000_v32 = vmul.f32 1.442695, %v12574_v57  ;;  %v4008_v57 = vmul.f32 1.442695, %v12579_v56  ;;  %v9460_v17 = vpop.trf.xlu1 }
 0x4e3   : > { %v9387_v29 = vpop.eup %6922  ;;  %6942 = vpow2.f32 %v3960_v39  ;;  %12581 = vst [vmem:[#allocation53_spill] sm:$0xff] %v9460_v17 }
 0x4e4   : > { %v9395_v19 = vpop.eup %6924  ;;  %6944 = vpow2.f32 %v3964_v23  ;;  %v4030_v55 = vadd.f32 %v9372_v0, %v4029_v60 }
 0x4e5   : > { %v9404_v58 = vpop.eup %6926  ;;  %6946 = vpow2.f32 %v3968_v3  ;;  %v12570_v3 = vld [vmem:[#allocation65_spill] sm:$0xff] }
 0x4e6   : > { %v9414_v46 = vpop.eup %6928  ;;  %6948 = vpow2.f32 %v3972_v38  ;;  %v4031_v39 = vadd.f32 %v9380_v21, %v4030_v55  ;;  %v12573_v55 = vsub.f32 %v9186_v36, %v9244_v28 }
 0x4e7   : > { %v9421_v24 = vpop.eup %6930  ;;  %6950 = vpow2.f32 %v3976_v34 }
 0x4e8   : > { %v9429_v23 = vpop.eup %6932  ;;  %6952 = vpow2.f32 %v9328_v37  ;;  %v3996_v11 = vmul.f32 1.442695, %v12573_v55  ;;  %v4032_v7 = vadd.f32 %v9387_v29, %v4031_v39  ;;  %v12576_v37 = vsub.f32 %v9198_v9, %v9244_v28  ;;  %v9449_v55 = vpop.trf.xlu0 }
 0x4e9   : > { %v9436_v34 = vpop.eup %6934  ;;  %6954 = vpow2.f32 %v9330_v61  ;;  %12577 = vst [vmem:[#allocation51_spill] sm:$0xff] %v9449_v55  ;;  %v12580_v61 = vsub.f32 %v9210_v62, %v9244_v28  ;;  %v12586_v62 = vsub.f32 %v9230_v8, %v9244_v28  ;;  %v12591_v8 = vsub.f32 %v9014_v33, %v9246_v41 }
 0x4ea   : > { %v9442_v60 = vpop.eup %6936  ;;  %6956 = vpow2.f32 %v9332_v45  ;;  %v4004_v38 = vmul.f32 1.442695, %v12576_v37  ;;  %v4033_v36 = vadd.f32 %v9395_v19, %v4032_v7  ;;  %v12583_v7 = vsub.f32 %v9216_v16, %v9244_v28 }
 0x4eb   : > { %12575 = vst [vmem:[#allocation50_spill] sm:$0xff] %v9442_v60  ;;  %v9451_v39 = vpop.eup %6938  ;;  %6958 = vpow2.f32 %v9334_v63  ;;  %v4012_v45 = vmul.f32 1.442695, %v12580_v61  ;;  %v12584_v63 = vsub.f32 %v9222_v44, %v9244_v28  ;;  %v4024_v61 = vmul.f32 1.442695, %v12586_v62 }
 0x4ec   : > { %12578 = vst [vmem:[#allocation52_spill] sm:$0xff] %v9451_v39  ;;  %v9462_v9 = vpop.eup %6940  ;;  %6960 = vpow2.f32 %v3996_v11  ;;  %v4016_v37 = vmul.f32 1.442695, %v12583_v7  ;;  %v4034_v26 = vadd.f32 %v9404_v58, %v4033_v36  ;;  %v12587_v11 = vsub.f32 %v8988_v22, %v9246_v41 }
 0x4ed   : > { %12582 = vst [vmem:[#allocation54_spill] sm:$0xff] %v9462_v9  ;;  %v4020_v55 = vmul.f32 1.442695, %v12584_v63  ;;  %v9471_v56 = vpop.eup %6942  ;;  %6962 = vpow2.f32 %v4000_v32  ;;  %v12588_v16 = vsub.f32 %v8994_v27, %v9246_v41  ;;  %v12590_v32 = vsub.f32 %v9004_v40, %v9246_v41 }
 0x4ee   : > { %12585 = vst [vmem:[#allocation55_spill] sm:$0xff] %v9471_v56  ;;  %v3902_v17 = vmul.f32 1.442695, %v12587_v11  ;;  %v9482_v10 = vpop.eup %6944  ;;  %6964 = vpow2.f32 %v4004_v38  ;;  %v4035_v44 = vadd.f32 %v9414_v46, %v4034_v26  ;;  %v3914_v28 = vmul.f32 1.442695, %v12591_v8 }
 0x4ef   : > { %v3906_v7 = vmul.f32 1.442695, %v12588_v16  ;;  %12589 = vst [vmem:[#allocation56_spill] sm:$0xff] %v9482_v10  ;;  %v3910_v36 = vmul.f32 1.442695, %v12590_v32  ;;  %v9491_v63 = vpop.eup %6946  ;;  %6966 = vpow2.f32 %v4008_v57  ;;  %v12592_v22 = vsub.f32 %v9023_v47, %v9246_v41 }
 0x4f0   : > { %v12593_v38 = vsub.f32 %v9029_v14, %v9246_v41  ;;  %v12594_v26 = vsub.f32 %v9045_v18, %v9246_v41  ;;  %v9502_v11 = vpop.eup %6948  ;;  %6968 = vpow2.f32 %v4012_v45  ;;  %v4036_v33 = vadd.f32 %v9421_v24, %v4035_v44  ;;  %v9513_v14 = vpop.trf.xlu0 }
 0x4f1   : > { %v3918_v27 = vmul.f32 1.442695, %v12592_v22  ;;  %v12595_v57 = vsub.f32 %v9053_v42, %v9246_v41  ;;  %v12596_v47 = vsub.f32 %v9075_v30, %v9246_v41  ;;  %12597 = vst [vmem:[#allocation57_spill] sm:$0xff] %v9513_v14  ;;  %v9515_v8 = vpop.eup %6950  ;;  %6970 = vpow2.f32 %v4016_v37 }
 0x4f2   : > { %v3922_v62 = vmul.f32 1.442695, %v12593_v38  ;;  %v3926_v40 = vmul.f32 1.442695, %v12594_v26  ;;  %v12598_v18 = vsub.f32 %v9081_v12, %v9246_v41  ;;  %v12599_v44 = vsub.f32 %v12549_v48, %v9246_v41  ;;  %v9532_v38 = vpop.trf.xlu1  ;;  %v9534_v26 = vpop.eup %6952 }
 0x4f3   : > { %v3930_v16 = vmul.f32 1.442695, %v12595_v57  ;;  %v9511_v32 = vmul.f32 1.442695, %v12596_v47  ;;  %v12600_v30 = vsub.f32 %v12550_v49, %v9246_v41  ;;  %12601 = vst [vmem:[#allocation58_spill] sm:$0xff] %v9532_v38  ;;  %6972 = vpow2.f32 %v4020_v55  ;;  %v9547_v49 = vpop.eup %6954 }
 0x4f4   : > { %v9520_v45 = vmul.f32 1.442695, %v12598_v18  ;;  %v9525_v42 = vmul.f32 1.442695, %v12599_v44  ;;  %v4037_v37 = vadd.f32 %v9429_v23, %v4036_v33  ;;  %v12602_v12 = vsub.f32 %v12552_v6, %v9246_v41 }
 0x4f5   : > { %v9530_v22 = vmul.f32 1.442695, %v12600_v30  ;;  %v12603_v48 = vsub.f32 %v12553_v51, %v9246_v41  ;;  %6974 = vpow2.f32 %v4024_v61  ;;  %v12604_v18 = vsub.f32 %v12554_v59, %v9246_v41  ;;  %v9564_v51 = vpop.eup %6956 }
 0x4f6   : > { %v9540_v57 = vmul.f32 1.442695, %v12602_v12  ;;  %v12605_v55 = vsub.f32 %v12555_v1, %v9246_v41  ;;  %v12606_v6 = vsub.f32 %v12556_v52, %v9246_v41  ;;  %v4038_v12 = vadd.f32 %v9436_v34, %v4037_v37 }
 0x4f7   : > { %v9545_v47 = vmul.f32 1.442695, %v12603_v48  ;;  %v9552_v44 = vmul.f32 1.442695, %v12604_v18  ;;  %6976 = vpow2.f32 %v3902_v17  ;;  %v12607_v59 = vsub.f32 %v12557_v43, %v9246_v41  ;;  %v9577_v18 = vpop.eup %6958 }
 0x4f8   : > { %v9557_v33 = vmul.f32 1.442695, %v12605_v55  ;;  %v9562_v30 = vmul.f32 1.442695, %v12606_v6  ;;  %v12608_v1 = vsub.f32 %v12558_v15, %v9246_v41  ;;  %6978 = vpow2.f32 %v3906_v7  ;;  %v9585_v43 = vpop.eup %6960  ;;  %v9592_v6 = vpop.trf.xlu0 }
 0x4f9   : > { %v9570_v61 = vmul.f32 1.442695, %v12607_v59  ;;  %v4039_v55 = vadd.f32 %v9442_v60, %v4038_v12  ;;  %6980 = vpow2.f32 %v3910_v36  ;;  %12609 = vst [vmem:[#allocation59_spill] sm:$0xff] %v9592_v6  ;;  %v9594_v59 = vpop.eup %6962  ;;  %v3133_v37 = vpop.permute.xlu1 %3132  ;;  %v12610_v7 = vsub.f32 %v12559_v20, %v9246_v41  ;;  %v12618_v60 = vld [vmem:[#allocation69_spill] sm:$0xff] }
 0x4fa   : > { %v9575_v48 = vmul.f32 1.442695, %v12608_v1  ;;  %6982 = vpow2.f32 %v3914_v28  ;;  %v9602_v12 = vpop.eup %6964  ;;  %v12611_v28 = vsub.f32 %v12560_v13, %v9246_v41 }
 0x4fb   : > { %v4040_v15 = vadd.f32 %v9451_v39, %v4039_v55  ;;  %6984 = vpow2.f32 %v3918_v27  ;;  %v9608_v52 = vmul.f32 1.442695, %v12610_v7  ;;  %v9615_v17 = vpop.eup %6966  ;;  %v12612_v55 = vsub.f32 %v12561_v5, %v9246_v41  ;;  %v12613_v27 = vld [vmem:[#allocation71_spill] sm:$0xff] }
 0x4fc   : > { %v9613_v1 = vmul.f32 1.442695, %v12611_v28  ;;  %6986 = vpow2.f32 %v3922_v62  ;;  %v9623_v20 = vpop.eup %6968  ;;  %v3381_v6 = vadd.f32 %v12613_v27, %v3133_v37  ;;  %v3383_v62 = vadd.f32 %v9240_v25, %v3133_v37  ;;  %v12617_v27 = vld [vmem:[#allocation68_spill] sm:$0xff] }
 0x4fd   : > { %v4041_v7 = vadd.f32 %v9462_v9, %v4040_v15  ;;  %6988 = vpow2.f32 %v3926_v40  ;;  %v9630_v28 = vpop.eup %6970  ;;  %v9635_v36 = vmul.f32 1.442695, %v12612_v55  ;;  %v3158_v14 = vpop.permute.xlu1 %3157  ;;  %v12619_v25 = vsub.f32 %v12562_v54, %v9246_v41 }
 0x4fe   : > { %6990 = vpow2.f32 %v3930_v16  ;;  %v9640_v15 = vpop.eup %6972  ;;  %v12614_v16 = vld [vmem:[#allocation21_spill] sm:$0xff]  ;;  %v3128_v5 = vpop.permute.xlu0 %3127 }
 0x4ff   : > { %v4042_v13 = vadd.f32 %v9471_v56, %v4041_v7  ;;  %6992 = vpow2.f32 %v9511_v32  ;;  %v9646_v38 = vadd.f32 %v12614_v16, %v3158_v14  ;;  %v9648_v55 = vpop.eup %6974  ;;  %v3377_v9 = vadd.f32 %v12617_v27, %v3128_v5 }
 0x500   : > { %12616 = vst [vmem:[#allocation61_spill] sm:$0xff] %v9648_v55  ;;  %6994 = vpow2.f32 %v9520_v45  ;;  %v3379_v40 = vadd.f32 %v12618_v60, %v3128_v5  ;;  %v9660_v37 = vmul.f32 1.442695, %v12619_v25  ;;  %v12620_v60 = vsub.f32 %v12563_v4, %v9246_v41  ;;  %v12622_v4 = vld [vmem:[#allocation16_spill] sm:$0xff] }
 0x501   : > { %12615 = vst [vmem:[#allocation60_spill] sm:$0xff] %v9646_v38  ;;  %v6977_v7 = vpop.eup %6976  ;;  %v4043_v32 = vadd.f32 %v9482_v10, %v4042_v13  ;;  %6996 = vpow2.f32 %v9525_v42  ;;  %v3439_v27 = vpack.c.bf16 %v3381_v6, %v3377_v9  ;;  %v3088_v39 = vpop.permute.xlu1 %3087  ;;  %v12624_v9 = vld [vmem:[#allocation22_spill] sm:$0xff] }
 0x502   : > { %v6979_v16 = vpop.eup %6978  ;;  %6998 = vpow2.f32 %v9530_v22  ;;  %v9668_v5 = vmul.f32 1.442695, %v12620_v60  ;;  %v3440_v13 = vpack.c.bf16 %v3383_v62, %v3379_v40  ;;  %v3163_v56 = vpop.permute.xlu0 %3162  ;;  %v12621_v22 = vld [vmem:[#allocation18_spill] sm:$0xff]  ;;  %v9677_v60 = vadd.f32 %v12622_v4, %v3088_v39 }
 0x503   : > { %v6981_v42 = vpop.eup %6980  ;;  %v4044_v10 = vadd.f32 %v9491_v63, %v4043_v32  ;;  %7000 = vpow2.f32 %v9540_v57  ;;  %v4065_v54 = vadd.f32 %v6979_v16, %v6977_v7  ;;  %v4103_v25 = vpack.c.bf16 %v6979_v16, %v6977_v7  ;;  %5634 = vxpose.xlu1.c.b16.start.end [1/1] (short) %v3439_v27, 128  ;;  %v12627_v32 = vld [vmem:[#allocation17_spill] sm:$0xff] }
 0x504   : > { %v6983_v45 = vpop.eup %6982  ;;  %7002 = vpow2.f32 %v9545_v47  ;;  %v9674_v55 = vadd.f32 %v12621_v22, %v3158_v14  ;;  %12623 = vst [vmem:[#allocation64_spill] sm:$0xff] %v9677_v60  ;;  %v9680_v6 = vadd.f32 %v12624_v9, %v3163_v56  ;;  %5650 = vxpose.xlu0.c.b16.start.end [1/1] (short) %v3440_v13, 128  ;;  %v12626_v14 = vpack.c.bf16 %v9354_v50, %v9344_v35  ;;  %v12629_v13 = vld [vmem:[#allocation12_spill] sm:$0xff]  ;;  %v12632_v22 = vld [vmem:[#allocation11_spill] sm:$0xff] }
 0x505   : > { %v6985_v62 = vpop.eup %6984  ;;  %v4045_v57 = vadd.f32 %v9502_v11, %v4044_v10  ;;  %7004 = vpow2.f32 %v9552_v44  ;;  %v4066_v40 = vadd.f32 %v6981_v42, %v4065_v54  ;;  %4134 = vmatprep.subr.bf16.mxu0 %v4103_v25  ;;  %v4105_v7 = vpack.c.bf16 %v6983_v45, %v6981_v42 }
 0x506   : > { %12625 = vst [vmem:[#allocation65_spill] sm:$0xff] %v9680_v6  ;;  %v6987_v47 = vpop.eup %6986  ;;  %7006 = vpow2.f32 %v9557_v33  ;;  %4135 = vmatpush1.bf16.msra.mxu0 %v12626_v14  ;;  %v9689_v16 = vadd.f32 %v12627_v32, %v3088_v39  ;;  %v9692_v27 = vadd.f32 %v12629_v13, %v3163_v56  ;;  %v3093_v25 = vpop.permute.xlu0 %3092  ;;  %v12630_v39 = vld [vmem:[#allocation14_spill] sm:$0xff]  ;;  %v12635_v14 = vpack.c.bf16 %v9372_v0, %v9364_v2 }
 0x507   : > { %v6989_v44 = vpop.eup %6988  ;;  %v4046_v54 = vadd.f32 %v9515_v8, %v4045_v57  ;;  %7008 = vpow2.f32 %v9562_v30  ;;  %v4067_v42 = vadd.f32 %v6983_v45, %v4066_v40  ;;  %4136 = vmatprep.subr.bf16.mxu0 %v4105_v7  ;;  %v4107_v33 = vpack.c.bf16 %v6987_v47, %v6985_v62 }
 0x508   : > { %12628 = vst [vmem:[#allocation71_spill] sm:$0xff] %v9689_v16  ;;  %v6991_v35 = vpop.eup %6990  ;;  %7010 = vpow2.f32 %v9570_v61  ;;  %v3446_v50 = vpack.c.bf16 %v9692_v27, %v9674_v55  ;;  %v9702_v56 = vadd.f32 %v12630_v39, %v3093_v25  ;;  %v9705_v4 = vadd.f32 %v12632_v22, %v3093_v25  ;;  %v12638_v25 = vld [vmem:[#allocation63_spill] sm:$0xff] }
 0x509   : > { %v6993_v9 = vpop.eup %6992  ;;  %v4047_v57 = vadd.f32 %v9534_v26, %v4046_v54  ;;  %7012 = vpow2.f32 %v9575_v48  ;;  %v4068_v30 = vadd.f32 %v6985_v62, %v4067_v42  ;;  %v4109_v45 = vpack.c.bf16 %v6991_v35, %v6989_v44  ;;  %v12636_v42 = vld [vmem:[#allocation62_spill] sm:$0xff] }
 0x50a   : > { %12631 = vst [vmem:[#allocation21_spill] sm:$0xff] %v9702_v56  ;;  %12633 = vst [vmem:[#allocation68_spill] sm:$0xff] %v9705_v4  ;;  %v6995_v40 = vpop.eup %6994  ;;  %7014 = vpow2.f32 %v9608_v52  ;;  %v12634_v61 = vsub.f32 %v12565_v53, %v9246_v41  ;;  %4137 = vmatpush1.bf16.msra.mxu0 %v12635_v14  ;;  %v12637_v2 = vsub.f32 %v12636_v42, %v9246_v41 }
 0x50b   : > { %v6997_v48 = vpop.eup %6996  ;;  %v4048_v62 = vadd.f32 %v9547_v49, %v4047_v57  ;;  %7016 = vpow2.f32 %v9613_v1  ;;  %v4069_v52 = vadd.f32 %v6987_v47, %v4068_v30  ;;  %4138 = vmatprep.subr.bf16.mxu0 %v4107_v33  ;;  %v4111_v54 = vpack.c.bf16 %v6995_v40, %v6993_v9 }
 0x50c   : > { %v3998_v7 = vmul.f32 1.442695, %v12634_v61  ;;  %v6999_v53 = vpop.eup %6998  ;;  %7018 = vpow2.f32 %v9635_v36  ;;  %v4002_v0 = vmul.f32 1.442695, %v12637_v2  ;;  %v12639_v39 = vsub.f32 %v12638_v25, %v9246_v41  ;;  %v12643_v25 = vld [vmem:[#allocation66_spill] sm:$0xff] }
 0x50d   : > { %v7001_v61 = vpop.eup %7000  ;;  %v4049_v14 = vadd.f32 %v9564_v51, %v4048_v62  ;;  %7020 = vpow2.f32 %v9660_v37  ;;  %v4070_v1 = vadd.f32 %v6989_v44, %v4069_v52  ;;  %v4113_v47 = vpack.c.bf16 %v6999_v53, %v6997_v48 }
 0x50e   : > { %v4006_v22 = vmul.f32 1.442695, %v12639_v39  ;;  %v7003_v33 = vpop.eup %7002  ;;  %7022 = vpow2.f32 %v9668_v5  ;;  %v12640_v36 = vsub.f32 %v12569_v31, %v9246_v41  ;;  %v12641_v30 = vsub.f32 %v12570_v3, %v9246_v41 }
 0x50f   : > { %v12642_v2 = vpack.c.bf16 %v9387_v29, %v9380_v21  ;;  %v7005_v62 = vpop.eup %7004  ;;  %v4050_v37 = vadd.f32 %v9577_v18, %v4049_v14  ;;  %7024 = vpow2.f32 %v3998_v7  ;;  %v4071_v44 = vadd.f32 %v6991_v35, %v4070_v1  ;;  %v12647_v35 = vld [vmem:[#allocation70_spill] sm:$0xff] }
 0x510   : > { %v4010_v57 = vmul.f32 1.442695, %v12640_v36  ;;  %v4014_v42 = vmul.f32 1.442695, %v12641_v30  ;;  %v4115_v52 = vpack.c.bf16 %v7003_v33, %v7001_v61  ;;  %v7007_v5 = vpop.eup %7006  ;;  %7026 = vpow2.f32 %v4002_v0  ;;  %v12645_v36 = vld [vmem:[#allocation67_spill] sm:$0xff] }
 0x511   : > { %4139 = vmatpush1.bf16.msra.mxu0 %v12642_v2  ;;  %v12644_v31 = vsub.f32 %v12643_v25, %v9246_v41  ;;  %v12646_v3 = vsub.f32 %v12645_v36, %v9246_v41  ;;  %v7009_v32 = vpop.eup %7008  ;;  %v4051_v29 = vadd.f32 %v9585_v43, %v4050_v37  ;;  %7028 = vpow2.f32 %v4006_v22 }
 0x512   : > { %4140 = vmatprep.subr.bf16.mxu0 %v4109_v45  ;;  %v4072_v21 = vadd.f32 %v6993_v9, %v4071_v44  ;;  %v4117_v14 = vpack.c.bf16 %v7007_v5, %v7005_v62  ;;  %v7011_v7 = vpop.eup %7010  ;;  %7030 = vpow2.f32 %v4010_v57  ;;  %v12648_v45 = vsub.f32 %v12647_v35, %v9246_v41 }
 0x513   : > { %v4018_v39 = vmul.f32 1.442695, %v12644_v31  ;;  %v4022_v30 = vmul.f32 1.442695, %v12646_v3  ;;  %v12649_v1 = vpack.c.bf16 %v9404_v58, %v9395_v19  ;;  %v7013_v2 = vpop.eup %7012  ;;  %v4052_v25 = vadd.f32 %v9594_v59, %v4051_v29 }
 0x514   : > { %v4026_v0 = vmul.f32 1.442695, %v12648_v45  ;;  %7032 = vpow2.f32 %v4014_v42  ;;  %v4073_v31 = vadd.f32 %v6995_v40, %v4072_v21  ;;  %v4119_v37 = vpack.c.bf16 %v7011_v7, %v7009_v32  ;;  %v7015_v22 = vpop.eup %7014 }
 0x515   : > { %4141 = vmatpush1.bf16.msra.mxu0 %v12649_v1  ;;  %7034 = vpow2.f32 %v4018_v39  ;;  %v7017_v9 = vpop.eup %7016  ;;  %v4053_v57 = vadd.f32 %v9602_v12, %v4052_v25  ;;  %v4121_v41 = vpack.c.bf16 %v7015_v22, %v7013_v2  ;;  %v12650_v19 = vpack.c.bf16 %v9421_v24, %v9414_v46 }
 0x516   : > { %4142 = vmatprep.subr.bf16.mxu0 %v4111_v54  ;;  %7036 = vpow2.f32 %v4022_v30  ;;  %v4074_v44 = vadd.f32 %v6997_v48, %v4073_v31  ;;  %v7019_v36 = vpop.eup %7018  ;;  %v12651_v35 = vpack.c.bf16 %v9436_v34, %v9429_v23  ;;  %v12655_v23 = vld [vmem:[#allocation61_spill] sm:$0xff] }
 0x517   : > { %7038 = vpow2.f32 %v4026_v0  ;;  %v7021_v58 = vpop.eup %7020  ;;  %v4054_v42 = vadd.f32 %v9615_v17, %v4053_v57  ;;  %v4123_v54 = vpack.c.bf16 %v7019_v36, %v7017_v9 }
 0x518   : > { %v4075_v40 = vadd.f32 %v6999_v53, %v4074_v44  ;;  %v7023_v3 = vpop.eup %7022  ;;  %v12653_v44 = vld [vmem:[#allocation50_spill] sm:$0xff] }
 0x519   : > { %4143 = vmatpush1.bf16.msra.mxu0 %v12650_v19  ;;  %v7025_v39 = vpop.eup %7024  ;;  %v4055_v29 = vadd.f32 %v9623_v20, %v4054_v42  ;;  %v4125_v30 = vpack.c.bf16 %v7023_v3, %v7021_v58 }
 0x51a   : > { %4144 = vmatprep.subr.bf16.mxu0 %v4113_v47  ;;  %v4076_v21 = vadd.f32 %v7001_v61, %v4075_v40  ;;  %v7027_v48 = vpop.eup %7026  ;;  %v12652_v61 = vld [vmem:[#allocation52_spill] sm:$0xff] }
 0x51b   : > { %v7029_v45 = vpop.eup %7028  ;;  %v4056_v24 = vadd.f32 %v9630_v28, %v4055_v29  ;;  %v4127_v0 = vpack.c.bf16 %v7027_v48, %v7025_v39  ;;  %v12654_v19 = vpack.c.bf16 %v12652_v61, %v12653_v44 }
 0x51c   : > { %v4077_v46 = vadd.f32 %v7003_v33, %v4076_v21  ;;  %v7031_v53 = vpop.eup %7030 }
 0x51d   : > { %4145 = vmatpush1.bf16.msra.mxu0 %v12651_v35  ;;  %v4057_v1 = vadd.f32 %v9640_v15, %v4056_v24  ;;  %v4129_v31 = vpack.c.bf16 %v7031_v53, %v7029_v45  ;;  %v12656_v35 = vld [vmem:[#allocation55_spill] sm:$0xff]  ;;  %v12657_v24 = vld [vmem:[#allocation54_spill] sm:$0xff] }
 0x51e   : > { %4146 = vmatprep.subr.bf16.mxu0 %v4115_v52  ;;  %v7033_v47 = vpop.eup %7032  ;;  %v4078_v25 = vadd.f32 %v7005_v62, %v4077_v46  ;;  %v3054_v62 = vld [vmem:[%s12126_s4 + $0xb8] sm:$0xff]  ;;  %v12658_v46 = vpack.c.bf16 %v12656_v35, %v12657_v24  ;;  %v12684_v35 = vld [vmem:[#allocation35_spill] sm:$0xff] }
 0x51f   : > { %v7035_v57 = vpop.eup %7034  ;;  %v9771_v34 = vadd.f32 %v12655_v23, %v4057_v1  ;;  %v3053_v1 = vld [vmem:[%s12126_s4 + $0xb0] sm:$0xff] }
 0x520   : > { %v7037_v42 = vpop.eup %7036  ;;  %v4079_v40 = vadd.f32 %v7007_v5, %v4078_v25  ;;  %v4131_v33 = vpack.c.bf16 %v7035_v57, %v7033_v47  ;;  %v6350_v5 = vld [vmem:[%s12128_s6] sm:$0xff] }
 0x521   : > { %4147 = vmatpush1.bf16.msra.mxu0 %v12654_v19  ;;  %v7039_v52 = vpop.eup %7038 }
 0x522   : > { %4148 = vmatprep.subr.bf16.mxu0 %v4117_v14  ;;  %v4080_v29 = vadd.f32 %v7009_v32, %v4079_v40  ;;  %v4133_v21 = vpack.c.bf16 %v7039_v52, %v7037_v42  ;;  %v12659_v14 = vld [vmem:[#allocation56_spill] sm:$0xff] }
 0x523   : > { %3172 = vperm.xlu1 %6807, %v3054_v62   ;;  %v12660_v32 = vpack.c.bf16 %v9491_v63, %v12659_v14  ;;  %v6351_v63 = vld [vmem:[%s12128_s6 + $0x8] sm:$0xff] }
 0x524   : > { %v4081_v61 = vadd.f32 %v7011_v7, %v4080_v29  ;;  %v6352_v7 = vld [vmem:[%s12128_s6 + $0x10] sm:$0xff] }
 0x525   : > { %4149 = vmatpush1.bf16.msra.mxu0 %v12658_v46 }
 0x526   : > { %4150 = vmatprep.subr.bf16.mxu0 %v4119_v37  ;;  %v4082_v44 = vadd.f32 %v7013_v2, %v4081_v61  ;;  %v12661_v2 = vpack.c.bf16 %v9515_v8, %v9502_v11  ;;  %v6353_v11 = vld [vmem:[%s12128_s6 + $0x18] sm:$0xff]  ;;  %v12687_v61 = vld [vmem:[#allocation37_spill] sm:$0xff] }
 0x527   : > { %6360 = vperm.xlu1 %6807, %v6350_v5  }
 0x528   : > { %v4083_v25 = vadd.f32 %v7015_v22, %v4082_v44 }
 0x529   : > { %4151 = vmatpush1.bf16.msra.mxu0 %v12660_v32  ;;  %3167 = vperm.xlu0 %6806, %v3053_v1   ;;  %v12691_v32 = vld [vmem:[#allocation39_spill] sm:$0xff] }
 0x52a   : > { %4152 = vmatprep.subr.bf16.mxu0 %v4121_v41  ;;  %v4084_v19 = vadd.f32 %v7017_v9, %v4083_v25  ;;  %v6354_v9 = vld [vmem:[%s12128_s6 + $0x20] sm:$0xff]  ;;  %v12662_v41 = vpack.c.bf16 %v9547_v49, %v9534_v26  ;;  %v6355_v26 = vld [vmem:[%s12128_s6 + $0x28] sm:$0xff] }
 0x52b   : > { %6370 = vperm.xlu1 %6807, %v6352_v7   ;;  %v12695_v7 = vld [vmem:[#allocation26_spill] sm:$0xff] }
 0x52c   : > { %v4085_v37 = vadd.f32 %v7019_v36, %v4084_v19 }
 0x52d   : > { %4153 = vmatpush1.bf16.msra.mxu0 %v12661_v2  ;;  %6365 = vperm.xlu0 %6806, %v6351_v63  }
 0x52e   : > { %4154 = vmatprep.subr.bf16.mxu0 %v4123_v54  ;;  %v4086_v22 = vadd.f32 %v7021_v58, %v4085_v37  ;;  %v6356_v58 = vld [vmem:[%s12128_s6 + $0x30] sm:$0xff]  ;;  %v12663_v54 = vpack.c.bf16 %v9577_v18, %v9564_v51  ;;  %v12665_v18 = vpack.c.bf16 %v9615_v17, %v9602_v12  ;;  %v12671_v17 = vld [vmem:[#allocation15_spill] sm:$0xff]  ;;  %v12698_v37 = vld [vmem:[#allocation28_spill] sm:$0xff] }
 0x52f   : > { %6380 = vperm.xlu1 %6807, %v6354_v9   ;;  %v12672_v12 = vld [vmem:[#allocation13_spill] sm:$0xff] }
 0x530   : > { %v4087_v8 = vadd.f32 %v7023_v3, %v4086_v22 }
 0x531   : > { %4155 = vmatpush1.bf16.msra.mxu0 %v12662_v41  ;;  %6375 = vperm.xlu0 %6806, %v6353_v11   ;;  %v12702_v11 = vld [vmem:[#allocation30_spill] sm:$0xff] }
 0x532   : > { %4156 = vmatprep.subr.bf16.mxu0 %v4125_v30  ;;  %v4088_v36 = vadd.f32 %v7025_v39, %v4087_v8  ;;  %v12664_v39 = vpack.c.bf16 %v9594_v59, %v9585_v43  ;;  %v6357_v30 = vld [vmem:[%s12128_s6 + $0x38] sm:$0xff]  ;;  %v12667_v59 = vpack.c.bf16 %v12655_v23, %v9640_v15  ;;  %v12679_v15 = vld [vmem:[#allocation27_spill] sm:$0xff]  ;;  %v12680_v23 = vld [vmem:[#allocation29_spill] sm:$0xff] }
 0x533   : > { %6390 = vperm.xlu1 %6807, %v6356_v58  }
 0x534   : > { %v4089_v49 = vadd.f32 %v7027_v48, %v4088_v36 }
 0x535   : > { %4157 = vmatpush1.bf16.msra.mxu0 %v12663_v54  ;;  %6385 = vperm.xlu0 %6806, %v6355_v26   ;;  %v12705_v54 = vld [vmem:[#allocation23_spill] sm:$0xff] }
 0x536   : > { %4158 = vmatprep.subr.bf16.mxu0 %v4127_v0  ;;  %v4090_v3 = vadd.f32 %v7029_v45, %v4089_v49  ;;  %v12666_v0 = vpack.c.bf16 %v9630_v28, %v9623_v20  ;;  %v12677_v20 = vmov 0   ;;  %v12678_v28 = vld [vmem:[#allocation25_spill] sm:$0xff]  ;;  %v12707_v49 = vld [vmem:[#allocation32_spill] sm:$0xff] }
 0x538   : > { %v4091_v40 = vadd.f32 %v7031_v53, %v4090_v3  ;;  %v12668_v53 = vld [vmem:[#allocation24_spill] sm:$0xff] }
 0x539   : > { %4159 = vmatpush1.bf16.msra.mxu0 %v12664_v39  ;;  %6395 = vperm.xlu0 %6806, %v6357_v30   ;;  %v12708_v39 = vld [vmem:[#allocation8_spill] sm:$0xff] }
 0x53a   : > { %4160 = vmatprep.subr.bf16.mxu0 %v4129_v31  ;;  %v4092_v51 = vadd.f32 %v7033_v47, %v4091_v40  ;;  %v12669_v47 = vld [vmem:[#allocation9_spill] sm:$0xff]  ;;  %v12710_v40 = vld [vmem:[#allocation20_spill] sm:$0xff] }
 0x53b   : > { %v12670_v31 = vpack.c.bf16 %v12668_v53, %v12669_v47  ;;  %v12715_v53 = vld [vmem:[#allocation36_spill] sm:$0xff]  ;;  %v12716_v47 = vld [vmem:[#allocation38_spill] sm:$0xff] }
 0x53c   : > { %v4093_v48 = vadd.f32 %v7035_v57, %v4092_v51  ;;  %v12673_v57 = vpack.c.bf16 %v12671_v17, %v12672_v12  ;;  %v4059_v17 = vrot.slane %v9771_v34, 4 }
 0x53d   : > { %4161 = vmatpush1.bf16.msra.mxu0 %v12665_v18  ;;  %v12712_v18 = vld [vmem:[#allocation19_spill] sm:$0xff] }
 0x53e   : > { %4162 = vmatprep.subr.bf16.mxu0 %v4131_v33  ;;  %v4094_v45 = vadd.f32 %v7037_v42, %v4093_v48  ;;  %v12674_v42 = vld [vmem:[#allocation10_spill] sm:$0xff]  ;;  %v12675_v33 = vld [vmem:[#allocation7_spill] sm:$0xff] }
 0x53f   : > { %v12676_v29 = vpack.c.bf16 %v12674_v42, %v12675_v33 }
 0x540   : > { %v9827_v43 = vadd.f32 %v7039_v52, %v4094_v45  ;;  %v12681_v52 = vld [vmem:[#allocation31_spill] sm:$0xff] }
 0x541   : > { %4163 = vmatpush1.bf16.msra.mxu0 %v12666_v0 }
 0x542   : > { %4164 = vmatprep.subr.bf16.mxu0 %v4133_v21  ;;  %v12682_v21 = vld [vmem:[#allocation33_spill] sm:$0xff]  ;;  %v4096_v12 = vrot.slane %v9827_v43, 4 }
 0x544   : > { %v4097_v42 = vadd.f32 %v4096_v12, %v9827_v43 }
 0x545   : > { %4165 = vmatpush1.bf16.msra.mxu0 %v12667_v59  ;;  %v12714_v59 = vld [vmem:[#allocation34_spill] sm:$0xff] }
 0x546   : > { %4284 = vmatprep.subr.bf16.mxu0 %v12670_v31  ;;  %v12717_v31 = vld [vmem:[#allocation40_spill] sm:$0xff] }
 0x548   : > { %4167 = vmatmul.mubr.bf16.vlgmr.msra.gmra.mrb[32].mxu0 %v12673_v57  ;;  %v4060_v57 = vadd.f32 %v4059_v17, %v9771_v34 }
 0x549   : > { %4285 = vmatpush1.bf16.msra.mxu0 %v12676_v29  ;;  %4316 = vmatprep.mubr.bf16.mxu0 %v12677_v20  ;;  %v4098_v29 = vrot.slane %v4097_v42, 2 }
 0x54a   : > { %v4061_v33 = vrot.slane %v4060_v57, 2 }
 0x550   : > { %6688 = vmatmul.mubr.msk.bf16.vlgmr.msra.gmra.mrb[36].mxu0 %vm3520_vm2, %v12678_v28  ;;  %v4062_v28 = vadd.f32 %v4061_v33, %v4060_v57 }
 0x551   : > { %4326 = vmatprep.mubr.bf16.mxu0 %v12677_v20 }
 0x558   : > { %6689 = vmatmul.mubr.msk.bf16.gmra.mrb[40].mxu0 %vm3520_vm2, %v12679_v15  ;;  %v4099_v15 = vadd.f32 %v4098_v29, %v4097_v42 }
 0x559   : > { %4336 = vmatprep.mubr.bf16.mxu0 %v12677_v20 }
 0x560   : > { %6690 = vmatmul.mubr.msk.bf16.gmra.mrb[44].mxu0 %vm3520_vm2, %v12680_v23  ;;  %v4063_v23 = vrot.slane %v4062_v28, 1 }
 0x561   : > { %4346 = vmatprep.mubr.bf16.mxu0 %v12677_v20 }
 0x568   : > { %6691 = vmatmul.mubr.msk.bf16.gmra.mrb[48].mxu0 %vm3520_vm2, %v12681_v52  ;;  %v4100_v52 = vrot.slane %v4099_v15, 1 }
 0x569   : > { %4356 = vmatprep.mubr.bf16.mxu0 %v12677_v20  ;;  %v9857_v62 = vpop.trf.xlu1 }
 0x56a   : > { %12683 = vst [vmem:[#allocation69_spill] sm:$0xff] %v9857_v62  ;;  %v9862_v24 = vpop.trf.xlu0 }
 0x56b   : > { %12685 = vst [vmem:[#allocation18_spill] sm:$0xff] %v9862_v24 }
 0x56d   : > { %v9864_v46 = vpop.trf.xlu1 }
 0x56e   : > { %12686 = vst [vmem:[#allocation16_spill] sm:$0xff] %v9864_v46  ;;  %v9869_v44 = vpop.trf.xlu0 }
 0x56f   : > { %12688 = vst [vmem:[#allocation22_spill] sm:$0xff] %v9869_v44 }
 0x570   : > { %6692 = vmatmul.mubr.msk.bf16.gmra.mrb[52].mxu0 %vm3520_vm2, %v12682_v21  ;;  %v4064_v21 = vadd.f32 %v4063_v23, %v4062_v28 }
 0x571   : > { %4366 = vmatprep.mubr.bf16.mxu0 %v12677_v20  ;;  %v9871_v5 = vpop.trf.xlu1 }
 0x572   : > { %12689 = vst [vmem:[#allocation17_spill] sm:$0xff] %v9871_v5  ;;  %v9873_v14 = vpop.trf.xlu0  ;;  %7040 = vrcp.f32 %v4064_v21 }
 0x573   : > { %12690 = vst [vmem:[#allocation12_spill] sm:$0xff] %v9873_v14 }
 0x575   : > { %v9877_v1 = vpop.trf.xlu1 }
 0x576   : > { %12692 = vst [vmem:[#allocation14_spill] sm:$0xff] %v9877_v1  ;;  %v9880_v25 = vpop.trf.xlu0 }
 0x577   : > { %12693 = vst [vmem:[#allocation11_spill] sm:$0xff] %v9880_v25 }
 0x578   : > { %6693 = vmatmul.mubr.msk.bf16.gmra.mrb[56].mxu0 %vm3520_vm2, %v12684_v35  ;;  %v4101_v35 = vadd.f32 %v4100_v52, %v4099_v15 }
 0x579   : > { %4376 = vmatprep.mubr.bf16.mxu0 %v12677_v20  ;;  %v9882_v19 = vpop.trf.xlu1 }
 0x57a   : > { %12694 = vst [vmem:[#allocation62_spill] sm:$0xff] %v9882_v19  ;;  %v9887_v2 = vpop.trf.xlu0  ;;  %7042 = vrcp.f32 %v4101_v35 }
 0x57b   : > { %12696 = vst [vmem:[#allocation63_spill] sm:$0xff] %v9887_v2 }
 0x57c   : > { %v7041_v55 = vpop.eup %7040 }
 0x57d   : > { %v9889_v63 = vpop.trf.xlu1 }
 0x57e   : > { %12697 = vst [vmem:[#allocation66_spill] sm:$0xff] %v9889_v63  ;;  %v9894_v22 = vpop.trf.xlu0 }
 0x57f   : > { %12699 = vst [vmem:[#allocation67_spill] sm:$0xff] %v9894_v22 }
 0x580   : > { %6694 = vmatmul.mubr.msk.bf16.gmra.mrb[60].mxu0 %vm3520_vm2, %v12687_v61 }
 0x581   : > { %4386 = vmatprep.mubr.bf16.mxu0 %v12677_v20  ;;  %v9896_v9 = vpop.trf.xlu1 }
 0x582   : > { %12700 = vst [vmem:[#allocation70_spill] sm:$0xff] %v9896_v9  ;;  %v9898_v41 = vpop.trf.xlu0 }
 0x583   : > { %12701 = vst [vmem:[#allocation52_spill] sm:$0xff] %v9898_v41 }
 0x585   : > { %v9902_v8 = vpop.trf.xlu1 }
 0x586   : > { %12703 = vst [vmem:[#allocation50_spill] sm:$0xff] %v9902_v8  ;;  %v9905_v36 = vpop.trf.xlu0 }
 0x587   : > { %12704 = vst [vmem:[#allocation61_spill] sm:$0xff] %v9905_v36 }
 0x588   : > { %6695 = vmatmul.mubr.msk.bf16.gmra.mrb[64].mxu0 %vm3520_vm2, %v12691_v32 }
 0x589   : > { %4396 = vmatprep.mubr.bf16.mxu0 %v12677_v20 }
 0x590   : > { %6696 = vmatmul.mubr.msk.bf16.gmra.mrb[68].mxu0 %vm3520_vm2, %v12695_v7 }
 0x591   : > { %4406 = vmatprep.mubr.bf16.mxu0 %v12677_v20 }
 0x598   : > { %6697 = vmatmul.mubr.msk.bf16.gmra.mrb[72].mxu0 %vm3520_vm2, %v12698_v37 }
 0x599   : > { %4416 = vmatprep.mubr.bf16.mxu0 %v12677_v20 }
 0x5a0   : > { %6698 = vmatmul.mubr.msk.bf16.gmra.mrb[76].mxu0 %vm3520_vm2, %v12702_v11 }
 0x5a1   : > { %4426 = vmatprep.mubr.bf16.mxu0 %v12677_v20 }
 0x5a2   : > { %v3173_v58 = vpop.permute.xlu1 %3172 }
 0x5a3   : > { %v9908_v26 = vadd.f32 %v12705_v54, %v3173_v58  ;;  %v9914_v30 = vadd.f32 %v12708_v39, %v3173_v58 }
 0x5a5   : > { %12706 = vst [vmem:[#allocation55_spill] sm:$0xff] %v9908_v26  ;;  %12709 = vst [vmem:[#allocation54_spill] sm:$0xff] %v9914_v30 }
 0x5a8   : > { %6699 = vmatmul.mubr.msk.bf16.gmra.mrb[80].mxu0 %vm3520_vm2, %v12707_v49  ;;  %v3168_v3 = vpop.permute.xlu0 %3167 }
 0x5a9   : > { %4436 = vmatprep.mubr.bf16.mxu0 %v12677_v20  ;;  %v9917_v51 = vadd.f32 %v12710_v40, %v3168_v3  ;;  %v9920_v48 = vadd.f32 %v12712_v18, %v3168_v3 }
 0x5ab   : > { %12711 = vst [vmem:[#allocation56_spill] sm:$0xff] %v9917_v51  ;;  %12713 = vst [vmem:[#allocation24_spill] sm:$0xff] %v9920_v48 }
 0x5b0   : > { %6700 = vmatmul.mubr.msk.bf16.gmra.mrb[84].mxu0 %vm3520_vm2, %v12714_v59 }
 0x5b1   : > { %4446 = vmatprep.mubr.bf16.mxu0 %v12677_v20 }
 0x5b8   : > { %6701 = vmatmul.mubr.msk.bf16.gmra.mrb[88].mxu0 %vm3520_vm2, %v12715_v53 }
 0x5b9   : > { %4456 = vmatprep.mubr.bf16.mxu0 %v12677_v20 }
 0x5c0   : > { %6702 = vmatmul.mubr.msk.bf16.gmra.mrb[92].mxu0 %vm3520_vm2, %v12716_v47 }
 0x5c1   : > { %4466 = vmatprep.mubr.bf16.mxu0 %v12677_v20 }
 0x5c8   : > { %6703 = vmatmul.mubr.msk.bf16.gmra.mrb[96].mxu0 %vm3520_vm2, %v12717_v31 }
 0x5c9   : > { %5596 = vmatprep.mubr.bf16.mxu0 %v3446_v50  ;;  %v7043_v50 = vpop.eup %7042 }
 0x61b   : > { %v4168_v27 = vpop.f32.mrb[32].mxu0 }
 0x61c   : > { %v9944_v61 = vmul.f32 %v7041_v55, %v4168_v27  ;;  %v4170_v32 = vpop.f32.mrb[33].mxu0 }
 0x61d   : > { %v9946_v7 = vmul.f32 %v7043_v50, %v4170_v32  ;;  %v4172_v34 = vpop.f32.mrb[34].mxu0 }
 0x61e   : > { %12718 = vst [vmem:[#allocation9_spill] sm:$0xff] %v9944_v61  ;;  %v9948_v43 = vmul.f32 %v7041_v55, %v4172_v34  ;;  %v4174_v37 = vpop.f32.mrb[35].mxu0 }
 0x61f   : > { %12719 = vst [vmem:[#allocation15_spill] sm:$0xff] %v9946_v7  ;;  %v9950_v11 = vmul.f32 %v7043_v50, %v4174_v37 }
 0x620   : > { %12720 = vst [vmem:[#allocation13_spill] sm:$0xff] %v9948_v43 }
 0x621   : > { %12721 = vst [vmem:[#allocation10_spill] sm:$0xff] %v9950_v11 }
 0x623   : > { %v9956_v49 = vpop.f32.mrb[36].mxu0 }
 0x624   : > { %v9958_v3 = vpop.f32.mrb[37].mxu0 }
 0x625   : > { %v9960_v39 = vpop.f32.mrb[38].mxu0 }
 0x626   : > { %v9962_v40 = vpop.f32.mrb[39].mxu0 }
 0x62b   : > { %v9964_v18 = vpop.f32.mrb[40].mxu0 }
 0x62c   : > { %v4477_v59 = vmax.f32 %v9956_v49, %v9964_v18  ;;  %v9968_v53 = vpop.f32.mrb[41].mxu0 }
 0x62d   : > { %v4514_v47 = vmax.f32 %v9958_v3, %v9968_v53  ;;  %v9972_v31 = vpop.f32.mrb[42].mxu0 }
 0x62e   : > { %v4478_v17 = vmax.f32 %v9960_v39, %v9972_v31  ;;  %v9976_v12 = vpop.f32.mrb[43].mxu0 }
 0x62f   : > { %v4515_v57 = vmax.f32 %v9962_v40, %v9976_v12 }
 0x633   : > { %v9980_v42 = vpop.f32.mrb[44].mxu0 }
 0x634   : > { %v4479_v33 = vmax.f32 %v4477_v59, %v9980_v42  ;;  %v9983_v29 = vpop.f32.mrb[45].mxu0 }
 0x635   : > { %v4516_v28 = vmax.f32 %v4514_v47, %v9983_v29  ;;  %v9986_v15 = vpop.f32.mrb[46].mxu0 }
 0x636   : > { %v4480_v23 = vmax.f32 %v4478_v17, %v9986_v15  ;;  %v9989_v52 = vpop.f32.mrb[47].mxu0 }
 0x637   : > { %v4517_v21 = vmax.f32 %v4515_v57, %v9989_v52 }
 0x63b   : > { %v9992_v35 = vpop.f32.mrb[48].mxu0 }
 0x63c   : > { %v4481_v55 = vmax.f32 %v4479_v33, %v9992_v35  ;;  %v9995_v27 = vpop.f32.mrb[49].mxu0 }
 0x63d   : > { %v4518_v50 = vmax.f32 %v4516_v28, %v9995_v27  ;;  %v9998_v32 = vpop.f32.mrb[50].mxu0 }
 0x63e   : > { %v4482_v34 = vmax.f32 %v4480_v23, %v9998_v32  ;;  %v10001_v37 = vpop.f32.mrb[51].mxu0 }
 0x63f   : > { %v4519_v59 = vmax.f32 %v4517_v21, %v10001_v37 }
 0x643   : > { %v10004_v47 = vpop.f32.mrb[52].mxu0 }
 0x644   : > { %v4483_v17 = vmax.f32 %v4481_v55, %v10004_v47  ;;  %v10007_v57 = vpop.f32.mrb[53].mxu0 }
 0x645   : > { %v4520_v33 = vmax.f32 %v4518_v50, %v10007_v57  ;;  %v10010_v58 = vpop.f32.mrb[54].mxu0 }
 0x646   : > { %v4484_v28 = vmax.f32 %v4482_v34, %v10010_v58  ;;  %v10013_v45 = vpop.f32.mrb[55].mxu0 }
 0x647   : > { %v4521_v23 = vmax.f32 %v4519_v59, %v10013_v45 }
 0x64b   : > { %v10016_v54 = vpop.f32.mrb[56].mxu0 }
 0x64c   : > { %v4485_v21 = vmax.f32 %v4483_v17, %v10016_v54  ;;  %v10019_v10 = vpop.f32.mrb[57].mxu0 }
 0x64d   : > { %v4522_v55 = vmax.f32 %v4520_v33, %v10019_v10  ;;  %v10022_v13 = vpop.f32.mrb[58].mxu0 }
 0x64e   : > { %v4486_v50 = vmax.f32 %v4484_v28, %v10022_v13  ;;  %v10025_v0 = vpop.f32.mrb[59].mxu0 }
 0x64f   : > { %12722 = vst [vmem:[#allocation7_spill] sm:$0xff] %v10025_v0  ;;  %v4523_v34 = vmax.f32 %v4521_v23, %v10025_v0 }
 0x653   : > { %v10028_v61 = vpop.f32.mrb[60].mxu0 }
 0x654   : > { %v4487_v59 = vmax.f32 %v4485_v21, %v10028_v61  ;;  %v10031_v43 = vpop.f32.mrb[61].mxu0 }
 0x655   : > { %12723 = vst [vmem:[#allocation25_spill] sm:$0xff] %v10031_v43  ;;  %v4524_v17 = vmax.f32 %v4522_v55, %v10031_v43  ;;  %v10034_v51 = vpop.f32.mrb[62].mxu0 }
 0x656   : > { %v4488_v33 = vmax.f32 %v4486_v50, %v10034_v51  ;;  %v10037_v26 = vpop.f32.mrb[63].mxu0 }
 0x657   : > { %12724 = vst [vmem:[#allocation27_spill] sm:$0xff] %v10037_v26  ;;  %v4525_v28 = vmax.f32 %v4523_v34, %v10037_v26 }
 0x65b   : > { %v10040_v7 = vpop.f32.mrb[64].mxu0 }
 0x65c   : > { %v4489_v23 = vmax.f32 %v4487_v59, %v10040_v7  ;;  %v10043_v11 = vpop.f32.mrb[65].mxu0 }
 0x65d   : > { %12725 = vst [vmem:[#allocation29_spill] sm:$0xff] %v10043_v11  ;;  %v4526_v21 = vmax.f32 %v4524_v17, %v10043_v11  ;;  %v10046_v36 = vpop.f32.mrb[66].mxu0 }
 0x65e   : > { %v4490_v55 = vmax.f32 %v4488_v33, %v10046_v36  ;;  %v10049_v41 = vpop.f32.mrb[67].mxu0 }
 0x65f   : > { %12726 = vst [vmem:[#allocation31_spill] sm:$0xff] %v10049_v41  ;;  %v4527_v50 = vmax.f32 %v4525_v28, %v10049_v41 }
 0x663   : > { %v10052_v22 = vpop.f32.mrb[68].mxu0 }
 0x664   : > { %v4491_v34 = vmax.f32 %v4489_v23, %v10052_v22  ;;  %v10055_v2 = vpop.f32.mrb[69].mxu0 }
 0x665   : > { %12727 = vst [vmem:[#allocation33_spill] sm:$0xff] %v10055_v2  ;;  %v4528_v59 = vmax.f32 %v4526_v21, %v10055_v2  ;;  %v10058_v25 = vpop.f32.mrb[70].mxu0 }
 0x666   : > { %v4492_v17 = vmax.f32 %v4490_v55, %v10058_v25  ;;  %v10061_v14 = vpop.f32.mrb[71].mxu0 }
 0x667   : > { %12728 = vst [vmem:[#allocation35_spill] sm:$0xff] %v10061_v14  ;;  %v4529_v33 = vmax.f32 %v4527_v50, %v10061_v14 }
 0x66b   : > { %v10064_v44 = vpop.f32.mrb[72].mxu0 }
 0x66c   : > { %v4493_v28 = vmax.f32 %v4491_v34, %v10064_v44  ;;  %v10067_v24 = vpop.f32.mrb[73].mxu0 }
 0x66d   : > { %12729 = vst [vmem:[#allocation37_spill] sm:$0xff] %v10067_v24  ;;  %v4530_v23 = vmax.f32 %v4528_v59, %v10067_v24  ;;  %v10070_v8 = vpop.f32.mrb[74].mxu0 }
 0x66e   : > { %v4494_v21 = vmax.f32 %v4492_v17, %v10070_v8  ;;  %v10073_v9 = vpop.f32.mrb[75].mxu0 }
 0x66f   : > { %12730 = vst [vmem:[#allocation39_spill] sm:$0xff] %v10073_v9  ;;  %v4531_v55 = vmax.f32 %v4529_v33, %v10073_v9 }
 0x673   : > { %v10076_v63 = vpop.f32.mrb[76].mxu0 }
 0x674   : > { %v4495_v50 = vmax.f32 %v4493_v28, %v10076_v63  ;;  %v10079_v19 = vpop.f32.mrb[77].mxu0 }
 0x675   : > { %12731 = vst [vmem:[#allocation26_spill] sm:$0xff] %v10079_v19  ;;  %v4532_v34 = vmax.f32 %v4530_v23, %v10079_v19  ;;  %v10082_v1 = vpop.f32.mrb[78].mxu0 }
 0x676   : > { %v4496_v59 = vmax.f32 %v4494_v21, %v10082_v1  ;;  %v10085_v5 = vpop.f32.mrb[79].mxu0 }
 0x677   : > { %12732 = vst [vmem:[#allocation28_spill] sm:$0xff] %v10085_v5  ;;  %v4533_v17 = vmax.f32 %v4531_v55, %v10085_v5 }
 0x67b   : > { %v10088_v46 = vpop.f32.mrb[80].mxu0 }
 0x67c   : > { %v4497_v33 = vmax.f32 %v4495_v50, %v10088_v46  ;;  %v10091_v62 = vpop.f32.mrb[81].mxu0 }
 0x67d   : > { %12733 = vst [vmem:[#allocation30_spill] sm:$0xff] %v10091_v62  ;;  %v4534_v28 = vmax.f32 %v4532_v34, %v10091_v62  ;;  %v10094_v60 = vpop.f32.mrb[82].mxu0 }
 0x67e   : > { %v4498_v23 = vmax.f32 %v4496_v59, %v10094_v60  ;;  %v10097_v56 = vpop.f32.mrb[83].mxu0 }
 0x67f   : > { %12734 = vst [vmem:[#allocation23_spill] sm:$0xff] %v10097_v56  ;;  %v4535_v21 = vmax.f32 %v4533_v17, %v10097_v56 }
 0x683   : > { %v10100_v38 = vpop.f32.mrb[84].mxu0 }
 0x684   : > { %v4499_v55 = vmax.f32 %v4497_v33, %v10100_v38  ;;  %v10103_v6 = vpop.f32.mrb[85].mxu0 }
 0x685   : > { %12735 = vst [vmem:[#allocation32_spill] sm:$0xff] %v10103_v6  ;;  %v4536_v50 = vmax.f32 %v4534_v28, %v10103_v6  ;;  %v10106_v16 = vpop.f32.mrb[86].mxu0 }
 0x686   : > { %v4500_v34 = vmax.f32 %v4498_v23, %v10106_v16  ;;  %v10109_v4 = vpop.f32.mrb[87].mxu0 }
 0x687   : > { %12736 = vst [vmem:[#allocation8_spill] sm:$0xff] %v10109_v4  ;;  %v4537_v59 = vmax.f32 %v4535_v21, %v10109_v4 }
 0x68b   : > { %v10112_v48 = vpop.f32.mrb[88].mxu0 }
 0x68c   : > { %v4501_v17 = vmax.f32 %v4499_v55, %v10112_v48  ;;  %v10115_v30 = vpop.f32.mrb[89].mxu0 }
 0x68d   : > { %12737 = vst [vmem:[#allocation20_spill] sm:$0xff] %v10115_v30  ;;  %v4538_v33 = vmax.f32 %v4536_v50, %v10115_v30  ;;  %v10118_v20 = vpop.f32.mrb[90].mxu0 }
 0x68e   : > { %v4502_v28 = vmax.f32 %v4500_v34, %v10118_v20  ;;  %v10121_v6 = vpop.f32.mrb[91].mxu0 }
 0x68f   : > { %12738 = vst [vmem:[#allocation19_spill] sm:$0xff] %v10121_v6  ;;  %v4539_v23 = vmax.f32 %v4537_v59, %v10121_v6 }
 0x693   : > { %v10124_v56 = vpop.f32.mrb[92].mxu0 }
 0x694   : > { %v4503_v21 = vmax.f32 %v4501_v17, %v10124_v56  ;;  %v10127_v4 = vpop.f32.mrb[93].mxu0 }
 0x695   : > { %12739 = vst [vmem:[#allocation34_spill] sm:$0xff] %v10127_v4  ;;  %v4540_v55 = vmax.f32 %v4538_v33, %v10127_v4  ;;  %v10130_v62 = vpop.f32.mrb[94].mxu0 }
 0x696   : > { %v4504_v50 = vmax.f32 %v4502_v28, %v10130_v62  ;;  %v10133_v30 = vpop.f32.mrb[95].mxu0 }
 0x697   : > { %12740 = vst [vmem:[#allocation36_spill] sm:$0xff] %v10133_v30  ;;  %v4541_v34 = vmax.f32 %v4539_v23, %v10133_v30 }
 0x69b   : > { %v10136_v5 = vpop.f32.mrb[96].mxu0 }
 0x69c   : > { %v4505_v59 = vmax.f32 %v4503_v21, %v10136_v5  ;;  %v10139_v6 = vpop.f32.mrb[97].mxu0 }
 0x69d   : > { %12741 = vst [vmem:[#allocation38_spill] sm:$0xff] %v10139_v6  ;;  %v4542_v17 = vmax.f32 %v4540_v55, %v10139_v6  ;;  %v10142_v19 = vpop.f32.mrb[98].mxu0 }
 0x69e   : > { %v4506_v33 = vmax.f32 %v4504_v50, %v10142_v19  ;;  %v10145_v4 = vpop.f32.mrb[99].mxu0 }
 0x69f   : > { %12742 = vst [vmem:[#allocation40_spill] sm:$0xff] %v10145_v4  ;;  %v4543_v28 = vmax.f32 %v4541_v34, %v10145_v4 }
 0x6a0   : > { %v4507_v9 = vmax.f32 %v4505_v59, %v4506_v33 }
 0x6a1   : > { %v4544_v24 = vmax.f32 %v4542_v17, %v4543_v28 }
 0x6a2   : > { %v4508_v14 = vrot.slane %v4507_v9, 4 }
 0x6a3   : > { %v4545_v23 = vrot.slane %v4544_v24, 4 }
 0x6a4   : > { %v4509_v30 = vmax.f32 %v4507_v9, %v4508_v14 }
 0x6a5   : > { %v4546_v2 = vmax.f32 %v4544_v24, %v4545_v23 }
 0x6a6   : > { %v4510_v41 = vrot.slane %v4509_v30, 2 }
 0x6a7   : > { %v4547_v21 = vrot.slane %v4546_v2, 2 }
 0x6a8   : > { %v4511_v11 = vmax.f32 %v4509_v30, %v4510_v41 }
 0x6a9   : > { %v4548_v26 = vmax.f32 %v4546_v2, %v4547_v21 }
 0x6aa   : > { %v4512_v43 = vrot.slane %v4511_v11, 1 }
 0x6ab   : > { %v4549_v55 = vrot.slane %v4548_v26, 1 }
 0x6ac   : > { %v10148_v6 = vmax.f32 %v4511_v11, %v4512_v43 }
 0x6ad   : > { %v10150_v0 = vmax.f32 %v4548_v26, %v4549_v55 }
 0x6ae   : > { %v4551_v50 = vsub.f32 %v9956_v49, %v10148_v6  ;;  %v4553_v34 = vsub.f32 %v9960_v39, %v10148_v6  ;;  %v4555_v14 = vsub.f32 %v9964_v18, %v10148_v6  ;;  %v4557_v24 = vsub.f32 %v9972_v31, %v10148_v6 }
 0x6af   : > { %v4559_v2 = vsub.f32 %v9980_v42, %v10148_v6  ;;  %v4561_v9 = vsub.f32 %v9986_v15, %v10148_v6  ;;  %v4563_v41 = vsub.f32 %v9992_v35, %v10148_v6  ;;  %v4565_v26 = vsub.f32 %v9998_v32, %v10148_v6 }
 0x6b0   : > { %v4567_v30 = vsub.f32 %v10004_v47, %v10148_v6  ;;  %v4569_v43 = vsub.f32 %v10010_v58, %v10148_v6  ;;  %v4571_v11 = vsub.f32 %v10016_v54, %v10148_v6  ;;  %v4573_v49 = vsub.f32 %v10022_v13, %v10148_v6 }
 0x6b1   : > { %v4575_v39 = vsub.f32 %v10028_v61, %v10148_v6  ;;  %v4577_v18 = vsub.f32 %v10034_v51, %v10148_v6  ;;  %v4579_v31 = vsub.f32 %v10040_v7, %v10148_v6  ;;  %v4581_v42 = vsub.f32 %v10046_v36, %v10148_v6 }
 0x6b2   : > { %v4583_v58 = vsub.f32 %v10052_v22, %v10148_v6  ;;  %v4585_v54 = vsub.f32 %v10058_v25, %v10148_v6  ;;  %v4587_v13 = vsub.f32 %v10064_v44, %v10148_v6  ;;  %v4589_v61 = vsub.f32 %v10070_v8, %v10148_v6  ;;  %v12762_v25 = vld [vmem:[#allocation38_spill] sm:$0xff] }
 0x6b3   : > { %v4591_v51 = vsub.f32 %v10076_v63, %v10148_v6  ;;  %v4593_v7 = vsub.f32 %v10082_v1, %v10148_v6  ;;  %v4595_v36 = vsub.f32 %v10088_v46, %v10148_v6  ;;  %v4597_v22 = vsub.f32 %v10094_v60, %v10148_v6 }
 0x6b4   : > { %v4615_v35 = vmul.f32 1.442695, %v4551_v50  ;;  %v4619_v32 = vmul.f32 1.442695, %v4553_v34  ;;  %v4623_v47 = vmul.f32 1.442695, %v4555_v14 }
 0x6b5   : > { %v4627_v17 = vmul.f32 1.442695, %v4557_v24  ;;  %v4631_v28 = vmul.f32 1.442695, %v4559_v2  ;;  %v4635_v23 = vmul.f32 1.442695, %v4561_v9 }
 0x6b6   : > { %7044 = vpow2.f32 %v4615_v35  ;;  %v4639_v21 = vmul.f32 1.442695, %v4563_v41  ;;  %v4643_v55 = vmul.f32 1.442695, %v4565_v26  ;;  %v4647_v60 = vmul.f32 1.442695, %v4567_v30 }
 0x6b7   : > { %7046 = vpow2.f32 %v4619_v32  ;;  %v4651_v15 = vmul.f32 1.442695, %v4569_v43  ;;  %v4655_v50 = vmul.f32 1.442695, %v4571_v11  ;;  %v4659_v34 = vmul.f32 1.442695, %v4573_v49 }
 0x6b8   : > { %7048 = vpow2.f32 %v4623_v47  ;;  %v4663_v14 = vmul.f32 1.442695, %v4575_v39  ;;  %v4667_v59 = vmul.f32 1.442695, %v4577_v18  ;;  %v4671_v24 = vmul.f32 1.442695, %v4579_v31 }
 0x6b9   : > { %7050 = vpow2.f32 %v4627_v17  ;;  %v4675_v46 = vmul.f32 1.442695, %v4581_v42  ;;  %v4679_v33 = vmul.f32 1.442695, %v4583_v58  ;;  %v4683_v35 = vmul.f32 1.442695, %v4585_v54 }
 0x6ba   : > { %7052 = vpow2.f32 %v4631_v28  ;;  %v4687_v2 = vmul.f32 1.442695, %v4587_v13  ;;  %v4691_v9 = vmul.f32 1.442695, %v4589_v61  ;;  %v4695_v32 = vmul.f32 1.442695, %v4591_v51 }
 0x6bb   : > { %7054 = vpow2.f32 %v4635_v23  ;;  %v10220_v41 = vmul.f32 1.442695, %v4593_v7  ;;  %v10222_v26 = vmul.f32 1.442695, %v4595_v36  ;;  %v10224_v30 = vmul.f32 1.442695, %v4597_v22 }
 0x6bc   : > { %7056 = vpow2.f32 %v4639_v21  ;;  %v12743_v51 = vld [vmem:[#allocation7_spill] sm:$0xff]  ;;  %v12746_v23 = vld [vmem:[#allocation29_spill] sm:$0xff]  ;;  %v12752_v42 = vld [vmem:[#allocation26_spill] sm:$0xff] }
 0x6bd   : > { %7058 = vpow2.f32 %v4643_v55  ;;  %v12745_v47 = vld [vmem:[#allocation27_spill] sm:$0xff]  ;;  %v12750_v13 = vld [vmem:[#allocation37_spill] sm:$0xff]  ;;  %v12753_v31 = vld [vmem:[#allocation28_spill] sm:$0xff] }
 0x6be   : > { %7060 = vpow2.f32 %v4647_v60  ;;  %v12744_v60 = vld [vmem:[#allocation25_spill] sm:$0xff]  ;;  %v12747_v55 = vld [vmem:[#allocation31_spill] sm:$0xff]  ;;  %v12754_v17 = vld [vmem:[#allocation30_spill] sm:$0xff] }
 0x6bf   : > { %7062 = vpow2.f32 %v4651_v15  ;;  %v12749_v61 = vld [vmem:[#allocation35_spill] sm:$0xff]  ;;  %v12757_v43 = vld [vmem:[#allocation8_spill] sm:$0xff] }
 0x6c0   : > { %v10234_v18 = vpop.eup %7044  ;;  %7064 = vpow2.f32 %v4655_v50  ;;  %v12751_v21 = vld [vmem:[#allocation39_spill] sm:$0xff]  ;;  %v12756_v50 = vld [vmem:[#allocation32_spill] sm:$0xff] }
 0x6c1   : > { %v10242_v54 = vpop.eup %7046  ;;  %7066 = vpow2.f32 %v4659_v34  ;;  %v12748_v34 = vld [vmem:[#allocation33_spill] sm:$0xff]  ;;  %v12755_v49 = vld [vmem:[#allocation23_spill] sm:$0xff] }
 0x6c2   : > { %v10250_v36 = vpop.eup %7048  ;;  %7068 = vpow2.f32 %v4663_v14  ;;  %v4743_v22 = vadd.f32 %v10242_v54, %v10234_v18  ;;  %v12761_v14 = vld [vmem:[#allocation36_spill] sm:$0xff] }
 0x6c3   : > { %v10258_v28 = vpop.eup %7050  ;;  %7070 = vpow2.f32 %v4667_v59  ;;  %v12759_v59 = vld [vmem:[#allocation19_spill] sm:$0xff] }
 0x6c4   : > { %v10266_v7 = vpop.eup %7052  ;;  %7072 = vpow2.f32 %v4671_v24  ;;  %v4744_v15 = vadd.f32 %v10250_v36, %v4743_v22 }
 0x6c5   : > { %v10273_v58 = vpop.eup %7054  ;;  %7074 = vpow2.f32 %v4675_v46 }
 0x6c6   : > { %v10281_v39 = vpop.eup %7056  ;;  %7076 = vpow2.f32 %v4679_v33  ;;  %v4745_v22 = vadd.f32 %v10258_v28, %v4744_v15 }
 0x6c7   : > { %v10288_v11 = vpop.eup %7058  ;;  %7078 = vpow2.f32 %v4683_v35 }
 0x6c8   : > { %v10296_v63 = vpop.eup %7060  ;;  %7080 = vpow2.f32 %v4687_v2  ;;  %v4746_v15 = vadd.f32 %v10266_v7, %v4745_v22  ;;  %v12763_v22 = vsub.f32 %v10100_v38, %v10148_v6 }
 0x6c9   : > { %v10303_v44 = vpop.eup %7062  ;;  %7082 = vpow2.f32 %v4691_v9  ;;  %v12764_v9 = vsub.f32 %v10106_v16, %v10148_v6 }
 0x6ca   : > { %v10311_v1 = vpop.eup %7064  ;;  %7084 = vpow2.f32 %v4695_v32  ;;  %v4711_v46 = vmul.f32 1.442695, %v12763_v22  ;;  %v4747_v35 = vadd.f32 %v10273_v58, %v4746_v15  ;;  %v12765_v32 = vsub.f32 %v10112_v48, %v10148_v6 }
 0x6cb   : > { %v10317_v8 = vpop.eup %7066  ;;  %7086 = vpow2.f32 %v10220_v41  ;;  %v4715_v33 = vmul.f32 1.442695, %v12764_v9  ;;  %v12766_v41 = vsub.f32 %v10118_v20, %v10148_v6  ;;  %v12770_v20 = vsub.f32 %v10136_v5, %v10148_v6 }
 0x6cc   : > { %v10323_v24 = vpop.eup %7068  ;;  %7088 = vpow2.f32 %v10222_v26  ;;  %v4719_v2 = vmul.f32 1.442695, %v12765_v32  ;;  %v4748_v38 = vadd.f32 %v10281_v39, %v4747_v35  ;;  %v12767_v26 = vsub.f32 %v10124_v56, %v10148_v6 }
 0x6cd   : > { %v10330_v22 = vpop.eup %7070  ;;  %7090 = vpow2.f32 %v10224_v30  ;;  %v4723_v15 = vmul.f32 1.442695, %v12766_v41  ;;  %v12768_v35 = vsub.f32 %v10130_v62, %v10148_v6 }
 0x6ce   : > { %v10336_v16 = vpop.eup %7072  ;;  %7092 = vpow2.f32 %v4711_v46  ;;  %v4727_v9 = vmul.f32 1.442695, %v12767_v26  ;;  %v4749_v48 = vadd.f32 %v10288_v11, %v4748_v38  ;;  %v4735_v46 = vmul.f32 1.442695, %v12770_v20 }
 0x6cf   : > { %v10342_v32 = vpop.eup %7074  ;;  %7094 = vpow2.f32 %v4715_v33  ;;  %v4731_v30 = vmul.f32 1.442695, %v12768_v35  ;;  %v12771_v38 = vsub.f32 %v10142_v19, %v10148_v6  ;;  %v12774_v6 = vsub.f32 %v9968_v53, %v10150_v0 }
 0x6d0   : > { %v10347_v4 = vpop.eup %7076  ;;  %7096 = vpow2.f32 %v4719_v2  ;;  %v4750_v41 = vadd.f32 %v10296_v63, %v4749_v48  ;;  %v12772_v2 = vsub.f32 %v9958_v3, %v10150_v0  ;;  %v12773_v48 = vsub.f32 %v9962_v40, %v10150_v0 }
 0x6d1   : > { %12769 = vst [vmem:[#allocation7_spill] sm:$0xff] %v10347_v4  ;;  %v10353_v56 = vpop.eup %7078  ;;  %7098 = vpow2.f32 %v4723_v15  ;;  %v4739_v33 = vmul.f32 1.442695, %v12771_v38  ;;  %v4625_v19 = vmul.f32 1.442695, %v12774_v6  ;;  %v12775_v3 = vsub.f32 %v9976_v12, %v10150_v0 }
 0x6d2   : > { %v10358_v26 = vpop.eup %7080  ;;  %7100 = vpow2.f32 %v4727_v9  ;;  %v4751_v62 = vadd.f32 %v10303_v44, %v4750_v41  ;;  %v4617_v35 = vmul.f32 1.442695, %v12772_v2  ;;  %v4621_v15 = vmul.f32 1.442695, %v12773_v48 }
 0x6d3   : > { %v10364_v5 = vpop.eup %7082  ;;  %7102 = vpow2.f32 %v4731_v30  ;;  %v4629_v41 = vmul.f32 1.442695, %v12775_v3  ;;  %v12776_v30 = vsub.f32 %v9983_v29, %v10150_v0  ;;  %v12777_v40 = vsub.f32 %v9989_v52, %v10150_v0 }
 0x6d4   : > { %v10372_v20 = vpop.eup %7084  ;;  %7104 = vpow2.f32 %v4735_v46  ;;  %v4752_v9 = vadd.f32 %v10311_v1, %v4751_v62  ;;  %v12778_v46 = vsub.f32 %v9995_v27, %v10150_v0  ;;  %v12779_v62 = vsub.f32 %v10001_v37, %v10150_v0 }
 0x6d5   : > { %v4633_v38 = vmul.f32 1.442695, %v12776_v30  ;;  %v10381_v2 = vpop.eup %7086  ;;  %7106 = vpow2.f32 %v4739_v33  ;;  %v4637_v53 = vmul.f32 1.442695, %v12777_v40  ;;  %v12780_v33 = vsub.f32 %v10007_v57, %v10150_v0 }
 0x6d6   : > { %v4641_v48 = vmul.f32 1.442695, %v12778_v46  ;;  %v4645_v12 = vmul.f32 1.442695, %v12779_v62  ;;  %v10392_v6 = vpop.eup %7088  ;;  %v4753_v29 = vadd.f32 %v10317_v8, %v4752_v9  ;;  %7108 = vpow2.f32 %v4617_v35 }
 0x6d7   : > { %v4649_v3 = vmul.f32 1.442695, %v12780_v33  ;;  %v12781_v52 = vsub.f32 %v10013_v45, %v10150_v0  ;;  %v10401_v40 = vpop.eup %7090  ;;  %7110 = vpow2.f32 %v4621_v15 }
 0x6d8   : > { %v10409_v9 = vpop.eup %7092  ;;  %v4754_v57 = vadd.f32 %v10323_v24, %v4753_v29  ;;  %7112 = vpow2.f32 %v4625_v19 }
 0x6d9   : > { %v4653_v30 = vmul.f32 1.442695, %v12781_v52  ;;  %v10416_v46 = vpop.eup %7094  ;;  %7114 = vpow2.f32 %v4629_v41  ;;  %v12782_v41 = vsub.f32 %v10019_v10, %v10150_v0  ;;  %v12783_v52 = vsub.f32 %v12743_v51, %v10150_v0 }
 0x6da   : > { %v10424_v29 = vpop.eup %7096  ;;  %v4755_v19 = vadd.f32 %v10330_v22, %v4754_v57  ;;  %7116 = vpow2.f32 %v4633_v38 }
 0x6db   : > { %v10431_v45 = vpop.eup %7098  ;;  %7118 = vpow2.f32 %v4637_v53  ;;  %v4657_v15 = vmul.f32 1.442695, %v12782_v41  ;;  %v4661_v33 = vmul.f32 1.442695, %v12783_v52 }
 0x6dc   : > { %v10439_v57 = vpop.eup %7100  ;;  %v4756_v38 = vadd.f32 %v10336_v16, %v4755_v19  ;;  %7120 = vpow2.f32 %v4641_v48  ;;  %v12784_v48 = vsub.f32 %v12744_v60, %v10150_v0  ;;  %v12789_v60 = vsub.f32 %v12749_v61, %v10150_v0 }
 0x6dd   : > { %v10447_v35 = vpop.eup %7102  ;;  %7122 = vpow2.f32 %v4645_v12  ;;  %v12785_v12 = vsub.f32 %v12745_v47, %v10150_v0  ;;  %v12788_v47 = vsub.f32 %v12748_v34, %v10150_v0  ;;  %v12792_v61 = vsub.f32 %v12752_v42, %v10150_v0 }
 0x6de   : > { %v10452_v62 = vpop.eup %7104  ;;  %v4757_v37 = vadd.f32 %v10342_v32, %v4756_v38  ;;  %7124 = vpow2.f32 %v4649_v3  ;;  %v4665_v10 = vmul.f32 1.442695, %v12784_v48  ;;  %v12786_v3 = vsub.f32 %v12746_v23, %v10150_v0 }
 0x6df   : > { %v10460_v41 = vpop.eup %7106  ;;  %7126 = vpow2.f32 %v4653_v30  ;;  %v4669_v51 = vmul.f32 1.442695, %v12785_v12  ;;  %v12787_v30 = vsub.f32 %v12747_v55, %v10150_v0  ;;  %v4681_v12 = vmul.f32 1.442695, %v12788_v47 }
 0x6e0   : > { %v7109_v52 = vpop.eup %7108  ;;  %v4758_v53 = vadd.f32 %v10347_v4, %v4757_v37  ;;  %7128 = vpow2.f32 %v4657_v15  ;;  %v4673_v38 = vmul.f32 1.442695, %v12786_v3  ;;  %v12790_v55 = vsub.f32 %v12750_v13, %v10150_v0 }
 0x6e1   : > { %v7111_v48 = vpop.eup %7110  ;;  %7130 = vpow2.f32 %v4661_v33  ;;  %v4677_v19 = vmul.f32 1.442695, %v12787_v30  ;;  %v4685_v33 = vmul.f32 1.442695, %v12789_v60  ;;  %v4697_v60 = vmul.f32 1.442695, %v12792_v61 }
 0x6e2   : > { %v7113_v27 = vpop.eup %7112  ;;  %v4759_v37 = vadd.f32 %v10353_v56, %v4758_v53  ;;  %7132 = vpow2.f32 %v4665_v10  ;;  %v4780_v15 = vadd.f32 %v7111_v48, %v7109_v52  ;;  %v4818_v23 = vpack.c.bf16 %v7111_v48, %v7109_v52 }
 0x6e3   : > { %v7115_v3 = vpop.eup %7114  ;;  %7134 = vpow2.f32 %v4669_v51  ;;  %v4689_v30 = vmul.f32 1.442695, %v12790_v55  ;;  %v12791_v51 = vsub.f32 %v12751_v21, %v10150_v0  ;;  %v12793_v13 = vpack.c.bf16 %v10242_v54, %v10234_v18 }
 0x6e4   : > { %v7117_v4 = vpop.eup %7116  ;;  %v4760_v34 = vadd.f32 %v10358_v26, %v4759_v37  ;;  %7136 = vpow2.f32 %v4673_v38  ;;  %v4781_v47 = vadd.f32 %v7113_v27, %v4780_v15  ;;  %4849 = vmatprep.subr.bf16.mxu1 %v4818_v23  ;;  %v4820_v53 = vpack.c.bf16 %v7115_v3, %v7113_v27 }
 0x6e5   : > { %v7119_v10 = vpop.eup %7118  ;;  %7138 = vpow2.f32 %v4677_v19  ;;  %v4693_v52 = vmul.f32 1.442695, %v12791_v51  ;;  %4850 = vmatpush1.bf16.msra.mxu1 %v12793_v13  ;;  %v12794_v21 = vsub.f32 %v12753_v31, %v10150_v0  ;;  %v12795_v42 = vsub.f32 %v12754_v17, %v10150_v0  ;;  %v12800_v13 = vld [vmem:[#allocation20_spill] sm:$0xff] }
 0x6e6   : > { %v7121_v48 = vpop.eup %7120  ;;  %v4761_v38 = vadd.f32 %v10364_v5, %v4760_v34  ;;  %7140 = vpow2.f32 %v4681_v12  ;;  %v4782_v37 = vadd.f32 %v7115_v3, %v4781_v47  ;;  %4851 = vmatprep.subr.bf16.mxu1 %v4820_v53  ;;  %v4822_v27 = vpack.c.bf16 %v7119_v10, %v7117_v4 }
 0x6e7   : > { %v7123_v19 = vpop.eup %7122  ;;  %7142 = vpow2.f32 %v4685_v33  ;;  %v4701_v15 = vmul.f32 1.442695, %v12794_v21  ;;  %v4705_v23 = vmul.f32 1.442695, %v12795_v42  ;;  %v12796_v3 = vsub.f32 %v12755_v49, %v10150_v0 }
 0x6e8   : > { %v7125_v55 = vpop.eup %7124  ;;  %v4762_v18 = vadd.f32 %v10372_v20, %v4761_v38  ;;  %7144 = vpow2.f32 %v4689_v30  ;;  %v4783_v54 = vadd.f32 %v7117_v4, %v4782_v37  ;;  %v4824_v34 = vpack.c.bf16 %v7123_v19, %v7121_v48 }
 0x6e9   : > { %v7127_v12 = vpop.eup %7126  ;;  %7146 = vpow2.f32 %v4693_v52  ;;  %v4709_v33 = vmul.f32 1.442695, %v12796_v3  ;;  %v12797_v31 = vsub.f32 %v12756_v50, %v10150_v0  ;;  %v12798_v17 = vpack.c.bf16 %v10258_v28, %v10250_v36 }
 0x6ea   : > { %v7129_v53 = vpop.eup %7128  ;;  %v4763_v51 = vadd.f32 %v10381_v2, %v4762_v18  ;;  %7148 = vpow2.f32 %v4697_v60  ;;  %v4784_v4 = vadd.f32 %v7119_v10, %v4783_v54  ;;  %v4826_v30 = vpack.c.bf16 %v7127_v12, %v7125_v55 }
 0x6eb   : > { %v4713_v47 = vmul.f32 1.442695, %v12797_v31  ;;  %4852 = vmatpush1.bf16.msra.mxu1 %v12798_v17  ;;  %v7131_v52 = vpop.eup %7130  ;;  %7150 = vpow2.f32 %v4701_v15  ;;  %v12799_v49 = vsub.f32 %v12757_v43, %v10150_v0  ;;  %v12801_v50 = vsub.f32 %v12800_v13, %v10150_v0  ;;  %v12803_v15 = vld [vmem:[#allocation34_spill] sm:$0xff] }
 0x6ec   : > { %4853 = vmatprep.subr.bf16.mxu1 %v4822_v27  ;;  %v7133_v37 = vpop.eup %7132  ;;  %v4764_v36 = vadd.f32 %v10392_v6, %v4763_v51  ;;  %7152 = vpow2.f32 %v4705_v23  ;;  %v4785_v28 = vadd.f32 %v7121_v48, %v4784_v4  ;;  %v4828_v21 = vpack.c.bf16 %v7131_v52, %v7129_v53 }
 0x6ed   : > { %v4717_v61 = vmul.f32 1.442695, %v12799_v49  ;;  %v4721_v38 = vmul.f32 1.442695, %v12801_v50  ;;  %v7135_v60 = vpop.eup %7134  ;;  %7154 = vpow2.f32 %v4709_v33  ;;  %v12802_v10 = vsub.f32 %v12759_v59, %v10150_v0 }
 0x6ee   : > { %v12804_v43 = vsub.f32 %v12803_v15, %v10150_v0  ;;  %v12805_v18 = vpack.c.bf16 %v10273_v58, %v10266_v7  ;;  %v7137_v54 = vpop.eup %7136  ;;  %v4765_v3 = vadd.f32 %v10401_v40, %v4764_v36  ;;  %7156 = vpow2.f32 %v4713_v47 }
 0x6ef   : > { %v4725_v27 = vmul.f32 1.442695, %v12802_v10  ;;  %v4786_v48 = vadd.f32 %v7123_v19, %v4785_v28  ;;  %v4830_v23 = vpack.c.bf16 %v7135_v60, %v7133_v37  ;;  %v7139_v33 = vpop.eup %7138  ;;  %7158 = vpow2.f32 %v4717_v61  ;;  %v12808_v19 = vld [vmem:[#allocation40_spill] sm:$0xff] }
 0x6f0   : > { %v4729_v42 = vmul.f32 1.442695, %v12804_v43  ;;  %4854 = vmatpush1.bf16.msra.mxu1 %v12805_v18  ;;  %v12806_v59 = vsub.f32 %v12761_v14, %v10150_v0  ;;  %v12807_v17 = vsub.f32 %v12762_v25, %v10150_v0  ;;  %v7141_v4 = vpop.eup %7140  ;;  %v4766_v58 = vadd.f32 %v10409_v9, %v4765_v3 }
 0x6f1   : > { %4855 = vmatprep.subr.bf16.mxu1 %v4824_v34  ;;  %7160 = vpow2.f32 %v4721_v38  ;;  %v4787_v7 = vadd.f32 %v7125_v55, %v4786_v48  ;;  %v4832_v49 = vpack.c.bf16 %v7139_v33, %v7137_v54  ;;  %v7143_v47 = vpop.eup %7142  ;;  %v12809_v34 = vsub.f32 %v12808_v19, %v10150_v0 }
 0x6f2   : > { %v4733_v31 = vmul.f32 1.442695, %v12806_v59  ;;  %v4737_v51 = vmul.f32 1.442695, %v12807_v17  ;;  %7162 = vpow2.f32 %v4725_v27  ;;  %v12810_v14 = vpack.c.bf16 %v10288_v11, %v10281_v39  ;;  %v7145_v13 = vpop.eup %7144 }
 0x6f3   : > { %v4741_v61 = vmul.f32 1.442695, %v12809_v34  ;;  %v4767_v25 = vadd.f32 %v10416_v46, %v4766_v58  ;;  %7164 = vpow2.f32 %v4729_v42  ;;  %v4788_v50 = vadd.f32 %v7127_v12, %v4787_v7  ;;  %v7147_v38 = vpop.eup %7146 }
 0x6f4   : > { %4856 = vmatpush1.bf16.msra.mxu1 %v12810_v14  ;;  %v4834_v36 = vpack.c.bf16 %v7143_v47, %v7141_v4  ;;  %7166 = vpow2.f32 %v4733_v31  ;;  %v7149_v55 = vpop.eup %7148  ;;  %v4836_v0 = vpack.c.bf16 %v7147_v38, %v7145_v13  ;;  %v12811_v11 = vpack.c.bf16 %v10303_v44, %v10296_v63 }
 0x6f5   : > { %4857 = vmatprep.subr.bf16.mxu1 %v4826_v30  ;;  %v4768_v28 = vadd.f32 %v10424_v29, %v4767_v25  ;;  %7168 = vpow2.f32 %v4737_v51  ;;  %v4789_v10 = vadd.f32 %v7129_v53, %v4788_v50  ;;  %v7151_v27 = vpop.eup %7150  ;;  %v12812_v59 = vpack.c.bf16 %v10317_v8, %v10311_v1 }
 0x6f6   : > { %7170 = vpow2.f32 %v4741_v61  ;;  %v7153_v39 = vpop.eup %7152  ;;  %v4838_v30 = vpack.c.bf16 %v7151_v27, %v7149_v55  ;;  %v12814_v25 = vpack.c.bf16 %v10342_v32, %v10336_v16  ;;  %v12818_v16 = vpack.c.bf16 %v10381_v2, %v10372_v20 }
 0x6f7   : > { %v4769_v15 = vadd.f32 %v10431_v45, %v4768_v28  ;;  %v4790_v12 = vadd.f32 %v7131_v52, %v4789_v10  ;;  %v7155_v43 = vpop.eup %7154  ;;  %v12821_v20 = vpack.c.bf16 %v10431_v45, %v10424_v29  ;;  %v12828_v45 = vld [vmem:[#allocation41_spill] sm:$0xff] }
 0x6f8   : > { %4858 = vmatpush1.bf16.msra.mxu1 %v12811_v11  ;;  %v7157_v42 = vpop.eup %7156  ;;  %v4840_v48 = vpack.c.bf16 %v7155_v43, %v7153_v39  ;;  %v12827_v11 = vld [vmem:[#allocation42_spill] sm:$0xff] }
 0x6f9   : > { %4859 = vmatprep.subr.bf16.mxu1 %v4828_v21  ;;  %v4770_v18 = vadd.f32 %v10439_v57, %v4769_v15  ;;  %v4791_v3 = vadd.f32 %v7133_v37, %v4790_v12  ;;  %v7159_v53 = vpop.eup %7158  ;;  %v12813_v37 = vpack.c.bf16 %v10330_v22, %v10323_v24  ;;  %v12815_v24 = vld [vmem:[#allocation7_spill] sm:$0xff]  ;;  %v12829_v29 = vpack.c.bf16 %v12827_v11, %v12828_v45 }
 0x6fa   : > { %v4842_v17 = vpack.c.bf16 %v7159_v53, %v7157_v42  ;;  %v12816_v22 = vpack.c.bf16 %v10353_v56, %v12815_v24  ;;  %v12819_v56 = vpack.c.bf16 %v10401_v40, %v10392_v6  ;;  %v12822_v6 = vpack.c.bf16 %v10447_v35, %v10439_v57  ;;  %v12831_v15 = vld [vmem:[#allocation43_spill] sm:$0xff]  ;;  %v12834_v57 = vld [vmem:[#allocation72_spill] sm:$0xff] }
 0x6fb   : > { %v7161_v31 = vpop.eup %7160  ;;  %v4771_v44 = vadd.f32 %v10447_v35, %v4770_v18  ;;  %v4792_v63 = vadd.f32 %v7135_v60, %v4791_v3  ;;  %v12833_v35 = vmov 0   ;;  %v12840_v18 = vld [vmem:[#allocation53_spill] sm:$0xff]  ;;  %v12841_v3 = vld [vmem:[#allocation58_spill] sm:$0xff] }
 0x6fc   : > { %4860 = vmatpush1.bf16.msra.mxu1 %v12812_v59  ;;  %v7163_v52 = vpop.eup %7162  ;;  %v12844_v59 = vld [vmem:[#allocation77_spill] sm:$0xff] }
 0x6fd   : > { %4861 = vmatprep.subr.bf16.mxu1 %v4830_v23  ;;  %v7165_v21 = vpop.eup %7164  ;;  %v4772_v51 = vadd.f32 %v10452_v62, %v4771_v44  ;;  %v4793_v58 = vadd.f32 %v7137_v54, %v4792_v63  ;;  %v4844_v7 = vpack.c.bf16 %v7163_v52, %v7161_v31  ;;  %v12846_v44 = vld [vmem:[#allocation48_spill] sm:$0xff]  ;;  %v12847_v63 = vld [vmem:[#allocation51_spill] sm:$0xff] }
 0x6fe   : > { %v7167_v19 = vpop.eup %7166 }
 0x6ff   : > { %v7169_v34 = vpop.eup %7168  ;;  %v10558_v8 = vadd.f32 %v10460_v41, %v4772_v51  ;;  %v4794_v1 = vadd.f32 %v7139_v33, %v4793_v58  ;;  %v4846_v60 = vpack.c.bf16 %v7167_v19, %v7165_v21  ;;  %v12817_v33 = vpack.c.bf16 %v10364_v5, %v10358_v26  ;;  %v12851_v51 = vld [vmem:[#allocation24_spill] sm:$0xff] }
 0x700   : > { %4862 = vmatpush1.bf16.msra.mxu1 %v12813_v37  ;;  %v7171_v23 = vpop.eup %7170  ;;  %v12820_v26 = vpack.c.bf16 %v10416_v46, %v10409_v9  ;;  %v12823_v9 = vpack.c.bf16 %v10460_v41, %v10452_v62  ;;  %v12824_v46 = vld [vmem:[#allocation46_spill] sm:$0xff]  ;;  %v12836_v41 = vld [vmem:[#allocation76_spill] sm:$0xff] }
 0x701   : > { %4863 = vmatprep.subr.bf16.mxu1 %v4832_v49  ;;  %v4795_v61 = vadd.f32 %v7141_v4, %v4794_v1  ;;  %v4848_v14 = vpack.c.bf16 %v7171_v23, %v7169_v34  ;;  %v12835_v62 = vld [vmem:[#allocation74_spill] sm:$0xff] }
 0x703   : > { %v4796_v54 = vadd.f32 %v7143_v47, %v4795_v61 }
 0x704   : > { %4864 = vmatpush1.bf16.msra.mxu1 %v12814_v25 }
 0x705   : > { %4865 = vmatprep.subr.bf16.mxu1 %v4834_v36  ;;  %v4797_v50 = vadd.f32 %v7145_v13, %v4796_v54 }
 0x707   : > { %v4798_v28 = vadd.f32 %v7147_v38, %v4797_v50 }
 0x708   : > { %4866 = vmatpush1.bf16.msra.mxu1 %v12816_v22 }
 0x709   : > { %4867 = vmatprep.subr.bf16.mxu1 %v4836_v0  ;;  %v4799_v10 = vadd.f32 %v7149_v55, %v4798_v28  ;;  %v12825_v0 = vld [vmem:[#allocation44_spill] sm:$0xff] }
 0x70b   : > { %v4800_v4 = vadd.f32 %v7151_v27, %v4799_v10  ;;  %v12826_v27 = vpack.c.bf16 %v12824_v46, %v12825_v0 }
 0x70c   : > { %4868 = vmatpush1.bf16.msra.mxu1 %v12817_v33 }
 0x70d   : > { %4869 = vmatprep.subr.bf16.mxu1 %v4838_v30  ;;  %v4801_v49 = vadd.f32 %v7153_v39, %v4800_v4  ;;  %v12830_v39 = vld [vmem:[#allocation45_spill] sm:$0xff]  ;;  %v12837_v30 = vld [vmem:[#allocation78_spill] sm:$0xff] }
 0x70e   : > { %v12832_v12 = vpack.c.bf16 %v12830_v39, %v12831_v15 }
 0x70f   : > { %v4802_v32 = vadd.f32 %v7155_v43, %v4801_v49  ;;  %v12838_v43 = vld [vmem:[#allocation47_spill] sm:$0xff] }
 0x710   : > { %4870 = vmatpush1.bf16.msra.mxu1 %v12818_v16 }
 0x711   : > { %4871 = vmatprep.subr.bf16.mxu1 %v4840_v48  ;;  %v4803_v47 = vadd.f32 %v7157_v42, %v4802_v32  ;;  %v12839_v42 = vld [vmem:[#allocation49_spill] sm:$0xff] }
 0x712   : > { %v12842_v48 = vld [vmem:[#allocation73_spill] sm:$0xff] }
 0x713   : > { %v4804_v13 = vadd.f32 %v7159_v53, %v4803_v47  ;;  %v12843_v53 = vld [vmem:[#allocation75_spill] sm:$0xff] }
 0x714   : > { %4872 = vmatpush1.bf16.msra.mxu1 %v12819_v56 }
 0x715   : > { %4873 = vmatprep.subr.bf16.mxu1 %v4842_v17  ;;  %v4805_v36 = vadd.f32 %v7161_v31, %v4804_v13  ;;  %v12845_v31 = vld [vmem:[#allocation79_spill] sm:$0xff]  ;;  %v12848_v17 = vld [vmem:[#allocation57_spill] sm:$0xff] }
 0x717   : > { %v4806_v5 = vadd.f32 %v7163_v52, %v4805_v36  ;;  %v12849_v52 = vld [vmem:[#allocation59_spill] sm:$0xff] }
 0x718   : > { %4874 = vmatpush1.bf16.msra.mxu1 %v12820_v26 }
 0x719   : > { %4875 = vmatprep.subr.bf16.mxu1 %v4844_v7  ;;  %v4807_v38 = vadd.f32 %v7165_v21, %v4806_v5  ;;  %v12850_v21 = vld [vmem:[#allocation54_spill] sm:$0xff]  ;;  %v4774_v7 = vrot.slane %v10558_v8, 4 }
 0x71a   : > { %v12852_v58 = vpack.c.bf16 %v12850_v21, %v12851_v51 }
 0x71b   : > { %v4808_v2 = vadd.f32 %v7167_v19, %v4807_v38  ;;  %v4775_v37 = vadd.f32 %v4774_v7, %v10558_v8 }
 0x71c   : > { %4876 = vmatpush1.bf16.msra.mxu1 %v12821_v20 }
 0x71d   : > { %4877 = vmatprep.subr.bf16.mxu1 %v4846_v60  ;;  %v4809_v55 = vadd.f32 %v7169_v34, %v4808_v2  ;;  %v4776_v1 = vrot.slane %v4775_v37, 2 }
 0x71f   : > { %v4810_v40 = vadd.f32 %v7171_v23, %v4809_v55  ;;  %v4777_v23 = vadd.f32 %v4776_v1, %v4775_v37 }
 0x720   : > { %4878 = vmatpush1.bf16.msra.mxu1 %v12822_v6 }
 0x721   : > { %4879 = vmatprep.subr.bf16.mxu1 %v4848_v14  ;;  %v4811_v19 = vrot.slane %v4810_v40, 4  ;;  %v4778_v14 = vrot.slane %v4777_v23, 1 }
 0x723   : > { %v4812_v34 = vadd.f32 %v4811_v19, %v4810_v40  ;;  %v4779_v54 = vadd.f32 %v4778_v14, %v4777_v23 }
 0x724   : > { %4880 = vmatpush1.bf16.msra.mxu1 %v12823_v9 }
 0x725   : > { %4999 = vmatprep.subr.bf16.mxu1 %v12826_v27  ;;  %v4813_v60 = vrot.slane %v4812_v34, 2  ;;  %7172 = vrcp.f32 %v4779_v54 }
 0x727   : > { %4882 = vmatmul.mubr.bf16.vlgmr.msra.gmra.mrb[80].mxu1 %v12829_v29  ;;  %v4814_v61 = vadd.f32 %v4813_v60, %v4812_v34 }
 0x728   : > { %5000 = vmatpush1.bf16.msra.mxu1 %v12832_v12  ;;  %5031 = vmatprep.mubr.bf16.mxu1 %v12833_v35 }
 0x729   : > { %v4815_v25 = vrot.slane %v4814_v61, 1 }
 0x72b   : > { %v4816_v50 = vadd.f32 %v4815_v25, %v4814_v61 }
 0x72d   : > { %7174 = vrcp.f32 %v4816_v50 }
 0x72f   : > { %6704 = vmatmul.mubr.msk.bf16.vlgmr.msra.gmra.mrb[84].mxu1 %vm3520_vm2, %v12834_v57  ;;  %v7173_v24 = vpop.eup %7172 }
 0x730   : > { %5041 = vmatprep.mubr.bf16.mxu1 %v12833_v35 }
 0x737   : > { %6705 = vmatmul.mubr.msk.bf16.gmra.mrb[88].mxu1 %vm3520_vm2, %v12835_v62  ;;  %v7175_v28 = vpop.eup %7174 }
 0x738   : > { %5051 = vmatprep.mubr.bf16.mxu1 %v12833_v35 }
 0x73f   : > { %6706 = vmatmul.mubr.msk.bf16.gmra.mrb[92].mxu1 %vm3520_vm2, %v12836_v41 }
 0x740   : > { %5061 = vmatprep.mubr.bf16.mxu1 %v12833_v35 }
 0x747   : > { %6707 = vmatmul.mubr.msk.bf16.gmra.mrb[96].mxu1 %vm3520_vm2, %v12837_v30 }
 0x748   : > { %5071 = vmatprep.mubr.bf16.mxu1 %v12833_v35 }
 0x74f   : > { %6708 = vmatmul.mubr.msk.bf16.gmra.mrb[100].mxu1 %vm3520_vm2, %v12838_v43 }
 0x750   : > { %5081 = vmatprep.mubr.bf16.mxu1 %v12833_v35 }
 0x757   : > { %6709 = vmatmul.mubr.msk.bf16.gmra.mrb[104].mxu1 %vm3520_vm2, %v12839_v42 }
 0x758   : > { %5091 = vmatprep.mubr.bf16.mxu1 %v12833_v35 }
 0x75f   : > { %6710 = vmatmul.mubr.msk.bf16.gmra.mrb[108].mxu1 %vm3520_vm2, %v12840_v18 }
 0x760   : > { %5101 = vmatprep.mubr.bf16.mxu1 %v12833_v35 }
 0x767   : > { %6711 = vmatmul.mubr.msk.bf16.gmra.mrb[112].mxu1 %vm3520_vm2, %v12841_v3 }
 0x768   : > { %5111 = vmatprep.mubr.bf16.mxu1 %v12833_v35 }
 0x76f   : > { %6712 = vmatmul.mubr.msk.bf16.gmra.mrb[116].mxu1 %vm3520_vm2, %v12842_v48 }
 0x770   : > { %5121 = vmatprep.mubr.bf16.mxu1 %v12833_v35 }
 0x777   : > { %6713 = vmatmul.mubr.msk.bf16.gmra.mrb[120].mxu1 %vm3520_vm2, %v12843_v53 }
 0x778   : > { %5131 = vmatprep.mubr.bf16.mxu1 %v12833_v35 }
 0x77f   : > { %6714 = vmatmul.mubr.msk.bf16.gmra.mrb[124].mxu1 %vm3520_vm2, %v12844_v59 }
 0x780   : > { %5141 = vmatprep.mubr.bf16.mxu1 %v12833_v35 }
 0x787   : > { %6715 = vmatmul.mubr.msk.bf16.gmra.mrb[128].mxu1 %vm3520_vm2, %v12845_v31 }
 0x788   : > { %5151 = vmatprep.mubr.bf16.mxu1 %v12833_v35 }
 0x78f   : > { %6716 = vmatmul.mubr.msk.bf16.gmra.mrb[132].mxu1 %vm3520_vm2, %v12846_v44 }
 0x790   : > { %5161 = vmatprep.mubr.bf16.mxu1 %v12833_v35 }
 0x797   : > { %6717 = vmatmul.mubr.msk.bf16.gmra.mrb[136].mxu1 %vm3520_vm2, %v12847_v63 }
 0x798   : > { %5171 = vmatprep.mubr.bf16.mxu1 %v12833_v35 }
 0x79f   : > { %6718 = vmatmul.mubr.msk.bf16.gmra.mrb[140].mxu1 %vm3520_vm2, %v12848_v17 }
 0x7a0   : > { %5181 = vmatprep.mubr.bf16.mxu1 %v12833_v35 }
 0x7a7   : > { %6719 = vmatmul.mubr.msk.bf16.gmra.mrb[144].mxu1 %vm3520_vm2, %v12849_v52 }
 0x7a8   : > { %6311 = vmatprep.mubr.bf16.mxu1 %v12852_v58 }
 0x7fa   : > { %v4883_v22 = vpop.f32.mrb[80].mxu1 }
 0x7fb   : > { %v10649_v10 = vmul.f32 %v7173_v24, %v4883_v22  ;;  %v4885_v33 = vpop.f32.mrb[81].mxu1 }
 0x7fc   : > { %v10651_v4 = vmul.f32 %v7175_v28, %v4885_v33  ;;  %v4887_v8 = vpop.f32.mrb[82].mxu1 }
 0x7fd   : > { %12853 = vst [vmem:[#allocation25_spill] sm:$0xff] %v10649_v10  ;;  %v10653_v49 = vmul.f32 %v7173_v24, %v4887_v8  ;;  %v4889_v16 = vpop.f32.mrb[83].mxu1 }
 0x7fe   : > { %12854 = vst [vmem:[#allocation27_spill] sm:$0xff] %v10651_v4  ;;  %v10655_v32 = vmul.f32 %v7175_v28, %v4889_v16 }
 0x7ff   : > { %12855 = vst [vmem:[#allocation29_spill] sm:$0xff] %v10653_v49 }
 0x800   : > { %12856 = vst [vmem:[#allocation31_spill] sm:$0xff] %v10655_v32 }
 0x802   : > { %v10661_v13 = vpop.f32.mrb[84].mxu1 }
 0x803   : > { %v10663_v36 = vpop.f32.mrb[85].mxu1 }
 0x804   : > { %v10665_v26 = vpop.f32.mrb[86].mxu1 }
 0x805   : > { %v10667_v5 = vpop.f32.mrb[87].mxu1 }
 0x80a   : > { %v10669_v38 = vpop.f32.mrb[88].mxu1 }
 0x80b   : > { %v5192_v20 = vmax.f32 %v10661_v13, %v10669_v38  ;;  %v10673_v2 = vpop.f32.mrb[89].mxu1 }
 0x80c   : > { %v5229_v55 = vmax.f32 %v10663_v36, %v10673_v2  ;;  %v10677_v6 = vpop.f32.mrb[90].mxu1 }
 0x80d   : > { %v5193_v40 = vmax.f32 %v10665_v26, %v10677_v6  ;;  %v10681_v9 = vpop.f32.mrb[91].mxu1 }
 0x80e   : > { %v5230_v46 = vmax.f32 %v10667_v5, %v10681_v9 }
 0x812   : > { %v10685_v0 = vpop.f32.mrb[92].mxu1 }
 0x813   : > { %v5194_v27 = vmax.f32 %v5192_v20, %v10685_v0  ;;  %v10688_v11 = vpop.f32.mrb[93].mxu1 }
 0x814   : > { %v5231_v45 = vmax.f32 %v5229_v55, %v10688_v11  ;;  %v10691_v29 = vpop.f32.mrb[94].mxu1 }
 0x815   : > { %v5195_v39 = vmax.f32 %v5193_v40, %v10691_v29  ;;  %v10694_v15 = vpop.f32.mrb[95].mxu1 }
 0x816   : > { %v5232_v12 = vmax.f32 %v5230_v46, %v10694_v15 }
 0x81a   : > { %v10697_v57 = vpop.f32.mrb[96].mxu1 }
 0x81b   : > { %v5196_v62 = vmax.f32 %v5194_v27, %v10697_v57  ;;  %v10700_v41 = vpop.f32.mrb[97].mxu1 }
 0x81c   : > { %v5233_v30 = vmax.f32 %v5231_v45, %v10700_v41  ;;  %v10703_v43 = vpop.f32.mrb[98].mxu1 }
 0x81d   : > { %v5197_v42 = vmax.f32 %v5195_v39, %v10703_v43  ;;  %v10706_v18 = vpop.f32.mrb[99].mxu1 }
 0x81e   : > { %v5234_v3 = vmax.f32 %v5232_v12, %v10706_v18 }
 0x822   : > { %v10709_v48 = vpop.f32.mrb[100].mxu1 }
 0x823   : > { %v5198_v53 = vmax.f32 %v5196_v62, %v10709_v48  ;;  %v10712_v59 = vpop.f32.mrb[101].mxu1 }
 0x824   : > { %v5235_v31 = vmax.f32 %v5233_v30, %v10712_v59  ;;  %v10715_v44 = vpop.f32.mrb[102].mxu1 }
 0x825   : > { %v5199_v63 = vmax.f32 %v5197_v42, %v10715_v44  ;;  %v10718_v17 = vpop.f32.mrb[103].mxu1 }
 0x826   : > { %v5236_v52 = vmax.f32 %v5234_v3, %v10718_v17 }
 0x82a   : > { %v10721_v21 = vpop.f32.mrb[104].mxu1 }
 0x82b   : > { %v5200_v51 = vmax.f32 %v5198_v53, %v10721_v21  ;;  %v10724_v58 = vpop.f32.mrb[105].mxu1 }
 0x82c   : > { %v5237_v7 = vmax.f32 %v5235_v31, %v10724_v58  ;;  %v10727_v19 = vpop.f32.mrb[106].mxu1 }
 0x82d   : > { %v5201_v37 = vmax.f32 %v5199_v63, %v10727_v19  ;;  %v10730_v34 = vpop.f32.mrb[107].mxu1 }
 0x82e   : > { %12857 = vst [vmem:[#allocation33_spill] sm:$0xff] %v10730_v34  ;;  %v5238_v1 = vmax.f32 %v5236_v52, %v10730_v34 }
 0x832   : > { %v10733_v60 = vpop.f32.mrb[108].mxu1 }
 0x833   : > { %v5202_v23 = vmax.f32 %v5200_v51, %v10733_v60  ;;  %v10736_v61 = vpop.f32.mrb[109].mxu1 }
 0x834   : > { %12858 = vst [vmem:[#allocation35_spill] sm:$0xff] %v10736_v61  ;;  %v5239_v14 = vmax.f32 %v5237_v7, %v10736_v61  ;;  %v10739_v25 = vpop.f32.mrb[110].mxu1 }
 0x835   : > { %v5203_v54 = vmax.f32 %v5201_v37, %v10739_v25  ;;  %v10742_v50 = vpop.f32.mrb[111].mxu1 }
 0x836   : > { %12859 = vst [vmem:[#allocation37_spill] sm:$0xff] %v10742_v50  ;;  %v5240_v24 = vmax.f32 %v5238_v1, %v10742_v50 }
 0x83a   : > { %v10745_v22 = vpop.f32.mrb[112].mxu1 }
 0x83b   : > { %v5204_v28 = vmax.f32 %v5202_v23, %v10745_v22  ;;  %v10748_v33 = vpop.f32.mrb[113].mxu1 }
 0x83c   : > { %12860 = vst [vmem:[#allocation39_spill] sm:$0xff] %v10748_v33  ;;  %v5241_v8 = vmax.f32 %v5239_v14, %v10748_v33  ;;  %v10751_v16 = vpop.f32.mrb[114].mxu1 }
 0x83d   : > { %v5205_v20 = vmax.f32 %v5203_v54, %v10751_v16  ;;  %v10754_v55 = vpop.f32.mrb[115].mxu1 }
 0x83e   : > { %12861 = vst [vmem:[#allocation26_spill] sm:$0xff] %v10754_v55  ;;  %v5242_v40 = vmax.f32 %v5240_v24, %v10754_v55 }
 0x842   : > { %v10757_v46 = vpop.f32.mrb[116].mxu1 }
 0x843   : > { %v5206_v27 = vmax.f32 %v5204_v28, %v10757_v46  ;;  %v10760_v45 = vpop.f32.mrb[117].mxu1 }
 0x844   : > { %12862 = vst [vmem:[#allocation28_spill] sm:$0xff] %v10760_v45  ;;  %v5243_v39 = vmax.f32 %v5241_v8, %v10760_v45  ;;  %v10763_v12 = vpop.f32.mrb[118].mxu1 }
 0x845   : > { %v5207_v62 = vmax.f32 %v5205_v20, %v10763_v12  ;;  %v10766_v30 = vpop.f32.mrb[119].mxu1 }
 0x846   : > { %12863 = vst [vmem:[#allocation30_spill] sm:$0xff] %v10766_v30  ;;  %v5244_v42 = vmax.f32 %v5242_v40, %v10766_v30 }
 0x84a   : > { %v10769_v3 = vpop.f32.mrb[120].mxu1 }
 0x84b   : > { %v5208_v53 = vmax.f32 %v5206_v27, %v10769_v3  ;;  %v10772_v31 = vpop.f32.mrb[121].mxu1 }
 0x84c   : > { %12864 = vst [vmem:[#allocation23_spill] sm:$0xff] %v10772_v31  ;;  %v5245_v63 = vmax.f32 %v5243_v39, %v10772_v31  ;;  %v10775_v52 = vpop.f32.mrb[122].mxu1 }
 0x84d   : > { %v5209_v51 = vmax.f32 %v5207_v62, %v10775_v52  ;;  %v10778_v7 = vpop.f32.mrb[123].mxu1 }
 0x84e   : > { %12865 = vst [vmem:[#allocation32_spill] sm:$0xff] %v10778_v7  ;;  %v5246_v37 = vmax.f32 %v5244_v42, %v10778_v7 }
 0x852   : > { %v10781_v1 = vpop.f32.mrb[124].mxu1 }
 0x853   : > { %v5210_v23 = vmax.f32 %v5208_v53, %v10781_v1  ;;  %v10784_v14 = vpop.f32.mrb[125].mxu1 }
 0x854   : > { %12866 = vst [vmem:[#allocation8_spill] sm:$0xff] %v10784_v14  ;;  %v5247_v54 = vmax.f32 %v5245_v63, %v10784_v14  ;;  %v10787_v24 = vpop.f32.mrb[126].mxu1 }
 0x855   : > { %v5211_v28 = vmax.f32 %v5209_v51, %v10787_v24  ;;  %v10790_v8 = vpop.f32.mrb[127].mxu1 }
 0x856   : > { %12867 = vst [vmem:[#allocation19_spill] sm:$0xff] %v10790_v8  ;;  %v5248_v20 = vmax.f32 %v5246_v37, %v10790_v8 }
 0x85a   : > { %v10793_v40 = vpop.f32.mrb[128].mxu1 }
 0x85b   : > { %v5212_v27 = vmax.f32 %v5210_v23, %v10793_v40  ;;  %v10796_v39 = vpop.f32.mrb[129].mxu1 }
 0x85c   : > { %12868 = vst [vmem:[#allocation36_spill] sm:$0xff] %v10796_v39  ;;  %v5249_v62 = vmax.f32 %v5247_v54, %v10796_v39  ;;  %v10799_v42 = vpop.f32.mrb[130].mxu1 }
 0x85d   : > { %v5213_v53 = vmax.f32 %v5211_v28, %v10799_v42  ;;  %v10802_v63 = vpop.f32.mrb[131].mxu1 }
 0x85e   : > { %12869 = vst [vmem:[#allocation38_spill] sm:$0xff] %v10802_v63  ;;  %v5250_v51 = vmax.f32 %v5248_v20, %v10802_v63 }
 0x862   : > { %v10805_v47 = vpop.f32.mrb[132].mxu1 }
 0x863   : > { %v5214_v37 = vmax.f32 %v5212_v27, %v10805_v47  ;;  %v10808_v56 = vpop.f32.mrb[133].mxu1 }
 0x864   : > { %12870 = vst [vmem:[#allocation20_spill] sm:$0xff] %v10808_v56  ;;  %v5251_v23 = vmax.f32 %v5249_v62, %v10808_v56  ;;  %v10811_v10 = vpop.f32.mrb[134].mxu1 }
 0x865   : > { %v5215_v54 = vmax.f32 %v5213_v53, %v10811_v10  ;;  %v10814_v49 = vpop.f32.mrb[135].mxu1 }
 0x866   : > { %12871 = vst [vmem:[#allocation34_spill] sm:$0xff] %v10814_v49  ;;  %v5252_v28 = vmax.f32 %v5250_v51, %v10814_v49 }
 0x86a   : > { %v10817_v4 = vpop.f32.mrb[136].mxu1 }
 0x86b   : > { %v5216_v20 = vmax.f32 %v5214_v37, %v10817_v4  ;;  %v10820_v32 = vpop.f32.mrb[137].mxu1 }
 0x86c   : > { %12872 = vst [vmem:[#allocation40_spill] sm:$0xff] %v10820_v32  ;;  %v5253_v27 = vmax.f32 %v5251_v23, %v10820_v32  ;;  %v10823_v35 = vpop.f32.mrb[138].mxu1 }
 0x86d   : > { %v5217_v62 = vmax.f32 %v5215_v54, %v10823_v35  ;;  %v10826_v56 = vpop.f32.mrb[139].mxu1 }
 0x86e   : > { %12873 = vst [vmem:[#allocation7_spill] sm:$0xff] %v10826_v56  ;;  %v5254_v53 = vmax.f32 %v5252_v28, %v10826_v56 }
 0x872   : > { %v10829_v63 = vpop.f32.mrb[140].mxu1 }
 0x873   : > { %v5218_v51 = vmax.f32 %v5216_v20, %v10829_v63  ;;  %v10832_v49 = vpop.f32.mrb[141].mxu1 }
 0x874   : > { %12874 = vst [vmem:[#allocation46_spill] sm:$0xff] %v10832_v49  ;;  %v5255_v37 = vmax.f32 %v5253_v27, %v10832_v49  ;;  %v10835_v39 = vpop.f32.mrb[142].mxu1 }
 0x875   : > { %v5219_v23 = vmax.f32 %v5217_v62, %v10835_v39  ;;  %v10838_v32 = vpop.f32.mrb[143].mxu1 }
 0x876   : > { %12875 = vst [vmem:[#allocation44_spill] sm:$0xff] %v10838_v32  ;;  %v5256_v54 = vmax.f32 %v5254_v53, %v10838_v32 }
 0x87a   : > { %v10841_v8 = vpop.f32.mrb[144].mxu1 }
 0x87b   : > { %v5220_v28 = vmax.f32 %v5218_v51, %v10841_v8  ;;  %v10844_v56 = vpop.f32.mrb[145].mxu1 }
 0x87c   : > { %12876 = vst [vmem:[#allocation42_spill] sm:$0xff] %v10844_v56  ;;  %v5257_v20 = vmax.f32 %v5255_v37, %v10844_v56  ;;  %v10847_v14 = vpop.f32.mrb[146].mxu1 }
 0x87d   : > { %v5221_v27 = vmax.f32 %v5219_v23, %v10847_v14  ;;  %v10850_v49 = vpop.f32.mrb[147].mxu1 }
 0x87e   : > { %12877 = vst [vmem:[#allocation41_spill] sm:$0xff] %v10850_v49  ;;  %v5258_v62 = vmax.f32 %v5256_v54, %v10850_v49 }
 0x87f   : > { %v5222_v7 = vmax.f32 %v5220_v28, %v5221_v27 }
 0x880   : > { %v5259_v31 = vmax.f32 %v5257_v20, %v5258_v62 }
 0x881   : > { %v5223_v30 = vrot.slane %v5222_v7, 4 }
 0x882   : > { %v5260_v53 = vrot.slane %v5259_v31, 4 }
 0x883   : > { %v5224_v32 = vmax.f32 %v5222_v7, %v5223_v30 }
 0x884   : > { %v5261_v45 = vmax.f32 %v5259_v31, %v5260_v53 }
 0x885   : > { %v5225_v55 = vrot.slane %v5224_v32, 2 }
 0x886   : > { %v5262_v51 = vrot.slane %v5261_v45, 2 }
 0x887   : > { %v5226_v33 = vmax.f32 %v5224_v32, %v5225_v55  ;;  %v12897_v55 = vld [vmem:[#allocation42_spill] sm:$0xff] }
 0x888   : > { %v5263_v50 = vmax.f32 %v5261_v45, %v5262_v51 }
 0x889   : > { %v5227_v61 = vrot.slane %v5226_v33, 1 }
 0x88a   : > { %v5264_v37 = vrot.slane %v5263_v50, 1 }
 0x88b   : > { %v10853_v56 = vmax.f32 %v5226_v33, %v5227_v61 }
 0x88c   : > { %v10855_v34 = vmax.f32 %v5263_v50, %v5264_v37 }
 0x88d   : > { %v5266_v23 = vsub.f32 %v10661_v13, %v10853_v56  ;;  %v5268_v54 = vsub.f32 %v10665_v26, %v10853_v56  ;;  %v5270_v30 = vsub.f32 %v10669_v38, %v10853_v56  ;;  %v5272_v31 = vsub.f32 %v10677_v6, %v10853_v56 }
 0x88e   : > { %v5274_v32 = vsub.f32 %v10685_v0, %v10853_v56  ;;  %v5276_v61 = vsub.f32 %v10691_v29, %v10853_v56  ;;  %v5278_v50 = vsub.f32 %v10697_v57, %v10853_v56  ;;  %v5280_v13 = vsub.f32 %v10703_v43, %v10853_v56 }
 0x88f   : > { %v5282_v26 = vsub.f32 %v10709_v48, %v10853_v56  ;;  %v5284_v38 = vsub.f32 %v10715_v44, %v10853_v56  ;;  %v5286_v6 = vsub.f32 %v10721_v21, %v10853_v56  ;;  %v5288_v0 = vsub.f32 %v10727_v19, %v10853_v56 }
 0x890   : > { %v5290_v29 = vsub.f32 %v10733_v60, %v10853_v56  ;;  %v5292_v57 = vsub.f32 %v10739_v25, %v10853_v56  ;;  %v5294_v43 = vsub.f32 %v10745_v22, %v10853_v56  ;;  %v5296_v48 = vsub.f32 %v10751_v16, %v10853_v56 }
 0x891   : > { %v5298_v44 = vsub.f32 %v10757_v46, %v10853_v56  ;;  %v5300_v21 = vsub.f32 %v10763_v12, %v10853_v56  ;;  %v5302_v19 = vsub.f32 %v10769_v3, %v10853_v56  ;;  %v5304_v60 = vsub.f32 %v10775_v52, %v10853_v56 }
 0x892   : > { %v5306_v25 = vsub.f32 %v10781_v1, %v10853_v56  ;;  %v5308_v22 = vsub.f32 %v10787_v24, %v10853_v56  ;;  %v5310_v33 = vsub.f32 %v10793_v40, %v10853_v56  ;;  %v5312_v16 = vsub.f32 %v10799_v42, %v10853_v56 }
 0x893   : > { %v5330_v24 = vmul.f32 1.442695, %v5266_v23  ;;  %v5334_v40 = vmul.f32 1.442695, %v5268_v54  ;;  %v5338_v42 = vmul.f32 1.442695, %v5270_v30 }
 0x894   : > { %v5342_v20 = vmul.f32 1.442695, %v5272_v31  ;;  %v5346_v62 = vmul.f32 1.442695, %v5274_v32  ;;  %v5350_v53 = vmul.f32 1.442695, %v5276_v61 }
 0x895   : > { %7176 = vpow2.f32 %v5330_v24  ;;  %v5354_v51 = vmul.f32 1.442695, %v5278_v50  ;;  %v5358_v37 = vmul.f32 1.442695, %v5280_v13  ;;  %v5362_v7 = vmul.f32 1.442695, %v5282_v26 }
 0x896   : > { %7178 = vpow2.f32 %v5334_v40  ;;  %v5366_v1 = vmul.f32 1.442695, %v5284_v38  ;;  %v5370_v23 = vmul.f32 1.442695, %v5286_v6  ;;  %v5374_v54 = vmul.f32 1.442695, %v5288_v0 }
 0x897   : > { %7180 = vpow2.f32 %v5338_v42  ;;  %v5378_v30 = vmul.f32 1.442695, %v5290_v29  ;;  %v5382_v28 = vmul.f32 1.442695, %v5292_v57  ;;  %v5386_v31 = vmul.f32 1.442695, %v5294_v43 }
 0x898   : > { %7182 = vpow2.f32 %v5342_v20  ;;  %v5390_v52 = vmul.f32 1.442695, %v5296_v48  ;;  %v5394_v27 = vmul.f32 1.442695, %v5298_v44  ;;  %v5398_v24 = vmul.f32 1.442695, %v5300_v21 }
 0x899   : > { %7184 = vpow2.f32 %v5346_v62  ;;  %v5402_v32 = vmul.f32 1.442695, %v5302_v19  ;;  %v5406_v61 = vmul.f32 1.442695, %v5304_v60  ;;  %v5410_v40 = vmul.f32 1.442695, %v5306_v25 }
 0x89a   : > { %7186 = vpow2.f32 %v5350_v53  ;;  %v10925_v50 = vmul.f32 1.442695, %v5308_v22  ;;  %v10927_v13 = vmul.f32 1.442695, %v5310_v33  ;;  %v10929_v26 = vmul.f32 1.442695, %v5312_v16 }
 0x89b   : > { %7188 = vpow2.f32 %v5354_v51  ;;  %v12878_v25 = vld [vmem:[#allocation33_spill] sm:$0xff]  ;;  %v12881_v53 = vld [vmem:[#allocation39_spill] sm:$0xff]  ;;  %v12884_v60 = vld [vmem:[#allocation30_spill] sm:$0xff] }
 0x89c   : > { %7190 = vpow2.f32 %v5358_v37  ;;  %v12880_v42 = vld [vmem:[#allocation37_spill] sm:$0xff]  ;;  %v12882_v37 = vld [vmem:[#allocation26_spill] sm:$0xff]  ;;  %v12885_v19 = vld [vmem:[#allocation23_spill] sm:$0xff] }
 0x89d   : > { %7192 = vpow2.f32 %v5362_v7  ;;  %v12879_v7 = vld [vmem:[#allocation35_spill] sm:$0xff]  ;;  %v12886_v51 = vld [vmem:[#allocation32_spill] sm:$0xff]  ;;  %v12890_v0 = vld [vmem:[#allocation38_spill] sm:$0xff] }
 0x89e   : > { %7194 = vpow2.f32 %v5366_v1  ;;  %v12887_v48 = vld [vmem:[#allocation8_spill] sm:$0xff]  ;;  %v12888_v43 = vld [vmem:[#allocation19_spill] sm:$0xff]  ;;  %v12892_v38 = vld [vmem:[#allocation34_spill] sm:$0xff] }
 0x89f   : > { %v10939_v57 = vpop.eup %7176  ;;  %7196 = vpow2.f32 %v5370_v23  ;;  %v12889_v20 = vld [vmem:[#allocation36_spill] sm:$0xff] }
 0x8a0   : > { %v10947_v21 = vpop.eup %7178  ;;  %7198 = vpow2.f32 %v5374_v54  ;;  %v12883_v54 = vld [vmem:[#allocation28_spill] sm:$0xff] }
 0x8a1   : > { %v10955_v33 = vpop.eup %7180  ;;  %7200 = vpow2.f32 %v5378_v30  ;;  %v5458_v16 = vadd.f32 %v10947_v21, %v10939_v57  ;;  %v12891_v23 = vld [vmem:[#allocation20_spill] sm:$0xff] }
 0x8a2   : > { %v10963_v62 = vpop.eup %7182  ;;  %7202 = vpow2.f32 %v5382_v28  ;;  %v12894_v28 = vld [vmem:[#allocation7_spill] sm:$0xff]  ;;  %v12896_v30 = vld [vmem:[#allocation44_spill] sm:$0xff] }
 0x8a3   : > { %v10971_v22 = vpop.eup %7184  ;;  %7204 = vpow2.f32 %v5386_v31  ;;  %v5459_v1 = vadd.f32 %v10955_v33, %v5458_v16 }
 0x8a4   : > { %v10978_v44 = vpop.eup %7186  ;;  %7206 = vpow2.f32 %v5390_v52 }
 0x8a5   : > { %v10986_v29 = vpop.eup %7188  ;;  %7208 = vpow2.f32 %v5394_v27  ;;  %v5460_v16 = vadd.f32 %v10963_v62, %v5459_v1 }
 0x8a6   : > { %v10993_v6 = vpop.eup %7190  ;;  %7210 = vpow2.f32 %v5398_v24 }
 0x8a7   : > { %v11001_v12 = vpop.eup %7192  ;;  %7212 = vpow2.f32 %v5402_v32  ;;  %v5461_v1 = vadd.f32 %v10971_v22, %v5460_v16  ;;  %v12898_v16 = vsub.f32 %v10805_v47, %v10853_v56 }
 0x8a8   : > { %v11008_v46 = vpop.eup %7194  ;;  %7214 = vpow2.f32 %v5406_v61  ;;  %v12899_v61 = vsub.f32 %v10811_v10, %v10853_v56 }
 0x8a9   : > { %v11016_v3 = vpop.eup %7196  ;;  %7216 = vpow2.f32 %v5410_v40  ;;  %v5426_v52 = vmul.f32 1.442695, %v12898_v16  ;;  %v5462_v24 = vadd.f32 %v10978_v44, %v5461_v1  ;;  %v12900_v40 = vsub.f32 %v10817_v4, %v10853_v56 }
 0x8aa   : > { %v11022_v45 = vpop.eup %7198  ;;  %7218 = vpow2.f32 %v10925_v50  ;;  %v5430_v27 = vmul.f32 1.442695, %v12899_v61  ;;  %v12901_v50 = vsub.f32 %v10823_v35, %v10853_v56  ;;  %v12905_v35 = vsub.f32 %v10841_v8, %v10853_v56 }
 0x8ab   : > { %v11028_v31 = vpop.eup %7200  ;;  %7220 = vpow2.f32 %v10927_v13  ;;  %v5434_v32 = vmul.f32 1.442695, %v12900_v40  ;;  %v5463_v47 = vadd.f32 %v10986_v29, %v5462_v24  ;;  %v12902_v13 = vsub.f32 %v10829_v63, %v10853_v56 }
 0x8ac   : > { %v11035_v16 = vpop.eup %7202  ;;  %7222 = vpow2.f32 %v10929_v26  ;;  %v5438_v1 = vmul.f32 1.442695, %v12901_v50  ;;  %v12903_v24 = vsub.f32 %v10835_v39, %v10853_v56 }
 0x8ad   : > { %v11041_v10 = vpop.eup %7204  ;;  %7224 = vpow2.f32 %v5426_v52  ;;  %v5442_v61 = vmul.f32 1.442695, %v12902_v13  ;;  %v5464_v4 = vadd.f32 %v10993_v6, %v5463_v47  ;;  %v5450_v52 = vmul.f32 1.442695, %v12905_v35 }
 0x8ae   : > { %v11047_v40 = vpop.eup %7206  ;;  %7226 = vpow2.f32 %v5430_v27  ;;  %v5446_v26 = vmul.f32 1.442695, %v12903_v24  ;;  %v12906_v47 = vsub.f32 %v10847_v14, %v10853_v56  ;;  %v12909_v56 = vsub.f32 %v10673_v2, %v10855_v34 }
 0x8af   : > { %v11052_v49 = vpop.eup %7208  ;;  %7228 = vpow2.f32 %v5434_v32  ;;  %v5465_v50 = vadd.f32 %v11001_v12, %v5464_v4  ;;  %v12907_v32 = vsub.f32 %v10663_v36, %v10855_v34  ;;  %v12908_v4 = vsub.f32 %v10667_v5, %v10855_v34 }
 0x8b0   : > { %12904 = vst [vmem:[#allocation45_spill] sm:$0xff] %v11052_v49  ;;  %v11058_v63 = vpop.eup %7210  ;;  %7230 = vpow2.f32 %v5438_v1  ;;  %v5454_v27 = vmul.f32 1.442695, %v12906_v47  ;;  %v5340_v14 = vmul.f32 1.442695, %v12909_v56  ;;  %v12910_v36 = vsub.f32 %v10681_v9, %v10855_v34 }
 0x8b1   : > { %v11063_v13 = vpop.eup %7212  ;;  %7232 = vpow2.f32 %v5442_v61  ;;  %v5466_v39 = vadd.f32 %v11008_v46, %v5465_v50  ;;  %v5332_v24 = vmul.f32 1.442695, %v12907_v32  ;;  %v5336_v1 = vmul.f32 1.442695, %v12908_v4 }
 0x8b2   : > { %v11069_v8 = vpop.eup %7214  ;;  %7234 = vpow2.f32 %v5446_v26  ;;  %v5344_v50 = vmul.f32 1.442695, %v12910_v36  ;;  %v12911_v26 = vsub.f32 %v10688_v11, %v10855_v34  ;;  %v12912_v5 = vsub.f32 %v10694_v15, %v10855_v34 }
 0x8b3   : > { %v11077_v35 = vpop.eup %7216  ;;  %7236 = vpow2.f32 %v5450_v52  ;;  %v5467_v61 = vadd.f32 %v11016_v3, %v5466_v39  ;;  %v12913_v52 = vsub.f32 %v10700_v41, %v10855_v34  ;;  %v12914_v39 = vsub.f32 %v10706_v18, %v10855_v34 }
 0x8b4   : > { %v5348_v47 = vmul.f32 1.442695, %v12911_v26  ;;  %v11086_v32 = vpop.eup %7218  ;;  %7238 = vpow2.f32 %v5454_v27  ;;  %v5352_v2 = vmul.f32 1.442695, %v12912_v5  ;;  %v12915_v27 = vsub.f32 %v10712_v59, %v10855_v34 }
 0x8b5   : > { %v5356_v4 = vmul.f32 1.442695, %v12913_v52  ;;  %v5360_v9 = vmul.f32 1.442695, %v12914_v39  ;;  %v11097_v56 = vpop.eup %7220  ;;  %v5468_v11 = vadd.f32 %v11022_v45, %v5467_v61  ;;  %7240 = vpow2.f32 %v5332_v24 }
 0x8b6   : > { %v5364_v36 = vmul.f32 1.442695, %v12915_v27  ;;  %v12916_v15 = vsub.f32 %v10718_v17, %v10855_v34  ;;  %v11106_v5 = vpop.eup %7222  ;;  %7242 = vpow2.f32 %v5336_v1 }
 0x8b7   : > { %v11114_v61 = vpop.eup %7224  ;;  %v5469_v59 = vadd.f32 %v11028_v31, %v5468_v11  ;;  %7244 = vpow2.f32 %v5340_v14 }
 0x8b8   : > { %v5368_v26 = vmul.f32 1.442695, %v12916_v15  ;;  %v11121_v52 = vpop.eup %7226  ;;  %7246 = vpow2.f32 %v5344_v50  ;;  %v12917_v50 = vsub.f32 %v10724_v58, %v10855_v34  ;;  %v12918_v15 = vsub.f32 %v12878_v25, %v10855_v34 }
 0x8b9   : > { %v11129_v11 = vpop.eup %7228  ;;  %v5470_v14 = vadd.f32 %v11035_v16, %v5469_v59  ;;  %7248 = vpow2.f32 %v5348_v47 }
 0x8ba   : > { %v11136_v17 = vpop.eup %7230  ;;  %7250 = vpow2.f32 %v5352_v2  ;;  %v5372_v1 = vmul.f32 1.442695, %v12917_v50  ;;  %v5376_v27 = vmul.f32 1.442695, %v12918_v15 }
 0x8bb   : > { %v11144_v59 = vpop.eup %7232  ;;  %v5471_v47 = vadd.f32 %v11041_v10, %v5470_v14  ;;  %7252 = vpow2.f32 %v5356_v4  ;;  %v12919_v4 = vsub.f32 %v12879_v7, %v10855_v34  ;;  %v12924_v7 = vsub.f32 %v12884_v60, %v10855_v34 }
 0x8bc   : > { %v11152_v24 = vpop.eup %7234  ;;  %7254 = vpow2.f32 %v5360_v9  ;;  %v12920_v9 = vsub.f32 %v12880_v42, %v10855_v34  ;;  %v12923_v42 = vsub.f32 %v12883_v54, %v10855_v34  ;;  %v12927_v60 = vsub.f32 %v12887_v48, %v10855_v34 }
 0x8bd   : > { %v11157_v39 = vpop.eup %7236  ;;  %v5472_v18 = vadd.f32 %v11047_v40, %v5471_v47  ;;  %7256 = vpow2.f32 %v5364_v36  ;;  %v5380_v58 = vmul.f32 1.442695, %v12919_v4  ;;  %v12921_v36 = vsub.f32 %v12881_v53, %v10855_v34 }
 0x8be   : > { %v11165_v50 = vpop.eup %7238  ;;  %7258 = vpow2.f32 %v5368_v26  ;;  %v5384_v25 = vmul.f32 1.442695, %v12920_v9  ;;  %v12922_v26 = vsub.f32 %v12882_v37, %v10855_v34  ;;  %v5396_v9 = vmul.f32 1.442695, %v12923_v42 }
 0x8bf   : > { %v7241_v15 = vpop.eup %7240  ;;  %v5473_v2 = vadd.f32 %v11052_v49, %v5472_v18  ;;  %7260 = vpow2.f32 %v5372_v1  ;;  %v5388_v47 = vmul.f32 1.442695, %v12921_v36  ;;  %v12925_v37 = vsub.f32 %v12885_v19, %v10855_v34 }
 0x8c0   : > { %v7243_v4 = vpop.eup %7242  ;;  %7262 = vpow2.f32 %v5376_v27  ;;  %v5392_v14 = vmul.f32 1.442695, %v12922_v26  ;;  %v5400_v27 = vmul.f32 1.442695, %v12924_v7  ;;  %v5412_v7 = vmul.f32 1.442695, %v12927_v60 }
 0x8c1   : > { %v7245_v41 = vpop.eup %7244  ;;  %v5474_v18 = vadd.f32 %v11058_v63, %v5473_v2  ;;  %7264 = vpow2.f32 %v5380_v58  ;;  %v5495_v1 = vadd.f32 %v7243_v4, %v7241_v15  ;;  %v5533_v53 = vpack.c.bf16 %v7243_v4, %v7241_v15 }
 0x8c2   : > { %v7247_v36 = vpop.eup %7246  ;;  %7266 = vpow2.f32 %v5384_v25  ;;  %v5404_v26 = vmul.f32 1.442695, %v12925_v37  ;;  %v12926_v25 = vsub.f32 %v12886_v51, %v10855_v34  ;;  %v12928_v19 = vpack.c.bf16 %v10947_v21, %v10939_v57 }
 0x8c3   : > { %v7249_v49 = vpop.eup %7248  ;;  %v5475_v54 = vadd.f32 %v11063_v13, %v5474_v18  ;;  %7268 = vpow2.f32 %v5388_v47  ;;  %v5496_v42 = vadd.f32 %v7245_v41, %v5495_v1  ;;  %5564 = vmatprep.subr.bf16.mxu0 %v5533_v53  ;;  %v5535_v2 = vpack.c.bf16 %v7247_v36, %v7245_v41 }
 0x8c4   : > { %v7251_v58 = vpop.eup %7250  ;;  %7270 = vpow2.f32 %v5392_v14  ;;  %v5408_v15 = vmul.f32 1.442695, %v12926_v25  ;;  %5565 = vmatpush1.bf16.msra.mxu0 %v12928_v19  ;;  %v12929_v51 = vsub.f32 %v12888_v43, %v10855_v34  ;;  %v12930_v48 = vsub.f32 %v12889_v20, %v10855_v34  ;;  %v12935_v19 = vld [vmem:[#allocation40_spill] sm:$0xff] }
 0x8c5   : > { %v7253_v4 = vpop.eup %7252  ;;  %v5476_v47 = vadd.f32 %v11069_v8, %v5475_v54  ;;  %7272 = vpow2.f32 %v5396_v9  ;;  %v5497_v18 = vadd.f32 %v7247_v36, %v5496_v42  ;;  %5566 = vmatprep.subr.bf16.mxu0 %v5535_v2  ;;  %v5537_v41 = vpack.c.bf16 %v7251_v58, %v7249_v49 }
 0x8c6   : > { %v7255_v14 = vpop.eup %7254  ;;  %7274 = vpow2.f32 %v5400_v27  ;;  %v5416_v1 = vmul.f32 1.442695, %v12929_v51  ;;  %v5420_v53 = vmul.f32 1.442695, %v12930_v48  ;;  %v12931_v36 = vsub.f32 %v12890_v0, %v10855_v34 }
 0x8c7   : > { %v7257_v37 = vpop.eup %7256  ;;  %v5477_v57 = vadd.f32 %v11077_v35, %v5476_v47  ;;  %7276 = vpow2.f32 %v5404_v26  ;;  %v5498_v21 = vadd.f32 %v7249_v49, %v5497_v18  ;;  %v5539_v54 = vpack.c.bf16 %v7255_v14, %v7253_v4 }
 0x8c8   : > { %v7259_v9 = vpop.eup %7258  ;;  %7278 = vpow2.f32 %v5408_v15  ;;  %v5424_v27 = vmul.f32 1.442695, %v12931_v36  ;;  %v12932_v43 = vsub.f32 %v12891_v23, %v10855_v34  ;;  %v12933_v20 = vpack.c.bf16 %v10963_v62, %v10955_v33 }
 0x8c9   : > { %v7261_v2 = vpop.eup %7260  ;;  %v5478_v25 = vadd.f32 %v11086_v32, %v5477_v57  ;;  %7280 = vpow2.f32 %v5412_v7  ;;  %v5499_v49 = vadd.f32 %v7251_v58, %v5498_v21  ;;  %v5541_v26 = vpack.c.bf16 %v7259_v9, %v7257_v37 }
 0x8ca   : > { %v5428_v42 = vmul.f32 1.442695, %v12932_v43  ;;  %5567 = vmatpush1.bf16.msra.mxu0 %v12933_v20  ;;  %v7263_v15 = vpop.eup %7262  ;;  %7282 = vpow2.f32 %v5416_v1  ;;  %v12934_v0 = vsub.f32 %v12892_v38, %v10855_v34  ;;  %v12936_v23 = vsub.f32 %v12935_v19, %v10855_v34  ;;  %v12938_v1 = vld [vmem:[#allocation46_spill] sm:$0xff] }
 0x8cb   : > { %5568 = vmatprep.subr.bf16.mxu0 %v5537_v41  ;;  %v7265_v18 = vpop.eup %7264  ;;  %v5479_v33 = vadd.f32 %v11097_v56, %v5478_v25  ;;  %7284 = vpow2.f32 %v5420_v53  ;;  %v5500_v62 = vadd.f32 %v7253_v4, %v5499_v49  ;;  %v5543_v51 = vpack.c.bf16 %v7263_v15, %v7261_v2 }
 0x8cc   : > { %v5432_v60 = vmul.f32 1.442695, %v12934_v0  ;;  %v5436_v47 = vmul.f32 1.442695, %v12936_v23  ;;  %v7267_v7 = vpop.eup %7266  ;;  %7286 = vpow2.f32 %v5424_v27  ;;  %v12937_v58 = vsub.f32 %v12894_v28, %v10855_v34 }
 0x8cd   : > { %v12939_v38 = vsub.f32 %v12938_v1, %v10855_v34  ;;  %v12940_v57 = vpack.c.bf16 %v10978_v44, %v10971_v22  ;;  %v7269_v21 = vpop.eup %7268  ;;  %v5480_v36 = vadd.f32 %v11106_v5, %v5479_v33  ;;  %7288 = vpow2.f32 %v5428_v42 }
 0x8ce   : > { %v5440_v41 = vmul.f32 1.442695, %v12937_v58  ;;  %v5501_v4 = vadd.f32 %v7255_v14, %v5500_v62  ;;  %v5545_v53 = vpack.c.bf16 %v7267_v7, %v7265_v18  ;;  %v7271_v27 = vpop.eup %7270  ;;  %7290 = vpow2.f32 %v5432_v60  ;;  %v12943_v14 = vld [vmem:[#allocation41_spill] sm:$0xff] }
 0x8cf   : > { %v5444_v48 = vmul.f32 1.442695, %v12939_v38  ;;  %5569 = vmatpush1.bf16.msra.mxu0 %v12940_v57  ;;  %v12941_v28 = vsub.f32 %v12896_v30, %v10855_v34  ;;  %v12942_v20 = vsub.f32 %v12897_v55, %v10855_v34  ;;  %v7273_v49 = vpop.eup %7272  ;;  %v5481_v44 = vadd.f32 %v11114_v61, %v5480_v36 }
 0x8d0   : > { %5570 = vmatprep.subr.bf16.mxu0 %v5539_v54  ;;  %7292 = vpow2.f32 %v5436_v47  ;;  %v5502_v22 = vadd.f32 %v7257_v37, %v5501_v4  ;;  %v5547_v0 = vpack.c.bf16 %v7271_v27, %v7269_v21  ;;  %v7275_v42 = vpop.eup %7274  ;;  %v12944_v54 = vsub.f32 %v12943_v14, %v10855_v34 }
 0x8d1   : > { %v5448_v43 = vmul.f32 1.442695, %v12941_v28  ;;  %v5452_v25 = vmul.f32 1.442695, %v12942_v20  ;;  %7294 = vpow2.f32 %v5440_v41  ;;  %v12945_v30 = vpack.c.bf16 %v10993_v6, %v10986_v29  ;;  %v7277_v19 = vpop.eup %7276 }
 0x8d2   : > { %v5456_v60 = vmul.f32 1.442695, %v12944_v54  ;;  %v5482_v55 = vadd.f32 %v11121_v52, %v5481_v44  ;;  %7296 = vpow2.f32 %v5444_v48  ;;  %v5503_v23 = vadd.f32 %v7259_v9, %v5502_v22  ;;  %v7279_v47 = vpop.eup %7278 }
 0x8d3   : > { %5571 = vmatpush1.bf16.msra.mxu0 %v12945_v30  ;;  %v5549_v33 = vpack.c.bf16 %v7275_v42, %v7273_v49  ;;  %7298 = vpow2.f32 %v5448_v43  ;;  %v7281_v37 = vpop.eup %7280  ;;  %v5551_v34 = vpack.c.bf16 %v7279_v47, %v7277_v19  ;;  %v12946_v6 = vpack.c.bf16 %v11008_v46, %v11001_v12 }
 0x8d4   : > { %5572 = vmatprep.subr.bf16.mxu0 %v5541_v26  ;;  %v5483_v62 = vadd.f32 %v11129_v11, %v5482_v55  ;;  %7300 = vpow2.f32 %v5452_v25  ;;  %v5504_v58 = vadd.f32 %v7261_v2, %v5503_v23  ;;  %v7283_v41 = vpop.eup %7282  ;;  %v12947_v28 = vpack.c.bf16 %v11022_v45, %v11016_v3 }
 0x8d5   : > { %7302 = vpow2.f32 %v5456_v60  ;;  %v7285_v29 = vpop.eup %7284  ;;  %v5553_v26 = vpack.c.bf16 %v7283_v41, %v7281_v37  ;;  %v12949_v55 = vpack.c.bf16 %v11047_v40, %v11041_v10  ;;  %v12953_v10 = vpack.c.bf16 %v11086_v32, %v11077_v35 }
 0x8d6   : > { %v5484_v1 = vadd.f32 %v11136_v17, %v5483_v62  ;;  %v5505_v9 = vadd.f32 %v7263_v15, %v5504_v58  ;;  %v7287_v38 = vpop.eup %7286  ;;  %v12956_v35 = vpack.c.bf16 %v11136_v17, %v11129_v11  ;;  %v12963_v17 = vld [vmem:[#allocation60_spill] sm:$0xff] }
 0x8d7   : > { %5573 = vmatpush1.bf16.msra.mxu0 %v12946_v6  ;;  %v7289_v48 = vpop.eup %7288  ;;  %v5555_v4 = vpack.c.bf16 %v7287_v38, %v7285_v29  ;;  %v12962_v6 = vld [vmem:[#allocation65_spill] sm:$0xff] }
 0x8d8   : > { %5574 = vmatprep.subr.bf16.mxu0 %v5543_v51  ;;  %v5485_v57 = vadd.f32 %v11144_v59, %v5484_v1  ;;  %v5506_v36 = vadd.f32 %v7265_v18, %v5505_v9  ;;  %v7291_v2 = vpop.eup %7290  ;;  %v12948_v18 = vpack.c.bf16 %v11035_v16, %v11028_v31  ;;  %v12950_v31 = vld [vmem:[#allocation45_spill] sm:$0xff]  ;;  %v12964_v11 = vpack.c.bf16 %v12962_v6, %v12963_v17  ;;  %v12966_v1 = vld [vmem:[#allocation64_spill] sm:$0xff] }
 0x8d9   : > { %v5557_v20 = vpack.c.bf16 %v7291_v2, %v7289_v48  ;;  %v12951_v16 = vpack.c.bf16 %v11058_v63, %v12950_v31  ;;  %v12954_v63 = vpack.c.bf16 %v11106_v5, %v11097_v56  ;;  %v12957_v56 = vpack.c.bf16 %v11152_v24, %v11144_v59  ;;  %v12969_v59 = vld [vmem:[#allocation69_spill] sm:$0xff] }
 0x8da   : > { %v7293_v43 = vpop.eup %7292  ;;  %v5486_v46 = vadd.f32 %v11152_v24, %v5485_v57  ;;  %v5507_v12 = vadd.f32 %v7267_v7, %v5506_v36  ;;  %v12968_v24 = vmov 0   ;;  %v12975_v57 = vld [vmem:[#allocation70_spill] sm:$0xff] }
 0x8db   : > { %5575 = vmatpush1.bf16.msra.mxu0 %v12947_v28  ;;  %v7295_v15 = vpop.eup %7294  ;;  %v12976_v36 = vld [vmem:[#allocation50_spill] sm:$0xff]  ;;  %v12979_v28 = vld [vmem:[#allocation12_spill] sm:$0xff] }
 0x8dc   : > { %5576 = vmatprep.subr.bf16.mxu0 %v5545_v53  ;;  %v7297_v51 = vpop.eup %7296  ;;  %v5487_v25 = vadd.f32 %v11157_v39, %v5486_v46  ;;  %v5508_v44 = vadd.f32 %v7269_v21, %v5507_v12  ;;  %v5559_v22 = vpack.c.bf16 %v7295_v15, %v7293_v43  ;;  %v12981_v46 = vld [vmem:[#allocation63_spill] sm:$0xff] }
 0x8dd   : > { %v7299_v14 = vpop.eup %7298  ;;  %v12982_v12 = vld [vmem:[#allocation67_spill] sm:$0xff] }
 0x8de   : > { %v7301_v54 = vpop.eup %7300  ;;  %v11263_v45 = vadd.f32 %v11165_v50, %v5487_v25  ;;  %v5509_v3 = vadd.f32 %v7271_v27, %v5508_v44  ;;  %v5561_v7 = vpack.c.bf16 %v7299_v14, %v7297_v51  ;;  %v12952_v27 = vpack.c.bf16 %v11069_v8, %v11063_v13 }
 0x8df   : > { %5577 = vmatpush1.bf16.msra.mxu0 %v12948_v18  ;;  %v7303_v53 = vpop.eup %7302  ;;  %v12955_v13 = vpack.c.bf16 %v11121_v52, %v11114_v61  ;;  %v12958_v61 = vpack.c.bf16 %v11165_v50, %v11157_v39  ;;  %v12959_v52 = vld [vmem:[#allocation68_spill] sm:$0xff]  ;;  %v12971_v50 = vld [vmem:[#allocation17_spill] sm:$0xff] }
 0x8e0   : > { %5578 = vmatprep.subr.bf16.mxu0 %v5547_v0  ;;  %v5510_v60 = vadd.f32 %v7273_v49, %v5509_v3  ;;  %v5563_v30 = vpack.c.bf16 %v7303_v53, %v7301_v54  ;;  %v12970_v39 = vld [vmem:[#allocation16_spill] sm:$0xff] }
 0x8e2   : > { %v5511_v21 = vadd.f32 %v7275_v42, %v5510_v60 }
 0x8e3   : > { %5579 = vmatpush1.bf16.msra.mxu0 %v12949_v55 }
 0x8e4   : > { %5580 = vmatprep.subr.bf16.mxu0 %v5549_v33  ;;  %v5512_v23 = vadd.f32 %v7277_v19, %v5511_v21 }
 0x8e6   : > { %v5513_v62 = vadd.f32 %v7279_v47, %v5512_v23 }
 0x8e7   : > { %5581 = vmatpush1.bf16.msra.mxu0 %v12951_v16 }
 0x8e8   : > { %5582 = vmatprep.subr.bf16.mxu0 %v5551_v34  ;;  %v5514_v58 = vadd.f32 %v7281_v37, %v5513_v62  ;;  %v12960_v34 = vld [vmem:[#allocation71_spill] sm:$0xff] }
 0x8ea   : > { %v5515_v49 = vadd.f32 %v7283_v41, %v5514_v58  ;;  %v12961_v41 = vpack.c.bf16 %v12959_v52, %v12960_v34 }
 0x8eb   : > { %5583 = vmatpush1.bf16.msra.mxu0 %v12952_v27 }
 0x8ec   : > { %5584 = vmatprep.subr.bf16.mxu0 %v5553_v26  ;;  %v5516_v0 = vadd.f32 %v7285_v29, %v5515_v49  ;;  %v12965_v29 = vld [vmem:[#allocation21_spill] sm:$0xff]  ;;  %v12972_v26 = vld [vmem:[#allocation14_spill] sm:$0xff] }
 0x8ed   : > { %v12967_v9 = vpack.c.bf16 %v12965_v29, %v12966_v1 }
 0x8ee   : > { %v5517_v40 = vadd.f32 %v7287_v38, %v5516_v0  ;;  %v12973_v38 = vld [vmem:[#allocation62_spill] sm:$0xff] }
 0x8ef   : > { %5585 = vmatpush1.bf16.msra.mxu0 %v12953_v10 }
 0x8f0   : > { %5586 = vmatprep.subr.bf16.mxu0 %v5555_v4  ;;  %v5518_v42 = vadd.f32 %v7289_v48, %v5517_v40  ;;  %v12974_v48 = vld [vmem:[#allocation66_spill] sm:$0xff] }
 0x8f1   : > { %v12977_v4 = vld [vmem:[#allocation18_spill] sm:$0xff] }
 0x8f2   : > { %v5519_v19 = vadd.f32 %v7291_v2, %v5518_v42  ;;  %v12978_v2 = vld [vmem:[#allocation22_spill] sm:$0xff] }
 0x8f3   : > { %5587 = vmatpush1.bf16.msra.mxu0 %v12954_v63 }
 0x8f4   : > { %5588 = vmatprep.subr.bf16.mxu0 %v5557_v20  ;;  %v5520_v33 = vadd.f32 %v7293_v43, %v5519_v19  ;;  %v12980_v43 = vld [vmem:[#allocation11_spill] sm:$0xff]  ;;  %v12983_v20 = vld [vmem:[#allocation52_spill] sm:$0xff] }
 0x8f6   : > { %v5521_v8 = vadd.f32 %v7295_v15, %v5520_v33  ;;  %v12984_v15 = vld [vmem:[#allocation61_spill] sm:$0xff] }
 0x8f7   : > { %5589 = vmatpush1.bf16.msra.mxu0 %v12955_v13 }
 0x8f8   : > { %5590 = vmatprep.subr.bf16.mxu0 %v5559_v22  ;;  %v5522_v47 = vadd.f32 %v7297_v51, %v5521_v8  ;;  %v5489_v51 = vrot.slane %v11263_v45, 4 }
 0x8fa   : > { %v5523_v32 = vadd.f32 %v7299_v14, %v5522_v47  ;;  %v5490_v44 = vadd.f32 %v5489_v51, %v11263_v45 }
 0x8fb   : > { %5591 = vmatpush1.bf16.msra.mxu0 %v12956_v35 }
 0x8fc   : > { %5592 = vmatprep.subr.bf16.mxu0 %v5561_v7  ;;  %v5524_v37 = vadd.f32 %v7301_v54, %v5523_v32  ;;  %v5491_v14 = vrot.slane %v5490_v44, 2 }
 0x8fe   : > { %v5525_v5 = vadd.f32 %v7303_v53, %v5524_v37  ;;  %v5492_v54 = vadd.f32 %v5491_v14, %v5490_v44 }
 0x8ff   : > { %5593 = vmatpush1.bf16.msra.mxu0 %v12957_v56 }
 0x900   : > { %5594 = vmatprep.subr.bf16.mxu0 %v5563_v30  ;;  %v5526_v25 = vrot.slane %v5525_v5, 4  ;;  %v5493_v7 = vrot.slane %v5492_v54, 1 }
 0x902   : > { %v5527_v22 = vadd.f32 %v5526_v25, %v5525_v5  ;;  %v5494_v60 = vadd.f32 %v5493_v7, %v5492_v54 }
 0x903   : > { %5595 = vmatpush1.bf16.msra.mxu0 %v12958_v61 }
 0x904   : > { %5714 = vmatprep.subr.bf16.mxu0 %v12961_v41  ;;  %v5528_v18 = vrot.slane %v5527_v22, 2  ;;  %7304 = vrcp.f32 %v5494_v60 }
 0x906   : > { %5597 = vmatmul.mubr.bf16.vlgmr.msra.gmra.mrb[100].mxu0 %v12964_v11  ;;  %v5529_v3 = vadd.f32 %v5528_v18, %v5527_v22 }
 0x907   : > { %5715 = vmatpush1.bf16.msra.mxu0 %v12967_v9  ;;  %5746 = vmatprep.mubr.bf16.mxu0 %v12968_v24 }
 0x908   : > { %v5530_v53 = vrot.slane %v5529_v3, 1 }
 0x90a   : > { %v5531_v30 = vadd.f32 %v5530_v53, %v5529_v3 }
 0x90c   : > { %7306 = vrcp.f32 %v5531_v30 }
 0x90e   : > { %6720 = vmatmul.mubr.msk.bf16.vlgmr.msra.gmra.mrb[104].mxu0 %vm3520_vm2, %v12969_v59  ;;  %v7305_v55 = vpop.eup %7304 }
 0x90f   : > { %5756 = vmatprep.mubr.bf16.mxu0 %v12968_v24 }
 0x916   : > { %6721 = vmatmul.mubr.msk.bf16.gmra.mrb[108].mxu0 %vm3520_vm2, %v12970_v39  ;;  %v7307_v23 = vpop.eup %7306 }
 0x917   : > { %5766 = vmatprep.mubr.bf16.mxu0 %v12968_v24 }
 0x91e   : > { %6722 = vmatmul.mubr.msk.bf16.gmra.mrb[112].mxu0 %vm3520_vm2, %v12971_v50 }
 0x91f   : > { %5776 = vmatprep.mubr.bf16.mxu0 %v12968_v24 }
 0x926   : > { %6723 = vmatmul.mubr.msk.bf16.gmra.mrb[116].mxu0 %vm3520_vm2, %v12972_v26 }
 0x927   : > { %5786 = vmatprep.mubr.bf16.mxu0 %v12968_v24 }
 0x92e   : > { %6724 = vmatmul.mubr.msk.bf16.gmra.mrb[120].mxu0 %vm3520_vm2, %v12973_v38 }
 0x92f   : > { %5796 = vmatprep.mubr.bf16.mxu0 %v12968_v24 }
 0x936   : > { %6725 = vmatmul.mubr.msk.bf16.gmra.mrb[124].mxu0 %vm3520_vm2, %v12974_v48 }
 0x937   : > { %5806 = vmatprep.mubr.bf16.mxu0 %v12968_v24 }
 0x93e   : > { %6726 = vmatmul.mubr.msk.bf16.gmra.mrb[128].mxu0 %vm3520_vm2, %v12975_v57 }
 0x93f   : > { %5816 = vmatprep.mubr.bf16.mxu0 %v12968_v24 }
 0x946   : > { %6727 = vmatmul.mubr.msk.bf16.gmra.mrb[132].mxu0 %vm3520_vm2, %v12976_v36 }
 0x947   : > { %5826 = vmatprep.mubr.bf16.mxu0 %v12968_v24 }
 0x94e   : > { %6728 = vmatmul.mubr.msk.bf16.gmra.mrb[136].mxu0 %vm3520_vm2, %v12977_v4 }
 0x94f   : > { %5836 = vmatprep.mubr.bf16.mxu0 %v12968_v24 }
 0x956   : > { %6729 = vmatmul.mubr.msk.bf16.gmra.mrb[140].mxu0 %vm3520_vm2, %v12978_v2 }
 0x957   : > { %5846 = vmatprep.mubr.bf16.mxu0 %v12968_v24 }
 0x95e   : > { %6730 = vmatmul.mubr.msk.bf16.gmra.mrb[144].mxu0 %vm3520_vm2, %v12979_v28 }
 0x95f   : > { %5856 = vmatprep.mubr.bf16.mxu0 %v12968_v24 }
 0x966   : > { %6731 = vmatmul.mubr.msk.bf16.gmra.mrb[148].mxu0 %vm3520_vm2, %v12980_v43 }
 0x967   : > { %5866 = vmatprep.mubr.bf16.mxu0 %v12968_v24 }
 0x96e   : > { %6732 = vmatmul.mubr.msk.bf16.gmra.mrb[152].mxu0 %vm3520_vm2, %v12981_v46 }
 0x96f   : > { %5876 = vmatprep.mubr.bf16.mxu0 %v12968_v24 }
 0x976   : > { %6733 = vmatmul.mubr.msk.bf16.gmra.mrb[156].mxu0 %vm3520_vm2, %v12982_v12 }
 0x977   : > { %5886 = vmatprep.mubr.bf16.mxu0 %v12968_v24 }
 0x97e   : > { %6734 = vmatmul.mubr.msk.bf16.gmra.mrb[160].mxu0 %vm3520_vm2, %v12983_v20 }
 0x97f   : > { %5896 = vmatprep.mubr.bf16.mxu0 %v12968_v24 }
 0x986   : > { %6735 = vmatmul.mubr.msk.bf16.gmra.mrb[164].mxu0 %vm3520_vm2, %v12984_v15 }
 0x9d9   : > { %v5598_v21 = vpop.f32.mrb[100].mxu0 }
 0x9da   : > { %v11351_v31 = vmul.f32 %v7305_v55, %v5598_v21  ;;  %v5600_v16 = vpop.f32.mrb[101].mxu0 }
 0x9db   : > { %v11353_v62 = vmul.f32 %v7307_v23, %v5600_v16  ;;  %v5602_v45 = vpop.f32.mrb[102].mxu0 }
 0x9dc   : > { %12985 = vst [vmem:[#allocation43_spill] sm:$0xff] %v11351_v31  ;;  %v11355_v58 = vmul.f32 %v7305_v55, %v5602_v45  ;;  %v5604_v27 = vpop.f32.mrb[103].mxu0 }
 0x9dd   : > { %12986 = vst [vmem:[#allocation72_spill] sm:$0xff] %v11353_v62  ;;  %v11357_v49 = vmul.f32 %v7307_v23, %v5604_v27 }
 0x9de   : > { %12987 = vst [vmem:[#allocation74_spill] sm:$0xff] %v11355_v58 }
 0x9df   : > { %12988 = vst [vmem:[#allocation76_spill] sm:$0xff] %v11357_v49 }
 0x9e1   : > { %v11363_v40 = vpop.f32.mrb[104].mxu0 }
 0x9e2   : > { %v11365_v42 = vpop.f32.mrb[105].mxu0 }
 0x9e3   : > { %v11367_v63 = vpop.f32.mrb[106].mxu0 }
 0x9e4   : > { %v11369_v19 = vpop.f32.mrb[107].mxu0 }
 0x9e9   : > { %v11371_v33 = vpop.f32.mrb[108].mxu0 }
 0x9ea   : > { %v5907_v13 = vmax.f32 %v11363_v40, %v11371_v33  ;;  %v11375_v8 = vpop.f32.mrb[109].mxu0 }
 0x9eb   : > { %v5944_v47 = vmax.f32 %v11365_v42, %v11375_v8  ;;  %v11379_v35 = vpop.f32.mrb[110].mxu0 }
 0x9ec   : > { %v5908_v32 = vmax.f32 %v11367_v63, %v11379_v35  ;;  %v11383_v37 = vpop.f32.mrb[111].mxu0 }
 0x9ed   : > { %v5945_v56 = vmax.f32 %v11369_v19, %v11383_v37 }
 0x9f1   : > { %v11387_v5 = vpop.f32.mrb[112].mxu0 }
 0x9f2   : > { %v5909_v61 = vmax.f32 %v5907_v13, %v11387_v5  ;;  %v11390_v52 = vpop.f32.mrb[113].mxu0 }
 0x9f3   : > { %v5946_v34 = vmax.f32 %v5944_v47, %v11390_v52  ;;  %v11393_v41 = vpop.f32.mrb[114].mxu0 }
 0x9f4   : > { %v5910_v6 = vmax.f32 %v5908_v32, %v11393_v41  ;;  %v11396_v17 = vpop.f32.mrb[115].mxu0 }
 0x9f5   : > { %v5947_v11 = vmax.f32 %v5945_v56, %v11396_v17 }
 0x9f9   : > { %v11399_v29 = vpop.f32.mrb[116].mxu0 }
 0x9fa   : > { %v5911_v1 = vmax.f32 %v5909_v61, %v11399_v29  ;;  %v11402_v9 = vpop.f32.mrb[117].mxu0 }
 0x9fb   : > { %v5948_v59 = vmax.f32 %v5946_v34, %v11402_v9  ;;  %v11405_v39 = vpop.f32.mrb[118].mxu0 }
 0x9fc   : > { %v5912_v50 = vmax.f32 %v5910_v6, %v11405_v39  ;;  %v11408_v26 = vpop.f32.mrb[119].mxu0 }
 0x9fd   : > { %v5949_v38 = vmax.f32 %v5947_v11, %v11408_v26 }
 0xa01   : > { %v11411_v48 = vpop.f32.mrb[120].mxu0 }
 0xa02   : > { %v5913_v57 = vmax.f32 %v5911_v1, %v11411_v48  ;;  %v11414_v36 = vpop.f32.mrb[121].mxu0 }
 0xa03   : > { %v5950_v4 = vmax.f32 %v5948_v59, %v11414_v36  ;;  %v11417_v2 = vpop.f32.mrb[122].mxu0 }
 0xa04   : > { %v5914_v28 = vmax.f32 %v5912_v50, %v11417_v2  ;;  %v11420_v43 = vpop.f32.mrb[123].mxu0 }
 0xa05   : > { %v5951_v46 = vmax.f32 %v5949_v38, %v11420_v43 }
 0xa09   : > { %v11423_v12 = vpop.f32.mrb[124].mxu0 }
 0xa0a   : > { %v5915_v20 = vmax.f32 %v5913_v57, %v11423_v12  ;;  %v11426_v15 = vpop.f32.mrb[125].mxu0 }
 0xa0b   : > { %v5952_v51 = vmax.f32 %v5950_v4, %v11426_v15  ;;  %v11429_v25 = vpop.f32.mrb[126].mxu0 }
 0xa0c   : > { %v5916_v44 = vmax.f32 %v5914_v28, %v11429_v25  ;;  %v11432_v22 = vpop.f32.mrb[127].mxu0 }
 0xa0d   : > { %12989 = vst [vmem:[#allocation78_spill] sm:$0xff] %v11432_v22  ;;  %v5953_v14 = vmax.f32 %v5951_v46, %v11432_v22 }
 0xa11   : > { %v11435_v18 = vpop.f32.mrb[128].mxu0 }
 0xa12   : > { %v5917_v54 = vmax.f32 %v5915_v20, %v11435_v18  ;;  %v11438_v3 = vpop.f32.mrb[129].mxu0 }
 0xa13   : > { %12990 = vst [vmem:[#allocation47_spill] sm:$0xff] %v11438_v3  ;;  %v5954_v7 = vmax.f32 %v5952_v51, %v11438_v3  ;;  %v11441_v53 = vpop.f32.mrb[130].mxu0 }
 0xa14   : > { %v5918_v60 = vmax.f32 %v5916_v44, %v11441_v53  ;;  %v11444_v30 = vpop.f32.mrb[131].mxu0 }
 0xa15   : > { %12991 = vst [vmem:[#allocation49_spill] sm:$0xff] %v11444_v30  ;;  %v5955_v55 = vmax.f32 %v5953_v14, %v11444_v30 }
 0xa19   : > { %v11447_v21 = vpop.f32.mrb[132].mxu0 }
 0xa1a   : > { %v5919_v23 = vmax.f32 %v5917_v54, %v11447_v21  ;;  %v11450_v16 = vpop.f32.mrb[133].mxu0 }
 0xa1b   : > { %12992 = vst [vmem:[#allocation53_spill] sm:$0xff] %v11450_v16  ;;  %v5956_v45 = vmax.f32 %v5954_v7, %v11450_v16  ;;  %v11453_v27 = vpop.f32.mrb[134].mxu0 }
 0xa1c   : > { %v5920_v13 = vmax.f32 %v5918_v60, %v11453_v27  ;;  %v11456_v47 = vpop.f32.mrb[135].mxu0 }
 0xa1d   : > { %12993 = vst [vmem:[#allocation58_spill] sm:$0xff] %v11456_v47  ;;  %v5957_v32 = vmax.f32 %v5955_v55, %v11456_v47 }
 0xa21   : > { %v11459_v56 = vpop.f32.mrb[136].mxu0 }
 0xa22   : > { %v5921_v61 = vmax.f32 %v5919_v23, %v11459_v56  ;;  %v11462_v34 = vpop.f32.mrb[137].mxu0 }
 0xa23   : > { %12994 = vst [vmem:[#allocation73_spill] sm:$0xff] %v11462_v34  ;;  %v5958_v6 = vmax.f32 %v5956_v45, %v11462_v34  ;;  %v11465_v11 = vpop.f32.mrb[138].mxu0 }
 0xa24   : > { %v5922_v1 = vmax.f32 %v5920_v13, %v11465_v11  ;;  %v11468_v59 = vpop.f32.mrb[139].mxu0 }
 0xa25   : > { %12995 = vst [vmem:[#allocation75_spill] sm:$0xff] %v11468_v59  ;;  %v5959_v50 = vmax.f32 %v5957_v32, %v11468_v59 }
 0xa29   : > { %v11471_v38 = vpop.f32.mrb[140].mxu0 }
 0xa2a   : > { %v5923_v57 = vmax.f32 %v5921_v61, %v11471_v38  ;;  %v11474_v4 = vpop.f32.mrb[141].mxu0 }
 0xa2b   : > { %12996 = vst [vmem:[#allocation77_spill] sm:$0xff] %v11474_v4  ;;  %v5960_v28 = vmax.f32 %v5958_v6, %v11474_v4  ;;  %v11477_v46 = vpop.f32.mrb[142].mxu0 }
 0xa2c   : > { %v5924_v20 = vmax.f32 %v5922_v1, %v11477_v46  ;;  %v11480_v51 = vpop.f32.mrb[143].mxu0 }
 0xa2d   : > { %12997 = vst [vmem:[#allocation79_spill] sm:$0xff] %v11480_v51  ;;  %v5961_v44 = vmax.f32 %v5959_v50, %v11480_v51 }
 0xa31   : > { %v11483_v14 = vpop.f32.mrb[144].mxu0 }
 0xa32   : > { %v5925_v54 = vmax.f32 %v5923_v57, %v11483_v14  ;;  %v11486_v7 = vpop.f32.mrb[145].mxu0 }
 0xa33   : > { %12998 = vst [vmem:[#allocation48_spill] sm:$0xff] %v11486_v7  ;;  %v5962_v60 = vmax.f32 %v5960_v28, %v11486_v7  ;;  %v11489_v55 = vpop.f32.mrb[146].mxu0 }
 0xa34   : > { %v5926_v23 = vmax.f32 %v5924_v20, %v11489_v55  ;;  %v11492_v45 = vpop.f32.mrb[147].mxu0 }
 0xa35   : > { %12999 = vst [vmem:[#allocation51_spill] sm:$0xff] %v11492_v45  ;;  %v5963_v13 = vmax.f32 %v5961_v44, %v11492_v45 }
 0xa39   : > { %v11495_v32 = vpop.f32.mrb[148].mxu0 }
 0xa3a   : > { %v5927_v61 = vmax.f32 %v5925_v54, %v11495_v32  ;;  %v11498_v6 = vpop.f32.mrb[149].mxu0 }
 0xa3b   : > { %13000 = vst [vmem:[#allocation57_spill] sm:$0xff] %v11498_v6  ;;  %v5964_v1 = vmax.f32 %v5962_v60, %v11498_v6  ;;  %v11501_v50 = vpop.f32.mrb[150].mxu0 }
 0xa3c   : > { %v5928_v57 = vmax.f32 %v5926_v23, %v11501_v50  ;;  %v11504_v28 = vpop.f32.mrb[151].mxu0 }
 0xa3d   : > { %13001 = vst [vmem:[#allocation59_spill] sm:$0xff] %v11504_v28  ;;  %v5965_v20 = vmax.f32 %v5963_v13, %v11504_v28 }
 0xa41   : > { %v11507_v0 = vpop.f32.mrb[152].mxu0 }
 0xa42   : > { %v5929_v44 = vmax.f32 %v5927_v61, %v11507_v0  ;;  %v11510_v10 = vpop.f32.mrb[153].mxu0 }
 0xa43   : > { %13002 = vst [vmem:[#allocation54_spill] sm:$0xff] %v11510_v10  ;;  %v5966_v54 = vmax.f32 %v5964_v1, %v11510_v10  ;;  %v11513_v31 = vpop.f32.mrb[154].mxu0 }
 0xa44   : > { %v5930_v60 = vmax.f32 %v5928_v57, %v11513_v31  ;;  %v11516_v58 = vpop.f32.mrb[155].mxu0 }
 0xa45   : > { %13003 = vst [vmem:[#allocation24_spill] sm:$0xff] %v11516_v58  ;;  %v5967_v23 = vmax.f32 %v5965_v20, %v11516_v58 }
 0xa49   : > { %v11519_v62 = vpop.f32.mrb[156].mxu0 }
 0xa4a   : > { %v5931_v13 = vmax.f32 %v5929_v44, %v11519_v62  ;;  %v11522_v49 = vpop.f32.mrb[157].mxu0 }
 0xa4b   : > { %13004 = vst [vmem:[#allocation33_spill] sm:$0xff] %v11522_v49  ;;  %v5968_v61 = vmax.f32 %v5966_v54, %v11522_v49  ;;  %v11525_v24 = vpop.f32.mrb[158].mxu0 }
 0xa4c   : > { %v5932_v1 = vmax.f32 %v5930_v60, %v11525_v24  ;;  %v11528_v10 = vpop.f32.mrb[159].mxu0 }
 0xa4d   : > { %13005 = vst [vmem:[#allocation35_spill] sm:$0xff] %v11528_v10  ;;  %v5969_v57 = vmax.f32 %v5967_v23, %v11528_v10 }
 0xa51   : > { %v11531_v28 = vpop.f32.mrb[160].mxu0 }
 0xa52   : > { %v5933_v20 = vmax.f32 %v5931_v13, %v11531_v28  ;;  %v11534_v58 = vpop.f32.mrb[161].mxu0 }
 0xa53   : > { %13006 = vst [vmem:[#allocation37_spill] sm:$0xff] %v11534_v58  ;;  %v5970_v44 = vmax.f32 %v5968_v61, %v11534_v58  ;;  %v11537_v6 = vpop.f32.mrb[162].mxu0 }
 0xa54   : > { %v5934_v54 = vmax.f32 %v5932_v1, %v11537_v6  ;;  %v11540_v49 = vpop.f32.mrb[163].mxu0 }
 0xa55   : > { %13007 = vst [vmem:[#allocation39_spill] sm:$0xff] %v11540_v49  ;;  %v5971_v60 = vmax.f32 %v5969_v57, %v11540_v49 }
 0xa59   : > { %v11543_v45 = vpop.f32.mrb[164].mxu0 }
 0xa5a   : > { %v5935_v23 = vmax.f32 %v5933_v20, %v11543_v45  ;;  %v11546_v10 = vpop.f32.mrb[165].mxu0 }
 0xa5b   : > { %13008 = vst [vmem:[#allocation26_spill] sm:$0xff] %v11546_v10  ;;  %v5972_v13 = vmax.f32 %v5970_v44, %v11546_v10  ;;  %v11549_v7 = vpop.f32.mrb[166].mxu0 }
 0xa5c   : > { %v5936_v61 = vmax.f32 %v5934_v54, %v11549_v7  ;;  %v11552_v58 = vpop.f32.mrb[167].mxu0 }
 0xa5d   : > { %13009 = vst [vmem:[#allocation28_spill] sm:$0xff] %v11552_v58  ;;  %v5973_v1 = vmax.f32 %v5971_v60, %v11552_v58 }
 0xa5e   : > { %v5937_v51 = vmax.f32 %v5935_v23, %v5936_v61 }
 0xa5f   : > { %v5974_v4 = vmax.f32 %v5972_v13, %v5973_v1 }
 0xa60   : > { %v5938_v59 = vrot.slane %v5937_v51, 4 }
 0xa61   : > { %v5975_v57 = vrot.slane %v5974_v4, 4 }
 0xa62   : > { %v5939_v49 = vmax.f32 %v5937_v51, %v5938_v59 }
 0xa63   : > { %v5976_v34 = vmax.f32 %v5974_v4, %v5975_v57 }
 0xa64   : > { %v5940_v47 = vrot.slane %v5939_v49, 2 }
 0xa65   : > { %v5977_v20 = vrot.slane %v5976_v34, 2 }
 0xa66   : > { %v5941_v16 = vmax.f32 %v5939_v49, %v5940_v47  ;;  %v13029_v47 = vld [vmem:[#allocation26_spill] sm:$0xff] }
 0xa67   : > { %v5978_v30 = vmax.f32 %v5976_v34, %v5977_v20 }
 0xa68   : > { %v5942_v3 = vrot.slane %v5941_v16, 1 }
 0xa69   : > { %v5979_v44 = vrot.slane %v5978_v30, 1 }
 0xa6a   : > { %v11555_v10 = vmax.f32 %v5941_v16, %v5942_v3 }
 0xa6b   : > { %v11557_v22 = vmax.f32 %v5978_v30, %v5979_v44 }
 0xa6c   : > { %v5981_v54 = vsub.f32 %v11363_v40, %v11555_v10  ;;  %v5983_v60 = vsub.f32 %v11367_v63, %v11555_v10  ;;  %v5985_v59 = vsub.f32 %v11371_v33, %v11555_v10  ;;  %v5987_v4 = vsub.f32 %v11379_v35, %v11555_v10 }
 0xa6d   : > { %v5989_v49 = vsub.f32 %v11387_v5, %v11555_v10  ;;  %v5991_v3 = vsub.f32 %v11393_v41, %v11555_v10  ;;  %v5993_v30 = vsub.f32 %v11399_v29, %v11555_v10  ;;  %v5995_v40 = vsub.f32 %v11405_v39, %v11555_v10 }
 0xa6e   : > { %v5997_v63 = vsub.f32 %v11411_v48, %v11555_v10  ;;  %v5999_v33 = vsub.f32 %v11417_v2, %v11555_v10  ;;  %v6001_v35 = vsub.f32 %v11423_v12, %v11555_v10  ;;  %v6003_v5 = vsub.f32 %v11429_v25, %v11555_v10 }
 0xa6f   : > { %v6005_v41 = vsub.f32 %v11435_v18, %v11555_v10  ;;  %v6007_v29 = vsub.f32 %v11441_v53, %v11555_v10  ;;  %v6009_v39 = vsub.f32 %v11447_v21, %v11555_v10  ;;  %v6011_v48 = vsub.f32 %v11453_v27, %v11555_v10 }
 0xa70   : > { %v6013_v2 = vsub.f32 %v11459_v56, %v11555_v10  ;;  %v6015_v12 = vsub.f32 %v11465_v11, %v11555_v10  ;;  %v6017_v25 = vsub.f32 %v11471_v38, %v11555_v10  ;;  %v6019_v18 = vsub.f32 %v11477_v46, %v11555_v10 }
 0xa71   : > { %v6021_v53 = vsub.f32 %v11483_v14, %v11555_v10  ;;  %v6023_v21 = vsub.f32 %v11489_v55, %v11555_v10  ;;  %v6025_v16 = vsub.f32 %v11495_v32, %v11555_v10  ;;  %v6027_v27 = vsub.f32 %v11501_v50, %v11555_v10 }
 0xa72   : > { %v6045_v55 = vmul.f32 1.442695, %v5981_v54  ;;  %v6049_v32 = vmul.f32 1.442695, %v5983_v60  ;;  %v6053_v50 = vmul.f32 1.442695, %v5985_v59 }
 0xa73   : > { %v6057_v13 = vmul.f32 1.442695, %v5987_v4  ;;  %v6061_v1 = vmul.f32 1.442695, %v5989_v49  ;;  %v6065_v57 = vmul.f32 1.442695, %v5991_v3 }
 0xa74   : > { %7308 = vpow2.f32 %v6045_v55  ;;  %v6069_v20 = vmul.f32 1.442695, %v5993_v30  ;;  %v6073_v44 = vmul.f32 1.442695, %v5995_v40  ;;  %v6077_v51 = vmul.f32 1.442695, %v5997_v63 }
 0xa75   : > { %7310 = vpow2.f32 %v6049_v32  ;;  %v6081_v14 = vmul.f32 1.442695, %v5999_v33  ;;  %v6085_v54 = vmul.f32 1.442695, %v6001_v35  ;;  %v6089_v60 = vmul.f32 1.442695, %v6003_v5 }
 0xa76   : > { %7312 = vpow2.f32 %v6053_v50  ;;  %v6093_v59 = vmul.f32 1.442695, %v6005_v41  ;;  %v6097_v23 = vmul.f32 1.442695, %v6007_v29  ;;  %v6101_v4 = vmul.f32 1.442695, %v6009_v39 }
 0xa77   : > { %7314 = vpow2.f32 %v6057_v13  ;;  %v6105_v46 = vmul.f32 1.442695, %v6011_v48  ;;  %v6109_v61 = vmul.f32 1.442695, %v6013_v2  ;;  %v6113_v55 = vmul.f32 1.442695, %v6015_v12 }
 0xa78   : > { %7316 = vpow2.f32 %v6061_v1  ;;  %v6117_v49 = vmul.f32 1.442695, %v6017_v25  ;;  %v6121_v3 = vmul.f32 1.442695, %v6019_v18  ;;  %v6125_v32 = vmul.f32 1.442695, %v6021_v53 }
 0xa79   : > { %7318 = vpow2.f32 %v6065_v57  ;;  %v11627_v30 = vmul.f32 1.442695, %v6023_v21  ;;  %v11629_v40 = vmul.f32 1.442695, %v6025_v16  ;;  %v11631_v63 = vmul.f32 1.442695, %v6027_v27 }
 0xa7a   : > { %7320 = vpow2.f32 %v6069_v20  ;;  %v13010_v53 = vld [vmem:[#allocation78_spill] sm:$0xff]  ;;  %v13012_v50 = vld [vmem:[#allocation49_spill] sm:$0xff]  ;;  %v13016_v18 = vld [vmem:[#allocation75_spill] sm:$0xff] }
 0xa7b   : > { %7322 = vpow2.f32 %v6073_v44  ;;  %v13013_v57 = vld [vmem:[#allocation53_spill] sm:$0xff]  ;;  %v13014_v44 = vld [vmem:[#allocation58_spill] sm:$0xff]  ;;  %v13018_v20 = vld [vmem:[#allocation79_spill] sm:$0xff] }
 0xa7c   : > { %7324 = vpow2.f32 %v6077_v51  ;;  %v13011_v51 = vld [vmem:[#allocation47_spill] sm:$0xff]  ;;  %v13017_v25 = vld [vmem:[#allocation77_spill] sm:$0xff]  ;;  %v13019_v48 = vld [vmem:[#allocation48_spill] sm:$0xff] }
 0xa7d   : > { %7326 = vpow2.f32 %v6081_v14  ;;  %v13020_v39 = vld [vmem:[#allocation51_spill] sm:$0xff]  ;;  %v13021_v13 = vld [vmem:[#allocation57_spill] sm:$0xff]  ;;  %v13024_v33 = vld [vmem:[#allocation24_spill] sm:$0xff] }
 0xa7e   : > { %v11641_v29 = vpop.eup %7308  ;;  %7328 = vpow2.f32 %v6085_v54  ;;  %v13022_v5 = vld [vmem:[#allocation59_spill] sm:$0xff]  ;;  %v13023_v54 = vld [vmem:[#allocation54_spill] sm:$0xff] }
 0xa7f   : > { %v11649_v12 = vpop.eup %7310  ;;  %7330 = vpow2.f32 %v6089_v60  ;;  %v13015_v60 = vld [vmem:[#allocation73_spill] sm:$0xff] }
 0xa80   : > { %v11657_v16 = vpop.eup %7312  ;;  %7332 = vpow2.f32 %v6093_v59  ;;  %v6173_v27 = vadd.f32 %v11649_v12, %v11641_v29  ;;  %v13028_v59 = vld [vmem:[#allocation39_spill] sm:$0xff] }
 0xa81   : > { %v11665_v1 = vpop.eup %7314  ;;  %7334 = vpow2.f32 %v6097_v23  ;;  %v13026_v23 = vld [vmem:[#allocation35_spill] sm:$0xff] }
 0xa82   : > { %v11673_v21 = vpop.eup %7316  ;;  %7336 = vpow2.f32 %v6101_v4  ;;  %v6174_v14 = vadd.f32 %v11657_v16, %v6173_v27 }
 0xa83   : > { %v11680_v2 = vpop.eup %7318  ;;  %7338 = vpow2.f32 %v6105_v46 }
 0xa84   : > { %v11688_v41 = vpop.eup %7320  ;;  %7340 = vpow2.f32 %v6109_v61  ;;  %v6175_v27 = vadd.f32 %v11665_v1, %v6174_v14 }
 0xa85   : > { %v11695_v35 = vpop.eup %7322  ;;  %7342 = vpow2.f32 %v6113_v55 }
 0xa86   : > { %v11703_v11 = vpop.eup %7324  ;;  %7344 = vpow2.f32 %v6117_v49  ;;  %v6176_v14 = vadd.f32 %v11673_v21, %v6175_v27  ;;  %v13030_v27 = vsub.f32 %v11507_v0, %v11555_v10 }
 0xa87   : > { %v11710_v56 = vpop.eup %7326  ;;  %7346 = vpow2.f32 %v6121_v3  ;;  %v13031_v3 = vsub.f32 %v11513_v31, %v11555_v10 }
 0xa88   : > { %v11718_v38 = vpop.eup %7328  ;;  %7348 = vpow2.f32 %v6125_v32  ;;  %v6141_v46 = vmul.f32 1.442695, %v13030_v27  ;;  %v6177_v55 = vadd.f32 %v11680_v2, %v6176_v14  ;;  %v13032_v32 = vsub.f32 %v11519_v62, %v11555_v10 }
 0xa89   : > { %v11724_v34 = vpop.eup %7330  ;;  %7350 = vpow2.f32 %v11627_v30  ;;  %v6145_v61 = vmul.f32 1.442695, %v13031_v3  ;;  %v13033_v30 = vsub.f32 %v11525_v24, %v11555_v10  ;;  %v13037_v24 = vsub.f32 %v11543_v45, %v11555_v10 }
 0xa8a   : > { %v11730_v4 = vpop.eup %7332  ;;  %7352 = vpow2.f32 %v11629_v40  ;;  %v6149_v49 = vmul.f32 1.442695, %v13032_v32  ;;  %v6178_v0 = vadd.f32 %v11688_v41, %v6177_v55  ;;  %v13034_v40 = vsub.f32 %v11531_v28, %v11555_v10 }
 0xa8b   : > { %v11737_v27 = vpop.eup %7334  ;;  %7354 = vpow2.f32 %v11631_v63  ;;  %v6153_v14 = vmul.f32 1.442695, %v13033_v30  ;;  %v13035_v55 = vsub.f32 %v11537_v6, %v11555_v10 }
 0xa8c   : > { %v11743_v31 = vpop.eup %7336  ;;  %7356 = vpow2.f32 %v6141_v46  ;;  %v6157_v3 = vmul.f32 1.442695, %v13034_v40  ;;  %v6179_v62 = vadd.f32 %v11695_v35, %v6178_v0  ;;  %v6165_v46 = vmul.f32 1.442695, %v13037_v24 }
 0xa8d   : > { %v11749_v32 = vpop.eup %7338  ;;  %7358 = vpow2.f32 %v6145_v61  ;;  %v6161_v63 = vmul.f32 1.442695, %v13035_v55  ;;  %v13038_v0 = vsub.f32 %v11549_v7, %v11555_v10  ;;  %v13041_v10 = vsub.f32 %v11375_v8, %v11557_v22 }
 0xa8e   : > { %v11754_v58 = vpop.eup %7340  ;;  %7360 = vpow2.f32 %v6149_v49  ;;  %v6180_v30 = vadd.f32 %v11703_v11, %v6179_v62  ;;  %v13039_v49 = vsub.f32 %v11365_v42, %v11557_v22  ;;  %v13040_v62 = vsub.f32 %v11369_v19, %v11557_v22 }
 0xa8f   : > { %13036 = vst [vmem:[#allocation30_spill] sm:$0xff] %v11754_v58  ;;  %v11760_v28 = vpop.eup %7342  ;;  %7362 = vpow2.f32 %v6153_v14  ;;  %v6169_v61 = vmul.f32 1.442695, %v13038_v0  ;;  %v6055_v7 = vmul.f32 1.442695, %v13041_v10  ;;  %v13042_v42 = vsub.f32 %v11383_v37, %v11557_v22 }
 0xa90   : > { %v11765_v40 = vpop.eup %7344  ;;  %7364 = vpow2.f32 %v6157_v3  ;;  %v6181_v6 = vadd.f32 %v11710_v56, %v6180_v30  ;;  %v6047_v55 = vmul.f32 1.442695, %v13039_v49  ;;  %v6051_v14 = vmul.f32 1.442695, %v13040_v62 }
 0xa91   : > { %v11771_v45 = vpop.eup %7346  ;;  %7366 = vpow2.f32 %v6161_v63  ;;  %v6059_v30 = vmul.f32 1.442695, %v13042_v42  ;;  %v13043_v63 = vsub.f32 %v11390_v52, %v11557_v22  ;;  %v13044_v19 = vsub.f32 %v11396_v17, %v11557_v22 }
 0xa92   : > { %v11779_v24 = vpop.eup %7348  ;;  %7368 = vpow2.f32 %v6165_v46  ;;  %v6182_v3 = vadd.f32 %v11718_v38, %v6181_v6  ;;  %v13045_v46 = vsub.f32 %v11402_v9, %v11557_v22  ;;  %v13046_v6 = vsub.f32 %v11408_v26, %v11557_v22 }
 0xa93   : > { %v6063_v0 = vmul.f32 1.442695, %v13043_v63  ;;  %v11788_v49 = vpop.eup %7350  ;;  %7370 = vpow2.f32 %v6169_v61  ;;  %v6067_v8 = vmul.f32 1.442695, %v13044_v19  ;;  %v13047_v61 = vsub.f32 %v11414_v36, %v11557_v22 }
 0xa94   : > { %v6071_v62 = vmul.f32 1.442695, %v13045_v46  ;;  %v6075_v37 = vmul.f32 1.442695, %v13046_v6  ;;  %v11799_v10 = vpop.eup %7352  ;;  %v6183_v52 = vadd.f32 %v11724_v34, %v6182_v3  ;;  %7372 = vpow2.f32 %v6047_v55 }
 0xa95   : > { %v6079_v42 = vmul.f32 1.442695, %v13047_v61  ;;  %v13048_v17 = vsub.f32 %v11420_v43, %v11557_v22  ;;  %v11808_v19 = vpop.eup %7354  ;;  %7374 = vpow2.f32 %v6051_v14 }
 0xa96   : > { %v11816_v3 = vpop.eup %7356  ;;  %v6184_v36 = vadd.f32 %v11730_v4, %v6183_v52  ;;  %7376 = vpow2.f32 %v6055_v7 }
 0xa97   : > { %v6083_v63 = vmul.f32 1.442695, %v13048_v17  ;;  %v11823_v46 = vpop.eup %7358  ;;  %7378 = vpow2.f32 %v6059_v30  ;;  %v13049_v30 = vsub.f32 %v11426_v15, %v11557_v22  ;;  %v13050_v17 = vsub.f32 %v13010_v53, %v11557_v22 }
 0xa98   : > { %v11831_v52 = vpop.eup %7360  ;;  %v6185_v7 = vadd.f32 %v11737_v27, %v6184_v36  ;;  %7380 = vpow2.f32 %v6063_v0 }
 0xa99   : > { %v11838_v43 = vpop.eup %7362  ;;  %7382 = vpow2.f32 %v6067_v8  ;;  %v6087_v14 = vmul.f32 1.442695, %v13049_v30  ;;  %v6091_v61 = vmul.f32 1.442695, %v13050_v17 }
 0xa9a   : > { %v11846_v36 = vpop.eup %7364  ;;  %v6186_v0 = vadd.f32 %v11743_v31, %v6185_v7  ;;  %7384 = vpow2.f32 %v6071_v62  ;;  %v13051_v62 = vsub.f32 %v13011_v51, %v11557_v22  ;;  %v13056_v51 = vsub.f32 %v13016_v18, %v11557_v22 }
 0xa9b   : > { %v11854_v55 = vpop.eup %7366  ;;  %7386 = vpow2.f32 %v6075_v37  ;;  %v13052_v37 = vsub.f32 %v13012_v50, %v11557_v22  ;;  %v13055_v50 = vsub.f32 %v13015_v60, %v11557_v22  ;;  %v13059_v18 = vsub.f32 %v13019_v48, %v11557_v22 }
 0xa9c   : > { %v11859_v6 = vpop.eup %7368  ;;  %v6187_v26 = vadd.f32 %v11749_v32, %v6186_v0  ;;  %7388 = vpow2.f32 %v6079_v42  ;;  %v6095_v15 = vmul.f32 1.442695, %v13051_v62  ;;  %v13053_v42 = vsub.f32 %v13013_v57, %v11557_v22 }
 0xa9d   : > { %v11867_v30 = vpop.eup %7370  ;;  %7390 = vpow2.f32 %v6083_v63  ;;  %v6099_v53 = vmul.f32 1.442695, %v13052_v37  ;;  %v13054_v63 = vsub.f32 %v13014_v44, %v11557_v22  ;;  %v6111_v37 = vmul.f32 1.442695, %v13055_v50 }
 0xa9e   : > { %v7373_v17 = vpop.eup %7372  ;;  %v6188_v8 = vadd.f32 %v11754_v58, %v6187_v26  ;;  %7392 = vpow2.f32 %v6087_v14  ;;  %v6103_v0 = vmul.f32 1.442695, %v13053_v42  ;;  %v13057_v44 = vsub.f32 %v13017_v25, %v11557_v22 }
 0xa9f   : > { %v7375_v62 = vpop.eup %7374  ;;  %7394 = vpow2.f32 %v6091_v61  ;;  %v6107_v7 = vmul.f32 1.442695, %v13054_v63  ;;  %v6115_v61 = vmul.f32 1.442695, %v13056_v51  ;;  %v6127_v51 = vmul.f32 1.442695, %v13059_v18 }
 0xaa0   : > { %v7377_v9 = vpop.eup %7376  ;;  %v6189_v26 = vadd.f32 %v11760_v28, %v6188_v8  ;;  %7396 = vpow2.f32 %v6095_v15  ;;  %v6210_v14 = vadd.f32 %v7375_v62, %v7373_v17  ;;  %v6248_v57 = vpack.c.bf16 %v7375_v62, %v7373_v17 }
 0xaa1   : > { %v7379_v42 = vpop.eup %7378  ;;  %7398 = vpow2.f32 %v6099_v53  ;;  %v6119_v63 = vmul.f32 1.442695, %v13057_v44  ;;  %v13058_v53 = vsub.f32 %v13018_v20, %v11557_v22  ;;  %v13060_v25 = vpack.c.bf16 %v11649_v12, %v11641_v29 }
 0xaa2   : > { %v7381_v58 = vpop.eup %7380  ;;  %v6190_v60 = vadd.f32 %v11765_v40, %v6189_v26  ;;  %7400 = vpow2.f32 %v6103_v0  ;;  %v6211_v50 = vadd.f32 %v7377_v9, %v6210_v14  ;;  %6279 = vmatprep.subr.bf16.mxu1 %v6248_v57  ;;  %v6250_v8 = vpack.c.bf16 %v7379_v42, %v7377_v9 }
 0xaa3   : > { %v7383_v15 = vpop.eup %7382  ;;  %7402 = vpow2.f32 %v6107_v7  ;;  %v6123_v17 = vmul.f32 1.442695, %v13058_v53  ;;  %6280 = vmatpush1.bf16.msra.mxu1 %v13060_v25  ;;  %v13061_v20 = vsub.f32 %v13020_v39, %v11557_v22  ;;  %v13062_v48 = vsub.f32 %v13021_v13, %v11557_v22  ;;  %v13067_v25 = vld [vmem:[#allocation33_spill] sm:$0xff] }
 0xaa4   : > { %v7385_v62 = vpop.eup %7384  ;;  %v6191_v0 = vadd.f32 %v11771_v45, %v6190_v60  ;;  %7404 = vpow2.f32 %v6111_v37  ;;  %v6212_v26 = vadd.f32 %v7379_v42, %v6211_v50  ;;  %6281 = vmatprep.subr.bf16.mxu1 %v6250_v8  ;;  %v6252_v9 = vpack.c.bf16 %v7383_v15, %v7381_v58 }
 0xaa5   : > { %v7387_v7 = vpop.eup %7386  ;;  %7406 = vpow2.f32 %v6115_v61  ;;  %v6131_v14 = vmul.f32 1.442695, %v13061_v20  ;;  %v6135_v57 = vmul.f32 1.442695, %v13062_v48  ;;  %v13063_v42 = vsub.f32 %v13022_v5, %v11557_v22 }
 0xaa6   : > { %v7389_v44 = vpop.eup %7388  ;;  %v6192_v29 = vadd.f32 %v11779_v24, %v6191_v0  ;;  %7408 = vpow2.f32 %v6119_v63  ;;  %v6213_v12 = vadd.f32 %v7381_v58, %v6212_v26  ;;  %v6254_v60 = vpack.c.bf16 %v7387_v7, %v7385_v62 }
 0xaa7   : > { %v7391_v37 = vpop.eup %7390  ;;  %7410 = vpow2.f32 %v6123_v17  ;;  %v6139_v61 = vmul.f32 1.442695, %v13063_v42  ;;  %v13064_v39 = vsub.f32 %v13023_v54, %v11557_v22  ;;  %v13065_v13 = vpack.c.bf16 %v11665_v1, %v11657_v16 }
 0xaa8   : > { %v7393_v8 = vpop.eup %7392  ;;  %v6193_v53 = vadd.f32 %v11788_v49, %v6192_v29  ;;  %7412 = vpow2.f32 %v6127_v51  ;;  %v6214_v58 = vadd.f32 %v7383_v15, %v6213_v12  ;;  %v6256_v63 = vpack.c.bf16 %v7391_v37, %v7389_v44 }
 0xaa9   : > { %v6143_v50 = vmul.f32 1.442695, %v13064_v39  ;;  %6282 = vmatpush1.bf16.msra.mxu1 %v13065_v13  ;;  %v7395_v17 = vpop.eup %7394  ;;  %7414 = vpow2.f32 %v6131_v14  ;;  %v13066_v5 = vsub.f32 %v13024_v33, %v11557_v22  ;;  %v13068_v54 = vsub.f32 %v13067_v25, %v11557_v22  ;;  %v13070_v14 = vld [vmem:[#allocation37_spill] sm:$0xff] }
 0xaaa   : > { %6283 = vmatprep.subr.bf16.mxu1 %v6252_v9  ;;  %v7397_v26 = vpop.eup %7396  ;;  %v6194_v16 = vadd.f32 %v11799_v10, %v6193_v53  ;;  %7416 = vpow2.f32 %v6135_v57  ;;  %v6215_v1 = vadd.f32 %v7385_v62, %v6214_v58  ;;  %v6258_v20 = vpack.c.bf16 %v7395_v17, %v7393_v8 }
 0xaab   : > { %v6147_v18 = vmul.f32 1.442695, %v13066_v5  ;;  %v6151_v0 = vmul.f32 1.442695, %v13068_v54  ;;  %v7399_v51 = vpop.eup %7398  ;;  %7418 = vpow2.f32 %v6139_v61  ;;  %v13069_v15 = vsub.f32 %v13026_v23, %v11557_v22 }
 0xaac   : > { %v13071_v33 = vsub.f32 %v13070_v14, %v11557_v22  ;;  %v13072_v29 = vpack.c.bf16 %v11680_v2, %v11673_v21  ;;  %v7401_v12 = vpop.eup %7400  ;;  %v6195_v42 = vadd.f32 %v11808_v19, %v6194_v16  ;;  %7420 = vpow2.f32 %v6143_v50 }
 0xaad   : > { %v6155_v9 = vmul.f32 1.442695, %v13069_v15  ;;  %v6216_v62 = vadd.f32 %v7387_v7, %v6215_v1  ;;  %v6260_v57 = vpack.c.bf16 %v7399_v51, %v7397_v26  ;;  %v7403_v61 = vpop.eup %7402  ;;  %7422 = vpow2.f32 %v6147_v18  ;;  %v13075_v7 = vld [vmem:[#allocation28_spill] sm:$0xff] }
 0xaae   : > { %v6159_v48 = vmul.f32 1.442695, %v13071_v33  ;;  %6284 = vmatpush1.bf16.msra.mxu1 %v13072_v29  ;;  %v13073_v23 = vsub.f32 %v13028_v59, %v11557_v22  ;;  %v13074_v13 = vsub.f32 %v13029_v47, %v11557_v22  ;;  %v7405_v58 = vpop.eup %7404  ;;  %v6196_v2 = vadd.f32 %v11816_v3, %v6195_v42 }
 0xaaf   : > { %6285 = vmatprep.subr.bf16.mxu1 %v6254_v60  ;;  %7424 = vpow2.f32 %v6151_v0  ;;  %v6217_v21 = vadd.f32 %v7389_v44, %v6216_v62  ;;  %v6262_v5 = vpack.c.bf16 %v7403_v61, %v7401_v12  ;;  %v7407_v50 = vpop.eup %7406  ;;  %v13076_v60 = vsub.f32 %v13075_v7, %v11557_v22 }
 0xab0   : > { %v6163_v39 = vmul.f32 1.442695, %v13073_v23  ;;  %v6167_v53 = vmul.f32 1.442695, %v13074_v13  ;;  %7426 = vpow2.f32 %v6155_v9  ;;  %v13077_v59 = vpack.c.bf16 %v11695_v35, %v11688_v41  ;;  %v7409_v25 = vpop.eup %7408 }
 0xab1   : > { %v6171_v18 = vmul.f32 1.442695, %v13076_v60  ;;  %v6197_v47 = vadd.f32 %v11823_v46, %v6196_v2  ;;  %7428 = vpow2.f32 %v6159_v48  ;;  %v6218_v54 = vadd.f32 %v7391_v37, %v6217_v21  ;;  %v7411_v0 = vpop.eup %7410 }
 0xab2   : > { %6286 = vmatpush1.bf16.msra.mxu1 %v13077_v59  ;;  %v6264_v16 = vpack.c.bf16 %v7407_v50, %v7405_v58  ;;  %7430 = vpow2.f32 %v6163_v39  ;;  %v7413_v44 = vpop.eup %7412  ;;  %v6266_v22 = vpack.c.bf16 %v7411_v0, %v7409_v25  ;;  %v13078_v35 = vpack.c.bf16 %v11710_v56, %v11703_v11 }
 0xab3   : > { %6287 = vmatprep.subr.bf16.mxu1 %v6256_v63  ;;  %v6198_v1 = vadd.f32 %v11831_v52, %v6197_v47  ;;  %7432 = vpow2.f32 %v6167_v53  ;;  %v6219_v15 = vadd.f32 %v7393_v8, %v6218_v54  ;;  %v7415_v9 = vpop.eup %7414  ;;  %v13079_v23 = vpack.c.bf16 %v11724_v34, %v11718_v38 }
 0xab4   : > { %7434 = vpow2.f32 %v6171_v18  ;;  %v7417_v41 = vpop.eup %7416  ;;  %v6268_v63 = vpack.c.bf16 %v7415_v9, %v7413_v44  ;;  %v13081_v47 = vpack.c.bf16 %v11749_v32, %v11743_v31  ;;  %v13085_v31 = vpack.c.bf16 %v11788_v49, %v11779_v24 }
 0xab5   : > { %v6199_v14 = vadd.f32 %v11838_v43, %v6198_v1  ;;  %v6220_v37 = vadd.f32 %v7395_v17, %v6219_v15  ;;  %v7419_v33 = vpop.eup %7418  ;;  %v13082_v1 = vld [vmem:[#allocation30_spill] sm:$0xff]  ;;  %v13088_v24 = vpack.c.bf16 %v11838_v43, %v11831_v52  ;;  %v13095_v43 = vld [vmem:[#allocation56_spill] sm:$0xff] }
 0xab6   : > { %6288 = vmatpush1.bf16.msra.mxu1 %v13078_v35  ;;  %v7421_v48 = vpop.eup %7420  ;;  %v6270_v62 = vpack.c.bf16 %v7419_v33, %v7417_v41  ;;  %v13094_v35 = vld [vmem:[#allocation55_spill] sm:$0xff] }
 0xab7   : > { %6289 = vmatprep.subr.bf16.mxu1 %v6258_v20  ;;  %v6200_v29 = vadd.f32 %v11846_v36, %v6199_v14  ;;  %v6221_v42 = vadd.f32 %v7397_v26, %v6220_v37  ;;  %v7423_v8 = vpop.eup %7422  ;;  %v13080_v26 = vpack.c.bf16 %v11737_v27, %v11730_v4  ;;  %v13083_v4 = vpack.c.bf16 %v11760_v28, %v13082_v1  ;;  %v13098_v14 = vld [vmem:[#allocation9_spill] sm:$0xff] }
 0xab8   : > { %v6272_v13 = vpack.c.bf16 %v7423_v8, %v7421_v48  ;;  %v13086_v28 = vpack.c.bf16 %v11808_v19, %v11799_v10  ;;  %v13089_v10 = vpack.c.bf16 %v11854_v55, %v11846_v36  ;;  %v13096_v52 = vpack.c.bf16 %v13094_v35, %v13095_v43  ;;  %v13101_v36 = vld [vmem:[#allocation31_spill] sm:$0xff] }
 0xab9   : > { %v7425_v39 = vpop.eup %7424  ;;  %v6201_v56 = vadd.f32 %v11854_v55, %v6200_v29  ;;  %v6222_v11 = vadd.f32 %v7399_v51, %v6221_v42  ;;  %v13100_v55 = vmov 0   ;;  %v13107_v29 = vld [vmem:[#allocation76_spill] sm:$0xff] }
 0xaba   : > { %6290 = vmatpush1.bf16.msra.mxu1 %v13079_v23  ;;  %v7427_v17 = vpop.eup %7426  ;;  %v13108_v42 = vld [vmem:[#allocation72_spill] sm:$0xff]  ;;  %v13111_v23 = vld [vmem:[#allocation43_spill] sm:$0xff] }
 0xabb   : > { %6291 = vmatprep.subr.bf16.mxu1 %v6260_v57  ;;  %v7429_v20 = vpop.eup %7428  ;;  %v6202_v53 = vadd.f32 %v11859_v6, %v6201_v56  ;;  %v6223_v2 = vadd.f32 %v7401_v12, %v6222_v11  ;;  %v6274_v21 = vpack.c.bf16 %v7427_v17, %v7425_v39 }
 0xabc   : > { %v7431_v7 = vpop.eup %7430 }
 0xabd   : > { %v7433_v60 = vpop.eup %7432  ;;  %v6203_v34 = vadd.f32 %v11867_v30, %v6202_v53  ;;  %v6224_v38 = vadd.f32 %v7403_v61, %v6223_v2  ;;  %v6276_v18 = vpack.c.bf16 %v7431_v7, %v7429_v20  ;;  %v13084_v61 = vpack.c.bf16 %v11771_v45, %v11765_v40 }
 0xabe   : > { %6292 = vmatpush1.bf16.msra.mxu1 %v13080_v26  ;;  %v7435_v51 = vpop.eup %7434  ;;  %v13087_v40 = vpack.c.bf16 %v11823_v46, %v11816_v3  ;;  %v13090_v3 = vpack.c.bf16 %v11867_v30, %v11859_v6  ;;  %v13091_v46 = vld [vmem:[#allocation10_spill] sm:$0xff]  ;;  %v13104_v6 = vld [vmem:[#allocation29_spill] sm:$0xff] }
 0xabf   : > { %6293 = vmatprep.subr.bf16.mxu1 %v6262_v5  ;;  %v6225_v57 = vadd.f32 %v7405_v58, %v6224_v38  ;;  %v6278_v59 = vpack.c.bf16 %v7435_v51, %v7433_v60  ;;  %v13105_v30 = vld [vmem:[#allocation25_spill] sm:$0xff]  ;;  %v6204_v56 = vrot.slane %v6203_v34, 4 }
 0xac1   : > { %v6226_v12 = vadd.f32 %v7407_v50, %v6225_v57 }
 0xac2   : > { %6294 = vmatpush1.bf16.msra.mxu1 %v13081_v47 }
 0xac3   : > { %6295 = vmatprep.subr.bf16.mxu1 %v6264_v16  ;;  %v6227_v54 = vadd.f32 %v7409_v25, %v6226_v12 }
 0xac5   : > { %v6228_v27 = vadd.f32 %v7411_v0, %v6227_v54 }
 0xac6   : > { %6296 = vmatpush1.bf16.msra.mxu1 %v13083_v4 }
 0xac7   : > { %6297 = vmatprep.subr.bf16.mxu1 %v6266_v22  ;;  %v6229_v15 = vadd.f32 %v7413_v44, %v6228_v27  ;;  %v13092_v22 = vld [vmem:[#allocation15_spill] sm:$0xff] }
 0xac9   : > { %v6230_v58 = vadd.f32 %v7415_v9, %v6229_v15  ;;  %v13093_v9 = vpack.c.bf16 %v13091_v46, %v13092_v22 }
 0xaca   : > { %6298 = vmatpush1.bf16.msra.mxu1 %v13084_v61  ;;  %v6844_v61 = vld [vmem:[%s12127_s5] sm:$0xff]  }
 0xacb   : > { %6299 = vmatprep.subr.bf16.mxu1 %v6268_v63  ;;  %v6231_v5 = vadd.f32 %v7417_v41, %v6230_v58  ;;  %v13097_v41 = vld [vmem:[#allocation13_spill] sm:$0xff]  ;;  %v13102_v63 = vld [vmem:[#allocation27_spill] sm:$0xff]  ;;  %v6845_v58 = vld [vmem:[%s12127_s5 + $0x8] sm:$0xff]  }
 0xacc   : > { %v13099_v37 = vpack.c.bf16 %v13097_v41, %v13098_v14  ;;  %v6507_v41 = vld [vmem:[%s7612_s17 + $0x20] sm:$0xff] }
 0xacd   : > { %v6232_v32 = vadd.f32 %v7419_v33, %v6231_v5  ;;  %v13103_v33 = vpack.c.bf16 %v13101_v36, %v13102_v63  ;;  %v6846_v5 = vld [vmem:[%s12127_s5 + $0x10] sm:$0xff]  }
 0xace   : > { %6300 = vmatpush1.bf16.msra.mxu1 %v13085_v31  ;;  %v6847_v31 = vld [vmem:[%s12127_s5 + $0x18] sm:$0xff]  }
 0xacf   : > { %6301 = vmatprep.subr.bf16.mxu1 %v6270_v62  ;;  %v6233_v50 = vadd.f32 %v7421_v48, %v6232_v32  ;;  %v13106_v48 = vpack.c.bf16 %v13104_v6, %v13105_v30  ;;  %v13109_v62 = vpack.c.bf16 %v13107_v29, %v13108_v42  ;;  %v6361_v32 = vpop.permute.xlu1 %6360  ;;  %v6509_v6 = vld [vmem:[%s7612_s17 + $0x30] sm:$0xff]  ;;  %v6510_v42 = vld [vmem:[%s7612_s17 + $0x38] sm:$0xff] }
 0xad1   : > { %v6234_v25 = vadd.f32 %v7423_v8, %v6233_v50  ;;  %v13110_v8 = vld [vmem:[#allocation74_spill] sm:$0xff] }
 0xad2   : > { %6302 = vmatpush1.bf16.msra.mxu1 %v13086_v28  ;;  %v6503_v28 = vld [vmem:[%s7612_s17] sm:$0xff] }
 0xad3   : > { %6303 = vmatprep.subr.bf16.mxu1 %v6272_v13  ;;  %v6235_v16 = vadd.f32 %v7425_v39, %v6234_v25  ;;  %v13112_v39 = vpack.c.bf16 %v13110_v8, %v13111_v23  ;;  %v6205_v13 = vadd.f32 %v6204_v56, %v6203_v34  ;;  %v6371_v43 = vpop.permute.xlu1 %6370 }
 0xad5   : > { %v6236_v45 = vadd.f32 %v7427_v17, %v6235_v16 }
 0xad6   : > { %6304 = vmatpush1.bf16.msra.mxu1 %v13087_v40  ;;  %v6504_v40 = vld [vmem:[%s7612_s17 + $0x8] sm:$0xff] }
 0xad7   : > { %6305 = vmatprep.subr.bf16.mxu1 %v6274_v21  ;;  %v6237_v0 = vadd.f32 %v7429_v20, %v6236_v45  ;;  %v6206_v20 = vrot.slane %v6205_v13, 2  ;;  %v6366_v45 = vpop.permute.xlu0 %6365  ;;  %v6381_v56 = vpop.permute.xlu1 %6380 }
 0xad9   : > { %v6238_v49 = vadd.f32 %v7431_v7, %v6237_v0  ;;  %v6207_v2 = vadd.f32 %v6206_v20, %v6205_v13  ;;  %v6511_v13 = vld [vmem:[%s7612_s17 + $0x40] sm:$0xff] }
 0xada   : > { %6306 = vmatpush1.bf16.msra.mxu1 %v13088_v24 }
 0xadb   : > { %6307 = vmatprep.subr.bf16.mxu1 %v6276_v18  ;;  %v6239_v44 = vadd.f32 %v7433_v60, %v6238_v49  ;;  %v6208_v7 = vrot.slane %v6207_v2, 1  ;;  %v6505_v49 = vld [vmem:[%s7612_s17 + $0x10] sm:$0xff]  ;;  %v6376_v36 = vpop.permute.xlu0 %6375 }
 0xadd   : > { %v6240_v19 = vadd.f32 %v7435_v51, %v6239_v44  ;;  %v6209_v60 = vadd.f32 %v6208_v7, %v6207_v2 }
 0xade   : > { %6308 = vmatpush1.bf16.msra.mxu1 %v13089_v10 }
 0xadf   : > { %6309 = vmatprep.subr.bf16.mxu1 %v6278_v59  ;;  %v6241_v11 = vrot.slane %v6240_v19, 4  ;;  %7436 = vrcp.f32 %v6209_v60  ;;  %v6386_v2 = vpop.permute.xlu0 %6385 }
 0xae1   : > { %v6242_v17 = vadd.f32 %v6241_v11, %v6240_v19 }
 0xae2   : > { %6310 = vmatpush1.bf16.msra.mxu1 %v13090_v3  ;;  %v6506_v3 = vld [vmem:[%s7612_s17 + $0x18] sm:$0xff] }
 0xae3   : > { %6430 = vmatprep.subr.bf16.mxu1 %v13093_v9  ;;  %v6243_v53 = vrot.slane %v6242_v17, 2 }
 0xae5   : > { %6312 = vmatmul.mubr.bf16.vlgmr.msra.gmra.mrb[148].mxu1 %v13096_v52  ;;  %v6244_v21 = vadd.f32 %v6243_v53, %v6242_v17  ;;  %v6512_v53 = vld [vmem:[%s7612_s17 + $0x48] sm:$0xff] }
 0xae6   : > { %6431 = vmatpush1.bf16.msra.mxu1 %v13099_v37  ;;  %6462 = vmatprep.mubr.bf16.mxu1 %v13100_v55 }
 0xae7   : > { %6432 = vmatprep.subr.bf16.mxu1 %v13103_v33  ;;  %v6245_v26 = vrot.slane %v6244_v21, 1 }
 0xae9   : > { %v6246_v38 = vadd.f32 %v6245_v26, %v6244_v21  ;;  %v7437_v18 = vpop.eup %7436  ;;  %v6513_v26 = vld [vmem:[%s7612_s17 + $0x50] sm:$0xff] }
 0xaea   : > { %6433 = vmatpush1.bf16.msra.mxu1 %v13106_v48 }
 0xaeb   : > { %6434 = vmatprep.subr.bf16.mxu1 %v13109_v62  ;;  %7438 = vrcp.f32 %v6246_v38 }
 0xaee   : > { %6435 = vmatpush1.bf16.msra.mxu1 %v13112_v39 }
 0xaf5   : > { %v7439_v57 = vpop.eup %7438 }
 0xbb8   : > { %v6313_v51 = vpop.f32.mrb[148].mxu1 }
 0xbb9   : > { %v6324_v59 = vmul.f32 %v7437_v18, %v6313_v51  ;;  %v6315_v47 = vpop.f32.mrb[149].mxu1  ;;  %v6514_v51 = vld [vmem:[%s7612_s17 + $0x58] sm:$0xff] }
 0xbba   : > { %v6325_v12 = vmul.f32 %v7439_v57, %v6315_v47  ;;  %v6317_v54 = vpop.f32.mrb[150].mxu1 }
 0xbbb   : > { %v6326_v1 = vmul.f32 %v7437_v18, %v6317_v54  ;;  %v6319_v34 = vpop.f32.mrb[151].mxu1  ;;  %v6391_v54 = vpop.permute.xlu1 %6390 }
 0xbbc   : > { %v6327_v4 = vmul.f32 %v7439_v57, %v6319_v34  ;;  %v6515_v34 = vld [vmem:[%s7612_s17 + $0x60] sm:$0xff] }
 0xbbd   : > { %v6328_v27 = vpack.c.bf16 %v6326_v1, %v6324_v59 }
 0xbbe   : > { %v6329_v15 = vpack.c.bf16 %v6327_v4, %v6325_v12 }
 0xbc0   : > { %6436 = vmatprep.subr.bf16.mxu1 %v6329_v15  ;;  %v6516_v15 = vld [vmem:[%s7612_s17 + $0x68] sm:$0xff] }
 0xbc1   : > { %6437 = vmatpush1.bf16.msra.mxu1 %v6328_v27 }
 0xbc4   : > { %6740 = vmatmul.mubr.msk.bf16.vlgmr.msra.gmra.mrb[152].mxu1 %vm3235_vm1, %v6844_v61  ;;  %v6396_v61 = vpop.permute.xlu0 %6395 }
 0xbc5   : > { %6472 = vmatprep.mubr.bf16.mxu1 %v13100_v55 }
 0xbcc   : > { %6741 = vmatmul.mubr.msk.bf16.gmra.mrb[156].mxu1 %vm3235_vm1, %v6845_v58 }
 0xbcd   : > { %6482 = vmatprep.mubr.bf16.mxu1 %v13100_v55 }
 0xbd4   : > { %6742 = vmatmul.mubr.msk.bf16.gmra.mrb[160].mxu1 %vm3235_vm1, %v6846_v5 }
 0xbd5   : > { %6492 = vmatprep.mubr.bf16.mxu1 %v13100_v55  ;;  %v6508_v55 = vld [vmem:[%s7612_s17 + $0x28] sm:$0xff] }
 0xbdc   : > { %6743 = vmatmul.mubr.msk.bf16.gmra.mrb[164].mxu1 %vm3235_vm1, %v6847_v31  ;;  %v6517_v31 = vld [vmem:[%s7612_s17 + $0x70] sm:$0xff] }
 0xc97   : > { %v6464_v50 = vpop.f32.mrb[152].mxu1 }
 0xc98   : > { %v6465_v25 = vadd.f32 %v6464_v50, %v6361_v32  ;;  %v6466_v16 = vpop.f32.mrb[153].mxu1 }
 0xc99   : > { %v6467_v0 = vadd.f32 %v6466_v16, %v6361_v32  ;;  %v6468_v24 = vpop.f32.mrb[154].mxu1 }
 0xc9a   : > { %v6519_v44 = vadd.f32 %v6503_v28, %v6465_v25  ;;  %v6469_v10 = vadd.f32 %v6468_v24, %v6366_v45  ;;  %v6470_v19 = vpop.f32.mrb[155].mxu1  ;;  %v6518_v25 = vld [vmem:[%s7612_s17 + $0x78] sm:$0xff]  ;;  %s7440_s17 = scalar_lea.vmem %s12074_s20, 2048 }
 0xc9b   : > { %v6520_v46 = vadd.f32 %v6504_v40, %v6467_v0  ;;  %v6471_v22 = vadd.f32 %v6470_v19, %v6366_v45  ;;  %p7441_p11 = scmp.ne.s32.totalorder %s12074_s20, %s7440_s17  ;;  %p7448_p1 = scmp.lt.s32.totalorder %s7446_s9, %s7440_s17 }
 0xc9c   : > { %6535 = vst [vmem:[%s12040_s18] sm:$0xff] %v6519_v44  ;;  %v6521_v9 = vadd.f32 %v6505_v49, %v6469_v10 }
 0xc9d   : > { %6536 = vst [vmem:[%s12040_s18 + $0x8] sm:$0xff] %v6520_v46  ;;  %v6522_v35 = vadd.f32 %v6506_v3, %v6471_v22  ;;  %p7442_p12 = pnand %p7441_p11, %p7591_p5  ;;  %p7449_p2 = por %p7448_p1, %p7447_p0 }
 0xc9e   : > { %6537 = vst [vmem:[%s12040_s18 + $0x10] sm:$0xff] %v6521_v9 }
 0xc9f   : > { %6538 = vst [vmem:[%s12040_s18 + $0x18] sm:$0xff] %v6522_v35  ;;  %v6474_v52 = vpop.f32.mrb[156].mxu1  ;;  %p7443_p13 = pneg %p7442_p12 }
 0xca0   : > { %v6475_v14 = vadd.f32 %v6474_v52, %v6371_v43  ;;  %v6476_v37 = vpop.f32.mrb[157].mxu1 }
 0xca1   : > { %v6477_v63 = vadd.f32 %v6476_v37, %v6371_v43  ;;  %v6478_v33 = vpop.f32.mrb[158].mxu1  ;;  %p7450_p3 = pnand %p7449_p2, %p7443_p13 }
 0xca2   : > { %v6523_v30 = vadd.f32 %v6507_v41, %v6475_v14  ;;  %v6479_v48 = vadd.f32 %v6478_v33, %v6376_v36  ;;  %v6480_v29 = vpop.f32.mrb[159].mxu1 }
 0xca3   : > { %v6524_v62 = vadd.f32 %v6508_v55, %v6477_v63  ;;  %v6481_v8 = vadd.f32 %v6480_v29, %v6376_v36 }
 0xca4   : > { %6539 = vst [vmem:[%s12040_s18 + $0x20] sm:$0xff] %v6523_v30  ;;  %v6525_v23 = vadd.f32 %v6509_v6, %v6479_v48 }
 0xca5   : > { %6540 = vst [vmem:[%s12040_s18 + $0x28] sm:$0xff] %v6524_v62  ;;  %v6526_v39 = vadd.f32 %v6510_v42, %v6481_v8 }
 0xca6   : > { %6541 = vst [vmem:[%s12040_s18 + $0x30] sm:$0xff] %v6525_v23 }
 0xca7   : > { %6542 = vst [vmem:[%s12040_s18 + $0x38] sm:$0xff] %v6526_v39  ;;  %v6484_v11 = vpop.f32.mrb[160].mxu1 }
 0xca8   : > { %v6485_v17 = vadd.f32 %v6484_v11, %v6381_v56  ;;  %v6486_v20 = vpop.f32.mrb[161].mxu1 }
 0xca9   : > { %v6487_v21 = vadd.f32 %v6486_v20, %v6381_v56  ;;  %v6488_v7 = vpop.f32.mrb[162].mxu1 }
 0xcaa   : > { %v6527_v60 = vadd.f32 %v6511_v13, %v6485_v17  ;;  %v6489_v38 = vadd.f32 %v6488_v7, %v6386_v2  ;;  %v6490_v18 = vpop.f32.mrb[163].mxu1 }
 0xcab   : > { %v6528_v57 = vadd.f32 %v6512_v53, %v6487_v21  ;;  %v6491_v59 = vadd.f32 %v6490_v18, %v6386_v2 }
 0xcac   : > { %6543 = vst [vmem:[%s12040_s18 + $0x40] sm:$0xff] %v6527_v60  ;;  %v6529_v47 = vadd.f32 %v6513_v26, %v6489_v38 }
 0xcad   : > { %6544 = vst [vmem:[%s12040_s18 + $0x48] sm:$0xff] %v6528_v57  ;;  %v6530_v12 = vadd.f32 %v6514_v51, %v6491_v59 }
 0xcae   : > { %6545 = vst [vmem:[%s12040_s18 + $0x50] sm:$0xff] %v6529_v47 }
 0xcaf   : > { %6546 = vst [vmem:[%s12040_s18 + $0x58] sm:$0xff] %v6530_v12  ;;  %v6494_v1 = vpop.f32.mrb[164].mxu1 }
 0xcb0   : > { %v6495_v4 = vadd.f32 %v6494_v1, %v6391_v54  ;;  %v6496_v27 = vpop.f32.mrb[165].mxu1 }
 0xcb1   : > { %v6497_v58 = vadd.f32 %v6496_v27, %v6391_v54  ;;  %v6498_v5 = vpop.f32.mrb[166].mxu1 }
 0xcb2   : > { %v6531_v32 = vadd.f32 %v6515_v34, %v6495_v4  ;;  %v6499_v50 = vadd.f32 %v6498_v5, %v6396_v61  ;;  %v6500_v28 = vpop.f32.mrb[167].mxu1 }
 0xcb3   : > { %v6532_v16 = vadd.f32 %v6516_v15, %v6497_v58  ;;  %v6501_v40 = vadd.f32 %v6500_v28, %v6396_v61 }
 0xcb4   : > { %6547 = vst [vmem:[%s12040_s18 + $0x60] sm:$0xff] %v6531_v32  ;;  %v6533_v45 = vadd.f32 %v6517_v31, %v6499_v50 }
 0xcb5   : > { %6548 = vst [vmem:[%s12040_s18 + $0x68] sm:$0xff] %v6532_v16  ;;  %v6534_v0 = vadd.f32 %v6518_v25, %v6501_v40 }
 0xcb6   : > { %6549 = vst [vmem:[%s12040_s18 + $0x70] sm:$0xff] %v6533_v45 }
 0xcb7   : > { %6550 = vst [vmem:[%s12040_s18 + $0x78] sm:$0xff] %v6534_v0 }
 0xcb8   : > { %7453 = shalt.err (!%p7450_p3)
}
 0xcb9   : > { %s7454_s13 = scalar_lea.hbm %s12072_s23, 2048  ;;  %s7458_s16 = scalar_lea.hbm %s12129_s7, 4096 }
 0xcba   : > { %p7455_p4 = scmp.ne.s32.totalorder %s12072_s23, %s7454_s13  ;;  %p7459_p9 = scmp.lt.u32.totalorder %s12072_s23, %s12129_s7 }
 0xcbb   : > { %p7460_p10 = scmp.lt.u32.totalorder %s7458_s16, %s7454_s13  ;;  %p7462_p12 = scmp.lt.u32.totalorder %s7454_s13, %s12072_s23 }
 0xcbc   : > { %p7456_p7 = pnand %p7455_p4, %p7591_p5 }
 0xcbd   : > { %p7461_p11 = por %p7460_p10, %p7459_p9 }
 0xcbe   : > { %p7457_p8 = pneg %p7456_p7 }
 0xcbf   : > { %p7463_p13 = por %p7462_p12, %p7461_p11 }
 0xcc1   : > { %p7464_p0 = pnand %p7463_p13, %p7457_p8 }
 0xcc3   : > { %7467 = shalt.err (!%p7464_p0)
}
 0xcc4   : > { %s7511_s21 = smov 256   ;;  %s7512_s22 = smov 16  }
 0xcc5   : > { %6759 = dma.vmem_to_hbm [thread:$0]  (%p7591_p5), %s12074_s20, 2048, %s12072_s23, %s12081_s28, %s7511_s21, %s7511_s21, %s7512_s22  }
 0xcc6 PF: > { %p6765_p1 = scmp.ge.s32.totalorder %s7502_s27, 2  ;;  %s6580_s17 = sand.u32 1, %s7490_s24  }
 0xcc7   : > { %s6581_s29 = scalar_lea.sflag [#allocation5], %s6580_s17 }
 0xcc8   : > { %p6762_p2 = pnand %p6765_p1, %p7595_p6 }
 0xcca   : > { %7485 = dma.done.wait (!%p6762_p2), %s6581_s29, 2048  }
 0xccb   : > { %7487 = vsyncadd (!%p6762_p2), %s6581_s29, 4294965248  ;;  %p17_p3 = scmp.ge.s32.totalorder %s7578_s30, 4   ;;  %s13113_s24 = smov %s7494_s25 }
 0xccc   : > { %s13114_s25 = smov %s7498_s26  ;;  %s13115_s26 = smov %s7589_s10 }
 0xccd   : > { %s13116_s27 = smov %s7578_s30  ;;  %19 = sbr.rel (!%p17_p3) target bundleno = 3 (0x3), region = 99 }
 0xcd4   :  { %6586 = vsyncpa [#allocation5], 1 }
 0xcd5   :  { %6588 = vsyncpa [#allocation5 + $0x1], 1 }

</bundles_post_ra>
